<compile_context>
chip_gen: v5e
topology: v5e:2x2
jax: 0.10.0
libtpu: 0.0.40
codegen_flags: <defaults>
</compile_context>

<pallas_src>
import jax
import jax.numpy as jnp
from jax import lax
from jax.experimental import pallas as pl
from jax.experimental.pallas import tpu as pltpu

C = 64                      # uniform channel width (== Bottleneck planes * expansion)
EXPANSION = 4               # Bottleneck.expansion
WIDTH = C // EXPANSION      # bottleneck width
BN_EPS = 1e-5
NUM_BLOCKS = (2, 2, 2, 2)   # blocks per layer, in call order layer4,layer3,layer2,layer1
NB_TOTAL = sum(NUM_BLOCKS)  # 8 residual blocks total

TILE_B = 256                # batch tile (multiple of 8; >= MXU dim on v6e/v7x)
OUT_LANES = 128             # lane-dense output width (column 0 is the real result)


# --------------------------------------------------------------------------- #
# Fused Pallas kernel: all residual blocks + head, one batch tile per grid step
# --------------------------------------------------------------------------- #
def fused_resnet_kernel(x_ref, w1_ref, b1_ref, w2_ref, b2_ref, w3_ref, b3_ref,
                        wh_ref, bh_ref, o_ref):
    """TransResNet.forward hot path on one (TILE_B, C) activation tile.

    Per block (BN scale pre-folded into the bf16 weights):
        conv1 (1x1x1)                    -> +bias -> relu
        conv2 (3x3x3 centre tap)         -> +bias -> relu
        conv3 (1x1x1)                    -> +bias
        residual add (downsample=None)   -> relu
    Head: relu -> bn1 (folded) -> conv1(64->1, 7x7x7 centre tap), computed as an MXU
    dot against a (C, 128) zero-padded weight so the output store is lane-dense.
    """
    h0 = x_ref[...]                                            # (TILE_B, C) f32

    def block(i, h):
        t = jnp.dot(h.astype(jnp.bfloat16), w1_ref[i],
                    preferred_element_type=jnp.float32)
        t = jnp.maximum(t + b1_ref[i], 0.0)
        t = jnp.dot(t.astype(jnp.bfloat16), w2_ref[i],
                    preferred_element_type=jnp.float32)
        t = jnp.maximum(t + b2_ref[i], 0.0)
        t = jnp.dot(t.astype(jnp.bfloat16), w3_ref[i],
                    preferred_element_type=jnp.float32)
        t = t + b3_ref[i]
        return jnp.maximum(t + h, 0.0)                         # residual carry in f32

    h = lax.fori_loop(0, NB_TOTAL, block, h0, unroll=True)

    # Head: self.relu -> self.bn1 (folded) -> self.conv1 (C -> 1) as a lane-dense dot.
    hr = jnp.maximum(h, 0.0)
    o_ref[...] = jnp.dot(hr.astype(jnp.bfloat16), wh_ref[...],
                         preferred_element_type=jnp.float32) + bh_ref[...]


def trans_resnet_forward(x, folded, *, tile_b=TILE_B):
    """Mirrors TransResNet.forward (eval mode), batch-tiled over a parallel grid."""
    h = x.reshape(-1, C).astype(jnp.float32)      # x.view(-1, input_layers, 1,1,1)
    # self.avgpool -> identity (spatial already (1,1,1)); drop1..drop5 -> identity (eval)
    B = h.shape[0]
    n_tiles = pl.cdiv(B, tile_b)
    B_pad = n_tiles * tile_b
    if B_pad != B:                                # pad tail tile with zero rows
        h = jnp.pad(h, ((0, B_pad - B), (0, 0)))

    const3 = lambda i: (0, 0, 0)                  # weights stay VMEM-resident
    const2 = lambda i: (0, 0)
    in_specs = [
        pl.BlockSpec((tile_b, C), lambda i: (i, 0)),
        pl.BlockSpec(folded["W1"].shape, const3),
        pl.BlockSpec(folded["B1"].shape, const3),
        pl.BlockSpec(folded["W2"].shape, const3),
        pl.BlockSpec(folded["B2"].shape, const3),
        pl.BlockSpec(folded["W3"].shape, const3),
        pl.BlockSpec(folded["B3"].shape, const3),
        pl.BlockSpec(folded["WH"].shape, const2),
        pl.BlockSpec(folded["BH"].shape, const2),
    ]
    out = pl.pallas_call(
        fused_resnet_kernel,
        out_shape=jax.ShapeDtypeStruct((B_pad, OUT_LANES), jnp.float32),
        grid=(n_tiles,),
        in_specs=in_specs,
        out_specs=pl.BlockSpec((tile_b, OUT_LANES), lambda i: (i, 0)),
        compiler_params=pltpu.CompilerParams(dimension_semantics=("parallel",)),
    )(h, folded["W1"], folded["B1"], folded["W2"], folded["B2"],
      folded["W3"], folded["B3"], folded["WH"], folded["BH"])
    # keep column 0 (real head output), drop batch padding, restore NCDHW
    return out[:B, :1].reshape(-1, 1, 1, 1, 1)


# --------------------------------------------------------------------------- #
# deterministic parameter construction + offline BN fold
# --------------------------------------------------------------------------- #
def _bn_fold(c):
    gamma = jnp.ones((1, c), jnp.float32)
    beta = jnp.zeros((1, c), jnp.float32)
    rmean = jnp.zeros((1, c), jnp.float32)
    rvar = jnp.ones((1, c), jnp.float32)
    scale = gamma / jnp.sqrt(rvar + BN_EPS)
    bias = beta - rmean * scale
    return scale, bias


def make_params(key):
    """Raw per-block weights + BN params (PyTorch eval-mode defaults)."""
    blocks = []
    for _ in range(NB_TOTAL):
        key, k1, k2, k3 = jax.random.split(key, 4)
        # conv1: Conv3d(C, WIDTH, k=1)     -> weight stored transposed (C, WIDTH)
        w1 = jax.random.normal(k1, (C, WIDTH), jnp.float32) * 0.05
        # conv2: Conv3d(WIDTH, WIDTH, k=3) -> only centre tap contributes at 1x1x1
        w2 = jax.random.normal(k2, (WIDTH, WIDTH), jnp.float32) * 0.05
        # conv3: Conv3d(WIDTH, C, k=1)
        w3 = jax.random.normal(k3, (WIDTH, C), jnp.float32) * 0.05
        s1, b1 = _bn_fold(WIDTH)
        s2, b2 = _bn_fold(WIDTH)
        s3, b3 = _bn_fold(C)
        blocks.append(dict(w1=w1, s1=s1, b1=b1, w2=w2, s2=s2, b2=b2,
                           w3=w3, s3=s3, b3=b3))
    key, kh = jax.random.split(key)
    # head conv1: Conv3d(64, 1, k=7, stride=2, padding=3) -> centre tap [:, :, 3,3,3]
    wh = jax.random.normal(kh, (C, 1), jnp.float32) * 0.05
    sh, bh = _bn_fold(C)
    return dict(blocks=blocks, head=dict(w=wh, s=sh, b=bh))


def fold_params(raw):
    """Fold BN scales into the conv weights, cast MXU weights to bf16, stack & pad."""
    blocks = raw["blocks"]
    W1 = jnp.stack([b["w1"] * b["s1"] for b in blocks]).astype(jnp.bfloat16)  # (NB,C,W)
    B1 = jnp.stack([b["b1"] for b in blocks])                                 # (NB,1,W)
    W2 = jnp.stack([b["w2"] * b["s2"] for b in blocks]).astype(jnp.bfloat16)  # (NB,W,W)
    B2 = jnp.stack([b["b2"] for b in blocks])                                 # (NB,1,W)
    W3 = jnp.stack([b["w3"] * b["s3"] for b in blocks]).astype(jnp.bfloat16)  # (NB,W,C)
    B3 = jnp.stack([b["b3"] for b in blocks])                                 # (NB,1,C)
    hd = raw["head"]
    # (relu(x) * s + b) @ w  ==  relu(x) @ (s.T * w) + (b @ w)
    wh_eff = hd["w"] * hd["s"].T                                              # (C, 1)
    bh_eff = hd["b"] @ hd["w"]                                                # (1, 1)
    # zero-pad to 128 lanes so the kernel's output store is lane-dense (col 0 is real)
    WH = jnp.pad(wh_eff, ((0, 0), (0, OUT_LANES - 1))).astype(jnp.bfloat16)   # (C, 128)
    BH = jnp.pad(bh_eff, ((0, 0), (0, OUT_LANES - 1)))                        # (1, 128)
    return dict(W1=W1, B1=B1, W2=W2, B2=B2, W3=W3, B3=B3, WH=WH, BH=BH)


# --------------------------------------------------------------------------- #
# pure-JAX f32 reference (raw, unfolded params; PyTorch eval-mode op order)
# --------------------------------------------------------------------------- #
def _reference_forward(x, raw):
    h = x.reshape(-1, C).astype(jnp.float32)
    for b in raw["blocks"]:
        t = jnp.maximum((h @ b["w1"]) * b["s1"] + b["b1"], 0.0)
        t = jnp.maximum((t @ b["w2"]) * b["s2"] + b["b2"], 0.0)
        t = (t @ b["w3"]) * b["s3"] + b["b3"]
        h = jnp.maximum(t + h, 0.0)
    hd = raw["head"]
    h = jnp.maximum(h, 0.0) * hd["s"] + hd["b"]
    return (h @ hd["w"]).reshape(-1, 1, 1, 1, 1)


if __name__ == "__main__":
    key = jax.random.PRNGKey(0)
    kx, kp, kx2 = jax.random.split(key, 3)

    raw_params = make_params(kp)
    folded_params = fold_params(raw_params)

    # small input consistent with forward(): x.view(-1, input_layers, 1, 1, 1), C=64
    B = 2
    x = jax.random.normal(kx, (B, C), jnp.float32)
    out = jax.block_until_ready(trans_resnet_forward(x, folded_params))
    ref = _reference_forward(x, raw_params)
    assert out.shape == (B, 1, 1, 1, 1), out.shape
    assert jnp.allclose(out, ref, atol=2e-2, rtol=2e-2), "mismatch vs reference (B=2)"

    # larger batch: exercises the multi-step parallel grid + tail-tile zero padding
    B2 = 600
    x2 = jax.random.normal(kx2, (B2, C), jnp.float32)
    out2 = jax.block_until_ready(trans_resnet_forward(x2, folded_params))
    ref2 = _reference_forward(x2, raw_params)
    assert out2.shape == (B2, 1, 1, 1, 1), out2.shape
    assert jnp.allclose(out2, ref2, atol=2e-2, rtol=2e-2), "mismatch vs reference (B=600)"

    print("KERNEL_OK")
</pallas_src>

<mosaic_0001>
module attributes {stable_mosaic.version = 11 : i64} {
  func.func @fused_resnet_kernel(%arg0: i32, %arg1: memref<256x64xf32, #tpu.memory_space<vmem>>, %arg2: memref<8x64x16xbf16, #tpu.memory_space<vmem>>, %arg3: memref<8x1x16xf32, #tpu.memory_space<vmem>>, %arg4: memref<8x16x16xbf16, #tpu.memory_space<vmem>>, %arg5: memref<8x1x16xf32, #tpu.memory_space<vmem>>, %arg6: memref<8x16x64xbf16, #tpu.memory_space<vmem>>, %arg7: memref<8x1x64xf32, #tpu.memory_space<vmem>>, %arg8: memref<64x128xbf16, #tpu.memory_space<vmem>>, %arg9: memref<1x128xf32, #tpu.memory_space<vmem>>, %arg10: memref<256x128xf32, #tpu.memory_space<vmem>>) attributes {dimension_semantics = [#tpu.dimension_semantics<parallel>], iteration_bounds = array<i64: 1>, scalar_prefetch = 0 : i64, scratch_operands = 0 : i64, tpu.core_type = #tpu.core_type<tc>, window_params = [{transform_indices = @transform_0, window_bounds = array<i64: 256, 64>}, {pipeline_mode = #tpu.pipeline_mode<synchronous>, transform_indices = @transform_1, window_bounds = array<i64: 8, 64, 16>}, {pipeline_mode = #tpu.pipeline_mode<synchronous>, transform_indices = @transform_2, window_bounds = array<i64: 8, 1, 16>}, {pipeline_mode = #tpu.pipeline_mode<synchronous>, transform_indices = @transform_3, window_bounds = array<i64: 8, 16, 16>}, {pipeline_mode = #tpu.pipeline_mode<synchronous>, transform_indices = @transform_4, window_bounds = array<i64: 8, 1, 16>}, {pipeline_mode = #tpu.pipeline_mode<synchronous>, transform_indices = @transform_5, window_bounds = array<i64: 8, 16, 64>}, {pipeline_mode = #tpu.pipeline_mode<synchronous>, transform_indices = @transform_6, window_bounds = array<i64: 8, 1, 64>}, {pipeline_mode = #tpu.pipeline_mode<synchronous>, transform_indices = @transform_7, window_bounds = array<i64: 64, 128>}, {pipeline_mode = #tpu.pipeline_mode<synchronous>, transform_indices = @transform_8, window_bounds = array<i64: 1, 128>}, {transform_indices = @transform_9, window_bounds = array<i64: 256, 128>}]} {
    %c0 = arith.constant 0 : index
    %c0_0 = arith.constant 0 : index
    %0 = vector.load %arg1[%c0, %c0_0] : memref<256x64xf32, #tpu.memory_space<vmem>>, vector<256x64xf32>
    %c0_i32 = arith.constant 0 : i32
    %1 = arith.truncf %0 : vector<256x64xf32> to vector<256x64xbf16>
    %2 = arith.index_cast %c0_i32 : i32 to index
    %c0_1 = arith.constant 0 : index
    %c0_2 = arith.constant 0 : index
    %3 = vector.load %arg2[%2, %c0_1, %c0_2] : memref<8x64x16xbf16, #tpu.memory_space<vmem>>, vector<1x64x16xbf16>
    %4 = vector.shape_cast %3 : vector<1x64x16xbf16> to vector<64x16xbf16>
    %cst = arith.constant dense<0.000000e+00> : vector<256x16xf32>
    %5 = tpu.matmul %1, %4, %cst {dimension_numbers = #tpu.dot_dimension_numbers<[1], [0], [0], [1], [0, 0, 1, 1], [], []>} : vector<256x64xbf16>, vector<64x16xbf16>, vector<256x16xf32> -> vector<256x16xf32>
    %6 = arith.index_cast %c0_i32 : i32 to index
    %c0_3 = arith.constant 0 : index
    %c0_4 = arith.constant 0 : index
    %7 = vector.load %arg3[%6, %c0_3, %c0_4] : memref<8x1x16xf32, #tpu.memory_space<vmem>>, vector<1x1x16xf32>
    %8 = vector.shape_cast %7 : vector<1x1x16xf32> to vector<1x16xf32>
    %9 = vector.broadcast %8 : vector<1x16xf32> to vector<256x16xf32>
    %10 = arith.addf %5, %9 : vector<256x16xf32>
    %cst_5 = arith.constant 0.000000e+00 : f32
    %11 = vector.broadcast %cst_5 : f32 to vector<256x16xf32>
    %12 = arith.maximumf %10, %11 : vector<256x16xf32>
    %13 = arith.truncf %12 : vector<256x16xf32> to vector<256x16xbf16>
    %14 = arith.index_cast %c0_i32 : i32 to index
    %c0_6 = arith.constant 0 : index
    %c0_7 = arith.constant 0 : index
    %15 = vector.load %arg4[%14, %c0_6, %c0_7] : memref<8x16x16xbf16, #tpu.memory_space<vmem>>, vector<1x16x16xbf16>
    %16 = vector.shape_cast %15 : vector<1x16x16xbf16> to vector<16x16xbf16>
    %cst_8 = arith.constant dense<0.000000e+00> : vector<256x16xf32>
    %17 = tpu.matmul %13, %16, %cst_8 {dimension_numbers = #tpu.dot_dimension_numbers<[1], [0], [0], [1], [0, 0, 1, 1], [], []>} : vector<256x16xbf16>, vector<16x16xbf16>, vector<256x16xf32> -> vector<256x16xf32>
    %18 = arith.index_cast %c0_i32 : i32 to index
    %c0_9 = arith.constant 0 : index
    %c0_10 = arith.constant 0 : index
    %19 = vector.load %arg5[%18, %c0_9, %c0_10] : memref<8x1x16xf32, #tpu.memory_space<vmem>>, vector<1x1x16xf32>
    %20 = vector.shape_cast %19 : vector<1x1x16xf32> to vector<1x16xf32>
    %21 = vector.broadcast %20 : vector<1x16xf32> to vector<256x16xf32>
    %22 = arith.addf %17, %21 : vector<256x16xf32>
    %cst_11 = arith.constant 0.000000e+00 : f32
    %23 = vector.broadcast %cst_11 : f32 to vector<256x16xf32>
    %24 = arith.maximumf %22, %23 : vector<256x16xf32>
    %25 = arith.truncf %24 : vector<256x16xf32> to vector<256x16xbf16>
    %26 = arith.index_cast %c0_i32 : i32 to index
    %c0_12 = arith.constant 0 : index
    %c0_13 = arith.constant 0 : index
    %27 = vector.load %arg6[%26, %c0_12, %c0_13] : memref<8x16x64xbf16, #tpu.memory_space<vmem>>, vector<1x16x64xbf16>
    %28 = vector.shape_cast %27 : vector<1x16x64xbf16> to vector<16x64xbf16>
    %cst_14 = arith.constant dense<0.000000e+00> : vector<256x64xf32>
    %29 = tpu.matmul %25, %28, %cst_14 {dimension_numbers = #tpu.dot_dimension_numbers<[1], [0], [0], [1], [0, 0, 1, 1], [], []>} : vector<256x16xbf16>, vector<16x64xbf16>, vector<256x64xf32> -> vector<256x64xf32>
    %30 = arith.index_cast %c0_i32 : i32 to index
    %c0_15 = arith.constant 0 : index
    %c0_16 = arith.constant 0 : index
    %31 = vector.load %arg7[%30, %c0_15, %c0_16] : memref<8x1x64xf32, #tpu.memory_space<vmem>>, vector<1x1x64xf32>
    %32 = vector.shape_cast %31 : vector<1x1x64xf32> to vector<1x64xf32>
    %33 = vector.broadcast %32 : vector<1x64xf32> to vector<256x64xf32>
    %34 = arith.addf %29, %33 : vector<256x64xf32>
    %35 = arith.addf %34, %0 : vector<256x64xf32>
    %cst_17 = arith.constant 0.000000e+00 : f32
    %36 = vector.broadcast %cst_17 : f32 to vector<256x64xf32>
    %37 = arith.maximumf %35, %36 : vector<256x64xf32>
    %c1_i32 = arith.constant 1 : i32
    %38 = arith.truncf %37 : vector<256x64xf32> to vector<256x64xbf16>
    %39 = arith.index_cast %c1_i32 : i32 to index
    %c0_18 = arith.constant 0 : index
    %c0_19 = arith.constant 0 : index
    %40 = vector.load %arg2[%39, %c0_18, %c0_19] : memref<8x64x16xbf16, #tpu.memory_space<vmem>>, vector<1x64x16xbf16>
    %41 = vector.shape_cast %40 : vector<1x64x16xbf16> to vector<64x16xbf16>
    %cst_20 = arith.constant dense<0.000000e+00> : vector<256x16xf32>
    %42 = tpu.matmul %38, %41, %cst_20 {dimension_numbers = #tpu.dot_dimension_numbers<[1], [0], [0], [1], [0, 0, 1, 1], [], []>} : vector<256x64xbf16>, vector<64x16xbf16>, vector<256x16xf32> -> vector<256x16xf32>
    %43 = arith.index_cast %c1_i32 : i32 to index
    %c0_21 = arith.constant 0 : index
    %c0_22 = arith.constant 0 : index
    %44 = vector.load %arg3[%43, %c0_21, %c0_22] : memref<8x1x16xf32, #tpu.memory_space<vmem>>, vector<1x1x16xf32>
    %45 = vector.shape_cast %44 : vector<1x1x16xf32> to vector<1x16xf32>
    %46 = vector.broadcast %45 : vector<1x16xf32> to vector<256x16xf32>
    %47 = arith.addf %42, %46 : vector<256x16xf32>
    %cst_23 = arith.constant 0.000000e+00 : f32
    %48 = vector.broadcast %cst_23 : f32 to vector<256x16xf32>
    %49 = arith.maximumf %47, %48 : vector<256x16xf32>
    %50 = arith.truncf %49 : vector<256x16xf32> to vector<256x16xbf16>
    %51 = arith.index_cast %c1_i32 : i32 to index
    %c0_24 = arith.constant 0 : index
    %c0_25 = arith.constant 0 : index
    %52 = vector.load %arg4[%51, %c0_24, %c0_25] : memref<8x16x16xbf16, #tpu.memory_space<vmem>>, vector<1x16x16xbf16>
    %53 = vector.shape_cast %52 : vector<1x16x16xbf16> to vector<16x16xbf16>
    %cst_26 = arith.constant dense<0.000000e+00> : vector<256x16xf32>
    %54 = tpu.matmul %50, %53, %cst_26 {dimension_numbers = #tpu.dot_dimension_numbers<[1], [0], [0], [1], [0, 0, 1, 1], [], []>} : vector<256x16xbf16>, vector<16x16xbf16>, vector<256x16xf32> -> vector<256x16xf32>
    %55 = arith.index_cast %c1_i32 : i32 to index
    %c0_27 = arith.constant 0 : index
    %c0_28 = arith.constant 0 : index
    %56 = vector.load %arg5[%55, %c0_27, %c0_28] : memref<8x1x16xf32, #tpu.memory_space<vmem>>, vector<1x1x16xf32>
    %57 = vector.shape_cast %56 : vector<1x1x16xf32> to vector<1x16xf32>
    %58 = vector.broadcast %57 : vector<1x16xf32> to vector<256x16xf32>
    %59 = arith.addf %54, %58 : vector<256x16xf32>
    %cst_29 = arith.constant 0.000000e+00 : f32
    %60 = vector.broadcast %cst_29 : f32 to vector<256x16xf32>
    %61 = arith.maximumf %59, %60 : vector<256x16xf32>
    %62 = arith.truncf %61 : vector<256x16xf32> to vector<256x16xbf16>
    %63 = arith.index_cast %c1_i32 : i32 to index
    %c0_30 = arith.constant 0 : index
    %c0_31 = arith.constant 0 : index
    %64 = vector.load %arg6[%63, %c0_30, %c0_31] : memref<8x16x64xbf16, #tpu.memory_space<vmem>>, vector<1x16x64xbf16>
    %65 = vector.shape_cast %64 : vector<1x16x64xbf16> to vector<16x64xbf16>
    %cst_32 = arith.constant dense<0.000000e+00> : vector<256x64xf32>
    %66 = tpu.matmul %62, %65, %cst_32 {dimension_numbers = #tpu.dot_dimension_numbers<[1], [0], [0], [1], [0, 0, 1, 1], [], []>} : vector<256x16xbf16>, vector<16x64xbf16>, vector<256x64xf32> -> vector<256x64xf32>
    %67 = arith.index_cast %c1_i32 : i32 to index
    %c0_33 = arith.constant 0 : index
    %c0_34 = arith.constant 0 : index
    %68 = vector.load %arg7[%67, %c0_33, %c0_34] : memref<8x1x64xf32, #tpu.memory_space<vmem>>, vector<1x1x64xf32>
    %69 = vector.shape_cast %68 : vector<1x1x64xf32> to vector<1x64xf32>
    %70 = vector.broadcast %69 : vector<1x64xf32> to vector<256x64xf32>
    %71 = arith.addf %66, %70 : vector<256x64xf32>
    %72 = arith.addf %71, %37 : vector<256x64xf32>
    %cst_35 = arith.constant 0.000000e+00 : f32
    %73 = vector.broadcast %cst_35 : f32 to vector<256x64xf32>
    %74 = arith.maximumf %72, %73 : vector<256x64xf32>
    %c2_i32 = arith.constant 2 : i32
    %75 = arith.truncf %74 : vector<256x64xf32> to vector<256x64xbf16>
    %76 = arith.index_cast %c2_i32 : i32 to index
    %c0_36 = arith.constant 0 : index
    %c0_37 = arith.constant 0 : index
    %77 = vector.load %arg2[%76, %c0_36, %c0_37] : memref<8x64x16xbf16, #tpu.memory_space<vmem>>, vector<1x64x16xbf16>
    %78 = vector.shape_cast %77 : vector<1x64x16xbf16> to vector<64x16xbf16>
    %cst_38 = arith.constant dense<0.000000e+00> : vector<256x16xf32>
    %79 = tpu.matmul %75, %78, %cst_38 {dimension_numbers = #tpu.dot_dimension_numbers<[1], [0], [0], [1], [0, 0, 1, 1], [], []>} : vector<256x64xbf16>, vector<64x16xbf16>, vector<256x16xf32> -> vector<256x16xf32>
    %80 = arith.index_cast %c2_i32 : i32 to index
    %c0_39 = arith.constant 0 : index
    %c0_40 = arith.constant 0 : index
    %81 = vector.load %arg3[%80, %c0_39, %c0_40] : memref<8x1x16xf32, #tpu.memory_space<vmem>>, vector<1x1x16xf32>
    %82 = vector.shape_cast %81 : vector<1x1x16xf32> to vector<1x16xf32>
    %83 = vector.broadcast %82 : vector<1x16xf32> to vector<256x16xf32>
    %84 = arith.addf %79, %83 : vector<256x16xf32>
    %cst_41 = arith.constant 0.000000e+00 : f32
    %85 = vector.broadcast %cst_41 : f32 to vector<256x16xf32>
    %86 = arith.maximumf %84, %85 : vector<256x16xf32>
    %87 = arith.truncf %86 : vector<256x16xf32> to vector<256x16xbf16>
    %88 = arith.index_cast %c2_i32 : i32 to index
    %c0_42 = arith.constant 0 : index
    %c0_43 = arith.constant 0 : index
    %89 = vector.load %arg4[%88, %c0_42, %c0_43] : memref<8x16x16xbf16, #tpu.memory_space<vmem>>, vector<1x16x16xbf16>
    %90 = vector.shape_cast %89 : vector<1x16x16xbf16> to vector<16x16xbf16>
    %cst_44 = arith.constant dense<0.000000e+00> : vector<256x16xf32>
    %91 = tpu.matmul %87, %90, %cst_44 {dimension_numbers = #tpu.dot_dimension_numbers<[1], [0], [0], [1], [0, 0, 1, 1], [], []>} : vector<256x16xbf16>, vector<16x16xbf16>, vector<256x16xf32> -> vector<256x16xf32>
    %92 = arith.index_cast %c2_i32 : i32 to index
    %c0_45 = arith.constant 0 : index
    %c0_46 = arith.constant 0 : index
    %93 = vector.load %arg5[%92, %c0_45, %c0_46] : memref<8x1x16xf32, #tpu.memory_space<vmem>>, vector<1x1x16xf32>
    %94 = vector.shape_cast %93 : vector<1x1x16xf32> to vector<1x16xf32>
    %95 = vector.broadcast %94 : vector<1x16xf32> to vector<256x16xf32>
    %96 = arith.addf %91, %95 : vector<256x16xf32>
    %cst_47 = arith.constant 0.000000e+00 : f32
    %97 = vector.broadcast %cst_47 : f32 to vector<256x16xf32>
    %98 = arith.maximumf %96, %97 : vector<256x16xf32>
    %99 = arith.truncf %98 : vector<256x16xf32> to vector<256x16xbf16>
    %100 = arith.index_cast %c2_i32 : i32 to index
    %c0_48 = arith.constant 0 : index
    %c0_49 = arith.constant 0 : index
    %101 = vector.load %arg6[%100, %c0_48, %c0_49] : memref<8x16x64xbf16, #tpu.memory_space<vmem>>, vector<1x16x64xbf16>
    %102 = vector.shape_cast %101 : vector<1x16x64xbf16> to vector<16x64xbf16>
    %cst_50 = arith.constant dense<0.000000e+00> : vector<256x64xf32>
    %103 = tpu.matmul %99, %102, %cst_50 {dimension_numbers = #tpu.dot_dimension_numbers<[1], [0], [0], [1], [0, 0, 1, 1], [], []>} : vector<256x16xbf16>, vector<16x64xbf16>, vector<256x64xf32> -> vector<256x64xf32>
    %104 = arith.index_cast %c2_i32 : i32 to index
    %c0_51 = arith.constant 0 : index
    %c0_52 = arith.constant 0 : index
    %105 = vector.load %arg7[%104, %c0_51, %c0_52] : memref<8x1x64xf32, #tpu.memory_space<vmem>>, vector<1x1x64xf32>
    %106 = vector.shape_cast %105 : vector<1x1x64xf32> to vector<1x64xf32>
    %107 = vector.broadcast %106 : vector<1x64xf32> to vector<256x64xf32>
    %108 = arith.addf %103, %107 : vector<256x64xf32>
    %109 = arith.addf %108, %74 : vector<256x64xf32>
    %cst_53 = arith.constant 0.000000e+00 : f32
    %110 = vector.broadcast %cst_53 : f32 to vector<256x64xf32>
    %111 = arith.maximumf %109, %110 : vector<256x64xf32>
    %c3_i32 = arith.constant 3 : i32
    %112 = arith.truncf %111 : vector<256x64xf32> to vector<256x64xbf16>
    %113 = arith.index_cast %c3_i32 : i32 to index
    %c0_54 = arith.constant 0 : index
    %c0_55 = arith.constant 0 : index
    %114 = vector.load %arg2[%113, %c0_54, %c0_55] : memref<8x64x16xbf16, #tpu.memory_space<vmem>>, vector<1x64x16xbf16>
    %115 = vector.shape_cast %114 : vector<1x64x16xbf16> to vector<64x16xbf16>
    %cst_56 = arith.constant dense<0.000000e+00> : vector<256x16xf32>
    %116 = tpu.matmul %112, %115, %cst_56 {dimension_numbers = #tpu.dot_dimension_numbers<[1], [0], [0], [1], [0, 0, 1, 1], [], []>} : vector<256x64xbf16>, vector<64x16xbf16>, vector<256x16xf32> -> vector<256x16xf32>
    %117 = arith.index_cast %c3_i32 : i32 to index
    %c0_57 = arith.constant 0 : index
    %c0_58 = arith.constant 0 : index
    %118 = vector.load %arg3[%117, %c0_57, %c0_58] : memref<8x1x16xf32, #tpu.memory_space<vmem>>, vector<1x1x16xf32>
    %119 = vector.shape_cast %118 : vector<1x1x16xf32> to vector<1x16xf32>
    %120 = vector.broadcast %119 : vector<1x16xf32> to vector<256x16xf32>
    %121 = arith.addf %116, %120 : vector<256x16xf32>
    %cst_59 = arith.constant 0.000000e+00 : f32
    %122 = vector.broadcast %cst_59 : f32 to vector<256x16xf32>
    %123 = arith.maximumf %121, %122 : vector<256x16xf32>
    %124 = arith.truncf %123 : vector<256x16xf32> to vector<256x16xbf16>
    %125 = arith.index_cast %c3_i32 : i32 to index
    %c0_60 = arith.constant 0 : index
    %c0_61 = arith.constant 0 : index
    %126 = vector.load %arg4[%125, %c0_60, %c0_61] : memref<8x16x16xbf16, #tpu.memory_space<vmem>>, vector<1x16x16xbf16>
    %127 = vector.shape_cast %126 : vector<1x16x16xbf16> to vector<16x16xbf16>
    %cst_62 = arith.constant dense<0.000000e+00> : vector<256x16xf32>
    %128 = tpu.matmul %124, %127, %cst_62 {dimension_numbers = #tpu.dot_dimension_numbers<[1], [0], [0], [1], [0, 0, 1, 1], [], []>} : vector<256x16xbf16>, vector<16x16xbf16>, vector<256x16xf32> -> vector<256x16xf32>
    %129 = arith.index_cast %c3_i32 : i32 to index
    %c0_63 = arith.constant 0 : index
    %c0_64 = arith.constant 0 : index
    %130 = vector.load %arg5[%129, %c0_63, %c0_64] : memref<8x1x16xf32, #tpu.memory_space<vmem>>, vector<1x1x16xf32>
    %131 = vector.shape_cast %130 : vector<1x1x16xf32> to vector<1x16xf32>
    %132 = vector.broadcast %131 : vector<1x16xf32> to vector<256x16xf32>
    %133 = arith.addf %128, %132 : vector<256x16xf32>
    %cst_65 = arith.constant 0.000000e+00 : f32
    %134 = vector.broadcast %cst_65 : f32 to vector<256x16xf32>
    %135 = arith.maximumf %133, %134 : vector<256x16xf32>
    %136 = arith.truncf %135 : vector<256x16xf32> to vector<256x16xbf16>
    %137 = arith.index_cast %c3_i32 : i32 to index
    %c0_66 = arith.constant 0 : index
    %c0_67 = arith.constant 0 : index
    %138 = vector.load %arg6[%137, %c0_66, %c0_67] : memref<8x16x64xbf16, #tpu.memory_space<vmem>>, vector<1x16x64xbf16>
    %139 = vector.shape_cast %138 : vector<1x16x64xbf16> to vector<16x64xbf16>
    %cst_68 = arith.constant dense<0.000000e+00> : vector<256x64xf32>
    %140 = tpu.matmul %136, %139, %cst_68 {dimension_numbers = #tpu.dot_dimension_numbers<[1], [0], [0], [1], [0, 0, 1, 1], [], []>} : vector<256x16xbf16>, vector<16x64xbf16>, vector<256x64xf32> -> vector<256x64xf32>
    %141 = arith.index_cast %c3_i32 : i32 to index
    %c0_69 = arith.constant 0 : index
    %c0_70 = arith.constant 0 : index
    %142 = vector.load %arg7[%141, %c0_69, %c0_70] : memref<8x1x64xf32, #tpu.memory_space<vmem>>, vector<1x1x64xf32>
    %143 = vector.shape_cast %142 : vector<1x1x64xf32> to vector<1x64xf32>
    %144 = vector.broadcast %143 : vector<1x64xf32> to vector<256x64xf32>
    %145 = arith.addf %140, %144 : vector<256x64xf32>
    %146 = arith.addf %145, %111 : vector<256x64xf32>
    %cst_71 = arith.constant 0.000000e+00 : f32
    %147 = vector.broadcast %cst_71 : f32 to vector<256x64xf32>
    %148 = arith.maximumf %146, %147 : vector<256x64xf32>
    %c4_i32 = arith.constant 4 : i32
    %149 = arith.truncf %148 : vector<256x64xf32> to vector<256x64xbf16>
    %150 = arith.index_cast %c4_i32 : i32 to index
    %c0_72 = arith.constant 0 : index
    %c0_73 = arith.constant 0 : index
    %151 = vector.load %arg2[%150, %c0_72, %c0_73] : memref<8x64x16xbf16, #tpu.memory_space<vmem>>, vector<1x64x16xbf16>
    %152 = vector.shape_cast %151 : vector<1x64x16xbf16> to vector<64x16xbf16>
    %cst_74 = arith.constant dense<0.000000e+00> : vector<256x16xf32>
    %153 = tpu.matmul %149, %152, %cst_74 {dimension_numbers = #tpu.dot_dimension_numbers<[1], [0], [0], [1], [0, 0, 1, 1], [], []>} : vector<256x64xbf16>, vector<64x16xbf16>, vector<256x16xf32> -> vector<256x16xf32>
    %154 = arith.index_cast %c4_i32 : i32 to index
    %c0_75 = arith.constant 0 : index
    %c0_76 = arith.constant 0 : index
    %155 = vector.load %arg3[%154, %c0_75, %c0_76] : memref<8x1x16xf32, #tpu.memory_space<vmem>>, vector<1x1x16xf32>
    %156 = vector.shape_cast %155 : vector<1x1x16xf32> to vector<1x16xf32>
    %157 = vector.broadcast %156 : vector<1x16xf32> to vector<256x16xf32>
    %158 = arith.addf %153, %157 : vector<256x16xf32>
    %cst_77 = arith.constant 0.000000e+00 : f32
    %159 = vector.broadcast %cst_77 : f32 to vector<256x16xf32>
    %160 = arith.maximumf %158, %159 : vector<256x16xf32>
    %161 = arith.truncf %160 : vector<256x16xf32> to vector<256x16xbf16>
    %162 = arith.index_cast %c4_i32 : i32 to index
    %c0_78 = arith.constant 0 : index
    %c0_79 = arith.constant 0 : index
    %163 = vector.load %arg4[%162, %c0_78, %c0_79] : memref<8x16x16xbf16, #tpu.memory_space<vmem>>, vector<1x16x16xbf16>
    %164 = vector.shape_cast %163 : vector<1x16x16xbf16> to vector<16x16xbf16>
    %cst_80 = arith.constant dense<0.000000e+00> : vector<256x16xf32>
    %165 = tpu.matmul %161, %164, %cst_80 {dimension_numbers = #tpu.dot_dimension_numbers<[1], [0], [0], [1], [0, 0, 1, 1], [], []>} : vector<256x16xbf16>, vector<16x16xbf16>, vector<256x16xf32> -> vector<256x16xf32>
    %166 = arith.index_cast %c4_i32 : i32 to index
    %c0_81 = arith.constant 0 : index
    %c0_82 = arith.constant 0 : index
    %167 = vector.load %arg5[%166, %c0_81, %c0_82] : memref<8x1x16xf32, #tpu.memory_space<vmem>>, vector<1x1x16xf32>
    %168 = vector.shape_cast %167 : vector<1x1x16xf32> to vector<1x16xf32>
    %169 = vector.broadcast %168 : vector<1x16xf32> to vector<256x16xf32>
    %170 = arith.addf %165, %169 : vector<256x16xf32>
    %cst_83 = arith.constant 0.000000e+00 : f32
    %171 = vector.broadcast %cst_83 : f32 to vector<256x16xf32>
    %172 = arith.maximumf %170, %171 : vector<256x16xf32>
    %173 = arith.truncf %172 : vector<256x16xf32> to vector<256x16xbf16>
    %174 = arith.index_cast %c4_i32 : i32 to index
    %c0_84 = arith.constant 0 : index
    %c0_85 = arith.constant 0 : index
    %175 = vector.load %arg6[%174, %c0_84, %c0_85] : memref<8x16x64xbf16, #tpu.memory_space<vmem>>, vector<1x16x64xbf16>
    %176 = vector.shape_cast %175 : vector<1x16x64xbf16> to vector<16x64xbf16>
    %cst_86 = arith.constant dense<0.000000e+00> : vector<256x64xf32>
    %177 = tpu.matmul %173, %176, %cst_86 {dimension_numbers = #tpu.dot_dimension_numbers<[1], [0], [0], [1], [0, 0, 1, 1], [], []>} : vector<256x16xbf16>, vector<16x64xbf16>, vector<256x64xf32> -> vector<256x64xf32>
    %178 = arith.index_cast %c4_i32 : i32 to index
    %c0_87 = arith.constant 0 : index
    %c0_88 = arith.constant 0 : index
    %179 = vector.load %arg7[%178, %c0_87, %c0_88] : memref<8x1x64xf32, #tpu.memory_space<vmem>>, vector<1x1x64xf32>
    %180 = vector.shape_cast %179 : vector<1x1x64xf32> to vector<1x64xf32>
    %181 = vector.broadcast %180 : vector<1x64xf32> to vector<256x64xf32>
    %182 = arith.addf %177, %181 : vector<256x64xf32>
    %183 = arith.addf %182, %148 : vector<256x64xf32>
    %cst_89 = arith.constant 0.000000e+00 : f32
    %184 = vector.broadcast %cst_89 : f32 to vector<256x64xf32>
    %185 = arith.maximumf %183, %184 : vector<256x64xf32>
    %c5_i32 = arith.constant 5 : i32
    %186 = arith.truncf %185 : vector<256x64xf32> to vector<256x64xbf16>
    %187 = arith.index_cast %c5_i32 : i32 to index
    %c0_90 = arith.constant 0 : index
    %c0_91 = arith.constant 0 : index
    %188 = vector.load %arg2[%187, %c0_90, %c0_91] : memref<8x64x16xbf16, #tpu.memory_space<vmem>>, vector<1x64x16xbf16>
    %189 = vector.shape_cast %188 : vector<1x64x16xbf16> to vector<64x16xbf16>
    %cst_92 = arith.constant dense<0.000000e+00> : vector<256x16xf32>
    %190 = tpu.matmul %186, %189, %cst_92 {dimension_numbers = #tpu.dot_dimension_numbers<[1], [0], [0], [1], [0, 0, 1, 1], [], []>} : vector<256x64xbf16>, vector<64x16xbf16>, vector<256x16xf32> -> vector<256x16xf32>
    %191 = arith.index_cast %c5_i32 : i32 to index
    %c0_93 = arith.constant 0 : index
    %c0_94 = arith.constant 0 : index
    %192 = vector.load %arg3[%191, %c0_93, %c0_94] : memref<8x1x16xf32, #tpu.memory_space<vmem>>, vector<1x1x16xf32>
    %193 = vector.shape_cast %192 : vector<1x1x16xf32> to vector<1x16xf32>
    %194 = vector.broadcast %193 : vector<1x16xf32> to vector<256x16xf32>
    %195 = arith.addf %190, %194 : vector<256x16xf32>
    %cst_95 = arith.constant 0.000000e+00 : f32
    %196 = vector.broadcast %cst_95 : f32 to vector<256x16xf32>
    %197 = arith.maximumf %195, %196 : vector<256x16xf32>
    %198 = arith.truncf %197 : vector<256x16xf32> to vector<256x16xbf16>
    %199 = arith.index_cast %c5_i32 : i32 to index
    %c0_96 = arith.constant 0 : index
    %c0_97 = arith.constant 0 : index
    %200 = vector.load %arg4[%199, %c0_96, %c0_97] : memref<8x16x16xbf16, #tpu.memory_space<vmem>>, vector<1x16x16xbf16>
    %201 = vector.shape_cast %200 : vector<1x16x16xbf16> to vector<16x16xbf16>
    %cst_98 = arith.constant dense<0.000000e+00> : vector<256x16xf32>
    %202 = tpu.matmul %198, %201, %cst_98 {dimension_numbers = #tpu.dot_dimension_numbers<[1], [0], [0], [1], [0, 0, 1, 1], [], []>} : vector<256x16xbf16>, vector<16x16xbf16>, vector<256x16xf32> -> vector<256x16xf32>
    %203 = arith.index_cast %c5_i32 : i32 to index
    %c0_99 = arith.constant 0 : index
    %c0_100 = arith.constant 0 : index
    %204 = vector.load %arg5[%203, %c0_99, %c0_100] : memref<8x1x16xf32, #tpu.memory_space<vmem>>, vector<1x1x16xf32>
    %205 = vector.shape_cast %204 : vector<1x1x16xf32> to vector<1x16xf32>
    %206 = vector.broadcast %205 : vector<1x16xf32> to vector<256x16xf32>
    %207 = arith.addf %202, %206 : vector<256x16xf32>
    %cst_101 = arith.constant 0.000000e+00 : f32
    %208 = vector.broadcast %cst_101 : f32 to vector<256x16xf32>
    %209 = arith.maximumf %207, %208 : vector<256x16xf32>
    %210 = arith.truncf %209 : vector<256x16xf32> to vector<256x16xbf16>
    %211 = arith.index_cast %c5_i32 : i32 to index
    %c0_102 = arith.constant 0 : index
    %c0_103 = arith.constant 0 : index
    %212 = vector.load %arg6[%211, %c0_102, %c0_103] : memref<8x16x64xbf16, #tpu.memory_space<vmem>>, vector<1x16x64xbf16>
    %213 = vector.shape_cast %212 : vector<1x16x64xbf16> to vector<16x64xbf16>
    %cst_104 = arith.constant dense<0.000000e+00> : vector<256x64xf32>
    %214 = tpu.matmul %210, %213, %cst_104 {dimension_numbers = #tpu.dot_dimension_numbers<[1], [0], [0], [1], [0, 0, 1, 1], [], []>} : vector<256x16xbf16>, vector<16x64xbf16>, vector<256x64xf32> -> vector<256x64xf32>
    %215 = arith.index_cast %c5_i32 : i32 to index
    %c0_105 = arith.constant 0 : index
    %c0_106 = arith.constant 0 : index
    %216 = vector.load %arg7[%215, %c0_105, %c0_106] : memref<8x1x64xf32, #tpu.memory_space<vmem>>, vector<1x1x64xf32>
    %217 = vector.shape_cast %216 : vector<1x1x64xf32> to vector<1x64xf32>
    %218 = vector.broadcast %217 : vector<1x64xf32> to vector<256x64xf32>
    %219 = arith.addf %214, %218 : vector<256x64xf32>
    %220 = arith.addf %219, %185 : vector<256x64xf32>
    %cst_107 = arith.constant 0.000000e+00 : f32
    %221 = vector.broadcast %cst_107 : f32 to vector<256x64xf32>
    %222 = arith.maximumf %220, %221 : vector<256x64xf32>
    %c6_i32 = arith.constant 6 : i32
    %223 = arith.truncf %222 : vector<256x64xf32> to vector<256x64xbf16>
    %224 = arith.index_cast %c6_i32 : i32 to index
    %c0_108 = arith.constant 0 : index
    %c0_109 = arith.constant 0 : index
    %225 = vector.load %arg2[%224, %c0_108, %c0_109] : memref<8x64x16xbf16, #tpu.memory_space<vmem>>, vector<1x64x16xbf16>
    %226 = vector.shape_cast %225 : vector<1x64x16xbf16> to vector<64x16xbf16>
    %cst_110 = arith.constant dense<0.000000e+00> : vector<256x16xf32>
    %227 = tpu.matmul %223, %226, %cst_110 {dimension_numbers = #tpu.dot_dimension_numbers<[1], [0], [0], [1], [0, 0, 1, 1], [], []>} : vector<256x64xbf16>, vector<64x16xbf16>, vector<256x16xf32> -> vector<256x16xf32>
    %228 = arith.index_cast %c6_i32 : i32 to index
    %c0_111 = arith.constant 0 : index
    %c0_112 = arith.constant 0 : index
    %229 = vector.load %arg3[%228, %c0_111, %c0_112] : memref<8x1x16xf32, #tpu.memory_space<vmem>>, vector<1x1x16xf32>
    %230 = vector.shape_cast %229 : vector<1x1x16xf32> to vector<1x16xf32>
    %231 = vector.broadcast %230 : vector<1x16xf32> to vector<256x16xf32>
    %232 = arith.addf %227, %231 : vector<256x16xf32>
    %cst_113 = arith.constant 0.000000e+00 : f32
    %233 = vector.broadcast %cst_113 : f32 to vector<256x16xf32>
    %234 = arith.maximumf %232, %233 : vector<256x16xf32>
    %235 = arith.truncf %234 : vector<256x16xf32> to vector<256x16xbf16>
    %236 = arith.index_cast %c6_i32 : i32 to index
    %c0_114 = arith.constant 0 : index
    %c0_115 = arith.constant 0 : index
    %237 = vector.load %arg4[%236, %c0_114, %c0_115] : memref<8x16x16xbf16, #tpu.memory_space<vmem>>, vector<1x16x16xbf16>
    %238 = vector.shape_cast %237 : vector<1x16x16xbf16> to vector<16x16xbf16>
    %cst_116 = arith.constant dense<0.000000e+00> : vector<256x16xf32>
    %239 = tpu.matmul %235, %238, %cst_116 {dimension_numbers = #tpu.dot_dimension_numbers<[1], [0], [0], [1], [0, 0, 1, 1], [], []>} : vector<256x16xbf16>, vector<16x16xbf16>, vector<256x16xf32> -> vector<256x16xf32>
    %240 = arith.index_cast %c6_i32 : i32 to index
    %c0_117 = arith.constant 0 : index
    %c0_118 = arith.constant 0 : index
    %241 = vector.load %arg5[%240, %c0_117, %c0_118] : memref<8x1x16xf32, #tpu.memory_space<vmem>>, vector<1x1x16xf32>
    %242 = vector.shape_cast %241 : vector<1x1x16xf32> to vector<1x16xf32>
    %243 = vector.broadcast %242 : vector<1x16xf32> to vector<256x16xf32>
    %244 = arith.addf %239, %243 : vector<256x16xf32>
    %cst_119 = arith.constant 0.000000e+00 : f32
    %245 = vector.broadcast %cst_119 : f32 to vector<256x16xf32>
    %246 = arith.maximumf %244, %245 : vector<256x16xf32>
    %247 = arith.truncf %246 : vector<256x16xf32> to vector<256x16xbf16>
    %248 = arith.index_cast %c6_i32 : i32 to index
    %c0_120 = arith.constant 0 : index
    %c0_121 = arith.constant 0 : index
    %249 = vector.load %arg6[%248, %c0_120, %c0_121] : memref<8x16x64xbf16, #tpu.memory_space<vmem>>, vector<1x16x64xbf16>
    %250 = vector.shape_cast %249 : vector<1x16x64xbf16> to vector<16x64xbf16>
    %cst_122 = arith.constant dense<0.000000e+00> : vector<256x64xf32>
    %251 = tpu.matmul %247, %250, %cst_122 {dimension_numbers = #tpu.dot_dimension_numbers<[1], [0], [0], [1], [0, 0, 1, 1], [], []>} : vector<256x16xbf16>, vector<16x64xbf16>, vector<256x64xf32> -> vector<256x64xf32>
    %252 = arith.index_cast %c6_i32 : i32 to index
    %c0_123 = arith.constant 0 : index
    %c0_124 = arith.constant 0 : index
    %253 = vector.load %arg7[%252, %c0_123, %c0_124] : memref<8x1x64xf32, #tpu.memory_space<vmem>>, vector<1x1x64xf32>
    %254 = vector.shape_cast %253 : vector<1x1x64xf32> to vector<1x64xf32>
    %255 = vector.broadcast %254 : vector<1x64xf32> to vector<256x64xf32>
    %256 = arith.addf %251, %255 : vector<256x64xf32>
    %257 = arith.addf %256, %222 : vector<256x64xf32>
    %cst_125 = arith.constant 0.000000e+00 : f32
    %258 = vector.broadcast %cst_125 : f32 to vector<256x64xf32>
    %259 = arith.maximumf %257, %258 : vector<256x64xf32>
    %c7_i32 = arith.constant 7 : i32
    %260 = arith.truncf %259 : vector<256x64xf32> to vector<256x64xbf16>
    %261 = arith.index_cast %c7_i32 : i32 to index
    %c0_126 = arith.constant 0 : index
    %c0_127 = arith.constant 0 : index
    %262 = vector.load %arg2[%261, %c0_126, %c0_127] : memref<8x64x16xbf16, #tpu.memory_space<vmem>>, vector<1x64x16xbf16>
    %263 = vector.shape_cast %262 : vector<1x64x16xbf16> to vector<64x16xbf16>
    %cst_128 = arith.constant dense<0.000000e+00> : vector<256x16xf32>
    %264 = tpu.matmul %260, %263, %cst_128 {dimension_numbers = #tpu.dot_dimension_numbers<[1], [0], [0], [1], [0, 0, 1, 1], [], []>} : vector<256x64xbf16>, vector<64x16xbf16>, vector<256x16xf32> -> vector<256x16xf32>
    %265 = arith.index_cast %c7_i32 : i32 to index
    %c0_129 = arith.constant 0 : index
    %c0_130 = arith.constant 0 : index
    %266 = vector.load %arg3[%265, %c0_129, %c0_130] : memref<8x1x16xf32, #tpu.memory_space<vmem>>, vector<1x1x16xf32>
    %267 = vector.shape_cast %266 : vector<1x1x16xf32> to vector<1x16xf32>
    %268 = vector.broadcast %267 : vector<1x16xf32> to vector<256x16xf32>
    %269 = arith.addf %264, %268 : vector<256x16xf32>
    %cst_131 = arith.constant 0.000000e+00 : f32
    %270 = vector.broadcast %cst_131 : f32 to vector<256x16xf32>
    %271 = arith.maximumf %269, %270 : vector<256x16xf32>
    %272 = arith.truncf %271 : vector<256x16xf32> to vector<256x16xbf16>
    %273 = arith.index_cast %c7_i32 : i32 to index
    %c0_132 = arith.constant 0 : index
    %c0_133 = arith.constant 0 : index
    %274 = vector.load %arg4[%273, %c0_132, %c0_133] : memref<8x16x16xbf16, #tpu.memory_space<vmem>>, vector<1x16x16xbf16>
    %275 = vector.shape_cast %274 : vector<1x16x16xbf16> to vector<16x16xbf16>
    %cst_134 = arith.constant dense<0.000000e+00> : vector<256x16xf32>
    %276 = tpu.matmul %272, %275, %cst_134 {dimension_numbers = #tpu.dot_dimension_numbers<[1], [0], [0], [1], [0, 0, 1, 1], [], []>} : vector<256x16xbf16>, vector<16x16xbf16>, vector<256x16xf32> -> vector<256x16xf32>
    %277 = arith.index_cast %c7_i32 : i32 to index
    %c0_135 = arith.constant 0 : index
    %c0_136 = arith.constant 0 : index
    %278 = vector.load %arg5[%277, %c0_135, %c0_136] : memref<8x1x16xf32, #tpu.memory_space<vmem>>, vector<1x1x16xf32>
    %279 = vector.shape_cast %278 : vector<1x1x16xf32> to vector<1x16xf32>
    %280 = vector.broadcast %279 : vector<1x16xf32> to vector<256x16xf32>
    %281 = arith.addf %276, %280 : vector<256x16xf32>
    %cst_137 = arith.constant 0.000000e+00 : f32
    %282 = vector.broadcast %cst_137 : f32 to vector<256x16xf32>
    %283 = arith.maximumf %281, %282 : vector<256x16xf32>
    %284 = arith.truncf %283 : vector<256x16xf32> to vector<256x16xbf16>
    %285 = arith.index_cast %c7_i32 : i32 to index
    %c0_138 = arith.constant 0 : index
    %c0_139 = arith.constant 0 : index
    %286 = vector.load %arg6[%285, %c0_138, %c0_139] : memref<8x16x64xbf16, #tpu.memory_space<vmem>>, vector<1x16x64xbf16>
    %287 = vector.shape_cast %286 : vector<1x16x64xbf16> to vector<16x64xbf16>
    %cst_140 = arith.constant dense<0.000000e+00> : vector<256x64xf32>
    %288 = tpu.matmul %284, %287, %cst_140 {dimension_numbers = #tpu.dot_dimension_numbers<[1], [0], [0], [1], [0, 0, 1, 1], [], []>} : vector<256x16xbf16>, vector<16x64xbf16>, vector<256x64xf32> -> vector<256x64xf32>
    %289 = arith.index_cast %c7_i32 : i32 to index
    %c0_141 = arith.constant 0 : index
    %c0_142 = arith.constant 0 : index
    %290 = vector.load %arg7[%289, %c0_141, %c0_142] : memref<8x1x64xf32, #tpu.memory_space<vmem>>, vector<1x1x64xf32>
    %291 = vector.shape_cast %290 : vector<1x1x64xf32> to vector<1x64xf32>
    %292 = vector.broadcast %291 : vector<1x64xf32> to vector<256x64xf32>
    %293 = arith.addf %288, %292 : vector<256x64xf32>
    %294 = arith.addf %293, %259 : vector<256x64xf32>
    %cst_143 = arith.constant 0.000000e+00 : f32
    %295 = vector.broadcast %cst_143 : f32 to vector<256x64xf32>
    %296 = arith.maximumf %294, %295 : vector<256x64xf32>
    %c8_i32 = arith.constant 8 : i32
    %cst_144 = arith.constant 0.000000e+00 : f32
    %297 = vector.broadcast %cst_144 : f32 to vector<256x64xf32>
    %298 = arith.maximumf %296, %297 : vector<256x64xf32>
    %299 = arith.truncf %298 : vector<256x64xf32> to vector<256x64xbf16>
    %c0_145 = arith.constant 0 : index
    %c0_146 = arith.constant 0 : index
    %300 = vector.load %arg8[%c0_145, %c0_146] : memref<64x128xbf16, #tpu.memory_space<vmem>>, vector<64x128xbf16>
    %cst_147 = arith.constant dense<0.000000e+00> : vector<256x128xf32>
    %301 = tpu.matmul %299, %300, %cst_147 {dimension_numbers = #tpu.dot_dimension_numbers<[1], [0], [0], [1], [0, 0, 1, 1], [], []>} : vector<256x64xbf16>, vector<64x128xbf16>, vector<256x128xf32> -> vector<256x128xf32>
    %c0_148 = arith.constant 0 : index
    %c0_149 = arith.constant 0 : index
    %302 = vector.load %arg9[%c0_148, %c0_149] : memref<1x128xf32, #tpu.memory_space<vmem>>, vector<1x128xf32>
    %303 = vector.broadcast %302 : vector<1x128xf32> to vector<256x128xf32>
    %304 = arith.addf %301, %303 : vector<256x128xf32>
    %c0_150 = arith.constant 0 : index
    %c0_151 = arith.constant 0 : index
    %305 = vector.load %arg10[%c0_150, %c0_151] : memref<256x128xf32, #tpu.memory_space<vmem>>, vector<256x128xf32>
    tpu.vector_store %arg10[%c0_150, %c0_151], %304 {strides = array<i32>} : memref<256x128xf32, #tpu.memory_space<vmem>>, vector<256x128xf32>,
    return
  }
  func.func @transform_0(%arg0: i32) -> (i32, i32) {
    %c0_i32 = arith.constant 0 : i32
    %c0_i32_0 = arith.constant 0 : i32
    return %arg0, %c0_i32 : i32, i32
  }
  func.func @transform_1(%arg0: i32) -> (i32, i32, i32) {
    %c0_i32 = arith.constant 0 : i32
    %c0_i32_0 = arith.constant 0 : i32
    %c0_i32_1 = arith.constant 0 : i32
    %c0_i32_2 = arith.constant 0 : i32
    return %c0_i32, %c0_i32_0, %c0_i32_1 : i32, i32, i32
  }
  func.func @transform_2(%arg0: i32) -> (i32, i32, i32) {
    %c0_i32 = arith.constant 0 : i32
    %c0_i32_0 = arith.constant 0 : i32
    %c0_i32_1 = arith.constant 0 : i32
    %c0_i32_2 = arith.constant 0 : i32
    return %c0_i32, %c0_i32_0, %c0_i32_1 : i32, i32, i32
  }
  func.func @transform_3(%arg0: i32) -> (i32, i32, i32) {
    %c0_i32 = arith.constant 0 : i32
    %c0_i32_0 = arith.constant 0 : i32
    %c0_i32_1 = arith.constant 0 : i32
    %c0_i32_2 = arith.constant 0 : i32
    return %c0_i32, %c0_i32_0, %c0_i32_1 : i32, i32, i32
  }
  func.func @transform_4(%arg0: i32) -> (i32, i32, i32) {
    %c0_i32 = arith.constant 0 : i32
    %c0_i32_0 = arith.constant 0 : i32
    %c0_i32_1 = arith.constant 0 : i32
    %c0_i32_2 = arith.constant 0 : i32
    return %c0_i32, %c0_i32_0, %c0_i32_1 : i32, i32, i32
  }
  func.func @transform_5(%arg0: i32) -> (i32, i32, i32) {
    %c0_i32 = arith.constant 0 : i32
    %c0_i32_0 = arith.constant 0 : i32
    %c0_i32_1 = arith.constant 0 : i32
    %c0_i32_2 = arith.constant 0 : i32
    return %c0_i32, %c0_i32_0, %c0_i32_1 : i32, i32, i32
  }
  func.func @transform_6(%arg0: i32) -> (i32, i32, i32) {
    %c0_i32 = arith.constant 0 : i32
    %c0_i32_0 = arith.constant 0 : i32
    %c0_i32_1 = arith.constant 0 : i32
    %c0_i32_2 = arith.constant 0 : i32
    return %c0_i32, %c0_i32_0, %c0_i32_1 : i32, i32, i32
  }
  func.func @transform_7(%arg0: i32) -> (i32, i32) {
    %c0_i32 = arith.constant 0 : i32
    %c0_i32_0 = arith.constant 0 : i32
    %c0_i32_1 = arith.constant 0 : i32
    return %c0_i32, %c0_i32_0 : i32, i32
  }
  func.func @transform_8(%arg0: i32) -> (i32, i32) {
    %c0_i32 = arith.constant 0 : i32
    %c0_i32_0 = arith.constant 0 : i32
    %c0_i32_1 = arith.constant 0 : i32
    return %c0_i32, %c0_i32_0 : i32, i32
  }
  func.func @transform_9(%arg0: i32) -> (i32, i32) {
    %c0_i32 = arith.constant 0 : i32
    %c0_i32_0 = arith.constant 0 : i32
    return %arg0, %c0_i32 : i32, i32
  }
}

</mosaic_0001>

<bundles_post_ra>
// kernel: tpu_custom_call.1
= control target key start
LH: loop header
LB: loop body
LE: loop exit
PB: predicated region body
PF: predicated region fallthrough
CT: control target
= control target key end

     0   :  { %s9729_s0 = inlined_call_operand.vmem [shape: f32[256,64], index: 0, kind: input, shape index: {}]   ;;  %s9730_s1 = inlined_call_operand.vmem [shape: bf16[8,64,16], index: 1, kind: input, shape index: {}]   ;;  %s9731_s2 = inlined_call_operand.vmem [shape: f32[8,1,16], index: 2, kind: input, shape index: {}]   ;;  %s9732_s3 = inlined_call_operand.vmem [shape: bf16[8,16,16], index: 3, kind: input, shape index: {}]   ;;  %s9733_s4 = inlined_call_operand.vmem [shape: f32[8,1,16], index: 4, kind: input, shape index: {}]   ;;  %s9734_s5 = inlined_call_operand.vmem [shape: bf16[8,16,64], index: 5, kind: input, shape index: {}]   ;;  %s9735_s6 = inlined_call_operand.vmem [shape: f32[8,1,64], index: 6, kind: input, shape index: {}]   ;;  %s9736_s7 = inlined_call_operand.vmem [shape: bf16[64,128], index: 7, kind: input, shape index: {}]   ;;  %s9737_s8 = inlined_call_operand.vmem [shape: f32[1,128], index: 8, kind: input, shape index: {}]   ;;  %s9738_s9 = inlined_call_operand.hbm [shape: f32[256,128], index: 9, kind: output, shape index: {}]  }
   0x1   :  { %v6273_v0 = vld [vmem:[%s9730_s1 + $0x18] sm:$0xff]  ;;  %v6272_v1 = vld [vmem:[%s9730_s1 + $0x10] sm:$0xff]  ;;  %v6271_v2 = vld [vmem:[%s9730_s1 + $0x8] sm:$0xff] }
   0x2   :  { %171 = vmatpush.bf16.msra.mxu0 %v6273_v0  ;;  %6322 = vmatpush.bf16.msra.mxu3 %v6273_v0  ;;  %v6270_v3 = vld [vmem:[%s9730_s1] sm:$0xff]  ;;  %v6455_v5 = vld [vmem:[%s9729_s0 + $0x8] sm:$0xff] }
   0x3   :  { %v6450_v4 = vld [vmem:[%s9729_s0] sm:$0xff] }
   0x6   :  { %172 = vmatpush.bf16.msra.mxu0 %v6272_v1  ;;  %6323 = vmatpush.bf16.msra.mxu3 %v6272_v1 }
   0xa   :  { %173 = vmatpush.bf16.msra.mxu0 %v6271_v2  ;;  %6324 = vmatpush.bf16.msra.mxu3 %v6271_v2 }
   0xb   :  { %14 = vsyncpa [#allocation3], 0  ;;  %v66_v6 = vpack.c.bf16 %v6455_v5, %v6450_v4  ;;  %vm118_vm0 = vcmask 523264   ;;  %v6274_v7 = vld [vmem:[%s9732_s3] sm:$0xff]  ;;  %v6466_v8 = vld [vmem:[%s9729_s0 + $0x10] sm:$0xff]  ;;  %vm316_vm1 = vcmask 130048  }
   0xc   :  { %6326 = vmatpush.bf16.msra.mxu1 %v6274_v7  ;;  %6327 = vmatpush.bf16.msra.mxu2 %v6274_v7  ;;  %v6471_v9 = vld [vmem:[%s9729_s0 + $0x18] sm:$0xff]  ;;  %v6479_v11 = vld [vmem:[%s9729_s0 + $0x20] sm:$0xff]  ;;  %v6484_v12 = vld [vmem:[%s9729_s0 + $0x28] sm:$0xff]  ;;  %s5545_s27 = sshll.u32 %s9738_s9, 4  ;;  %s6383_s28 = smov 128   ;;  %s5546_s27 = int_to_ptr.hbm [resolvable:$true] %s5545_s27 }
   0xd   :  { %v67_v10 = vpack.c.bf16 %v6471_v9, %v6466_v8  ;;  %v68_v13 = vpack.c.bf16 %v6484_v12, %v6479_v11  ;;  %v6492_v14 = vld [vmem:[%s9729_s0 + $0x30] sm:$0xff]  ;;  %v6497_v15 = vld [vmem:[%s9729_s0 + $0x38] sm:$0xff]  ;;  %v6505_v17 = vld [vmem:[%s9729_s0 + $0x40] sm:$0xff]  ;;  %s6384_s29 = smov 8  }
   0xe   :  { %174 = vmatpush.bf16.msra.mxu0 %v6270_v3  ;;  %6325 = vmatpush.bf16.msra.mxu3 %v6270_v3  ;;  %v69_v16 = vpack.c.bf16 %v6497_v15, %v6492_v14  ;;  %v6510_v18 = vld [vmem:[%s9729_s0 + $0x48] sm:$0xff]  ;;  %v6518_v20 = vld [vmem:[%s9729_s0 + $0x50] sm:$0xff]  ;;  %v6523_v21 = vld [vmem:[%s9729_s0 + $0x58] sm:$0xff] }
   0xf   :  { %v70_v19 = vpack.c.bf16 %v6510_v18, %v6505_v17  ;;  %v71_v22 = vpack.c.bf16 %v6523_v21, %v6518_v20  ;;  %v6531_v23 = vld [vmem:[%s9729_s0 + $0x60] sm:$0xff]  ;;  %v6536_v24 = vld [vmem:[%s9729_s0 + $0x68] sm:$0xff]  ;;  %v6544_v26 = vld [vmem:[%s9729_s0 + $0x70] sm:$0xff] }
  0x10   :  { %v72_v25 = vpack.c.bf16 %v6536_v24, %v6531_v23  ;;  %v6549_v27 = vld [vmem:[%s9729_s0 + $0x78] sm:$0xff]  ;;  %v6557_v29 = vld [vmem:[%s9729_s0 + $0x80] sm:$0xff]  ;;  %v6562_v30 = vld [vmem:[%s9729_s0 + $0x88] sm:$0xff] }
  0x11   :  { %5573 = vmatmul.msk.bf16.vlgmr.msra.gmra.mxu0 %vm118_vm0, %v66_v6  ;;  %v73_v28 = vpack.c.bf16 %v6549_v27, %v6544_v26  ;;  %v74_v31 = vpack.c.bf16 %v6562_v30, %v6557_v29  ;;  %v6569_v33 = vld [vmem:[%s9731_s2] ss:$0 sm:$0xff]  ;;  %v6577_v39 = vld [vmem:[%s9729_s0 + $0x90] sm:$0xff]  ;;  %v6582_v40 = vld [vmem:[%s9729_s0 + $0x98] sm:$0xff] }
  0x12   :  { %372 = vmatpush.bf16.msrb.mxu0 %v6274_v7  ;;  %v75_v42 = vpack.c.bf16 %v6582_v40, %v6577_v39  ;;  %v6594_v49 = vld [vmem:[%s9729_s0 + $0xa0] sm:$0xff]  ;;  %v6599_v50 = vld [vmem:[%s9729_s0 + $0xa8] sm:$0xff]  ;;  %v6609_v59 = vld [vmem:[%s9729_s0 + $0xb0] sm:$0xff] }
  0x13   :  { %v76_v52 = vpack.c.bf16 %v6599_v50, %v6594_v49  ;;  %v6614_v60 = vld [vmem:[%s9729_s0 + $0xb8] sm:$0xff]  ;;  %v6621_v0 = vld [vmem:[%s9729_s0 + $0xe0] sm:$0xff]  ;;  %v6626_v1 = vld [vmem:[%s9729_s0 + $0xe8] sm:$0xff] }
  0x14   :  { %v77_v62 = vpack.c.bf16 %v6614_v60, %v6609_v59  ;;  %v80_v2 = vpack.c.bf16 %v6626_v1, %v6621_v0 }
  0x16   :  { %5587 = vmatmul.msk.bf16.vlgmr.msra.gmra.mxu3 %vm118_vm0, %v80_v2 }
  0x21   :  { %5574 = vmatmul.msk.bf16.gmra.mxu0 %vm118_vm0, %v67_v10 }
  0x31   :  { %5575 = vmatmul.msk.bf16.gmra.mxu0 %vm118_vm0, %v68_v13 }
  0x41   :  { %5576 = vmatmul.msk.bf16.gmra.mxu0 %vm118_vm0, %v69_v16  ;;  %v6637_v16 = vld [vmem:[%s9729_s0 + $0xc0] sm:$0xff] }
  0x51   :  { %5577 = vmatmul.msk.bf16.gmra.mxu0 %vm118_vm0, %v70_v19  ;;  %v6642_v19 = vld [vmem:[%s9729_s0 + $0xc8] sm:$0xff] }
  0x61   :  { %5578 = vmatmul.msk.bf16.gmra.mxu0 %vm118_vm0, %v71_v22 }
  0x71   :  { %5579 = vmatmul.msk.bf16.gmra.mxu0 %vm118_vm0, %v72_v25  ;;  %v78_v25 = vpack.c.bf16 %v6642_v19, %v6637_v16 }
  0x81   :  { %5580 = vmatmul.msk.bf16.gmra.mxu0 %vm118_vm0, %v73_v28 }
  0x8e   :  { %v176_v32 = vpop.f32.mrf.mxu0 }
  0x8f   :  { %v177_v34 = vadd.f32 %v6569_v33, %v176_v32  ;;  %v6654_v32 = vld [vmem:[%s9729_s0 + $0xf8] sm:$0xff] }
  0x91   :  { %5581 = vmatmul.msk.bf16.gmra.mxu0 %vm118_vm0, %v74_v31  ;;  %v256_v37 = vmax.f32 %v177_v34, 0.0  ;;  %v6649_v31 = vld [vmem:[%s9729_s0 + $0xf0] sm:$0xff] }
  0x92   :  { %v81_v34 = vpack.c.bf16 %v6654_v32, %v6649_v31 }
  0x94   :  { %5588 = vmatmul.msk.bf16.gmra.mxu3 %vm118_vm0, %v81_v34 }
  0x96   :  { %v178_v35 = vpop.f32.mrf.mxu0 }
  0x97   :  { %v179_v36 = vadd.f32 %v6569_v33, %v178_v35 }
  0x99   :  { %v257_v38 = vmax.f32 %v179_v36, 0.0 }
  0x9b   :  { %v6584_v41 = vpack.c.bf16 %v257_v38, %v256_v37 }
  0x9e   :  { %v181_v43 = vpop.f32.mrf.mxu0 }
  0x9f   :  { %v182_v44 = vadd.f32 %v6569_v33, %v181_v43  ;;  %v6665_v43 = vld [vmem:[%s9729_s0 + $0xd0] sm:$0xff] }
  0xa1   :  { %5582 = vmatmul.msk.bf16.gmra.mxu0 %vm118_vm0, %v75_v42  ;;  %v258_v47 = vmax.f32 %v182_v44, 0.0  ;;  %v6670_v44 = vld [vmem:[%s9729_s0 + $0xd8] sm:$0xff] }
  0xa6   :  { %v183_v45 = vpop.f32.mrf.mxu0 }
  0xa7   :  { %v184_v46 = vadd.f32 %v6569_v33, %v183_v45 }
  0xa9   :  { %v259_v48 = vmax.f32 %v184_v46, 0.0  ;;  %v79_v46 = vpack.c.bf16 %v6670_v44, %v6665_v43 }
  0xab   :  { %v289_v51 = vpack.c.bf16 %v259_v48, %v258_v47 }
  0xae   :  { %v186_v53 = vpop.f32.mrf.mxu0 }
  0xaf   :  { %v187_v54 = vadd.f32 %v6569_v33, %v186_v53 }
  0xb1   :  { %5583 = vmatmul.msk.bf16.gmra.mxu0 %vm118_vm0, %v76_v52  ;;  %v260_v57 = vmax.f32 %v187_v54, 0.0 }
  0xb6   :  { %v188_v55 = vpop.f32.mrf.mxu0 }
  0xb7   :  { %v189_v56 = vadd.f32 %v6569_v33, %v188_v55 }
  0xb9   :  { %v261_v58 = vmax.f32 %v189_v56, 0.0 }
  0xbb   :  { %v290_v61 = vpack.c.bf16 %v261_v58, %v260_v57 }
  0xbe   :  { %v191_v63 = vpop.f32.mrf.mxu0 }
  0xbf   :  { %v192_v3 = vadd.f32 %v6569_v33, %v191_v63 }
  0xc1   :  { %5584 = vmatmul.msk.bf16.gmra.mxu0 %vm118_vm0, %v77_v62  ;;  %v262_v10 = vmax.f32 %v192_v3, 0.0 }
  0xc6   :  { %v193_v6 = vpop.f32.mrf.mxu0 }
  0xc7   :  { %v194_v7 = vadd.f32 %v6569_v33, %v193_v6 }
  0xc9   :  { %v263_v13 = vmax.f32 %v194_v7, 0.0 }
  0xcb   :  { %v291_v22 = vpack.c.bf16 %v263_v13, %v262_v10 }
  0xce   :  { %v196_v28 = vpop.f32.mrf.mxu0 }
  0xcf   :  { %v197_v35 = vadd.f32 %v6569_v33, %v196_v28 }
  0xd1   :  { %5585 = vmatmul.msk.bf16.gmra.mxu0 %vm118_vm0, %v78_v25  ;;  %v264_v38 = vmax.f32 %v197_v35, 0.0 }
  0xd6   :  { %v198_v36 = vpop.f32.mrf.mxu0 }
  0xd7   :  { %v199_v37 = vadd.f32 %v6569_v33, %v198_v36 }
  0xd9   :  { %v265_v42 = vmax.f32 %v199_v37, 0.0 }
  0xdb   :  { %v292_v45 = vpack.c.bf16 %v265_v42, %v264_v38 }
  0xde   :  { %v201_v47 = vpop.f32.mrf.mxu0 }
  0xdf   :  { %v202_v48 = vadd.f32 %v6569_v33, %v201_v47 }
  0xe1   :  { %5586 = vmatmul.msk.bf16.gmra.mxu0 %vm118_vm0, %v79_v46  ;;  %v266_v54 = vmax.f32 %v202_v48, 0.0 }
  0xe6   :  { %v203_v52 = vpop.f32.mrf.mxu0 }
  0xe7   :  { %v204_v53 = vadd.f32 %v6569_v33, %v203_v52 }
  0xe9   :  { %v267_v55 = vmax.f32 %v204_v53, 0.0 }
  0xeb   :  { %v293_v56 = vpack.c.bf16 %v267_v55, %v266_v54 }
  0xee   :  { %v206_v57 = vpop.f32.mrf.mxu0 }
  0xef   :  { %v207_v58 = vadd.f32 %v6569_v33, %v206_v57  ;;  %v6275_v57 = vld [vmem:[%s9734_s5] sm:$0xff] }
  0xf0   :  { %569 = vmatpush.bf16.msrb.mxu2 %v6275_v57 }
  0xf1   :  { %5593 = vmatmul.msk.bf16.vlgmr.msrb.gmra.mxu0 %vm316_vm1, %v6584_v41  ;;  %v268_v2 = vmax.f32 %v207_v58, 0.0 }
  0xf6   :  { %v208_v62 = vpop.f32.mrf.mxu0 }
  0xf7   :  { %v209_v63 = vadd.f32 %v6569_v33, %v208_v62 }
  0xf9   :  { %v269_v3 = vmax.f32 %v209_v63, 0.0 }
  0xfb   :  { %v294_v6 = vpack.c.bf16 %v269_v3, %v268_v2 }
  0xfd   :  { %5599 = vmatmul.msk.bf16.vlgmr.msra.gmra.mxu1 %vm316_vm1, %v294_v6 }
  0xfe   :  { %v211_v7 = vpop.f32.mrf.mxu0 }
  0xff   :  { %v212_v10 = vadd.f32 %v6569_v33, %v211_v7 }
 0x101   :  { %5594 = vmatmul.msk.bf16.gmra.mxu0 %vm316_vm1, %v289_v51  ;;  %v270_v28 = vmax.f32 %v212_v10, 0.0 }
 0x106   :  { %v213_v13 = vpop.f32.mrf.mxu0 }
 0x107   :  { %v214_v25 = vadd.f32 %v6569_v33, %v213_v13 }
 0x109   :  { %v271_v41 = vmax.f32 %v214_v25, 0.0 }
 0x10b   :  { %v295_v34 = vpack.c.bf16 %v271_v41, %v270_v28 }
 0x10d   :  { %5600 = vmatmul.msk.bf16.gmra.mxu1 %vm316_vm1, %v295_v34 }
 0x10e   :  { %v216_v35 = vpop.f32.mrf.mxu0 }
 0x10f   :  { %v217_v36 = vadd.f32 %v6569_v33, %v216_v35 }
 0x111   :  { %5595 = vmatmul.msk.bf16.gmra.mxu0 %vm316_vm1, %v290_v61  ;;  %v272_v42 = vmax.f32 %v217_v36, 0.0 }
 0x116   :  { %v218_v37 = vpop.f32.mrf.mxu0 }
 0x117   :  { %v219_v38 = vadd.f32 %v6569_v33, %v218_v37 }
 0x119   :  { %v273_v51 = vmax.f32 %v219_v38, 0.0 }
 0x11b   :  { %v296_v46 = vpack.c.bf16 %v273_v51, %v272_v42 }
 0x11d   :  { %5601 = vmatmul.msk.bf16.gmra.mxu1 %vm316_vm1, %v296_v46  ;;  %v246_v46 = vpop.f32.mrf.mxu3 }
 0x11e   :  { %v221_v47 = vpop.f32.mrf.mxu0 }
 0x11f   :  { %v222_v48 = vadd.f32 %v6569_v33, %v221_v47 }
 0x121   :  { %5596 = vmatmul.msk.bf16.gmra.mxu0 %vm316_vm1, %v291_v22  ;;  %v274_v54 = vmax.f32 %v222_v48, 0.0 }
 0x126   :  { %v223_v52 = vpop.f32.mrf.mxu0 }
 0x127   :  { %v224_v53 = vadd.f32 %v6569_v33, %v223_v52 }
 0x129   :  { %v275_v61 = vmax.f32 %v224_v53, 0.0 }
 0x12b   :  { %v297_v55 = vpack.c.bf16 %v275_v61, %v274_v54 }
 0x12d   :  { %5602 = vmatmul.msk.bf16.gmra.mxu1 %vm316_vm1, %v297_v55  ;;  %v248_v55 = vpop.f32.mrf.mxu3 }
 0x12e   :  { %v226_v58 = vpop.f32.mrf.mxu0 }
 0x12f   :  { %v227_v22 = vadd.f32 %v6569_v33, %v226_v58  ;;  %v247_v58 = vadd.f32 %v6569_v33, %v246_v46 }
 0x131   :  { %5597 = vmatmul.msk.bf16.gmra.mxu0 %vm316_vm1, %v292_v45  ;;  %v276_v2 = vmax.f32 %v227_v22, 0.0  ;;  %v249_v22 = vadd.f32 %v6569_v33, %v248_v55 }
 0x136   :  { %v228_v62 = vpop.f32.mrf.mxu0 }
 0x137   :  { %v229_v63 = vadd.f32 %v6569_v33, %v228_v62  ;;  %v251_v62 = vpop.f32.mrf.mxu3 }
 0x139   :  { %v277_v3 = vmax.f32 %v229_v63, 0.0  ;;  %v284_v63 = vmax.f32 %v247_v58, 0.0 }
 0x13b   :  { %v298_v6 = vpack.c.bf16 %v277_v3, %v276_v2  ;;  %v285_v2 = vmax.f32 %v249_v22, 0.0 }
 0x13d   :  { %5603 = vmatmul.msk.bf16.gmra.mxu1 %vm316_vm1, %v298_v6  ;;  %v302_v3 = vpack.c.bf16 %v285_v2, %v284_v63 }
 0x13e   :  { %v231_v7 = vpop.f32.mrf.mxu0 }
 0x13f   :  { %v232_v10 = vadd.f32 %v6569_v33, %v231_v7  ;;  %v253_v7 = vpop.f32.mrf.mxu3 }
 0x141   :  { %5598 = vmatmul.msk.bf16.gmra.mxu0 %vm316_vm1, %v293_v56  ;;  %v278_v28 = vmax.f32 %v232_v10, 0.0  ;;  %v252_v10 = vadd.f32 %v6569_v33, %v251_v62 }
 0x146   :  { %v233_v13 = vpop.f32.mrf.mxu0 }
 0x147   :  { %v234_v25 = vadd.f32 %v6569_v33, %v233_v13  ;;  %v254_v13 = vadd.f32 %v6569_v33, %v253_v7 }
 0x149   :  { %v279_v45 = vmax.f32 %v234_v25, 0.0 }
 0x14b   :  { %v299_v41 = vpack.c.bf16 %v279_v45, %v278_v28  ;;  %v286_v28 = vmax.f32 %v252_v10, 0.0  ;;  %v287_v45 = vmax.f32 %v254_v13, 0.0 }
 0x14d   :  { %5604 = vmatmul.msk.bf16.vlgmr.msra.gmra.mxu2 %vm316_vm1, %v299_v41  ;;  %v303_v41 = vpack.c.bf16 %v287_v45, %v286_v28 }
 0x14e   :  { %v236_v34 = vpop.f32.mrf.mxu0 }
 0x14f   :  { %v237_v35 = vadd.f32 %v6569_v33, %v236_v34 }
 0x151   :  { %v280_v38 = vmax.f32 %v237_v35, 0.0  ;;  %v6720_v35 = vld [vmem:[%s9733_s4] ss:$0 sm:$0xff] }
 0x156   :  { %v238_v36 = vpop.f32.mrf.mxu0 }
 0x157   :  { %v239_v37 = vadd.f32 %v6569_v33, %v238_v36 }
 0x159   :  { %v281_v42 = vmax.f32 %v239_v37, 0.0 }
 0x15b   :  { %v300_v51 = vpack.c.bf16 %v281_v42, %v280_v38 }
 0x15d   :  { %5605 = vmatmul.msk.bf16.gmra.mxu2 %vm316_vm1, %v300_v51 }
 0x15e   :  { %v241_v56 = vpop.f32.mrf.mxu0 }
 0x15f   :  { %v242_v47 = vadd.f32 %v6569_v33, %v241_v56 }
 0x161   :  { %v282_v53 = vmax.f32 %v242_v47, 0.0 }
 0x166   :  { %v243_v48 = vpop.f32.mrf.mxu0 }
 0x167   :  { %v244_v52 = vadd.f32 %v6569_v33, %v243_v48 }
 0x169   :  { %v283_v54 = vmax.f32 %v244_v52, 0.0 }
 0x16b   :  { %v301_v61 = vpack.c.bf16 %v283_v54, %v282_v53 }
 0x16d   :  { %5606 = vmatmul.msk.bf16.gmra.mxu2 %vm316_vm1, %v301_v61 }
 0x16e   :  { %v374_v57 = vpop.f32.mrf.mxu0 }
 0x16f   :  { %v375_v37 = vadd.f32 %v6720_v35, %v374_v57 }
 0x171   :  { %v454_v42 = vmax.f32 %v375_v37, 0.0 }
 0x176   :  { %v376_v6 = vpop.f32.mrf.mxu0 }
 0x177   :  { %v377_v36 = vadd.f32 %v6720_v35, %v376_v6 }
 0x179   :  { %v455_v38 = vmax.f32 %v377_v36, 0.0 }
 0x17a   :  { %v404_v45 = vpop.f32.mrf.mxu1 }
 0x17b   :  { %v486_v33 = vpack.c.bf16 %v455_v38, %v454_v42 }
 0x17d   :  { %5607 = vmatmul.msk.bf16.gmra.mxu2 %vm316_vm1, %v302_v3 }
 0x17e   :  { %v379_v25 = vpop.f32.mrf.mxu0 }
 0x17f   :  { %v380_v47 = vadd.f32 %v6720_v35, %v379_v25 }
 0x181   :  { %v456_v52 = vmax.f32 %v380_v47, 0.0 }
 0x186   :  { %v381_v34 = vpop.f32.mrf.mxu0 }
 0x187   :  { %v382_v56 = vadd.f32 %v6720_v35, %v381_v34 }
 0x189   :  { %v457_v48 = vmax.f32 %v382_v56, 0.0 }
 0x18b   :  { %v487_v53 = vpack.c.bf16 %v457_v48, %v456_v52  ;;  %v406_v48 = vpop.f32.mrf.mxu1 }
 0x18d   :  { %5608 = vmatmul.msk.bf16.gmra.mxu2 %vm316_vm1, %v303_v41 }
 0x18e   :  { %v384_v51 = vpop.f32.mrf.mxu0 }
 0x18f   :  { %v385_v55 = vadd.f32 %v6720_v35, %v384_v51 }
 0x191   :  { %v458_v22 = vmax.f32 %v385_v55, 0.0 }
 0x196   :  { %v386_v46 = vpop.f32.mrf.mxu0 }
 0x197   :  { %v387_v61 = vadd.f32 %v6720_v35, %v386_v46 }
 0x199   :  { %v459_v57 = vmax.f32 %v387_v61, 0.0 }
 0x19b   :  { %v488_v62 = vpack.c.bf16 %v459_v57, %v458_v22 }
 0x19d   :  { %5613 = vmatmul.msk.bf16.vlgmr.msrb.gmra.mxu2 %vm316_vm1, %v486_v33 }
 0x19e   :  { %v389_v54 = vpop.f32.mrf.mxu0 }
 0x19f   :  { %v390_v3 = vadd.f32 %v6720_v35, %v389_v54 }
 0x1a1   :  { %v460_v7 = vmax.f32 %v390_v3, 0.0 }
 0x1a6   :  { %v391_v58 = vpop.f32.mrf.mxu0 }
 0x1a7   :  { %v392_v2 = vadd.f32 %v6720_v35, %v391_v58 }
 0x1a9   :  { %v461_v6 = vmax.f32 %v392_v2, 0.0 }
 0x1ab   :  { %v489_v10 = vpack.c.bf16 %v461_v6, %v460_v7 }
 0x1ad   :  { %5614 = vmatmul.msk.bf16.gmra.mxu2 %vm316_vm1, %v487_v53 }
 0x1ae   :  { %v394_v63 = vpop.f32.mrf.mxu0 }
 0x1af   :  { %v395_v41 = vadd.f32 %v6720_v35, %v394_v63  ;;  %v409_v63 = vpop.f32.mrf.mxu1 }
 0x1b1   :  { %v462_v42 = vmax.f32 %v395_v41, 0.0  ;;  %v405_v41 = vadd.f32 %v6720_v35, %v404_v45 }
 0x1b6   :  { %v396_v13 = vpop.f32.mrf.mxu0 }
 0x1b7   :  { %v397_v28 = vadd.f32 %v6720_v35, %v396_v13  ;;  %v407_v13 = vadd.f32 %v6720_v35, %v406_v48  ;;  %v6278_v48 = vld [vmem:[%s9730_s1 + $0x30] sm:$0xff] }
 0x1b9   :  { %v463_v36 = vmax.f32 %v397_v28, 0.0  ;;  %v411_v28 = vpop.f32.mrf.mxu1 }
 0x1bb   :  { %v490_v46 = vpack.c.bf16 %v463_v36, %v462_v42 }
 0x1bd   :  { %5615 = vmatmul.msk.bf16.gmra.mxu2 %vm316_vm1, %v488_v62 }
 0x1be   :  { %v399_v34 = vpop.f32.mrf.mxu0 }
 0x1bf   :  { %v400_v61 = vadd.f32 %v6720_v35, %v399_v34  ;;  %v467_v34 = vmax.f32 %v407_v13, 0.0 }
 0x1c1   :  { %v464_v22 = vmax.f32 %v400_v61, 0.0  ;;  %v414_v45 = vpop.f32.mrf.mxu1  ;;  %v6277_v61 = vld [vmem:[%s9730_s1 + $0x28] sm:$0xff] }
 0x1c6   :  { %v401_v52 = vpop.f32.mrf.mxu0 }
 0x1c7   :  { %v402_v54 = vadd.f32 %v6720_v35, %v401_v52 }
 0x1c9   :  { %v465_v55 = vmax.f32 %v402_v54, 0.0  ;;  %v410_v54 = vadd.f32 %v6720_v35, %v409_v63  ;;  %v6276_v63 = vld [vmem:[%s9730_s1 + $0x20] sm:$0xff] }
 0x1cb   :  { %v491_v6 = vpack.c.bf16 %v465_v55, %v464_v22 }
 0x1cd   :  { %5616 = vmatmul.msk.bf16.gmra.mxu2 %vm316_vm1, %v489_v10 }
 0x1d0   :  { %v429_v25 = vpop.f32.mrf.mxu2 }
 0x1d1   :  { %v430_v37 = vadd.f32 %v6720_v35, %v429_v25  ;;  %v6279_v25 = vld [vmem:[%s9730_s1 + $0x38] sm:$0xff] }
 0x1d2   :  { %821 = vmatpush.bf16.msrb.mxu3 %v6279_v25 }
 0x1d3   :  { %v476_v33 = vmax.f32 %v430_v37, 0.0 }
 0x1d6   :  { %822 = vmatpush.bf16.msrb.mxu3 %v6278_v48 }
 0x1d8   :  { %v431_v38 = vpop.f32.mrf.mxu2 }
 0x1d9   :  { %v432_v51 = vadd.f32 %v6720_v35, %v431_v38  ;;  %v466_v38 = vmax.f32 %v405_v41, 0.0 }
 0x1da   :  { %823 = vmatpush.bf16.msrb.mxu3 %v6277_v61 }
 0x1db   :  { %v477_v56 = vmax.f32 %v432_v51, 0.0 }
 0x1dd   :  { %v6738_v47 = vpack.c.bf16 %v477_v56, %v476_v33  ;;  %5617 = vmatmul.msk.bf16.gmra.mxu2 %vm316_vm1, %v490_v46  ;;  %v492_v56 = vpack.c.bf16 %v467_v34, %v466_v38  ;;  %v415_v34 = vadd.f32 %v6720_v35, %v414_v45  ;;  %v6784_v45 = vld [vmem:[%s9735_s6] ss:$0 sm:$0xff] }
 0x1de   :  { %824 = vmatpush.bf16.msrb.mxu3 %v6276_v63 }
 0x1e0   :  { %v434_v53 = vpop.f32.mrf.mxu2 }
 0x1e1   :  { %v435_v57 = vadd.f32 %v6720_v35, %v434_v53  ;;  %v412_v53 = vadd.f32 %v6720_v35, %v411_v28 }
 0x1e3   :  { %v478_v2 = vmax.f32 %v435_v57, 0.0  ;;  %v469_v55 = vmax.f32 %v412_v53, 0.0 }
 0x1e8   :  { %v436_v58 = vpop.f32.mrf.mxu2 }
 0x1e9   :  { %v437_v62 = vadd.f32 %v6720_v35, %v436_v58  ;;  %v416_v58 = vpop.f32.mrf.mxu1 }
 0x1ea   :  { %v417_v41 = vadd.f32 %v6720_v35, %v416_v58 }
 0x1eb   :  { %v479_v3 = vmax.f32 %v437_v62, 0.0  ;;  %v468_v62 = vmax.f32 %v410_v54, 0.0 }
 0x1ed   :  { %v6745_v7 = vpack.c.bf16 %v479_v3, %v478_v2  ;;  %5618 = vmatmul.msk.bf16.gmra.mxu2 %vm316_vm1, %v491_v6  ;;  %v493_v3 = vpack.c.bf16 %v469_v55, %v468_v62 }
 0x1f0   :  { %v439_v10 = vpop.f32.mrf.mxu2 }
 0x1f1   :  { %v440_v36 = vadd.f32 %v6720_v35, %v439_v10  ;;  %v419_v28 = vpop.f32.mrf.mxu1 }
 0x1f2   :  { %v420_v55 = vadd.f32 %v6720_v35, %v419_v28  ;;  %v6281_v28 = vld [vmem:[%s9734_s5 + $0x8] sm:$0xff] }
 0x1f3   :  { %v480_v51 = vmax.f32 %v440_v36, 0.0  ;;  %v471_v36 = vmax.f32 %v417_v41, 0.0  ;;  %1222 = vmatpush.bf16.msra.mxu2 %v6281_v28 }
 0x1f8   :  { %v441_v37 = vpop.f32.mrf.mxu2 }
 0x1f9   :  { %v442_v42 = vadd.f32 %v6720_v35, %v441_v37 }
 0x1fb   :  { %v481_v33 = vmax.f32 %v442_v42, 0.0  ;;  %v470_v42 = vmax.f32 %v415_v34, 0.0 }
 0x1fd   :  { %v6755_v46 = vpack.c.bf16 %v481_v33, %v480_v51  ;;  %5619 = vmatmul.msk.bf16.gmra.mxu2 %vm316_vm1, %v492_v56  ;;  %v494_v33 = vpack.c.bf16 %v471_v36, %v470_v42 }
 0x200   :  { %v444_v52 = vpop.f32.mrf.mxu2 }
 0x201   :  { %v445_v57 = vadd.f32 %v6720_v35, %v444_v52  ;;  %v421_v52 = vpop.f32.mrf.mxu1 }
 0x202   :  { %v422_v61 = vadd.f32 %v6720_v35, %v421_v52 }
 0x203   :  { %v482_v6 = vmax.f32 %v445_v57, 0.0 }
 0x208   :  { %v446_v22 = vpop.f32.mrf.mxu2 }
 0x209   :  { %v447_v2 = vadd.f32 %v6720_v35, %v446_v22  ;;  %v424_v58 = vpop.f32.mrf.mxu1  ;;  %v473_v22 = vmax.f32 %v422_v61, 0.0 }
 0x20b   :  { %v483_v10 = vmax.f32 %v447_v2, 0.0  ;;  %v472_v2 = vmax.f32 %v420_v55, 0.0 }
 0x20d   :  { %v6771_v13 = vpack.c.bf16 %v483_v10, %v482_v6  ;;  %5620 = vmatmul.msk.bf16.gmra.mxu2 %vm316_vm1, %v493_v3  ;;  %v495_v10 = vpack.c.bf16 %v473_v22, %v472_v2 }
 0x210   :  { %v449_v25 = vpop.f32.mrf.mxu2 }
 0x211   :  { %v450_v37 = vadd.f32 %v6720_v35, %v449_v25  ;;  %v426_v34 = vpop.f32.mrf.mxu1 }
 0x213   :  { %v484_v56 = vmax.f32 %v450_v37, 0.0  ;;  %v425_v37 = vadd.f32 %v6720_v35, %v424_v58 }
 0x218   :  { %v451_v38 = vpop.f32.mrf.mxu2 }
 0x219   :  { %v452_v51 = vadd.f32 %v6720_v35, %v451_v38 }
 0x21b   :  { %v485_v48 = vmax.f32 %v452_v51, 0.0 }
 0x21d   :  { %v6778_v53 = vpack.c.bf16 %v485_v48, %v484_v56  ;;  %5621 = vmatmul.msk.bf16.gmra.mxu2 %vm316_vm1, %v494_v33  ;;  %v474_v33 = vmax.f32 %v425_v37, 0.0 }
 0x220   :  { %v571_v54 = vpop.f32.mrf.mxu2 }
 0x221   :  { %v572_v57 = vadd.f32 %v6784_v45, %v571_v54 }
 0x223   :  { %v6790_v3 = vadd.f32 %v572_v57, %v6450_v4 }
 0x225   :  { %v683_v25 = vmax.f32 %v6790_v3, 0.0 }
 0x228   :  { %v573_v62 = vpop.f32.mrf.mxu2 }
 0x229   :  { %v574_v6 = vadd.f32 %v6784_v45, %v573_v62 }
 0x22b   :  { %v6794_v63 = vadd.f32 %v574_v6, %v6455_v5  ;;  %v427_v5 = vadd.f32 %v6720_v35, %v426_v34 }
 0x22d   :  { %v684_v41 = vmax.f32 %v6794_v63, 0.0  ;;  %5622 = vmatmul.msk.bf16.gmra.mxu2 %vm316_vm1, %v495_v10  ;;  %v475_v42 = vmax.f32 %v427_v5, 0.0  ;;  %v6287_v63 = vld [vmem:[%s9734_s5 + $0x10] sm:$0xff] }
 0x22f   :  { %v715_v4 = vpack.c.bf16 %v684_v41, %v683_v25  ;;  %v496_v52 = vpack.c.bf16 %v475_v42, %v474_v33 }
 0x230   :  { %v576_v36 = vpop.f32.mrf.mxu2 }
 0x231   :  { %5654 = vmatmul.msk.bf16.vlgmr.msrb.gmra.mxu3 %vm118_vm0, %v715_v4  ;;  %v577_v38 = vadd.f32 %v6784_v45, %v576_v36 }
 0x233   :  { %v6811_v56 = vadd.f32 %v577_v38, %v6466_v8 }
 0x235   :  { %v685_v61 = vmax.f32 %v6811_v56, 0.0 }
 0x238   :  { %v578_v51 = vpop.f32.mrf.mxu2 }
 0x239   :  { %v579_v48 = vadd.f32 %v6784_v45, %v578_v51 }
 0x23b   :  { %v6815_v54 = vadd.f32 %v579_v48, %v6471_v9 }
 0x23d   :  { %v686_v55 = vmax.f32 %v6815_v54, 0.0  ;;  %5623 = vmatmul.msk.bf16.gmra.mxu2 %vm316_vm1, %v496_v52 }
 0x23f   :  { %v716_v35 = vpack.c.bf16 %v686_v55, %v685_v61 }
 0x240   :  { %v581_v57 = vpop.f32.mrf.mxu2 }
 0x241   :  { %5655 = vmatmul.msk.bf16.gmra.mxu3 %vm118_vm0, %v716_v35  ;;  %v582_v8 = vadd.f32 %v6784_v45, %v581_v57 }
 0x243   :  { %v6827_v9 = vadd.f32 %v582_v8, %v6479_v11 }
 0x245   :  { %v687_v2 = vmax.f32 %v6827_v9, 0.0 }
 0x248   :  { %v583_v58 = vpop.f32.mrf.mxu2 }
 0x249   :  { %v584_v22 = vadd.f32 %v6784_v45, %v583_v58 }
 0x24b   :  { %v6831_v62 = vadd.f32 %v584_v22, %v6484_v12  ;;  %v6280_v12 = vld [vmem:[%s9732_s3 + $0x8] sm:$0xff] }
 0x24c   :  { %1023 = vmatpush.bf16.msrb.mxu1 %v6280_v12 }
 0x24d   :  { %v688_v6 = vmax.f32 %v6831_v62, 0.0  ;;  %5624 = vmatmul.msk.bf16.gmra.mxu2 %vm316_vm1, %v6738_v47 }
 0x24f   :  { %v717_v10 = vpack.c.bf16 %v688_v6, %v687_v2 }
 0x250   :  { %v586_v28 = vpop.f32.mrf.mxu2  ;;  %1875 = vmatpush.bf16.msra.mxu1 %v6287_v63 }
 0x251   :  { %5656 = vmatmul.msk.bf16.gmra.mxu3 %vm118_vm0, %v717_v10  ;;  %v587_v11 = vadd.f32 %v6784_v45, %v586_v28 }
 0x253   :  { %v6847_v34 = vadd.f32 %v587_v11, %v6492_v14 }
 0x255   :  { %v689_v5 = vmax.f32 %v6847_v34, 0.0 }
 0x258   :  { %v588_v4 = vpop.f32.mrf.mxu2 }
 0x259   :  { %v589_v47 = vadd.f32 %v6784_v45, %v588_v4 }
 0x25b   :  { %v6851_v36 = vadd.f32 %v589_v47, %v6497_v15 }
 0x25d   :  { %v690_v37 = vmax.f32 %v6851_v36, 0.0  ;;  %5625 = vmatmul.msk.bf16.gmra.mxu2 %vm316_vm1, %v6745_v7 }
 0x25f   :  { %v718_v38 = vpack.c.bf16 %v690_v37, %v689_v5 }
 0x260   :  { %v591_v42 = vpop.f32.mrf.mxu2 }
 0x261   :  { %5657 = vmatmul.msk.bf16.gmra.mxu3 %vm118_vm0, %v718_v38  ;;  %v592_v14 = vadd.f32 %v6784_v45, %v591_v42 }
 0x263   :  { %v6864_v15 = vadd.f32 %v592_v14, %v6505_v17 }
 0x265   :  { %v691_v7 = vmax.f32 %v6864_v15, 0.0 }
 0x268   :  { %v593_v51 = vpop.f32.mrf.mxu2 }
 0x269   :  { %v594_v33 = vadd.f32 %v6784_v45, %v593_v51 }
 0x26b   :  { %v6868_v48 = vadd.f32 %v594_v33, %v6510_v18 }
 0x26d   :  { %v692_v52 = vmax.f32 %v6868_v48, 0.0  ;;  %5626 = vmatmul.msk.bf16.gmra.mxu2 %vm316_vm1, %v6755_v46 }
 0x26f   :  { %v719_v35 = vpack.c.bf16 %v692_v52, %v691_v7 }
 0x270   :  { %v596_v57 = vpop.f32.mrf.mxu2 }
 0x271   :  { %5658 = vmatmul.msk.bf16.gmra.mxu3 %vm118_vm0, %v719_v35  ;;  %v597_v17 = vadd.f32 %v6784_v45, %v596_v57 }
 0x273   :  { %v6881_v18 = vadd.f32 %v597_v17, %v6518_v20 }
 0x275   :  { %v693_v46 = vmax.f32 %v6881_v18, 0.0 }
 0x278   :  { %v598_v8 = vpop.f32.mrf.mxu2 }
 0x279   :  { %v599_v58 = vadd.f32 %v6784_v45, %v598_v8 }
 0x27b   :  { %v6885_v22 = vadd.f32 %v599_v58, %v6523_v21 }
 0x27d   :  { %v694_v10 = vmax.f32 %v6885_v22, 0.0  ;;  %5627 = vmatmul.msk.bf16.gmra.mxu2 %vm316_vm1, %v6771_v13 }
 0x27f   :  { %v720_v28 = vpack.c.bf16 %v694_v10, %v693_v46 }
 0x280   :  { %v601_v11 = vpop.f32.mrf.mxu2 }
 0x281   :  { %5659 = vmatmul.msk.bf16.gmra.mxu3 %vm118_vm0, %v720_v28  ;;  %v602_v20 = vadd.f32 %v6784_v45, %v601_v11 }
 0x283   :  { %v6898_v21 = vadd.f32 %v602_v20, %v6531_v23 }
 0x285   :  { %v695_v13 = vmax.f32 %v6898_v21, 0.0 }
 0x288   :  { %v603_v12 = vpop.f32.mrf.mxu2 }
 0x289   :  { %v604_v4 = vadd.f32 %v6784_v45, %v603_v12 }
 0x28b   :  { %v6902_v47 = vadd.f32 %v604_v4, %v6536_v24 }
 0x28d   :  { %v696_v38 = vmax.f32 %v6902_v47, 0.0  ;;  %5628 = vmatmul.msk.bf16.gmra.mxu2 %vm316_vm1, %v6778_v53 }
 0x28f   :  { %v721_v42 = vpack.c.bf16 %v696_v38, %v695_v13 }
 0x290   :  { %v606_v14 = vpop.f32.mrf.mxu2 }
 0x291   :  { %5660 = vmatmul.msk.bf16.gmra.mxu3 %vm118_vm0, %v721_v42  ;;  %v607_v23 = vadd.f32 %v6784_v45, %v606_v14 }
 0x293   :  { %v6915_v24 = vadd.f32 %v607_v23, %v6544_v26 }
 0x295   :  { %v9756_v53 = vmax.f32 %v6915_v24, 0.0  ;;  %v9868_v47 = vmax.f32 %v6915_v24, 0.0 }
 0x298   :  { %v608_v51 = vpop.f32.mrf.mxu2 }
 0x299   :  { %v609_v33 = vadd.f32 %v6784_v45, %v608_v51 }
 0x29b   :  { %v6919_v35 = vadd.f32 %v609_v33, %v6549_v27 }
 0x29d   :  { %v9755_v57 = vmax.f32 %v6919_v35, 0.0 }
 0x29f   :  { %v722_v17 = vpack.c.bf16 %v9755_v57, %v9756_v53 }
 0x2a0   :  { %v611_v8 = vpop.f32.mrf.mxu2 }
 0x2a1   :  { %5661 = vmatmul.msk.bf16.gmra.mxu3 %vm118_vm0, %v722_v17  ;;  %v612_v26 = vadd.f32 %v6784_v45, %v611_v8 }
 0x2a3   :  { %v6930_v28 = vadd.f32 %v612_v26, %v6557_v29 }
 0x2a5   :  { %v9740_v20 = vmax.f32 %v6930_v28, 0.0 }
 0x2a8   :  { %v613_v58 = vpop.f32.mrf.mxu2 }
 0x2a9   :  { %v614_v27 = vadd.f32 %v6784_v45, %v613_v58 }
 0x2ab   :  { %v6934_v11 = vadd.f32 %v614_v27, %v6562_v30  ;;  %v6947_v30 = vld [vmem:[%s9731_s2 + $0x1] ss:$0 sm:$0xff] }
 0x2ad   :  { %v9739_v12 = vmax.f32 %v6934_v11, 0.0 }
 0x2af   :  { %v723_v4 = vpack.c.bf16 %v9739_v12, %v9740_v20 }
 0x2b0   :  { %v616_v42 = vpop.f32.mrf.mxu2 }
 0x2b1   :  { %5662 = vmatmul.msk.bf16.gmra.mxu3 %vm118_vm0, %v723_v4  ;;  %v617_v29 = vadd.f32 %v6784_v45, %v616_v42 }
 0x2b3   :  { %v6950_v51 = vadd.f32 %v617_v29, %v6577_v39 }
 0x2b4   :  { %v826_v14 = vpop.f32.mrf.mxu3 }
 0x2b5   :  { %v827_v17 = vadd.f32 %v6947_v30, %v826_v14  ;;  %v9742_v58 = vmax.f32 %v6950_v51, 0.0 }
 0x2b7   :  { %v906_v42 = vmax.f32 %v827_v17, 0.0 }
 0x2b8   :  { %v618_v23 = vpop.f32.mrf.mxu2 }
 0x2b9   :  { %v619_v33 = vadd.f32 %v6784_v45, %v618_v23 }
 0x2bb   :  { %v6955_v8 = vadd.f32 %v619_v33, %v6582_v40 }
 0x2bc   :  { %v828_v26 = vpop.f32.mrf.mxu3 }
 0x2bd   :  { %v9741_v27 = vmax.f32 %v6955_v8, 0.0  ;;  %v829_v4 = vadd.f32 %v6947_v30, %v828_v26 }
 0x2bf   :  { %v907_v12 = vmax.f32 %v829_v4, 0.0  ;;  %v724_v39 = vpack.c.bf16 %v9741_v27, %v9742_v58 }
 0x2c0   :  { %v621_v29 = vpop.f32.mrf.mxu2 }
 0x2c1   :  { %v938_v23 = vpack.c.bf16 %v907_v12, %v906_v42  ;;  %5663 = vmatmul.msk.bf16.gmra.mxu3 %vm118_vm0, %v724_v39  ;;  %v622_v14 = vadd.f32 %v6784_v45, %v621_v29 }
 0x2c3   :  { %5677 = vmatmul.msk.bf16.vlgmr.msrb.gmra.mxu1 %vm316_vm1, %v938_v23  ;;  %v6968_v20 = vadd.f32 %v622_v14, %v6594_v49 }
 0x2c4   :  { %v831_v40 = vpop.f32.mrf.mxu3 }
 0x2c5   :  { %v832_v26 = vadd.f32 %v6947_v30, %v831_v40  ;;  %v9744_v12 = vmax.f32 %v6968_v20, 0.0 }
 0x2c7   :  { %v908_v23 = vmax.f32 %v832_v26, 0.0 }
 0x2c8   :  { %v623_v33 = vpop.f32.mrf.mxu2 }
 0x2c9   :  { %v624_v17 = vadd.f32 %v6784_v45, %v623_v33 }
 0x2cb   :  { %v6973_v4 = vadd.f32 %v624_v17, %v6599_v50 }
 0x2cc   :  { %v833_v27 = vpop.f32.mrf.mxu3 }
 0x2cd   :  { %v9743_v42 = vmax.f32 %v6973_v4, 0.0  ;;  %v834_v39 = vadd.f32 %v6947_v30, %v833_v27 }
 0x2cf   :  { %v725_v49 = vpack.c.bf16 %v9743_v42, %v9744_v12  ;;  %v909_v29 = vmax.f32 %v834_v39, 0.0 }
 0x2d0   :  { %v626_v14 = vpop.f32.mrf.mxu2 }
 0x2d1   :  { %5664 = vmatmul.msk.bf16.gmra.mxu3 %vm118_vm0, %v725_v49  ;;  %v939_v40 = vpack.c.bf16 %v909_v29, %v908_v23  ;;  %v627_v33 = vadd.f32 %v6784_v45, %v626_v14 }
 0x2d3   :  { %5678 = vmatmul.msk.bf16.gmra.mxu1 %vm316_vm1, %v939_v40  ;;  %v6986_v58 = vadd.f32 %v627_v33, %v6609_v59 }
 0x2d4   :  { %v836_v50 = vpop.f32.mrf.mxu3 }
 0x2d5   :  { %v837_v26 = vadd.f32 %v6947_v30, %v836_v50  ;;  %v9746_v49 = vmax.f32 %v6986_v58, 0.0 }
 0x2d7   :  { %v910_v40 = vmax.f32 %v837_v26, 0.0 }
 0x2d8   :  { %v628_v17 = vpop.f32.mrf.mxu2 }
 0x2d9   :  { %v629_v27 = vadd.f32 %v6784_v45, %v628_v17 }
 0x2db   :  { %v6991_v42 = vadd.f32 %v629_v27, %v6614_v60 }
 0x2dc   :  { %v838_v39 = vpop.f32.mrf.mxu3 }
 0x2dd   :  { %v9745_v23 = vmax.f32 %v6991_v42, 0.0  ;;  %v839_v29 = vadd.f32 %v6947_v30, %v838_v39 }
 0x2df   :  { %v726_v59 = vpack.c.bf16 %v9745_v23, %v9746_v49  ;;  %v911_v14 = vmax.f32 %v839_v29, 0.0 }
 0x2e0   :  { %v631_v33 = vpop.f32.mrf.mxu2 }
 0x2e1   :  { %5665 = vmatmul.msk.bf16.gmra.mxu3 %vm118_vm0, %v726_v59  ;;  %v940_v50 = vpack.c.bf16 %v911_v14, %v910_v40  ;;  %v632_v17 = vadd.f32 %v6784_v45, %v631_v33 }
 0x2e3   :  { %5679 = vmatmul.msk.bf16.gmra.mxu1 %vm316_vm1, %v940_v50  ;;  %v7004_v12 = vadd.f32 %v632_v17, %v6637_v16 }
 0x2e4   :  { %v841_v60 = vpop.f32.mrf.mxu3 }
 0x2e5   :  { %v842_v39 = vadd.f32 %v6947_v30, %v841_v60  ;;  %v9748_v59 = vmax.f32 %v7004_v12, 0.0 }
 0x2e7   :  { %v912_v50 = vmax.f32 %v842_v39, 0.0 }
 0x2e8   :  { %v633_v27 = vpop.f32.mrf.mxu2 }
 0x2e9   :  { %v634_v26 = vadd.f32 %v6784_v45, %v633_v27 }
 0x2eb   :  { %v7009_v23 = vadd.f32 %v634_v26, %v6642_v19 }
 0x2ec   :  { %v843_v29 = vpop.f32.mrf.mxu3 }
 0x2ed   :  { %v9747_v40 = vmax.f32 %v7009_v23, 0.0  ;;  %v844_v14 = vadd.f32 %v6947_v30, %v843_v29 }
 0x2ef   :  { %v727_v16 = vpack.c.bf16 %v9747_v40, %v9748_v59  ;;  %v913_v33 = vmax.f32 %v844_v14, 0.0 }
 0x2f0   :  { %v636_v17 = vpop.f32.mrf.mxu2 }
 0x2f1   :  { %5666 = vmatmul.msk.bf16.gmra.mxu3 %vm118_vm0, %v727_v16  ;;  %v941_v60 = vpack.c.bf16 %v913_v33, %v912_v50  ;;  %v637_v27 = vadd.f32 %v6784_v45, %v636_v17 }
 0x2f3   :  { %5680 = vmatmul.msk.bf16.gmra.mxu1 %vm316_vm1, %v941_v60  ;;  %v7022_v49 = vadd.f32 %v637_v27, %v6665_v43 }
 0x2f4   :  { %v846_v19 = vpop.f32.mrf.mxu3 }
 0x2f5   :  { %v847_v29 = vadd.f32 %v6947_v30, %v846_v19  ;;  %v9750_v16 = vmax.f32 %v7022_v49, 0.0 }
 0x2f7   :  { %v914_v60 = vmax.f32 %v847_v29, 0.0 }
 0x2f8   :  { %v638_v26 = vpop.f32.mrf.mxu2 }
 0x2f9   :  { %v639_v39 = vadd.f32 %v6784_v45, %v638_v26 }
 0x2fb   :  { %v7027_v40 = vadd.f32 %v639_v39, %v6670_v44 }
 0x2fc   :  { %v848_v14 = vpop.f32.mrf.mxu3 }
 0x2fd   :  { %v9749_v50 = vmax.f32 %v7027_v40, 0.0  ;;  %v849_v33 = vadd.f32 %v6947_v30, %v848_v14 }
 0x2ff   :  { %v728_v43 = vpack.c.bf16 %v9749_v50, %v9750_v16  ;;  %v915_v17 = vmax.f32 %v849_v33, 0.0 }
 0x300   :  { %v641_v27 = vpop.f32.mrf.mxu2 }
 0x301   :  { %5667 = vmatmul.msk.bf16.gmra.mxu3 %vm118_vm0, %v728_v43  ;;  %v942_v19 = vpack.c.bf16 %v915_v17, %v914_v60  ;;  %v642_v26 = vadd.f32 %v6784_v45, %v641_v27 }
 0x303   :  { %5681 = vmatmul.msk.bf16.gmra.mxu1 %vm316_vm1, %v942_v19  ;;  %v7040_v59 = vadd.f32 %v642_v26, %v6621_v0 }
 0x304   :  { %v851_v44 = vpop.f32.mrf.mxu3 }
 0x305   :  { %v852_v14 = vadd.f32 %v6947_v30, %v851_v44  ;;  %v9752_v43 = vmax.f32 %v7040_v59, 0.0 }
 0x307   :  { %v916_v19 = vmax.f32 %v852_v14, 0.0 }
 0x308   :  { %v643_v39 = vpop.f32.mrf.mxu2 }
 0x309   :  { %v644_v29 = vadd.f32 %v6784_v45, %v643_v39 }
 0x30b   :  { %v7045_v50 = vadd.f32 %v644_v29, %v6626_v1 }
 0x30c   :  { %v853_v33 = vpop.f32.mrf.mxu3 }
 0x30d   :  { %v9751_v60 = vmax.f32 %v7045_v50, 0.0  ;;  %v854_v17 = vadd.f32 %v6947_v30, %v853_v33 }
 0x30f   :  { %v729_v0 = vpack.c.bf16 %v9751_v60, %v9752_v43  ;;  %v917_v27 = vmax.f32 %v854_v17, 0.0 }
 0x310   :  { %v646_v26 = vpop.f32.mrf.mxu2 }
 0x311   :  { %5668 = vmatmul.msk.bf16.gmra.mxu3 %vm118_vm0, %v729_v0  ;;  %v943_v44 = vpack.c.bf16 %v917_v27, %v916_v19  ;;  %v647_v39 = vadd.f32 %v6784_v45, %v646_v26 }
 0x313   :  { %5682 = vmatmul.msk.bf16.gmra.mxu1 %vm316_vm1, %v943_v44  ;;  %v7058_v16 = vadd.f32 %v647_v39, %v6649_v31 }
 0x314   :  { %v856_v1 = vpop.f32.mrf.mxu3 }
 0x315   :  { %v857_v33 = vadd.f32 %v6947_v30, %v856_v1  ;;  %v9754_v0 = vmax.f32 %v7058_v16, 0.0 }
 0x317   :  { %v918_v44 = vmax.f32 %v857_v33, 0.0 }
 0x318   :  { %v648_v29 = vpop.f32.mrf.mxu2 }
 0x319   :  { %v649_v14 = vadd.f32 %v6784_v45, %v648_v29 }
 0x31b   :  { %v7063_v60 = vadd.f32 %v649_v14, %v6654_v32 }
 0x31c   :  { %v858_v17 = vpop.f32.mrf.mxu3 }
 0x31d   :  { %v9753_v19 = vmax.f32 %v7063_v60, 0.0  ;;  %v859_v27 = vadd.f32 %v6947_v30, %v858_v17 }
 0x31f   :  { %v730_v31 = vpack.c.bf16 %v9753_v19, %v9754_v0  ;;  %v919_v26 = vmax.f32 %v859_v27, 0.0 }
 0x321   :  { %5669 = vmatmul.msk.bf16.gmra.mxu3 %vm118_vm0, %v730_v31  ;;  %v944_v45 = vpack.c.bf16 %v919_v26, %v918_v44 }
 0x323   :  { %5683 = vmatmul.msk.bf16.gmra.mxu1 %vm316_vm1, %v944_v45 }
 0x324   :  { %v861_v32 = vpop.f32.mrf.mxu3 }
 0x325   :  { %v862_v1 = vadd.f32 %v6947_v30, %v861_v32  ;;  %v7082_v32 = vld [vmem:[%s9733_s4 + $0x1] ss:$0 sm:$0xff] }
 0x327   :  { %v920_v14 = vmax.f32 %v862_v1, 0.0 }
 0x32c   :  { %v863_v39 = vpop.f32.mrf.mxu3 }
 0x32d   :  { %v864_v29 = vadd.f32 %v6947_v30, %v863_v39 }
 0x32f   :  { %v921_v17 = vmax.f32 %v864_v29, 0.0 }
 0x331   :  { %v945_v33 = vpack.c.bf16 %v921_v17, %v920_v14 }
 0x333   :  { %5684 = vmatmul.msk.bf16.gmra.mxu1 %vm316_vm1, %v945_v33 }
 0x334   :  { %v866_v43 = vpop.f32.mrf.mxu3 }
 0x335   :  { %v867_v19 = vadd.f32 %v6947_v30, %v866_v43 }
 0x337   :  { %v922_v44 = vmax.f32 %v867_v19, 0.0 }
 0x33c   :  { %v868_v27 = vpop.f32.mrf.mxu3 }
 0x33d   :  { %v869_v31 = vadd.f32 %v6947_v30, %v868_v27 }
 0x33f   :  { %v923_v26 = vmax.f32 %v869_v31, 0.0 }
 0x340   :  { %v1025_v45 = vpop.f32.mrf.mxu1 }
 0x341   :  { %v946_v0 = vpack.c.bf16 %v923_v26, %v922_v44  ;;  %v1026_v39 = vadd.f32 %v7082_v32, %v1025_v45  ;;  %v6286_v45 = vld [vmem:[%s9732_s3 + $0x10] sm:$0xff] }
 0x342   :  { %1676 = vmatpush.bf16.msra.mxu3 %v6286_v45 }
 0x343   :  { %5685 = vmatmul.msk.bf16.gmra.mxu1 %vm316_vm1, %v946_v0  ;;  %v1105_v14 = vmax.f32 %v1026_v39, 0.0 }
 0x344   :  { %v871_v1 = vpop.f32.mrf.mxu3 }
 0x345   :  { %v872_v17 = vadd.f32 %v6947_v30, %v871_v1 }
 0x347   :  { %v924_v44 = vmax.f32 %v872_v17, 0.0 }
 0x348   :  { %v1027_v29 = vpop.f32.mrf.mxu1 }
 0x349   :  { %v1028_v43 = vadd.f32 %v7082_v32, %v1027_v29 }
 0x34b   :  { %v1106_v19 = vmax.f32 %v1028_v43, 0.0 }
 0x34c   :  { %v873_v33 = vpop.f32.mrf.mxu3 }
 0x34d   :  { %v1137_v27 = vpack.c.bf16 %v1106_v19, %v1105_v14  ;;  %v874_v31 = vadd.f32 %v6947_v30, %v873_v33 }
 0x34f   :  { %v925_v26 = vmax.f32 %v874_v31, 0.0  ;;  %5700 = vmatmul.msk.bf16.vlgmr.msra.gmra.mxu2 %vm316_vm1, %v1137_v27 }
 0x350   :  { %v1030_v57 = vpop.f32.mrf.mxu1 }
 0x351   :  { %v947_v0 = vpack.c.bf16 %v925_v26, %v924_v44  ;;  %v1031_v1 = vadd.f32 %v7082_v32, %v1030_v57  ;;  %v6285_v57 = vld [vmem:[%s9730_s1 + $0x58] sm:$0xff] }
 0x352   :  { %1474 = vmatpush.bf16.msra.mxu0 %v6285_v57 }
 0x353   :  { %5686 = vmatmul.msk.bf16.gmra.mxu1 %vm316_vm1, %v947_v0  ;;  %v1107_v14 = vmax.f32 %v1031_v1, 0.0 }
 0x354   :  { %v876_v39 = vpop.f32.mrf.mxu3 }
 0x355   :  { %v877_v17 = vadd.f32 %v6947_v30, %v876_v39 }
 0x357   :  { %v926_v44 = vmax.f32 %v877_v17, 0.0 }
 0x358   :  { %v1032_v29 = vpop.f32.mrf.mxu1 }
 0x359   :  { %v1033_v43 = vadd.f32 %v7082_v32, %v1032_v29 }
 0x35b   :  { %v1108_v19 = vmax.f32 %v1033_v43, 0.0 }
 0x35c   :  { %v878_v33 = vpop.f32.mrf.mxu3 }
 0x35d   :  { %v1138_v27 = vpack.c.bf16 %v1108_v19, %v1107_v14  ;;  %v879_v31 = vadd.f32 %v6947_v30, %v878_v33 }
 0x35f   :  { %v927_v26 = vmax.f32 %v879_v31, 0.0  ;;  %5701 = vmatmul.msk.bf16.gmra.mxu2 %vm316_vm1, %v1138_v27 }
 0x360   :  { %v1035_v0 = vpop.f32.mrf.mxu1 }
 0x361   :  { %v948_v45 = vpack.c.bf16 %v927_v26, %v926_v44  ;;  %v1036_v39 = vadd.f32 %v7082_v32, %v1035_v0 }
 0x363   :  { %5687 = vmatmul.msk.bf16.gmra.mxu1 %vm316_vm1, %v948_v45  ;;  %v1109_v14 = vmax.f32 %v1036_v39, 0.0 }
 0x364   :  { %v881_v1 = vpop.f32.mrf.mxu3 }
 0x365   :  { %v882_v17 = vadd.f32 %v6947_v30, %v881_v1 }
 0x367   :  { %v928_v44 = vmax.f32 %v882_v17, 0.0 }
 0x368   :  { %v1037_v29 = vpop.f32.mrf.mxu1 }
 0x369   :  { %v1038_v43 = vadd.f32 %v7082_v32, %v1037_v29 }
 0x36b   :  { %v1110_v19 = vmax.f32 %v1038_v43, 0.0 }
 0x36c   :  { %v883_v33 = vpop.f32.mrf.mxu3 }
 0x36d   :  { %v1139_v27 = vpack.c.bf16 %v1110_v19, %v1109_v14  ;;  %v884_v31 = vadd.f32 %v6947_v30, %v883_v33 }
 0x36f   :  { %v929_v26 = vmax.f32 %v884_v31, 0.0  ;;  %5702 = vmatmul.msk.bf16.gmra.mxu2 %vm316_vm1, %v1139_v27  ;;  %v6284_v27 = vld [vmem:[%s9730_s1 + $0x50] sm:$0xff] }
 0x370   :  { %v1040_v45 = vpop.f32.mrf.mxu1  ;;  %1475 = vmatpush.bf16.msra.mxu0 %v6284_v27 }
 0x371   :  { %v949_v53 = vpack.c.bf16 %v929_v26, %v928_v44  ;;  %v1041_v57 = vadd.f32 %v7082_v32, %v1040_v45 }
 0x373   :  { %5688 = vmatmul.msk.bf16.gmra.mxu1 %vm316_vm1, %v949_v53  ;;  %v1111_v1 = vmax.f32 %v1041_v57, 0.0 }
 0x374   :  { %v886_v0 = vpop.f32.mrf.mxu3 }
 0x375   :  { %v887_v43 = vadd.f32 %v6947_v30, %v886_v0 }
 0x377   :  { %v930_v31 = vmax.f32 %v887_v43, 0.0 }
 0x378   :  { %v1042_v29 = vpop.f32.mrf.mxu1 }
 0x379   :  { %v1043_v39 = vadd.f32 %v7082_v32, %v1042_v29 }
 0x37b   :  { %v1112_v14 = vmax.f32 %v1043_v39, 0.0 }
 0x37c   :  { %v888_v19 = vpop.f32.mrf.mxu3 }
 0x37d   :  { %v1140_v33 = vpack.c.bf16 %v1112_v14, %v1111_v1  ;;  %v889_v17 = vadd.f32 %v6947_v30, %v888_v19 }
 0x37f   :  { %v931_v53 = vmax.f32 %v889_v17, 0.0  ;;  %5703 = vmatmul.msk.bf16.gmra.mxu2 %vm316_vm1, %v1140_v33 }
 0x380   :  { %v1045_v44 = vpop.f32.mrf.mxu1 }
 0x381   :  { %v950_v26 = vpack.c.bf16 %v931_v53, %v930_v31  ;;  %v1046_v0 = vadd.f32 %v7082_v32, %v1045_v44  ;;  %v6283_v44 = vld [vmem:[%s9730_s1 + $0x48] sm:$0xff] }
 0x382   :  { %1476 = vmatpush.bf16.msra.mxu0 %v6283_v44 }
 0x383   :  { %5689 = vmatmul.msk.bf16.gmra.mxu1 %vm316_vm1, %v950_v26  ;;  %v1113_v39 = vmax.f32 %v1046_v0, 0.0 }
 0x384   :  { %v891_v45 = vpop.f32.mrf.mxu3 }
 0x385   :  { %v892_v1 = vadd.f32 %v6947_v30, %v891_v45 }
 0x387   :  { %v932_v33 = vmax.f32 %v892_v1, 0.0 }
 0x388   :  { %v1047_v57 = vpop.f32.mrf.mxu1 }
 0x389   :  { %v1048_v29 = vadd.f32 %v7082_v32, %v1047_v57 }
 0x38b   :  { %v1114_v14 = vmax.f32 %v1048_v29, 0.0 }
 0x38c   :  { %v893_v19 = vpop.f32.mrf.mxu3 }
 0x38d   :  { %v1141_v43 = vpack.c.bf16 %v1114_v14, %v1113_v39  ;;  %v894_v17 = vadd.f32 %v6947_v30, %v893_v19 }
 0x38f   :  { %v933_v27 = vmax.f32 %v894_v17, 0.0  ;;  %5704 = vmatmul.msk.bf16.gmra.mxu2 %vm316_vm1, %v1141_v43 }
 0x390   :  { %v1050_v31 = vpop.f32.mrf.mxu1 }
 0x391   :  { %v951_v53 = vpack.c.bf16 %v933_v27, %v932_v33  ;;  %v1051_v45 = vadd.f32 %v7082_v32, %v1050_v31 }
 0x393   :  { %5690 = vmatmul.msk.bf16.gmra.mxu1 %vm316_vm1, %v951_v53  ;;  %v1115_v29 = vmax.f32 %v1051_v45, 0.0 }
 0x394   :  { %v896_v26 = vpop.f32.mrf.mxu3 }
 0x395   :  { %v897_v39 = vadd.f32 %v6947_v30, %v896_v26 }
 0x397   :  { %v934_v17 = vmax.f32 %v897_v39, 0.0 }
 0x398   :  { %v1052_v0 = vpop.f32.mrf.mxu1 }
 0x399   :  { %v1053_v57 = vadd.f32 %v7082_v32, %v1052_v0 }
 0x39b   :  { %v1116_v1 = vmax.f32 %v1053_v57, 0.0 }
 0x39c   :  { %v898_v14 = vpop.f32.mrf.mxu3 }
 0x39d   :  { %v1142_v19 = vpack.c.bf16 %v1116_v1, %v1115_v29  ;;  %v899_v43 = vadd.f32 %v6947_v30, %v898_v14 }
 0x39f   :  { %v935_v33 = vmax.f32 %v899_v43, 0.0  ;;  %5705 = vmatmul.msk.bf16.gmra.mxu2 %vm316_vm1, %v1142_v19  ;;  %v6282_v19 = vld [vmem:[%s9730_s1 + $0x40] sm:$0xff] }
 0x3a0   :  { %v1055_v27 = vpop.f32.mrf.mxu1  ;;  %1477 = vmatpush.bf16.msra.mxu0 %v6282_v19 }
 0x3a1   :  { %v952_v53 = vpack.c.bf16 %v935_v33, %v934_v17  ;;  %v1056_v44 = vadd.f32 %v7082_v32, %v1055_v27 }
 0x3a3   :  { %5691 = vmatmul.msk.bf16.gmra.mxu1 %vm316_vm1, %v952_v53  ;;  %v1117_v26 = vmax.f32 %v1056_v44, 0.0 }
 0x3a4   :  { %v901_v31 = vpop.f32.mrf.mxu3 }
 0x3a5   :  { %v902_v57 = vadd.f32 %v6947_v30, %v901_v31 }
 0x3a7   :  { %v936_v43 = vmax.f32 %v902_v57, 0.0 }
 0x3a8   :  { %v1057_v0 = vpop.f32.mrf.mxu1 }
 0x3a9   :  { %v1058_v45 = vadd.f32 %v7082_v32, %v1057_v0 }
 0x3ab   :  { %v1118_v29 = vmax.f32 %v1058_v45, 0.0 }
 0x3ac   :  { %v903_v1 = vpop.f32.mrf.mxu3 }
 0x3ad   :  { %v1143_v14 = vpack.c.bf16 %v1118_v29, %v1117_v26  ;;  %v904_v39 = vadd.f32 %v6947_v30, %v903_v1 }
 0x3af   :  { %v937_v17 = vmax.f32 %v904_v39, 0.0  ;;  %5706 = vmatmul.msk.bf16.gmra.mxu2 %vm316_vm1, %v1143_v14 }
 0x3b0   :  { %v1060_v33 = vpop.f32.mrf.mxu1 }
 0x3b1   :  { %v953_v27 = vpack.c.bf16 %v937_v17, %v936_v43  ;;  %v1061_v53 = vadd.f32 %v7082_v32, %v1060_v33  ;;  %v7151_v33 = vld [vmem:[%s9735_s6 + $0x1] ss:$0 sm:$0xff] }
 0x3b3   :  { %5692 = vmatmul.msk.bf16.gmra.mxu1 %vm316_vm1, %v953_v27  ;;  %v1119_v0 = vmax.f32 %v1061_v53, 0.0 }
 0x3b8   :  { %v1062_v31 = vpop.f32.mrf.mxu1 }
 0x3b9   :  { %v1063_v44 = vadd.f32 %v7082_v32, %v1062_v31 }
 0x3bb   :  { %v1120_v30 = vmax.f32 %v1063_v44, 0.0 }
 0x3bd   :  { %v1144_v45 = vpack.c.bf16 %v1120_v30, %v1119_v0 }
 0x3bf   :  { %5707 = vmatmul.msk.bf16.gmra.mxu2 %vm316_vm1, %v1144_v45 }
 0x3c0   :  { %v1065_v26 = vpop.f32.mrf.mxu1 }
 0x3c1   :  { %v1066_v57 = vadd.f32 %v7082_v32, %v1065_v26 }
 0x3c3   :  { %v1121_v14 = vmax.f32 %v1066_v57, 0.0 }
 0x3c8   :  { %v1067_v29 = vpop.f32.mrf.mxu1 }
 0x3c9   :  { %v1068_v1 = vadd.f32 %v7082_v32, %v1067_v29 }
 0x3cb   :  { %v1122_v39 = vmax.f32 %v1068_v1, 0.0 }
 0x3cd   :  { %v1145_v19 = vpack.c.bf16 %v1122_v39, %v1121_v14 }
 0x3cf   :  { %5708 = vmatmul.msk.bf16.gmra.mxu2 %vm316_vm1, %v1145_v19 }
 0x3d0   :  { %v1070_v43 = vpop.f32.mrf.mxu1 }
 0x3d1   :  { %v1071_v27 = vadd.f32 %v7082_v32, %v1070_v43 }
 0x3d2   :  { %v1224_v17 = vpop.f32.mrf.mxu2 }
 0x3d3   :  { %v1225_v53 = vadd.f32 %v7151_v33, %v1224_v17  ;;  %v1123_v30 = vmax.f32 %v1071_v27, 0.0 }
 0x3d5   :  { %v7158_v45 = vadd.f32 %v1225_v53, %v683_v25 }
 0x3d7   :  { %v1336_v14 = vmax.f32 %v7158_v45, 0.0 }
 0x3d8   :  { %v1072_v31 = vpop.f32.mrf.mxu1 }
 0x3d9   :  { %v1073_v44 = vadd.f32 %v7082_v32, %v1072_v31 }
 0x3da   :  { %v1226_v0 = vpop.f32.mrf.mxu2 }
 0x3db   :  { %v1124_v26 = vmax.f32 %v1073_v44, 0.0  ;;  %v1227_v57 = vadd.f32 %v7151_v33, %v1226_v0 }
 0x3dd   :  { %v1146_v29 = vpack.c.bf16 %v1124_v26, %v1123_v30  ;;  %v7163_v1 = vadd.f32 %v1227_v57, %v684_v41 }
 0x3df   :  { %v1337_v39 = vmax.f32 %v7163_v1, 0.0  ;;  %5709 = vmatmul.msk.bf16.gmra.mxu2 %vm316_vm1, %v1146_v29  ;;  %v6293_v1 = vld [vmem:[%s9734_s5 + $0x18] sm:$0xff] }
 0x3e0   :  { %v1075_v19 = vpop.f32.mrf.mxu1  ;;  %2528 = vmatpush.bf16.msrb.mxu3 %v6293_v1 }
 0x3e1   :  { %v1368_v3 = vpack.c.bf16 %v1337_v39, %v1336_v14  ;;  %v1076_v41 = vadd.f32 %v7082_v32, %v1075_v19 }
 0x3e2   :  { %v1229_v25 = vpop.f32.mrf.mxu2 }
 0x3e3   :  { %5741 = vmatmul.msk.bf16.vlgmr.msra.gmra.mxu0 %vm118_vm0, %v1368_v3  ;;  %v1230_v43 = vadd.f32 %v7151_v33, %v1229_v25  ;;  %v1125_v31 = vmax.f32 %v1076_v41, 0.0 }
 0x3e5   :  { %v7181_v44 = vadd.f32 %v1230_v43, %v685_v61 }
 0x3e7   :  { %v1338_v29 = vmax.f32 %v7181_v44, 0.0 }
 0x3e8   :  { %v1077_v17 = vpop.f32.mrf.mxu1 }
 0x3e9   :  { %v1078_v27 = vadd.f32 %v7082_v32, %v1077_v17 }
 0x3ea   :  { %v1231_v53 = vpop.f32.mrf.mxu2 }
 0x3eb   :  { %v1126_v0 = vmax.f32 %v1078_v27, 0.0  ;;  %v1232_v30 = vadd.f32 %v7151_v33, %v1231_v53 }
 0x3ed   :  { %v1147_v26 = vpack.c.bf16 %v1126_v0, %v1125_v31  ;;  %v7186_v57 = vadd.f32 %v1232_v30, %v686_v55 }
 0x3ef   :  { %v1339_v19 = vmax.f32 %v7186_v57, 0.0  ;;  %5710 = vmatmul.msk.bf16.gmra.mxu2 %vm316_vm1, %v1147_v26 }
 0x3f0   :  { %v1080_v3 = vpop.f32.mrf.mxu1 }
 0x3f1   :  { %v1369_v56 = vpack.c.bf16 %v1339_v19, %v1338_v29  ;;  %v1081_v25 = vadd.f32 %v7082_v32, %v1080_v3 }
 0x3f2   :  { %v1234_v61 = vpop.f32.mrf.mxu2 }
 0x3f3   :  { %5742 = vmatmul.msk.bf16.gmra.mxu0 %vm118_vm0, %v1369_v56  ;;  %v1235_v54 = vadd.f32 %v7151_v33, %v1234_v61  ;;  %v1127_v43 = vmax.f32 %v1081_v25, 0.0 }
 0x3f5   :  { %v7201_v17 = vadd.f32 %v1235_v54, %v687_v2 }
 0x3f7   :  { %v1340_v30 = vmax.f32 %v7201_v17, 0.0 }
 0x3f8   :  { %v1082_v55 = vpop.f32.mrf.mxu1 }
 0x3f9   :  { %v1083_v63 = vadd.f32 %v7082_v32, %v1082_v55 }
 0x3fa   :  { %v1236_v41 = vpop.f32.mrf.mxu2 }
 0x3fb   :  { %v1128_v27 = vmax.f32 %v1083_v63, 0.0  ;;  %v1237_v53 = vadd.f32 %v7151_v33, %v1236_v41 }
 0x3fd   :  { %v1148_v31 = vpack.c.bf16 %v1128_v27, %v1127_v43  ;;  %v7206_v0 = vadd.f32 %v1237_v53, %v688_v6 }
 0x3ff   :  { %v1341_v26 = vmax.f32 %v7206_v0, 0.0  ;;  %5711 = vmatmul.msk.bf16.gmra.mxu2 %vm316_vm1, %v1148_v31 }
 0x400   :  { %v1085_v3 = vpop.f32.mrf.mxu1 }
 0x401   :  { %v1370_v9 = vpack.c.bf16 %v1341_v26, %v1340_v30  ;;  %v1086_v56 = vadd.f32 %v7082_v32, %v1085_v3 }
 0x402   :  { %v1239_v2 = vpop.f32.mrf.mxu2 }
 0x403   :  { %5743 = vmatmul.msk.bf16.gmra.mxu0 %vm118_vm0, %v1370_v9  ;;  %v1240_v62 = vadd.f32 %v7151_v33, %v1239_v2  ;;  %v1129_v54 = vmax.f32 %v1086_v56, 0.0 }
 0x405   :  { %v7221_v55 = vadd.f32 %v1240_v62, %v689_v5 }
 0x407   :  { %v1342_v53 = vmax.f32 %v7221_v55, 0.0 }
 0x408   :  { %v1087_v6 = vpop.f32.mrf.mxu1 }
 0x409   :  { %v1088_v61 = vadd.f32 %v7082_v32, %v1087_v6 }
 0x40a   :  { %v1241_v25 = vpop.f32.mrf.mxu2 }
 0x40b   :  { %v1130_v63 = vmax.f32 %v1088_v61, 0.0  ;;  %v1242_v41 = vadd.f32 %v7151_v33, %v1241_v25 }
 0x40d   :  { %v1149_v43 = vpack.c.bf16 %v1130_v63, %v1129_v54  ;;  %v7226_v27 = vadd.f32 %v1242_v41, %v690_v37 }
 0x40f   :  { %v1343_v31 = vmax.f32 %v7226_v27, 0.0  ;;  %5712 = vmatmul.msk.bf16.gmra.mxu2 %vm316_vm1, %v1149_v43 }
 0x410   :  { %v1090_v3 = vpop.f32.mrf.mxu1 }
 0x411   :  { %v1371_v34 = vpack.c.bf16 %v1343_v31, %v1342_v53  ;;  %v1091_v9 = vadd.f32 %v7082_v32, %v1090_v3 }
 0x412   :  { %v1244_v5 = vpop.f32.mrf.mxu2 }
 0x413   :  { %5744 = vmatmul.msk.bf16.gmra.mxu0 %vm118_vm0, %v1371_v34  ;;  %v1245_v36 = vadd.f32 %v7151_v33, %v1244_v5  ;;  %v1131_v62 = vmax.f32 %v1091_v9, 0.0 }
 0x415   :  { %v7241_v6 = vadd.f32 %v1245_v36, %v691_v7 }
 0x417   :  { %v1344_v41 = vmax.f32 %v7241_v6, 0.0 }
 0x418   :  { %v1092_v37 = vpop.f32.mrf.mxu1 }
 0x419   :  { %v1093_v2 = vadd.f32 %v7082_v32, %v1092_v37 }
 0x41a   :  { %v1246_v56 = vpop.f32.mrf.mxu2 }
 0x41b   :  { %v1132_v61 = vmax.f32 %v1093_v2, 0.0  ;;  %v1247_v25 = vadd.f32 %v7151_v33, %v1246_v56 }
 0x41d   :  { %v1150_v54 = vpack.c.bf16 %v1132_v61, %v1131_v62  ;;  %v7246_v63 = vadd.f32 %v1247_v25, %v692_v52 }
 0x41f   :  { %v1345_v43 = vmax.f32 %v7246_v63, 0.0  ;;  %5713 = vmatmul.msk.bf16.gmra.mxu2 %vm316_vm1, %v1150_v54 }
 0x420   :  { %v1095_v3 = vpop.f32.mrf.mxu1 }
 0x421   :  { %v1372_v15 = vpack.c.bf16 %v1345_v43, %v1344_v41  ;;  %v1096_v34 = vadd.f32 %v7082_v32, %v1095_v3 }
 0x422   :  { %v1249_v7 = vpop.f32.mrf.mxu2 }
 0x423   :  { %5745 = vmatmul.msk.bf16.gmra.mxu0 %vm118_vm0, %v1372_v15  ;;  %v1250_v48 = vadd.f32 %v7151_v33, %v1249_v7  ;;  %v1133_v36 = vmax.f32 %v1096_v34, 0.0 }
 0x425   :  { %v7261_v37 = vadd.f32 %v1250_v48, %v693_v46 }
 0x427   :  { %v1346_v25 = vmax.f32 %v7261_v37, 0.0 }
 0x428   :  { %v1097_v52 = vpop.f32.mrf.mxu1 }
 0x429   :  { %v1098_v5 = vadd.f32 %v7082_v32, %v1097_v52 }
 0x42a   :  { %v1251_v9 = vpop.f32.mrf.mxu2 }
 0x42b   :  { %v1134_v2 = vmax.f32 %v1098_v5, 0.0  ;;  %v1252_v56 = vadd.f32 %v7151_v33, %v1251_v9 }
 0x42d   :  { %v1151_v62 = vpack.c.bf16 %v1134_v2, %v1133_v36  ;;  %v7266_v61 = vadd.f32 %v1252_v56, %v694_v10 }
 0x42f   :  { %v1347_v54 = vmax.f32 %v7266_v61, 0.0  ;;  %5714 = vmatmul.msk.bf16.gmra.mxu2 %vm316_vm1, %v1151_v62 }
 0x430   :  { %v1100_v3 = vpop.f32.mrf.mxu1 }
 0x431   :  { %v1373_v18 = vpack.c.bf16 %v1347_v54, %v1346_v25  ;;  %v1101_v15 = vadd.f32 %v7082_v32, %v1100_v3 }
 0x432   :  { %v1254_v46 = vpop.f32.mrf.mxu2 }
 0x433   :  { %5746 = vmatmul.msk.bf16.gmra.mxu0 %vm118_vm0, %v1373_v18  ;;  %v1255_v22 = vadd.f32 %v7151_v33, %v1254_v46  ;;  %v1135_v48 = vmax.f32 %v1101_v15, 0.0  ;;  %v9869_v46 = vmax.f32 %v6919_v35, 0.0 }
 0x435   :  { %v7281_v52 = vadd.f32 %v1255_v22, %v695_v13 }
 0x437   :  { %v1348_v56 = vmax.f32 %v7281_v52, 0.0 }
 0x438   :  { %v1102_v10 = vpop.f32.mrf.mxu1 }
 0x439   :  { %v1103_v7 = vadd.f32 %v7082_v32, %v1102_v10 }
 0x43a   :  { %v1256_v34 = vpop.f32.mrf.mxu2 }
 0x43b   :  { %v1136_v5 = vmax.f32 %v1103_v7, 0.0  ;;  %v1257_v9 = vadd.f32 %v7151_v33, %v1256_v34 }
 0x43d   :  { %v1152_v36 = vpack.c.bf16 %v1136_v5, %v1135_v48  ;;  %v7286_v2 = vadd.f32 %v1257_v9, %v696_v38  ;;  %v9870_v5 = vmax.f32 %v6930_v28, 0.0  ;;  %v7332_v28 = vld [vmem:[%s9731_s2 + $0x2] ss:$0 sm:$0xff] }
 0x43f   :  { %v9775_v62 = vmax.f32 %v7286_v2, 0.0  ;;  %5715 = vmatmul.msk.bf16.gmra.mxu2 %vm316_vm1, %v1152_v36  ;;  %v9871_v36 = vmax.f32 %v6934_v11, 0.0 }
 0x441   :  { %v1374_v21 = vpack.c.bf16 %v9775_v62, %v1348_v56 }
 0x442   :  { %v1259_v13 = vpop.f32.mrf.mxu2 }
 0x443   :  { %5747 = vmatmul.msk.bf16.gmra.mxu0 %vm118_vm0, %v1374_v21  ;;  %v1260_v32 = vadd.f32 %v7151_v33, %v1259_v13 }
 0x445   :  { %v7299_v38 = vadd.f32 %v1260_v32, %v9868_v47 }
 0x447   :  { %v9774_v22 = vmax.f32 %v7299_v38, 0.0 }
 0x44a   :  { %v1261_v3 = vpop.f32.mrf.mxu2 }
 0x44b   :  { %v1262_v18 = vadd.f32 %v7151_v33, %v1261_v3 }
 0x44d   :  { %v7304_v15 = vadd.f32 %v1262_v18, %v9869_v46 }
 0x44f   :  { %v9759_v10 = vmax.f32 %v7304_v15, 0.0 }
 0x451   :  { %v1375_v7 = vpack.c.bf16 %v9759_v10, %v9774_v22  ;;  %v9873_v10 = vmax.f32 %v6955_v8, 0.0 }
 0x452   :  { %v1264_v34 = vpop.f32.mrf.mxu2 }
 0x453   :  { %5748 = vmatmul.msk.bf16.gmra.mxu0 %vm118_vm0, %v1375_v7  ;;  %v1265_v24 = vadd.f32 %v7151_v33, %v1264_v34 }
 0x455   :  { %v7316_v35 = vadd.f32 %v1265_v24, %v9870_v5  ;;  %v9872_v5 = vmax.f32 %v6950_v51, 0.0 }
 0x457   :  { %v9758_v13 = vmax.f32 %v7316_v35, 0.0 }
 0x45a   :  { %v1266_v48 = vpop.f32.mrf.mxu2 }
 0x45b   :  { %v1267_v9 = vadd.f32 %v7151_v33, %v1266_v48 }
 0x45d   :  { %v7321_v21 = vadd.f32 %v1267_v9, %v9871_v36 }
 0x45f   :  { %v9757_v32 = vmax.f32 %v7321_v21, 0.0 }
 0x460   :  { %v1479_v3 = vpop.f32.mrf.mxu0 }
 0x461   :  { %v1376_v47 = vpack.c.bf16 %v9757_v32, %v9758_v13  ;;  %v1480_v11 = vadd.f32 %v7332_v28, %v1479_v3 }
 0x462   :  { %v1269_v18 = vpop.f32.mrf.mxu2 }
 0x463   :  { %5749 = vmatmul.msk.bf16.gmra.mxu0 %vm118_vm0, %v1376_v47  ;;  %v1270_v46 = vadd.f32 %v7151_v33, %v1269_v18  ;;  %v1559_v48 = vmax.f32 %v1480_v11, 0.0  ;;  %v6291_v11 = vld [vmem:[%s9730_s1 + $0x78] sm:$0xff] }
 0x464   :  { %2127 = vmatpush.bf16.msrb.mxu2 %v6291_v11 }
 0x465   :  { %v7340_v9 = vadd.f32 %v1270_v46, %v9872_v5 }
 0x467   :  { %v9761_v3 = vmax.f32 %v7340_v9, 0.0 }
 0x468   :  { %v1481_v7 = vpop.f32.mrf.mxu0 }
 0x469   :  { %v1482_v34 = vadd.f32 %v7332_v28, %v1481_v7 }
 0x46a   :  { %v1271_v24 = vpop.f32.mrf.mxu2 }
 0x46b   :  { %v1560_v36 = vmax.f32 %v1482_v34, 0.0  ;;  %v1272_v32 = vadd.f32 %v7151_v33, %v1271_v24 }
 0x46d   :  { %v1591_v13 = vpack.c.bf16 %v1560_v36, %v1559_v48  ;;  %v7345_v47 = vadd.f32 %v1272_v32, %v9873_v10  ;;  %v9874_v48 = vmax.f32 %v6968_v20, 0.0 }
 0x46f   :  { %v9760_v18 = vmax.f32 %v7345_v47, 0.0  ;;  %5764 = vmatmul.msk.bf16.vlgmr.msra.gmra.mxu3 %vm316_vm1, %v1591_v13 }
 0x470   :  { %v1484_v7 = vpop.f32.mrf.mxu0 }
 0x471   :  { %v1377_v51 = vpack.c.bf16 %v9760_v18, %v9761_v3  ;;  %v1485_v8 = vadd.f32 %v7332_v28, %v1484_v7 }
 0x472   :  { %v1274_v46 = vpop.f32.mrf.mxu2 }
 0x473   :  { %5750 = vmatmul.msk.bf16.gmra.mxu0 %vm118_vm0, %v1377_v51  ;;  %v1275_v10 = vadd.f32 %v7151_v33, %v1274_v46  ;;  %v1561_v24 = vmax.f32 %v1485_v8, 0.0  ;;  %v9875_v51 = vmax.f32 %v6973_v4, 0.0 }
 0x475   :  { %v7363_v5 = vadd.f32 %v1275_v10, %v9874_v48 }
 0x477   :  { %v9763_v7 = vmax.f32 %v7363_v5, 0.0 }
 0x478   :  { %v1486_v32 = vpop.f32.mrf.mxu0 }
 0x479   :  { %v1487_v13 = vadd.f32 %v7332_v28, %v1486_v32 }
 0x47a   :  { %v1276_v34 = vpop.f32.mrf.mxu2 }
 0x47b   :  { %v1562_v36 = vmax.f32 %v1487_v13, 0.0  ;;  %v1277_v18 = vadd.f32 %v7151_v33, %v1276_v34 }
 0x47d   :  { %v1592_v3 = vpack.c.bf16 %v1562_v36, %v1561_v24  ;;  %v7368_v11 = vadd.f32 %v1277_v18, %v9875_v51 }
 0x47f   :  { %v9762_v46 = vmax.f32 %v7368_v11, 0.0  ;;  %5765 = vmatmul.msk.bf16.gmra.mxu3 %vm316_vm1, %v1592_v3  ;;  %v9876_v3 = vmax.f32 %v6986_v58, 0.0 }
 0x480   :  { %v1489_v32 = vpop.f32.mrf.mxu0 }
 0x481   :  { %v1378_v20 = vpack.c.bf16 %v9762_v46, %v9763_v7  ;;  %v1490_v10 = vadd.f32 %v7332_v28, %v1489_v32  ;;  %v9877_v7 = vmax.f32 %v6991_v42, 0.0 }
 0x482   :  { %v1279_v8 = vpop.f32.mrf.mxu2 }
 0x483   :  { %5751 = vmatmul.msk.bf16.gmra.mxu0 %vm118_vm0, %v1378_v20  ;;  %v1280_v4 = vadd.f32 %v7151_v33, %v1279_v8  ;;  %v1563_v24 = vmax.f32 %v1490_v10, 0.0 }
 0x485   :  { %v7383_v48 = vadd.f32 %v1280_v4, %v9876_v3 }
 0x487   :  { %v9765_v32 = vmax.f32 %v7383_v48, 0.0 }
 0x488   :  { %v1491_v18 = vpop.f32.mrf.mxu0 }
 0x489   :  { %v1492_v13 = vadd.f32 %v7332_v28, %v1491_v18 }
 0x48a   :  { %v1281_v34 = vpop.f32.mrf.mxu2 }
 0x48b   :  { %v1564_v36 = vmax.f32 %v1492_v13, 0.0  ;;  %v1282_v51 = vadd.f32 %v7151_v33, %v1281_v34 }
 0x48d   :  { %v1593_v46 = vpack.c.bf16 %v1564_v36, %v1563_v24  ;;  %v7388_v20 = vadd.f32 %v1282_v51, %v9877_v7 }
 0x48f   :  { %v9764_v8 = vmax.f32 %v7388_v20, 0.0  ;;  %5766 = vmatmul.msk.bf16.gmra.mxu3 %vm316_vm1, %v1593_v46  ;;  %v9878_v46 = vmax.f32 %v7004_v12, 0.0 }
 0x490   :  { %v1494_v18 = vpop.f32.mrf.mxu0 }
 0x491   :  { %v1379_v58 = vpack.c.bf16 %v9764_v8, %v9765_v32  ;;  %v1495_v4 = vadd.f32 %v7332_v28, %v1494_v18  ;;  %v9879_v32 = vmax.f32 %v7009_v23, 0.0 }
 0x492   :  { %v1284_v10 = vpop.f32.mrf.mxu2 }
 0x493   :  { %5752 = vmatmul.msk.bf16.gmra.mxu0 %vm118_vm0, %v1379_v58  ;;  %v1285_v42 = vadd.f32 %v7151_v33, %v1284_v10  ;;  %v1565_v24 = vmax.f32 %v1495_v4, 0.0 }
 0x495   :  { %v7403_v3 = vadd.f32 %v1285_v42, %v9878_v46 }
 0x497   :  { %v9767_v18 = vmax.f32 %v7403_v3, 0.0 }
 0x498   :  { %v1496_v7 = vpop.f32.mrf.mxu0 }
 0x499   :  { %v1497_v13 = vadd.f32 %v7332_v28, %v1496_v7 }
 0x49a   :  { %v1286_v34 = vpop.f32.mrf.mxu2 }
 0x49b   :  { %v1566_v36 = vmax.f32 %v1497_v13, 0.0  ;;  %v1287_v51 = vadd.f32 %v7151_v33, %v1286_v34 }
 0x49d   :  { %v1594_v8 = vpack.c.bf16 %v1566_v36, %v1565_v24  ;;  %v7408_v58 = vadd.f32 %v1287_v51, %v9879_v32 }
 0x49f   :  { %v9766_v10 = vmax.f32 %v7408_v58, 0.0  ;;  %5767 = vmatmul.msk.bf16.gmra.mxu3 %vm316_vm1, %v1594_v8  ;;  %v9880_v8 = vmax.f32 %v7022_v49, 0.0 }
 0x4a0   :  { %v1499_v7 = vpop.f32.mrf.mxu0 }
 0x4a1   :  { %v1380_v12 = vpack.c.bf16 %v9766_v10, %v9767_v18  ;;  %v1500_v42 = vadd.f32 %v7332_v28, %v1499_v7  ;;  %v9881_v18 = vmax.f32 %v7027_v40, 0.0 }
 0x4a2   :  { %v1289_v4 = vpop.f32.mrf.mxu2 }
 0x4a3   :  { %5753 = vmatmul.msk.bf16.gmra.mxu0 %vm118_vm0, %v1380_v12  ;;  %v1290_v23 = vadd.f32 %v7151_v33, %v1289_v4  ;;  %v1567_v24 = vmax.f32 %v1500_v42, 0.0  ;;  %v6290_v42 = vld [vmem:[%s9730_s1 + $0x70] sm:$0xff] }
 0x4a4   :  { %2128 = vmatpush.bf16.msrb.mxu2 %v6290_v42 }
 0x4a5   :  { %v7423_v46 = vadd.f32 %v1290_v23, %v9880_v8  ;;  %v9882_v8 = vmax.f32 %v7040_v59, 0.0 }
 0x4a7   :  { %v9769_v7 = vmax.f32 %v7423_v46, 0.0 }
 0x4a8   :  { %v1501_v32 = vpop.f32.mrf.mxu0 }
 0x4a9   :  { %v1502_v13 = vadd.f32 %v7332_v28, %v1501_v32 }
 0x4aa   :  { %v1291_v34 = vpop.f32.mrf.mxu2 }
 0x4ab   :  { %v1568_v36 = vmax.f32 %v1502_v13, 0.0  ;;  %v1292_v51 = vadd.f32 %v7151_v33, %v1291_v34 }
 0x4ad   :  { %v1595_v10 = vpack.c.bf16 %v1568_v36, %v1567_v24  ;;  %v7428_v12 = vadd.f32 %v1292_v51, %v9881_v18 }
 0x4af   :  { %v9768_v4 = vmax.f32 %v7428_v12, 0.0  ;;  %5768 = vmatmul.msk.bf16.gmra.mxu3 %vm316_vm1, %v1595_v10 }
 0x4b0   :  { %v1504_v32 = vpop.f32.mrf.mxu0 }
 0x4b1   :  { %v1381_v49 = vpack.c.bf16 %v9768_v4, %v9769_v7  ;;  %v1505_v40 = vadd.f32 %v7332_v28, %v1504_v32 }
 0x4b2   :  { %v1294_v23 = vpop.f32.mrf.mxu2 }
 0x4b3   :  { %5754 = vmatmul.msk.bf16.gmra.mxu0 %vm118_vm0, %v1381_v49  ;;  %v1295_v18 = vadd.f32 %v7151_v33, %v1294_v23  ;;  %v1569_v24 = vmax.f32 %v1505_v40, 0.0  ;;  %v9883_v49 = vmax.f32 %v7045_v50, 0.0 }
 0x4b5   :  { %v7446_v36 = vadd.f32 %v1295_v18, %v9882_v8 }
 0x4b7   :  { %v9771_v32 = vmax.f32 %v7446_v36, 0.0 }
 0x4b8   :  { %v1506_v13 = vpop.f32.mrf.mxu0 }
 0x4b9   :  { %v1507_v10 = vadd.f32 %v7332_v28, %v1506_v13 }
 0x4ba   :  { %v1296_v34 = vpop.f32.mrf.mxu2 }
 0x4bb   :  { %v1570_v51 = vmax.f32 %v1507_v10, 0.0  ;;  %v1297_v4 = vadd.f32 %v7151_v33, %v1296_v34 }
 0x4bd   :  { %v1596_v7 = vpack.c.bf16 %v1570_v51, %v1569_v24  ;;  %v7451_v42 = vadd.f32 %v1297_v4, %v9883_v49 }
 0x4bf   :  { %v9770_v23 = vmax.f32 %v7451_v42, 0.0  ;;  %5769 = vmatmul.msk.bf16.gmra.mxu3 %vm316_vm1, %v1596_v7  ;;  %v9884_v7 = vmax.f32 %v7058_v16, 0.0 }
 0x4c0   :  { %v1509_v13 = vpop.f32.mrf.mxu0 }
 0x4c1   :  { %v1382_v59 = vpack.c.bf16 %v9770_v23, %v9771_v32  ;;  %v1510_v18 = vadd.f32 %v7332_v28, %v1509_v13  ;;  %v9885_v32 = vmax.f32 %v7063_v60, 0.0 }
 0x4c2   :  { %v1299_v40 = vpop.f32.mrf.mxu2 }
 0x4c3   :  { %5755 = vmatmul.msk.bf16.gmra.mxu0 %vm118_vm0, %v1382_v59  ;;  %v1300_v50 = vadd.f32 %v7151_v33, %v1299_v40  ;;  %v1571_v24 = vmax.f32 %v1510_v18, 0.0 }
 0x4c5   :  { %v7466_v8 = vadd.f32 %v1300_v50, %v9884_v7 }
 0x4c7   :  { %v9773_v13 = vmax.f32 %v7466_v8, 0.0 }
 0x4c8   :  { %v1511_v4 = vpop.f32.mrf.mxu0 }
 0x4c9   :  { %v1512_v10 = vadd.f32 %v7332_v28, %v1511_v4 }
 0x4ca   :  { %v1301_v34 = vpop.f32.mrf.mxu2 }
 0x4cb   :  { %v1572_v51 = vmax.f32 %v1512_v10, 0.0  ;;  %v1302_v49 = vadd.f32 %v7151_v33, %v1301_v34 }
 0x4cd   :  { %v1597_v23 = vpack.c.bf16 %v1572_v51, %v1571_v24  ;;  %v7471_v59 = vadd.f32 %v1302_v49, %v9885_v32 }
 0x4cf   :  { %v9772_v40 = vmax.f32 %v7471_v59, 0.0  ;;  %5770 = vmatmul.msk.bf16.gmra.mxu3 %vm316_vm1, %v1597_v23 }
 0x4d0   :  { %v1514_v4 = vpop.f32.mrf.mxu0 }
 0x4d1   :  { %v1383_v16 = vpack.c.bf16 %v9772_v40, %v9773_v13  ;;  %v1515_v33 = vadd.f32 %v7332_v28, %v1514_v4  ;;  %v6289_v4 = vld [vmem:[%s9730_s1 + $0x68] sm:$0xff] }
 0x4d2   :  { %2129 = vmatpush.bf16.msrb.mxu2 %v6289_v4 }
 0x4d3   :  { %5756 = vmatmul.msk.bf16.gmra.mxu0 %vm118_vm0, %v1383_v16  ;;  %v1573_v32 = vmax.f32 %v1515_v33, 0.0 }
 0x4d8   :  { %v1516_v18 = vpop.f32.mrf.mxu0 }
 0x4d9   :  { %v1517_v60 = vadd.f32 %v7332_v28, %v1516_v18  ;;  %v7493_v18 = vld [vmem:[%s9733_s4 + $0x2] ss:$0 sm:$0xff] }
 0x4db   :  { %v1574_v50 = vmax.f32 %v1517_v60, 0.0 }
 0x4dd   :  { %v1598_v10 = vpack.c.bf16 %v1574_v50, %v1573_v32 }
 0x4df   :  { %5771 = vmatmul.msk.bf16.gmra.mxu3 %vm316_vm1, %v1598_v10 }
 0x4e0   :  { %v1519_v34 = vpop.f32.mrf.mxu0 }
 0x4e1   :  { %v1520_v23 = vadd.f32 %v7332_v28, %v1519_v34 }
 0x4e3   :  { %v1575_v51 = vmax.f32 %v1520_v23, 0.0 }
 0x4e8   :  { %v1521_v24 = vpop.f32.mrf.mxu0 }
 0x4e9   :  { %v1522_v7 = vadd.f32 %v7332_v28, %v1521_v24 }
 0x4eb   :  { %v1576_v49 = vmax.f32 %v1522_v7, 0.0 }
 0x4ed   :  { %v1599_v40 = vpack.c.bf16 %v1576_v49, %v1575_v51 }
 0x4ef   :  { %5772 = vmatmul.msk.bf16.gmra.mxu3 %vm316_vm1, %v1599_v40 }
 0x4f0   :  { %v1524_v16 = vpop.f32.mrf.mxu0 }
 0x4f1   :  { %v1525_v60 = vadd.f32 %v7332_v28, %v1524_v16 }
 0x4f2   :  { %v1678_v33 = vpop.f32.mrf.mxu3 }
 0x4f3   :  { %v1679_v50 = vadd.f32 %v7493_v18, %v1678_v33  ;;  %v1577_v34 = vmax.f32 %v1525_v60, 0.0  ;;  %v6292_v33 = vld [vmem:[%s9732_s3 + $0x18] sm:$0xff] }
 0x4f4   :  { %2329 = vmatpush.bf16.msrb.mxu0 %v6292_v33 }
 0x4f5   :  { %v1758_v7 = vmax.f32 %v1679_v50, 0.0 }
 0x4f8   :  { %v1526_v32 = vpop.f32.mrf.mxu0 }
 0x4f9   :  { %v1527_v10 = vadd.f32 %v7332_v28, %v1526_v32 }
 0x4fa   :  { %v1680_v40 = vpop.f32.mrf.mxu3 }
 0x4fb   :  { %v1578_v23 = vmax.f32 %v1527_v10, 0.0  ;;  %v1681_v24 = vadd.f32 %v7493_v18, %v1680_v40 }
 0x4fd   :  { %v1600_v51 = vpack.c.bf16 %v1578_v23, %v1577_v34  ;;  %v1759_v49 = vmax.f32 %v1681_v24, 0.0 }
 0x4ff   :  { %v1790_v4 = vpack.c.bf16 %v1759_v49, %v1758_v7  ;;  %5773 = vmatmul.msk.bf16.gmra.mxu3 %vm316_vm1, %v1600_v51 }
 0x500   :  { %v1529_v13 = vpop.f32.mrf.mxu0 }
 0x501   :  { %5787 = vmatmul.msk.bf16.vlgmr.msra.gmra.mxu1 %vm316_vm1, %v1790_v4  ;;  %v1530_v60 = vadd.f32 %v7332_v28, %v1529_v13 }
 0x502   :  { %v1683_v16 = vpop.f32.mrf.mxu3 }
 0x503   :  { %v1684_v10 = vadd.f32 %v7493_v18, %v1683_v16  ;;  %v1579_v34 = vmax.f32 %v1530_v60, 0.0 }
 0x505   :  { %v1760_v7 = vmax.f32 %v1684_v10, 0.0 }
 0x508   :  { %v1531_v32 = vpop.f32.mrf.mxu0 }
 0x509   :  { %v1532_v50 = vadd.f32 %v7332_v28, %v1531_v32 }
 0x50a   :  { %v1685_v40 = vpop.f32.mrf.mxu3 }
 0x50b   :  { %v1580_v23 = vmax.f32 %v1532_v50, 0.0  ;;  %v1686_v24 = vadd.f32 %v7493_v18, %v1685_v40 }
 0x50d   :  { %v1601_v51 = vpack.c.bf16 %v1580_v23, %v1579_v34  ;;  %v1761_v49 = vmax.f32 %v1686_v24, 0.0 }
 0x50f   :  { %v1791_v4 = vpack.c.bf16 %v1761_v49, %v1760_v7  ;;  %5774 = vmatmul.msk.bf16.gmra.mxu3 %vm316_vm1, %v1601_v51 }
 0x510   :  { %v1534_v22 = vpop.f32.mrf.mxu0 }
 0x511   :  { %5788 = vmatmul.msk.bf16.gmra.mxu1 %vm316_vm1, %v1791_v4  ;;  %v1535_v33 = vadd.f32 %v7332_v28, %v1534_v22 }
 0x512   :  { %v1688_v13 = vpop.f32.mrf.mxu3 }
 0x513   :  { %v1689_v32 = vadd.f32 %v7493_v18, %v1688_v13  ;;  %v1581_v62 = vmax.f32 %v1535_v33, 0.0 }
 0x515   :  { %v1762_v34 = vmax.f32 %v1689_v32, 0.0 }
 0x518   :  { %v1536_v16 = vpop.f32.mrf.mxu0 }
 0x519   :  { %v1537_v60 = vadd.f32 %v7332_v28, %v1536_v16 }
 0x51a   :  { %v1690_v50 = vpop.f32.mrf.mxu3 }
 0x51b   :  { %v1582_v40 = vmax.f32 %v1537_v60, 0.0  ;;  %v1691_v10 = vadd.f32 %v7493_v18, %v1690_v50 }
 0x51d   :  { %v1602_v23 = vpack.c.bf16 %v1582_v40, %v1581_v62  ;;  %v1763_v24 = vmax.f32 %v1691_v10, 0.0 }
 0x51f   :  { %v1792_v7 = vpack.c.bf16 %v1763_v24, %v1762_v34  ;;  %5775 = vmatmul.msk.bf16.gmra.mxu3 %vm316_vm1, %v1602_v23  ;;  %v6288_v23 = vld [vmem:[%s9730_s1 + $0x60] sm:$0xff] }
 0x520   :  { %v1539_v51 = vpop.f32.mrf.mxu0  ;;  %2130 = vmatpush.bf16.msrb.mxu2 %v6288_v23 }
 0x521   :  { %5789 = vmatmul.msk.bf16.gmra.mxu1 %vm316_vm1, %v1792_v7  ;;  %v1540_v49 = vadd.f32 %v7332_v28, %v1539_v51 }
 0x522   :  { %v1693_v22 = vpop.f32.mrf.mxu3 }
 0x523   :  { %v1694_v13 = vadd.f32 %v7493_v18, %v1693_v22  ;;  %v1583_v60 = vmax.f32 %v1540_v49, 0.0 }
 0x525   :  { %v1764_v32 = vmax.f32 %v1694_v13, 0.0 }
 0x528   :  { %v1541_v4 = vpop.f32.mrf.mxu0 }
 0x529   :  { %v1542_v33 = vadd.f32 %v7332_v28, %v1541_v4 }
 0x52a   :  { %v1695_v16 = vpop.f32.mrf.mxu3 }
 0x52b   :  { %v1584_v50 = vmax.f32 %v1542_v33, 0.0  ;;  %v1696_v62 = vadd.f32 %v7493_v18, %v1695_v16 }
 0x52d   :  { %v1603_v40 = vpack.c.bf16 %v1584_v50, %v1583_v60  ;;  %v1765_v10 = vmax.f32 %v1696_v62, 0.0 }
 0x52f   :  { %v1793_v34 = vpack.c.bf16 %v1765_v10, %v1764_v32  ;;  %5776 = vmatmul.msk.bf16.gmra.mxu3 %vm316_vm1, %v1603_v40 }
 0x530   :  { %v1544_v24 = vpop.f32.mrf.mxu0 }
 0x531   :  { %5790 = vmatmul.msk.bf16.gmra.mxu1 %vm316_vm1, %v1793_v34  ;;  %v1545_v51 = vadd.f32 %v7332_v28, %v1544_v24 }
 0x532   :  { %v1698_v7 = vpop.f32.mrf.mxu3 }
 0x533   :  { %v1699_v49 = vadd.f32 %v7493_v18, %v1698_v7  ;;  %v1585_v33 = vmax.f32 %v1545_v51, 0.0 }
 0x535   :  { %v1766_v50 = vmax.f32 %v1699_v49, 0.0 }
 0x538   :  { %v1546_v22 = vpop.f32.mrf.mxu0 }
 0x539   :  { %v1547_v4 = vadd.f32 %v7332_v28, %v1546_v22 }
 0x53a   :  { %v1700_v13 = vpop.f32.mrf.mxu3 }
 0x53b   :  { %v1586_v16 = vmax.f32 %v1547_v4, 0.0  ;;  %v1701_v60 = vadd.f32 %v7493_v18, %v1700_v13 }
 0x53d   :  { %v1604_v62 = vpack.c.bf16 %v1586_v16, %v1585_v33  ;;  %v1767_v32 = vmax.f32 %v1701_v60, 0.0 }
 0x53f   :  { %v1794_v40 = vpack.c.bf16 %v1767_v32, %v1766_v50  ;;  %5777 = vmatmul.msk.bf16.gmra.mxu3 %vm316_vm1, %v1604_v62 }
 0x540   :  { %v1549_v10 = vpop.f32.mrf.mxu0 }
 0x541   :  { %5791 = vmatmul.msk.bf16.gmra.mxu1 %vm316_vm1, %v1794_v40  ;;  %v1550_v23 = vadd.f32 %v7332_v28, %v1549_v10 }
 0x542   :  { %v1703_v34 = vpop.f32.mrf.mxu3 }
 0x543   :  { %v1704_v7 = vadd.f32 %v7493_v18, %v1703_v34  ;;  %v1587_v4 = vmax.f32 %v1550_v23, 0.0 }
 0x545   :  { %v1768_v33 = vmax.f32 %v1704_v7, 0.0 }
 0x548   :  { %v1551_v24 = vpop.f32.mrf.mxu0 }
 0x549   :  { %v1552_v51 = vadd.f32 %v7332_v28, %v1551_v24 }
 0x54a   :  { %v1705_v22 = vpop.f32.mrf.mxu3 }
 0x54b   :  { %v1588_v13 = vmax.f32 %v1552_v51, 0.0  ;;  %v1706_v49 = vadd.f32 %v7493_v18, %v1705_v22 }
 0x54d   :  { %v1605_v16 = vpack.c.bf16 %v1588_v13, %v1587_v4  ;;  %v1769_v60 = vmax.f32 %v1706_v49, 0.0 }
 0x54f   :  { %v1795_v50 = vpack.c.bf16 %v1769_v60, %v1768_v33  ;;  %5778 = vmatmul.msk.bf16.gmra.mxu3 %vm316_vm1, %v1605_v16 }
 0x550   :  { %v1554_v62 = vpop.f32.mrf.mxu0 }
 0x551   :  { %5792 = vmatmul.msk.bf16.gmra.mxu1 %vm316_vm1, %v1795_v50  ;;  %v1555_v40 = vadd.f32 %v7332_v28, %v1554_v62 }
 0x552   :  { %v1708_v32 = vpop.f32.mrf.mxu3 }
 0x553   :  { %v1709_v34 = vadd.f32 %v7493_v18, %v1708_v32  ;;  %v1589_v51 = vmax.f32 %v1555_v40, 0.0 }
 0x555   :  { %v1770_v4 = vmax.f32 %v1709_v34, 0.0 }
 0x558   :  { %v1556_v10 = vpop.f32.mrf.mxu0 }
 0x559   :  { %v1557_v23 = vadd.f32 %v7332_v28, %v1556_v10 }
 0x55a   :  { %v1710_v24 = vpop.f32.mrf.mxu3 }
 0x55b   :  { %v1590_v22 = vmax.f32 %v1557_v23, 0.0  ;;  %v1711_v7 = vadd.f32 %v7493_v18, %v1710_v24 }
 0x55d   :  { %v1606_v13 = vpack.c.bf16 %v1590_v22, %v1589_v51  ;;  %v1771_v49 = vmax.f32 %v1711_v7, 0.0 }
 0x55f   :  { %v1796_v33 = vpack.c.bf16 %v1771_v49, %v1770_v4  ;;  %5779 = vmatmul.msk.bf16.gmra.mxu3 %vm316_vm1, %v1606_v13  ;;  %v7551_v13 = vld [vmem:[%s9735_s6 + $0x2] ss:$0 sm:$0xff] }
 0x561   :  { %5793 = vmatmul.msk.bf16.gmra.mxu1 %vm316_vm1, %v1796_v33 }
 0x562   :  { %v1713_v16 = vpop.f32.mrf.mxu3 }
 0x563   :  { %v1714_v60 = vadd.f32 %v7493_v18, %v1713_v16 }
 0x565   :  { %v1772_v28 = vmax.f32 %v1714_v60, 0.0 }
 0x56a   :  { %v1715_v50 = vpop.f32.mrf.mxu3 }
 0x56b   :  { %v1716_v62 = vadd.f32 %v7493_v18, %v1715_v50 }
 0x56d   :  { %v1773_v32 = vmax.f32 %v1716_v62, 0.0 }
 0x56f   :  { %v1797_v40 = vpack.c.bf16 %v1773_v32, %v1772_v28 }
 0x571   :  { %5794 = vmatmul.msk.bf16.gmra.mxu1 %vm316_vm1, %v1797_v40 }
 0x572   :  { %v1718_v10 = vpop.f32.mrf.mxu3 }
 0x573   :  { %v1719_v34 = vadd.f32 %v7493_v18, %v1718_v10 }
 0x575   :  { %v1774_v51 = vmax.f32 %v1719_v34, 0.0 }
 0x57a   :  { %v1720_v23 = vpop.f32.mrf.mxu3 }
 0x57b   :  { %v1721_v24 = vadd.f32 %v7493_v18, %v1720_v23 }
 0x57d   :  { %v1775_v22 = vmax.f32 %v1721_v24, 0.0 }
 0x57e   :  { %v1877_v7 = vpop.f32.mrf.mxu1 }
 0x57f   :  { %v1798_v4 = vpack.c.bf16 %v1775_v22, %v1774_v51  ;;  %v1878_v33 = vadd.f32 %v7551_v13, %v1877_v7 }
 0x581   :  { %5795 = vmatmul.msk.bf16.gmra.mxu1 %vm316_vm1, %v1798_v4  ;;  %v7557_v60 = vadd.f32 %v1878_v33, %v1336_v14 }
 0x582   :  { %v1723_v49 = vpop.f32.mrf.mxu3 }
 0x583   :  { %v1724_v62 = vadd.f32 %v7493_v18, %v1723_v49  ;;  %v1989_v40 = vmax.f32 %v7557_v60, 0.0 }
 0x585   :  { %v1776_v23 = vmax.f32 %v1724_v62, 0.0 }
 0x586   :  { %v1879_v16 = vpop.f32.mrf.mxu1 }
 0x587   :  { %v1880_v50 = vadd.f32 %v7551_v13, %v1879_v16 }
 0x589   :  { %v7563_v28 = vadd.f32 %v1880_v50, %v1337_v39 }
 0x58a   :  { %v1725_v32 = vpop.f32.mrf.mxu3 }
 0x58b   :  { %v1990_v10 = vmax.f32 %v7563_v28, 0.0  ;;  %v1726_v34 = vadd.f32 %v7493_v18, %v1725_v32  ;;  %v6299_v28 = vld [vmem:[%s9734_s5 + $0x20] sm:$0xff] }
 0x58c   :  { %3181 = vmatpush.bf16.msra.mxu0 %v6299_v28 }
 0x58d   :  { %v2021_v45 = vpack.c.bf16 %v1990_v10, %v1989_v40  ;;  %v1777_v14 = vmax.f32 %v1726_v34, 0.0 }
 0x58e   :  { %v1882_v24 = vpop.f32.mrf.mxu1 }
 0x58f   :  { %v1799_v51 = vpack.c.bf16 %v1777_v14, %v1776_v23  ;;  %5828 = vmatmul.msk.bf16.vlgmr.msrb.gmra.mxu2 %vm118_vm0, %v2021_v45  ;;  %v1883_v22 = vadd.f32 %v7551_v13, %v1882_v24 }
 0x591   :  { %5796 = vmatmul.msk.bf16.gmra.mxu1 %vm316_vm1, %v1799_v51  ;;  %v7580_v4 = vadd.f32 %v1883_v22, %v1338_v29 }
 0x592   :  { %v1728_v39 = vpop.f32.mrf.mxu3 }
 0x593   :  { %v1729_v33 = vadd.f32 %v7493_v18, %v1728_v39  ;;  %v1991_v62 = vmax.f32 %v7580_v4, 0.0 }
 0x595   :  { %v1778_v23 = vmax.f32 %v1729_v33, 0.0 }
 0x596   :  { %v1884_v7 = vpop.f32.mrf.mxu1 }
 0x597   :  { %v1885_v49 = vadd.f32 %v7551_v13, %v1884_v7 }
 0x599   :  { %v7586_v16 = vadd.f32 %v1885_v49, %v1339_v19 }
 0x59a   :  { %v1730_v50 = vpop.f32.mrf.mxu3 }
 0x59b   :  { %v1992_v32 = vmax.f32 %v7586_v16, 0.0  ;;  %v1731_v34 = vadd.f32 %v7493_v18, %v1730_v50 }
 0x59d   :  { %v2022_v44 = vpack.c.bf16 %v1992_v32, %v1991_v62  ;;  %v1779_v29 = vmax.f32 %v1731_v34, 0.0 }
 0x59e   :  { %v1887_v45 = vpop.f32.mrf.mxu1 }
 0x59f   :  { %v1800_v14 = vpack.c.bf16 %v1779_v29, %v1778_v23  ;;  %5829 = vmatmul.msk.bf16.gmra.mxu2 %vm118_vm0, %v2022_v44  ;;  %v1888_v19 = vadd.f32 %v7551_v13, %v1887_v45 }
 0x5a1   :  { %5797 = vmatmul.msk.bf16.gmra.mxu1 %vm316_vm1, %v1800_v14  ;;  %v7600_v51 = vadd.f32 %v1888_v19, %v1340_v30 }
 0x5a2   :  { %v1733_v57 = vpop.f32.mrf.mxu3 }
 0x5a3   :  { %v1734_v39 = vadd.f32 %v7493_v18, %v1733_v57  ;;  %v1993_v49 = vmax.f32 %v7600_v51, 0.0 }
 0x5a5   :  { %v1780_v34 = vmax.f32 %v1734_v39, 0.0 }
 0x5a6   :  { %v1889_v24 = vpop.f32.mrf.mxu1 }
 0x5a7   :  { %v1890_v1 = vadd.f32 %v7551_v13, %v1889_v24 }
 0x5a9   :  { %v7606_v22 = vadd.f32 %v1890_v1, %v1341_v26 }
 0x5aa   :  { %v1735_v7 = vpop.f32.mrf.mxu3 }
 0x5ab   :  { %v1994_v33 = vmax.f32 %v7606_v22, 0.0  ;;  %v1736_v50 = vadd.f32 %v7493_v18, %v1735_v7 }
 0x5ad   :  { %v2023_v17 = vpack.c.bf16 %v1994_v33, %v1993_v49  ;;  %v1781_v30 = vmax.f32 %v1736_v50, 0.0 }
 0x5ae   :  { %v1892_v23 = vpop.f32.mrf.mxu1 }
 0x5af   :  { %v1801_v44 = vpack.c.bf16 %v1781_v30, %v1780_v34  ;;  %5830 = vmatmul.msk.bf16.gmra.mxu2 %vm118_vm0, %v2023_v17  ;;  %v1893_v26 = vadd.f32 %v7551_v13, %v1892_v23 }
 0x5b1   :  { %5798 = vmatmul.msk.bf16.gmra.mxu1 %vm316_vm1, %v1801_v44  ;;  %v7620_v45 = vadd.f32 %v1893_v26, %v1342_v53 }
 0x5b2   :  { %v1738_v0 = vpop.f32.mrf.mxu3 }
 0x5b3   :  { %v1739_v57 = vadd.f32 %v7493_v18, %v1738_v0  ;;  %v1995_v1 = vmax.f32 %v7620_v45, 0.0 }
 0x5b5   :  { %v1782_v50 = vmax.f32 %v1739_v57, 0.0 }
 0x5b6   :  { %v1894_v29 = vpop.f32.mrf.mxu1 }
 0x5b7   :  { %v1895_v14 = vadd.f32 %v7551_v13, %v1894_v29 }
 0x5b9   :  { %v7626_v19 = vadd.f32 %v1895_v14, %v1343_v31 }
 0x5ba   :  { %v1740_v24 = vpop.f32.mrf.mxu3 }
 0x5bb   :  { %v1996_v39 = vmax.f32 %v7626_v19, 0.0  ;;  %v1741_v7 = vadd.f32 %v7493_v18, %v1740_v24 }
 0x5bd   :  { %v2024_v55 = vpack.c.bf16 %v1996_v39, %v1995_v1  ;;  %v1783_v53 = vmax.f32 %v1741_v7, 0.0 }
 0x5be   :  { %v1897_v34 = vpop.f32.mrf.mxu1 }
 0x5bf   :  { %v1802_v17 = vpack.c.bf16 %v1783_v53, %v1782_v50  ;;  %5831 = vmatmul.msk.bf16.gmra.mxu2 %vm118_vm0, %v2024_v55  ;;  %v1898_v31 = vadd.f32 %v7551_v13, %v1897_v34 }
 0x5c1   :  { %5799 = vmatmul.msk.bf16.gmra.mxu1 %vm316_vm1, %v1802_v17  ;;  %v7640_v23 = vadd.f32 %v1898_v31, %v1344_v41 }
 0x5c2   :  { %v1743_v27 = vpop.f32.mrf.mxu3 }
 0x5c3   :  { %v1744_v0 = vadd.f32 %v7493_v18, %v1743_v27  ;;  %v1997_v14 = vmax.f32 %v7640_v23, 0.0 }
 0x5c5   :  { %v1784_v7 = vmax.f32 %v1744_v0, 0.0 }
 0x5c6   :  { %v1899_v30 = vpop.f32.mrf.mxu1 }
 0x5c7   :  { %v1900_v44 = vadd.f32 %v7551_v13, %v1899_v30 }
 0x5c9   :  { %v7646_v26 = vadd.f32 %v1900_v44, %v1345_v43 }
 0x5ca   :  { %v1745_v29 = vpop.f32.mrf.mxu3 }
 0x5cb   :  { %v1998_v57 = vmax.f32 %v7646_v26, 0.0  ;;  %v1746_v24 = vadd.f32 %v7493_v18, %v1745_v29 }
 0x5cd   :  { %v2025_v6 = vpack.c.bf16 %v1998_v57, %v1997_v14  ;;  %v1785_v41 = vmax.f32 %v1746_v24, 0.0 }
 0x5ce   :  { %v1902_v50 = vpop.f32.mrf.mxu1 }
 0x5cf   :  { %v1803_v55 = vpack.c.bf16 %v1785_v41, %v1784_v7  ;;  %5832 = vmatmul.msk.bf16.gmra.mxu2 %vm118_vm0, %v2025_v6  ;;  %v1903_v43 = vadd.f32 %v7551_v13, %v1902_v50 }
 0x5d1   :  { %5800 = vmatmul.msk.bf16.gmra.mxu1 %vm316_vm1, %v1803_v55  ;;  %v7660_v34 = vadd.f32 %v1903_v43, %v1346_v25  ;;  %v9886_v43 = vmax.f32 %v7286_v2, 0.0 }
 0x5d2   :  { %v1748_v63 = vpop.f32.mrf.mxu3 }
 0x5d3   :  { %v1749_v27 = vadd.f32 %v7493_v18, %v1748_v63  ;;  %v1999_v44 = vmax.f32 %v7660_v34, 0.0 }
 0x5d5   :  { %v1786_v24 = vmax.f32 %v1749_v27, 0.0 }
 0x5d6   :  { %v1904_v53 = vpop.f32.mrf.mxu1 }
 0x5d7   :  { %v1905_v17 = vadd.f32 %v7551_v13, %v1904_v53 }
 0x5d9   :  { %v7666_v31 = vadd.f32 %v1905_v17, %v1347_v54 }
 0x5da   :  { %v1750_v30 = vpop.f32.mrf.mxu3 }
 0x5db   :  { %v2000_v0 = vmax.f32 %v7666_v31, 0.0  ;;  %v1751_v29 = vadd.f32 %v7493_v18, %v1750_v30 }
 0x5dd   :  { %v2026_v37 = vpack.c.bf16 %v2000_v0, %v1999_v44  ;;  %v1787_v25 = vmax.f32 %v1751_v29, 0.0 }
 0x5de   :  { %v1907_v7 = vpop.f32.mrf.mxu1 }
 0x5df   :  { %v1804_v6 = vpack.c.bf16 %v1787_v25, %v1786_v24  ;;  %5833 = vmatmul.msk.bf16.gmra.mxu2 %vm118_vm0, %v2026_v37  ;;  %v1908_v54 = vadd.f32 %v7551_v13, %v1907_v7 }
 0x5e1   :  { %5801 = vmatmul.msk.bf16.gmra.mxu1 %vm316_vm1, %v1804_v6  ;;  %v7680_v50 = vadd.f32 %v1908_v54, %v1348_v56  ;;  %v9887_v6 = vmax.f32 %v7299_v38, 0.0  ;;  %v9888_v54 = vmax.f32 %v7304_v15, 0.0 }
 0x5e2   :  { %v1753_v61 = vpop.f32.mrf.mxu3 }
 0x5e3   :  { %v1754_v63 = vadd.f32 %v7493_v18, %v1753_v61  ;;  %v2001_v27 = vmax.f32 %v7680_v50, 0.0 }
 0x5e5   :  { %v1788_v24 = vmax.f32 %v1754_v63, 0.0 }
 0x5e6   :  { %v1909_v41 = vpop.f32.mrf.mxu1 }
 0x5e7   :  { %v1910_v55 = vadd.f32 %v7551_v13, %v1909_v41 }
 0x5e9   :  { %v7686_v53 = vadd.f32 %v1910_v55, %v9886_v43 }
 0x5ea   :  { %v1755_v17 = vpop.f32.mrf.mxu3 }
 0x5eb   :  { %v2002_v30 = vmax.f32 %v7686_v53, 0.0  ;;  %v1756_v29 = vadd.f32 %v7493_v18, %v1755_v17 }
 0x5ed   :  { %v2027_v52 = vpack.c.bf16 %v2002_v30, %v2001_v27  ;;  %v1789_v56 = vmax.f32 %v1756_v29, 0.0 }
 0x5ee   :  { %v1912_v37 = vpop.f32.mrf.mxu1 }
 0x5ef   :  { %v1805_v25 = vpack.c.bf16 %v1789_v56, %v1788_v24  ;;  %5834 = vmatmul.msk.bf16.gmra.mxu2 %vm118_vm0, %v2027_v52  ;;  %v1913_v2 = vadd.f32 %v7551_v13, %v1912_v37  ;;  %v9889_v24 = vmax.f32 %v7316_v35, 0.0  ;;  %v9890_v56 = vmax.f32 %v7321_v21, 0.0  ;;  %v7735_v21 = vld [vmem:[%s9731_s2 + $0x3] ss:$0 sm:$0xff] }
 0x5f1   :  { %5802 = vmatmul.msk.bf16.gmra.mxu1 %vm316_vm1, %v1805_v25  ;;  %v7700_v61 = vadd.f32 %v1913_v2, %v9887_v6 }
 0x5f3   :  { %v9793_v55 = vmax.f32 %v7700_v61, 0.0  ;;  %v9905_v53 = vmax.f32 %v7700_v61, 0.0 }
 0x5f6   :  { %v1914_v7 = vpop.f32.mrf.mxu1 }
 0x5f7   :  { %v1915_v18 = vadd.f32 %v7551_v13, %v1914_v7 }
 0x5f9   :  { %v7705_v41 = vadd.f32 %v1915_v18, %v9888_v54 }
 0x5fb   :  { %v9780_v63 = vmax.f32 %v7705_v41, 0.0 }
 0x5fd   :  { %v2028_v43 = vpack.c.bf16 %v9780_v63, %v9793_v55 }
 0x5fe   :  { %v1917_v17 = vpop.f32.mrf.mxu1 }
 0x5ff   :  { %5835 = vmatmul.msk.bf16.gmra.mxu2 %vm118_vm0, %v2028_v43  ;;  %v1918_v38 = vadd.f32 %v7551_v13, %v1917_v17  ;;  %v9891_v43 = vmax.f32 %v7340_v9, 0.0 }
 0x601   :  { %v7717_v15 = vadd.f32 %v1918_v38, %v9889_v24  ;;  %v9892_v24 = vmax.f32 %v7345_v47, 0.0 }
 0x603   :  { %v9777_v25 = vmax.f32 %v7717_v15, 0.0 }
 0x606   :  { %v1919_v29 = vpop.f32.mrf.mxu1 }
 0x607   :  { %v1920_v52 = vadd.f32 %v7551_v13, %v1919_v29 }
 0x609   :  { %v7722_v37 = vadd.f32 %v1920_v52, %v9890_v56 }
 0x60b   :  { %v9776_v2 = vmax.f32 %v7722_v37, 0.0 }
 0x60d   :  { %v2029_v7 = vpack.c.bf16 %v9776_v2, %v9777_v25 }
 0x60e   :  { %v1922_v6 = vpop.f32.mrf.mxu1 }
 0x60f   :  { %5836 = vmatmul.msk.bf16.gmra.mxu2 %vm118_vm0, %v2029_v7  ;;  %v1923_v18 = vadd.f32 %v7551_v13, %v1922_v6 }
 0x611   :  { %v7739_v17 = vadd.f32 %v1923_v18, %v9891_v43 }
 0x612   :  { %v2132_v35 = vpop.f32.mrf.mxu2 }
 0x613   :  { %v2133_v29 = vadd.f32 %v7735_v21, %v2132_v35  ;;  %v9779_v7 = vmax.f32 %v7739_v17, 0.0 }
 0x615   :  { %v2212_v25 = vmax.f32 %v2133_v29, 0.0 }
 0x616   :  { %v1924_v54 = vpop.f32.mrf.mxu1 }
 0x617   :  { %v1925_v38 = vadd.f32 %v7551_v13, %v1924_v54 }
 0x619   :  { %v7745_v52 = vadd.f32 %v1925_v38, %v9892_v24  ;;  %v6297_v38 = vld [vmem:[%s9730_s1 + $0x98] sm:$0xff]  ;;  %v9893_v24 = vmax.f32 %v7363_v5, 0.0 }
 0x61a   :  { %v2134_v56 = vpop.f32.mrf.mxu2  ;;  %2780 = vmatpush.bf16.msrb.mxu1 %v6297_v38 }
 0x61b   :  { %v9778_v6 = vmax.f32 %v7745_v52, 0.0  ;;  %v2135_v2 = vadd.f32 %v7735_v21, %v2134_v56 }
 0x61d   :  { %v2030_v9 = vpack.c.bf16 %v9778_v6, %v9779_v7  ;;  %v2213_v18 = vmax.f32 %v2135_v2, 0.0 }
 0x61e   :  { %v1927_v54 = vpop.f32.mrf.mxu1 }
 0x61f   :  { %v2244_v35 = vpack.c.bf16 %v2213_v18, %v2212_v25  ;;  %5837 = vmatmul.msk.bf16.gmra.mxu2 %vm118_vm0, %v2030_v9  ;;  %v1928_v43 = vadd.f32 %v7551_v13, %v1927_v54  ;;  %v9894_v9 = vmax.f32 %v7368_v11, 0.0 }
 0x621   :  { %5851 = vmatmul.msk.bf16.vlgmr.msrb.gmra.mxu0 %vm316_vm1, %v2244_v35  ;;  %v7762_v56 = vadd.f32 %v1928_v43, %v9893_v24 }
 0x622   :  { %v2137_v47 = vpop.f32.mrf.mxu2 }
 0x623   :  { %v2138_v25 = vadd.f32 %v7735_v21, %v2137_v47  ;;  %v9782_v54 = vmax.f32 %v7762_v56, 0.0 }
 0x625   :  { %v2214_v7 = vmax.f32 %v2138_v25, 0.0 }
 0x626   :  { %v1929_v29 = vpop.f32.mrf.mxu1 }
 0x627   :  { %v1930_v2 = vadd.f32 %v7551_v13, %v1929_v29 }
 0x629   :  { %v7768_v18 = vadd.f32 %v1930_v2, %v9894_v9  ;;  %v9895_v9 = vmax.f32 %v7383_v48, 0.0 }
 0x62a   :  { %v2139_v35 = vpop.f32.mrf.mxu2 }
 0x62b   :  { %v9781_v6 = vmax.f32 %v7768_v18, 0.0  ;;  %v2140_v38 = vadd.f32 %v7735_v21, %v2139_v35 }
 0x62d   :  { %v2031_v5 = vpack.c.bf16 %v9781_v6, %v9782_v54  ;;  %v2215_v43 = vmax.f32 %v2140_v38, 0.0  ;;  %v9896_v38 = vmax.f32 %v7388_v20, 0.0 }
 0x62e   :  { %v1932_v29 = vpop.f32.mrf.mxu1 }
 0x62f   :  { %v2245_v47 = vpack.c.bf16 %v2215_v43, %v2214_v7  ;;  %5838 = vmatmul.msk.bf16.gmra.mxu2 %vm118_vm0, %v2031_v5  ;;  %v1933_v24 = vadd.f32 %v7551_v13, %v1932_v29 }
 0x631   :  { %5852 = vmatmul.msk.bf16.gmra.mxu0 %vm316_vm1, %v2245_v47  ;;  %v7782_v35 = vadd.f32 %v1933_v24, %v9895_v9 }
 0x632   :  { %v2142_v11 = vpop.f32.mrf.mxu2 }
 0x633   :  { %v2143_v63 = vadd.f32 %v7735_v21, %v2142_v11  ;;  %v9784_v5 = vmax.f32 %v7782_v35, 0.0 }
 0x635   :  { %v2216_v47 = vmax.f32 %v2143_v63, 0.0 }
 0x636   :  { %v1934_v2 = vpop.f32.mrf.mxu1 }
 0x637   :  { %v1935_v25 = vadd.f32 %v7551_v13, %v1934_v2 }
 0x639   :  { %v7788_v6 = vadd.f32 %v1935_v25, %v9896_v38  ;;  %v9897_v38 = vmax.f32 %v7403_v3, 0.0 }
 0x63a   :  { %v2144_v7 = vpop.f32.mrf.mxu2 }
 0x63b   :  { %v9783_v43 = vmax.f32 %v7788_v6, 0.0  ;;  %v2145_v29 = vadd.f32 %v7735_v21, %v2144_v7 }
 0x63d   :  { %v2032_v48 = vpack.c.bf16 %v9783_v43, %v9784_v5  ;;  %v2217_v24 = vmax.f32 %v2145_v29, 0.0  ;;  %v9898_v29 = vmax.f32 %v7408_v58, 0.0 }
 0x63e   :  { %v1937_v2 = vpop.f32.mrf.mxu1 }
 0x63f   :  { %v2246_v11 = vpack.c.bf16 %v2217_v24, %v2216_v47  ;;  %5839 = vmatmul.msk.bf16.gmra.mxu2 %vm118_vm0, %v2032_v48  ;;  %v1938_v9 = vadd.f32 %v7551_v13, %v1937_v2 }
 0x641   :  { %5853 = vmatmul.msk.bf16.gmra.mxu0 %vm316_vm1, %v2246_v11  ;;  %v7802_v7 = vadd.f32 %v1938_v9, %v9897_v38 }
 0x642   :  { %v2147_v20 = vpop.f32.mrf.mxu2 }
 0x643   :  { %v2148_v54 = vadd.f32 %v7735_v21, %v2147_v20  ;;  %v9788_v48 = vmax.f32 %v7802_v7, 0.0 }
 0x645   :  { %v2218_v11 = vmax.f32 %v2148_v54, 0.0 }
 0x646   :  { %v1939_v25 = vpop.f32.mrf.mxu1 }
 0x647   :  { %v1940_v63 = vadd.f32 %v7551_v13, %v1939_v25 }
 0x649   :  { %v7808_v43 = vadd.f32 %v1940_v63, %v9898_v29  ;;  %v9899_v29 = vmax.f32 %v7423_v46, 0.0 }
 0x64a   :  { %v2149_v47 = vpop.f32.mrf.mxu2 }
 0x64b   :  { %v9785_v24 = vmax.f32 %v7808_v43, 0.0  ;;  %v2150_v2 = vadd.f32 %v7735_v21, %v2149_v47 }
 0x64d   :  { %v2033_v3 = vpack.c.bf16 %v9785_v24, %v9788_v48  ;;  %v2219_v9 = vmax.f32 %v2150_v2, 0.0  ;;  %v9900_v2 = vmax.f32 %v7428_v12, 0.0  ;;  %v6296_v12 = vld [vmem:[%s9730_s1 + $0x90] sm:$0xff] }
 0x64e   :  { %v1942_v25 = vpop.f32.mrf.mxu1  ;;  %2781 = vmatpush.bf16.msrb.mxu1 %v6296_v12 }
 0x64f   :  { %v2247_v20 = vpack.c.bf16 %v2219_v9, %v2218_v11  ;;  %5840 = vmatmul.msk.bf16.gmra.mxu2 %vm118_vm0, %v2033_v3  ;;  %v1943_v38 = vadd.f32 %v7551_v13, %v1942_v25 }
 0x651   :  { %5854 = vmatmul.msk.bf16.gmra.mxu0 %vm316_vm1, %v2247_v20  ;;  %v7822_v47 = vadd.f32 %v1943_v38, %v9899_v29 }
 0x652   :  { %v2152_v58 = vpop.f32.mrf.mxu2 }
 0x653   :  { %v2153_v5 = vadd.f32 %v7735_v21, %v2152_v58  ;;  %v9787_v3 = vmax.f32 %v7822_v47, 0.0 }
 0x655   :  { %v2220_v20 = vmax.f32 %v2153_v5, 0.0 }
 0x656   :  { %v1944_v63 = vpop.f32.mrf.mxu1 }
 0x657   :  { %v1945_v54 = vadd.f32 %v7551_v13, %v1944_v63 }
 0x659   :  { %v7828_v24 = vadd.f32 %v1945_v54, %v9900_v2  ;;  %v9901_v2 = vmax.f32 %v7446_v36, 0.0 }
 0x65a   :  { %v2154_v11 = vpop.f32.mrf.mxu2 }
 0x65b   :  { %v9786_v9 = vmax.f32 %v7828_v24, 0.0  ;;  %v2155_v25 = vadd.f32 %v7735_v21, %v2154_v11 }
 0x65d   :  { %v2034_v46 = vpack.c.bf16 %v9786_v9, %v9787_v3  ;;  %v2221_v38 = vmax.f32 %v2155_v25, 0.0 }
 0x65e   :  { %v1947_v63 = vpop.f32.mrf.mxu1 }
 0x65f   :  { %v2248_v58 = vpack.c.bf16 %v2221_v38, %v2220_v20  ;;  %5841 = vmatmul.msk.bf16.gmra.mxu2 %vm118_vm0, %v2034_v46  ;;  %v1948_v54 = vadd.f32 %v7551_v13, %v1947_v63  ;;  %v9902_v46 = vmax.f32 %v7451_v42, 0.0 }
 0x661   :  { %5855 = vmatmul.msk.bf16.gmra.mxu0 %vm316_vm1, %v2248_v58  ;;  %v7845_v11 = vadd.f32 %v1948_v54, %v9901_v2 }
 0x662   :  { %v2157_v29 = vpop.f32.mrf.mxu2 }
 0x663   :  { %v2158_v20 = vadd.f32 %v7735_v21, %v2157_v29  ;;  %v9792_v9 = vmax.f32 %v7845_v11, 0.0 }
 0x665   :  { %v2222_v12 = vmax.f32 %v2158_v20, 0.0 }
 0x666   :  { %v1949_v5 = vpop.f32.mrf.mxu1 }
 0x667   :  { %v1950_v25 = vadd.f32 %v7551_v13, %v1949_v5 }
 0x669   :  { %v7851_v38 = vadd.f32 %v1950_v25, %v9902_v46  ;;  %v9903_v46 = vmax.f32 %v7466_v8, 0.0 }
 0x66a   :  { %v2159_v58 = vpop.f32.mrf.mxu2 }
 0x66b   :  { %v9789_v3 = vmax.f32 %v7851_v38, 0.0  ;;  %v2160_v63 = vadd.f32 %v7735_v21, %v2159_v58 }
 0x66d   :  { %v2035_v36 = vpack.c.bf16 %v9789_v3, %v9792_v9  ;;  %v2223_v54 = vmax.f32 %v2160_v63, 0.0  ;;  %v9904_v63 = vmax.f32 %v7471_v59, 0.0 }
 0x66e   :  { %v1952_v5 = vpop.f32.mrf.mxu1 }
 0x66f   :  { %v2249_v29 = vpack.c.bf16 %v2223_v54, %v2222_v12  ;;  %5842 = vmatmul.msk.bf16.gmra.mxu2 %vm118_vm0, %v2035_v36  ;;  %v1953_v2 = vadd.f32 %v7551_v13, %v1952_v5 }
 0x671   :  { %5856 = vmatmul.msk.bf16.gmra.mxu0 %vm316_vm1, %v2249_v29  ;;  %v7865_v58 = vadd.f32 %v1953_v2, %v9903_v46 }
 0x672   :  { %v2162_v42 = vpop.f32.mrf.mxu2 }
 0x673   :  { %v2163_v48 = vadd.f32 %v7735_v21, %v2162_v42  ;;  %v9791_v36 = vmax.f32 %v7865_v58, 0.0 }
 0x675   :  { %v2224_v29 = vmax.f32 %v2163_v48, 0.0 }
 0x676   :  { %v1954_v25 = vpop.f32.mrf.mxu1 }
 0x677   :  { %v1955_v20 = vadd.f32 %v7551_v13, %v1954_v25 }
 0x679   :  { %v7871_v3 = vadd.f32 %v1955_v20, %v9904_v63 }
 0x67a   :  { %v2164_v12 = vpop.f32.mrf.mxu2 }
 0x67b   :  { %v9790_v54 = vmax.f32 %v7871_v3, 0.0  ;;  %v2165_v5 = vadd.f32 %v7735_v21, %v2164_v12 }
 0x67d   :  { %v2036_v8 = vpack.c.bf16 %v9790_v54, %v9791_v36  ;;  %v2225_v13 = vmax.f32 %v2165_v5, 0.0 }
 0x67f   :  { %v2250_v2 = vpack.c.bf16 %v2225_v13, %v2224_v29  ;;  %5843 = vmatmul.msk.bf16.gmra.mxu2 %vm118_vm0, %v2036_v8 }
 0x681   :  { %5857 = vmatmul.msk.bf16.gmra.mxu0 %vm316_vm1, %v2250_v2 }
 0x682   :  { %v2167_v59 = vpop.f32.mrf.mxu2 }
 0x683   :  { %v2168_v42 = vadd.f32 %v7735_v21, %v2167_v59  ;;  %v7890_v59 = vld [vmem:[%s9733_s4 + $0x3] ss:$0 sm:$0xff] }
 0x685   :  { %v2226_v20 = vmax.f32 %v2168_v42, 0.0  ;;  %v6295_v42 = vld [vmem:[%s9730_s1 + $0x88] sm:$0xff] }
 0x686   :  { %2782 = vmatpush.bf16.msrb.mxu1 %v6295_v42 }
 0x68a   :  { %v2169_v25 = vpop.f32.mrf.mxu2 }
 0x68b   :  { %v2170_v46 = vadd.f32 %v7735_v21, %v2169_v25 }
 0x68d   :  { %v2227_v63 = vmax.f32 %v2170_v46, 0.0 }
 0x68f   :  { %v2251_v48 = vpack.c.bf16 %v2227_v63, %v2226_v20 }
 0x691   :  { %5858 = vmatmul.msk.bf16.gmra.mxu0 %vm316_vm1, %v2251_v48 }
 0x692   :  { %v2172_v12 = vpop.f32.mrf.mxu2 }
 0x693   :  { %v2173_v54 = vadd.f32 %v7735_v21, %v2172_v12 }
 0x695   :  { %v2228_v8 = vmax.f32 %v2173_v54, 0.0 }
 0x69a   :  { %v2174_v5 = vpop.f32.mrf.mxu2 }
 0x69b   :  { %v2175_v29 = vadd.f32 %v7735_v21, %v2174_v5 }
 0x69d   :  { %v2229_v13 = vmax.f32 %v2175_v29, 0.0 }
 0x69e   :  { %v2331_v2 = vpop.f32.mrf.mxu0 }
 0x69f   :  { %v2252_v36 = vpack.c.bf16 %v2229_v13, %v2228_v8  ;;  %v2332_v46 = vadd.f32 %v7890_v59, %v2331_v2  ;;  %v6298_v2 = vld [vmem:[%s9732_s3 + $0x20] sm:$0xff] }
 0x6a0   :  { %2982 = vmatpush.bf16.msra.mxu2 %v6298_v2 }
 0x6a1   :  { %5859 = vmatmul.msk.bf16.gmra.mxu0 %vm316_vm1, %v2252_v36  ;;  %v2411_v63 = vmax.f32 %v2332_v46, 0.0 }
 0x6a2   :  { %v2177_v25 = vpop.f32.mrf.mxu2 }
 0x6a3   :  { %v2178_v48 = vadd.f32 %v7735_v21, %v2177_v25 }
 0x6a5   :  { %v2230_v36 = vmax.f32 %v2178_v48, 0.0 }
 0x6a6   :  { %v2333_v20 = vpop.f32.mrf.mxu0 }
 0x6a7   :  { %v2334_v54 = vadd.f32 %v7890_v59, %v2333_v20 }
 0x6a9   :  { %v2412_v12 = vmax.f32 %v2334_v54, 0.0 }
 0x6aa   :  { %v2179_v5 = vpop.f32.mrf.mxu2 }
 0x6ab   :  { %v2443_v29 = vpack.c.bf16 %v2412_v12, %v2411_v63  ;;  %v2180_v8 = vadd.f32 %v7735_v21, %v2179_v5 }
 0x6ad   :  { %v2231_v13 = vmax.f32 %v2180_v8, 0.0  ;;  %5874 = vmatmul.msk.bf16.vlgmr.msrb.gmra.mxu3 %vm316_vm1, %v2443_v29 }
 0x6ae   :  { %v2336_v9 = vpop.f32.mrf.mxu0 }
 0x6af   :  { %v2253_v55 = vpack.c.bf16 %v2231_v13, %v2230_v36  ;;  %v2337_v25 = vadd.f32 %v7890_v59, %v2336_v9 }
 0x6b1   :  { %5860 = vmatmul.msk.bf16.gmra.mxu0 %vm316_vm1, %v2253_v55  ;;  %v2413_v54 = vmax.f32 %v2337_v25, 0.0 }
 0x6b2   :  { %v2182_v42 = vpop.f32.mrf.mxu2 }
 0x6b3   :  { %v2183_v63 = vadd.f32 %v7735_v21, %v2182_v42 }
 0x6b5   :  { %v2232_v8 = vmax.f32 %v2183_v63, 0.0 }
 0x6b6   :  { %v2338_v46 = vpop.f32.mrf.mxu0 }
 0x6b7   :  { %v2339_v20 = vadd.f32 %v7890_v59, %v2338_v46 }
 0x6b9   :  { %v2414_v48 = vmax.f32 %v2339_v20, 0.0 }
 0x6ba   :  { %v2184_v12 = vpop.f32.mrf.mxu2 }
 0x6bb   :  { %v2444_v5 = vpack.c.bf16 %v2414_v48, %v2413_v54  ;;  %v2185_v29 = vadd.f32 %v7735_v21, %v2184_v12 }
 0x6bd   :  { %v2233_v36 = vmax.f32 %v2185_v29, 0.0  ;;  %5875 = vmatmul.msk.bf16.gmra.mxu3 %vm316_vm1, %v2444_v5 }
 0x6be   :  { %v2341_v55 = vpop.f32.mrf.mxu0 }
 0x6bf   :  { %v2254_v13 = vpack.c.bf16 %v2233_v36, %v2232_v8  ;;  %v2342_v2 = vadd.f32 %v7890_v59, %v2341_v55 }
 0x6c1   :  { %5861 = vmatmul.msk.bf16.gmra.mxu0 %vm316_vm1, %v2254_v13  ;;  %v2415_v42 = vmax.f32 %v2342_v2, 0.0 }
 0x6c2   :  { %v2187_v9 = vpop.f32.mrf.mxu2 }
 0x6c3   :  { %v2188_v20 = vadd.f32 %v7735_v21, %v2187_v9 }
 0x6c5   :  { %v2234_v29 = vmax.f32 %v2188_v20, 0.0 }
 0x6c6   :  { %v2343_v46 = vpop.f32.mrf.mxu0 }
 0x6c7   :  { %v2344_v25 = vadd.f32 %v7890_v59, %v2343_v46 }
 0x6c9   :  { %v2416_v54 = vmax.f32 %v2344_v25, 0.0 }
 0x6ca   :  { %v2189_v48 = vpop.f32.mrf.mxu2 }
 0x6cb   :  { %v2445_v12 = vpack.c.bf16 %v2416_v54, %v2415_v42  ;;  %v2190_v63 = vadd.f32 %v7735_v21, %v2189_v48 }
 0x6cd   :  { %v2235_v5 = vmax.f32 %v2190_v63, 0.0  ;;  %5876 = vmatmul.msk.bf16.gmra.mxu3 %vm316_vm1, %v2445_v12 }
 0x6ce   :  { %v2346_v8 = vpop.f32.mrf.mxu0 }
 0x6cf   :  { %v2255_v36 = vpack.c.bf16 %v2235_v5, %v2234_v29  ;;  %v2347_v13 = vadd.f32 %v7890_v59, %v2346_v8  ;;  %v6294_v8 = vld [vmem:[%s9730_s1 + $0x80] sm:$0xff] }
 0x6d0   :  { %2783 = vmatpush.bf16.msrb.mxu1 %v6294_v8 }
 0x6d1   :  { %5862 = vmatmul.msk.bf16.gmra.mxu0 %vm316_vm1, %v2255_v36  ;;  %v2417_v9 = vmax.f32 %v2347_v13, 0.0 }
 0x6d2   :  { %v2192_v55 = vpop.f32.mrf.mxu2 }
 0x6d3   :  { %v2193_v25 = vadd.f32 %v7735_v21, %v2192_v55 }
 0x6d5   :  { %v2236_v63 = vmax.f32 %v2193_v25, 0.0 }
 0x6d6   :  { %v2348_v46 = vpop.f32.mrf.mxu0 }
 0x6d7   :  { %v2349_v2 = vadd.f32 %v7890_v59, %v2348_v46 }
 0x6d9   :  { %v2418_v42 = vmax.f32 %v2349_v2, 0.0 }
 0x6da   :  { %v2194_v54 = vpop.f32.mrf.mxu2 }
 0x6db   :  { %v2446_v48 = vpack.c.bf16 %v2418_v42, %v2417_v9  ;;  %v2195_v20 = vadd.f32 %v7735_v21, %v2194_v54 }
 0x6dd   :  { %v2237_v12 = vmax.f32 %v2195_v20, 0.0  ;;  %5877 = vmatmul.msk.bf16.gmra.mxu3 %vm316_vm1, %v2446_v48 }
 0x6de   :  { %v2351_v29 = vpop.f32.mrf.mxu0 }
 0x6df   :  { %v2256_v5 = vpack.c.bf16 %v2237_v12, %v2236_v63  ;;  %v2352_v55 = vadd.f32 %v7890_v59, %v2351_v29 }
 0x6e1   :  { %5863 = vmatmul.msk.bf16.gmra.mxu0 %vm316_vm1, %v2256_v5  ;;  %v2419_v2 = vmax.f32 %v2352_v55, 0.0 }
 0x6e2   :  { %v2197_v36 = vpop.f32.mrf.mxu2 }
 0x6e3   :  { %v2198_v9 = vadd.f32 %v7735_v21, %v2197_v36 }
 0x6e5   :  { %v2238_v20 = vmax.f32 %v2198_v9, 0.0 }
 0x6e6   :  { %v2353_v13 = vpop.f32.mrf.mxu0 }
 0x6e7   :  { %v2354_v46 = vadd.f32 %v7890_v59, %v2353_v13 }
 0x6e9   :  { %v2420_v25 = vmax.f32 %v2354_v46, 0.0 }
 0x6ea   :  { %v2199_v42 = vpop.f32.mrf.mxu2 }
 0x6eb   :  { %v2447_v54 = vpack.c.bf16 %v2420_v25, %v2419_v2  ;;  %v2200_v48 = vadd.f32 %v7735_v21, %v2199_v42 }
 0x6ed   :  { %v2239_v63 = vmax.f32 %v2200_v48, 0.0  ;;  %5878 = vmatmul.msk.bf16.gmra.mxu3 %vm316_vm1, %v2447_v54 }
 0x6ee   :  { %v2356_v12 = vpop.f32.mrf.mxu0 }
 0x6ef   :  { %v2257_v5 = vpack.c.bf16 %v2239_v63, %v2238_v20  ;;  %v2357_v8 = vadd.f32 %v7890_v59, %v2356_v12 }
 0x6f1   :  { %5864 = vmatmul.msk.bf16.gmra.mxu0 %vm316_vm1, %v2257_v5  ;;  %v2421_v36 = vmax.f32 %v2357_v8, 0.0 }
 0x6f2   :  { %v2202_v29 = vpop.f32.mrf.mxu2 }
 0x6f3   :  { %v2203_v46 = vadd.f32 %v7735_v21, %v2202_v29 }
 0x6f5   :  { %v2240_v48 = vmax.f32 %v2203_v46, 0.0 }
 0x6f6   :  { %v2358_v13 = vpop.f32.mrf.mxu0 }
 0x6f7   :  { %v2359_v55 = vadd.f32 %v7890_v59, %v2358_v13 }
 0x6f9   :  { %v2422_v2 = vmax.f32 %v2359_v55, 0.0 }
 0x6fa   :  { %v2204_v25 = vpop.f32.mrf.mxu2 }
 0x6fb   :  { %v2448_v42 = vpack.c.bf16 %v2422_v2, %v2421_v36  ;;  %v2205_v9 = vadd.f32 %v7735_v21, %v2204_v25 }
 0x6fd   :  { %v2241_v54 = vmax.f32 %v2205_v9, 0.0  ;;  %5879 = vmatmul.msk.bf16.gmra.mxu3 %vm316_vm1, %v2448_v42 }
 0x6fe   :  { %v2361_v20 = vpop.f32.mrf.mxu0 }
 0x6ff   :  { %v2258_v63 = vpack.c.bf16 %v2241_v54, %v2240_v48  ;;  %v2362_v5 = vadd.f32 %v7890_v59, %v2361_v20 }
 0x701   :  { %5865 = vmatmul.msk.bf16.gmra.mxu0 %vm316_vm1, %v2258_v63  ;;  %v2423_v29 = vmax.f32 %v2362_v5, 0.0 }
 0x702   :  { %v2207_v12 = vpop.f32.mrf.mxu2 }
 0x703   :  { %v2208_v55 = vadd.f32 %v7735_v21, %v2207_v12 }
 0x705   :  { %v2242_v9 = vmax.f32 %v2208_v55, 0.0 }
 0x706   :  { %v2363_v13 = vpop.f32.mrf.mxu0 }
 0x707   :  { %v2364_v8 = vadd.f32 %v7890_v59, %v2363_v13 }
 0x709   :  { %v2424_v36 = vmax.f32 %v2364_v8, 0.0 }
 0x70a   :  { %v2209_v2 = vpop.f32.mrf.mxu2 }
 0x70b   :  { %v2449_v25 = vpack.c.bf16 %v2424_v36, %v2423_v29  ;;  %v2210_v46 = vadd.f32 %v7735_v21, %v2209_v2 }
 0x70d   :  { %v2243_v42 = vmax.f32 %v2210_v46, 0.0  ;;  %5880 = vmatmul.msk.bf16.gmra.mxu3 %vm316_vm1, %v2449_v25 }
 0x70e   :  { %v2366_v48 = vpop.f32.mrf.mxu0 }
 0x70f   :  { %v2259_v54 = vpack.c.bf16 %v2243_v42, %v2242_v9  ;;  %v2367_v20 = vadd.f32 %v7890_v59, %v2366_v48  ;;  %v7953_v48 = vld [vmem:[%s9735_s6 + $0x3] ss:$0 sm:$0xff] }
 0x711   :  { %5866 = vmatmul.msk.bf16.gmra.mxu0 %vm316_vm1, %v2259_v54  ;;  %v2425_v13 = vmax.f32 %v2367_v20, 0.0 }
 0x716   :  { %v2368_v63 = vpop.f32.mrf.mxu0 }
 0x717   :  { %v2369_v5 = vadd.f32 %v7890_v59, %v2368_v63 }
 0x719   :  { %v2426_v12 = vmax.f32 %v2369_v5, 0.0 }
 0x71b   :  { %v2450_v8 = vpack.c.bf16 %v2426_v12, %v2425_v13 }
 0x71d   :  { %5881 = vmatmul.msk.bf16.gmra.mxu3 %vm316_vm1, %v2450_v8 }
 0x71e   :  { %v2371_v29 = vpop.f32.mrf.mxu0 }
 0x71f   :  { %v2372_v21 = vadd.f32 %v7890_v59, %v2371_v29 }
 0x721   :  { %v2427_v2 = vmax.f32 %v2372_v21, 0.0 }
 0x726   :  { %v2373_v55 = vpop.f32.mrf.mxu0 }
 0x727   :  { %v2374_v36 = vadd.f32 %v7890_v59, %v2373_v55 }
 0x729   :  { %v2428_v25 = vmax.f32 %v2374_v36, 0.0 }
 0x72b   :  { %v2451_v46 = vpack.c.bf16 %v2428_v25, %v2427_v2 }
 0x72d   :  { %5882 = vmatmul.msk.bf16.gmra.mxu3 %vm316_vm1, %v2451_v46 }
 0x72e   :  { %v2376_v9 = vpop.f32.mrf.mxu0 }
 0x72f   :  { %v2377_v54 = vadd.f32 %v7890_v59, %v2376_v9 }
 0x730   :  { %v2530_v42 = vpop.f32.mrf.mxu3 }
 0x731   :  { %v2531_v20 = vadd.f32 %v7953_v48, %v2530_v42  ;;  %v2429_v12 = vmax.f32 %v2377_v54, 0.0 }
 0x733   :  { %v7960_v8 = vadd.f32 %v2531_v20, %v1989_v40 }
 0x735   :  { %v2642_v2 = vmax.f32 %v7960_v8, 0.0 }
 0x736   :  { %v2378_v63 = vpop.f32.mrf.mxu0 }
 0x737   :  { %v2379_v5 = vadd.f32 %v7890_v59, %v2378_v63 }
 0x738   :  { %v2532_v13 = vpop.f32.mrf.mxu3 }
 0x739   :  { %v2430_v29 = vmax.f32 %v2379_v5, 0.0  ;;  %v2533_v21 = vadd.f32 %v7953_v48, %v2532_v13 }
 0x73b   :  { %v2452_v55 = vpack.c.bf16 %v2430_v29, %v2429_v12  ;;  %v7965_v36 = vadd.f32 %v2533_v21, %v1990_v10 }
 0x73d   :  { %v2643_v25 = vmax.f32 %v7965_v36, 0.0  ;;  %5883 = vmatmul.msk.bf16.gmra.mxu3 %vm316_vm1, %v2452_v55  ;;  %v6305_v36 = vld [vmem:[%s9734_s5 + $0x28] sm:$0xff] }
 0x73e   :  { %v2381_v46 = vpop.f32.mrf.mxu0  ;;  %3834 = vmatpush.bf16.msrb.mxu2 %v6305_v36 }
 0x73f   :  { %v2674_v60 = vpack.c.bf16 %v2643_v25, %v2642_v2  ;;  %v2382_v10 = vadd.f32 %v7890_v59, %v2381_v46 }
 0x740   :  { %v2535_v40 = vpop.f32.mrf.mxu3 }
 0x741   :  { %5915 = vmatmul.msk.bf16.vlgmr.msrb.gmra.mxu1 %vm118_vm0, %v2674_v60  ;;  %v2536_v9 = vadd.f32 %v7953_v48, %v2535_v40  ;;  %v2431_v63 = vmax.f32 %v2382_v10, 0.0 }
 0x743   :  { %v7983_v5 = vadd.f32 %v2536_v9, %v1991_v62 }
 0x745   :  { %v2644_v55 = vmax.f32 %v7983_v5, 0.0 }
 0x746   :  { %v2383_v42 = vpop.f32.mrf.mxu0 }
 0x747   :  { %v2384_v54 = vadd.f32 %v7890_v59, %v2383_v42 }
 0x748   :  { %v2537_v20 = vpop.f32.mrf.mxu3 }
 0x749   :  { %v2432_v13 = vmax.f32 %v2384_v54, 0.0  ;;  %v2538_v12 = vadd.f32 %v7953_v48, %v2537_v20 }
 0x74b   :  { %v2453_v29 = vpack.c.bf16 %v2432_v13, %v2431_v63  ;;  %v7988_v21 = vadd.f32 %v2538_v12, %v1992_v32 }
 0x74d   :  { %v2645_v46 = vmax.f32 %v7988_v21, 0.0  ;;  %5884 = vmatmul.msk.bf16.gmra.mxu3 %vm316_vm1, %v2453_v29 }
 0x74e   :  { %v2386_v60 = vpop.f32.mrf.mxu0 }
 0x74f   :  { %v2675_v4 = vpack.c.bf16 %v2645_v46, %v2644_v55  ;;  %v2387_v40 = vadd.f32 %v7890_v59, %v2386_v60 }
 0x750   :  { %v2540_v62 = vpop.f32.mrf.mxu3 }
 0x751   :  { %5916 = vmatmul.msk.bf16.gmra.mxu1 %vm118_vm0, %v2675_v4  ;;  %v2541_v16 = vadd.f32 %v7953_v48, %v2540_v62  ;;  %v2433_v9 = vmax.f32 %v2387_v40, 0.0 }
 0x753   :  { %v8003_v42 = vadd.f32 %v2541_v16, %v1993_v49 }
 0x755   :  { %v2646_v12 = vmax.f32 %v8003_v42, 0.0 }
 0x756   :  { %v2388_v32 = vpop.f32.mrf.mxu0 }
 0x757   :  { %v2389_v28 = vadd.f32 %v7890_v59, %v2388_v32 }
 0x758   :  { %v2542_v10 = vpop.f32.mrf.mxu3 }
 0x759   :  { %v2434_v54 = vmax.f32 %v2389_v28, 0.0  ;;  %v2543_v20 = vadd.f32 %v7953_v48, %v2542_v10 }
 0x75b   :  { %v2454_v63 = vpack.c.bf16 %v2434_v54, %v2433_v9  ;;  %v8008_v13 = vadd.f32 %v2543_v20, %v1994_v33 }
 0x75d   :  { %v2647_v29 = vmax.f32 %v8008_v13, 0.0  ;;  %5885 = vmatmul.msk.bf16.gmra.mxu3 %vm316_vm1, %v2454_v63 }
 0x75e   :  { %v2391_v60 = vpop.f32.mrf.mxu0 }
 0x75f   :  { %v2676_v51 = vpack.c.bf16 %v2647_v29, %v2646_v12  ;;  %v2392_v4 = vadd.f32 %v7890_v59, %v2391_v60 }
 0x760   :  { %v2545_v49 = vpop.f32.mrf.mxu3 }
 0x761   :  { %5917 = vmatmul.msk.bf16.gmra.mxu1 %vm118_vm0, %v2676_v51  ;;  %v2546_v22 = vadd.f32 %v7953_v48, %v2545_v49  ;;  %v2435_v16 = vmax.f32 %v2392_v4, 0.0 }
 0x763   :  { %v8023_v32 = vadd.f32 %v2546_v22, %v1995_v1 }
 0x765   :  { %v2648_v20 = vmax.f32 %v8023_v32, 0.0 }
 0x766   :  { %v2393_v33 = vpop.f32.mrf.mxu0 }
 0x767   :  { %v2394_v62 = vadd.f32 %v7890_v59, %v2393_v33 }
 0x768   :  { %v2547_v40 = vpop.f32.mrf.mxu3 }
 0x769   :  { %v2436_v28 = vmax.f32 %v2394_v62, 0.0  ;;  %v2548_v10 = vadd.f32 %v7953_v48, %v2547_v40 }
 0x76b   :  { %v2455_v9 = vpack.c.bf16 %v2436_v28, %v2435_v16  ;;  %v8028_v54 = vadd.f32 %v2548_v10, %v1996_v39 }
 0x76d   :  { %v2649_v63 = vmax.f32 %v8028_v54, 0.0  ;;  %5886 = vmatmul.msk.bf16.gmra.mxu3 %vm316_vm1, %v2455_v9 }
 0x76e   :  { %v2396_v60 = vpop.f32.mrf.mxu0 }
 0x76f   :  { %v2677_v45 = vpack.c.bf16 %v2649_v63, %v2648_v20  ;;  %v2397_v51 = vadd.f32 %v7890_v59, %v2396_v60 }
 0x770   :  { %v2550_v1 = vpop.f32.mrf.mxu3 }
 0x771   :  { %5918 = vmatmul.msk.bf16.gmra.mxu1 %vm118_vm0, %v2677_v45  ;;  %v2551_v19 = vadd.f32 %v7953_v48, %v2550_v1  ;;  %v2437_v22 = vmax.f32 %v2397_v51, 0.0 }
 0x773   :  { %v8043_v33 = vadd.f32 %v2551_v19, %v1997_v14 }
 0x775   :  { %v2650_v10 = vmax.f32 %v8043_v33, 0.0 }
 0x776   :  { %v2398_v39 = vpop.f32.mrf.mxu0 }
 0x777   :  { %v2399_v49 = vadd.f32 %v7890_v59, %v2398_v39 }
 0x778   :  { %v2552_v4 = vpop.f32.mrf.mxu3 }
 0x779   :  { %v2438_v62 = vmax.f32 %v2399_v49, 0.0  ;;  %v2553_v40 = vadd.f32 %v7953_v48, %v2552_v4 }
 0x77b   :  { %v2456_v16 = vpack.c.bf16 %v2438_v62, %v2437_v22  ;;  %v8048_v28 = vadd.f32 %v2553_v40, %v1998_v57 }
 0x77d   :  { %v2651_v9 = vmax.f32 %v8048_v28, 0.0  ;;  %5887 = vmatmul.msk.bf16.gmra.mxu3 %vm316_vm1, %v2456_v16 }
 0x77e   :  { %v2401_v60 = vpop.f32.mrf.mxu0 }
 0x77f   :  { %v2678_v23 = vpack.c.bf16 %v2651_v9, %v2650_v10  ;;  %v2402_v45 = vadd.f32 %v7890_v59, %v2401_v60 }
 0x780   :  { %v2555_v14 = vpop.f32.mrf.mxu3 }
 0x781   :  { %5919 = vmatmul.msk.bf16.gmra.mxu1 %vm118_vm0, %v2678_v23  ;;  %v2556_v26 = vadd.f32 %v7953_v48, %v2555_v14  ;;  %v2439_v19 = vmax.f32 %v2402_v45, 0.0 }
 0x783   :  { %v8063_v39 = vadd.f32 %v2556_v26, %v1999_v44 }
 0x785   :  { %v2652_v40 = vmax.f32 %v8063_v39, 0.0 }
 0x786   :  { %v2403_v57 = vpop.f32.mrf.mxu0 }
 0x787   :  { %v2404_v1 = vadd.f32 %v7890_v59, %v2403_v57 }
 0x788   :  { %v2557_v51 = vpop.f32.mrf.mxu3 }
 0x789   :  { %v2440_v49 = vmax.f32 %v2404_v1, 0.0  ;;  %v2558_v4 = vadd.f32 %v7953_v48, %v2557_v51 }
 0x78b   :  { %v2457_v22 = vpack.c.bf16 %v2440_v49, %v2439_v19  ;;  %v8068_v62 = vadd.f32 %v2558_v4, %v2000_v0 }
 0x78d   :  { %v2653_v16 = vmax.f32 %v8068_v62, 0.0  ;;  %5888 = vmatmul.msk.bf16.gmra.mxu3 %vm316_vm1, %v2457_v22 }
 0x78e   :  { %v2406_v60 = vpop.f32.mrf.mxu0 }
 0x78f   :  { %v2679_v34 = vpack.c.bf16 %v2653_v16, %v2652_v40  ;;  %v2407_v23 = vadd.f32 %v7890_v59, %v2406_v60 }
 0x790   :  { %v2560_v44 = vpop.f32.mrf.mxu3 }
 0x791   :  { %5920 = vmatmul.msk.bf16.gmra.mxu1 %vm118_vm0, %v2679_v34  ;;  %v2561_v31 = vadd.f32 %v7953_v48, %v2560_v44  ;;  %v2441_v26 = vmax.f32 %v2407_v23, 0.0  ;;  %v9906_v44 = vmax.f32 %v7705_v41, 0.0 }
 0x793   :  { %v8083_v57 = vadd.f32 %v2561_v31, %v2001_v27 }
 0x795   :  { %v2654_v4 = vmax.f32 %v8083_v57, 0.0 }
 0x796   :  { %v2408_v0 = vpop.f32.mrf.mxu0 }
 0x797   :  { %v2409_v14 = vadd.f32 %v7890_v59, %v2408_v0 }
 0x798   :  { %v2562_v45 = vpop.f32.mrf.mxu3 }
 0x799   :  { %v2442_v1 = vmax.f32 %v2409_v14, 0.0  ;;  %v2563_v51 = vadd.f32 %v7953_v48, %v2562_v45 }
 0x79b   :  { %v2458_v19 = vpack.c.bf16 %v2442_v1, %v2441_v26  ;;  %v8088_v49 = vadd.f32 %v2563_v51, %v2002_v30  ;;  %v9907_v1 = vmax.f32 %v7717_v15, 0.0  ;;  %v8134_v15 = vld [vmem:[%s9731_s2 + $0x4] ss:$0 sm:$0xff] }
 0x79d   :  { %v9812_v22 = vmax.f32 %v8088_v49, 0.0  ;;  %5889 = vmatmul.msk.bf16.gmra.mxu3 %vm316_vm1, %v2458_v19  ;;  %v9908_v19 = vmax.f32 %v7722_v37, 0.0 }
 0x79f   :  { %v2680_v50 = vpack.c.bf16 %v9812_v22, %v2654_v4 }
 0x7a0   :  { %v2565_v27 = vpop.f32.mrf.mxu3 }
 0x7a1   :  { %5921 = vmatmul.msk.bf16.gmra.mxu1 %vm118_vm0, %v2680_v50  ;;  %v2566_v59 = vadd.f32 %v7953_v48, %v2565_v27 }
 0x7a3   :  { %v8101_v30 = vadd.f32 %v2566_v59, %v9905_v53 }
 0x7a5   :  { %v9811_v31 = vmax.f32 %v8101_v30, 0.0 }
 0x7a8   :  { %v2567_v60 = vpop.f32.mrf.mxu3 }
 0x7a9   :  { %v2568_v34 = vadd.f32 %v7953_v48, %v2567_v60 }
 0x7ab   :  { %v8106_v23 = vadd.f32 %v2568_v34, %v9906_v44 }
 0x7ad   :  { %v9796_v0 = vmax.f32 %v8106_v23, 0.0 }
 0x7af   :  { %v2681_v14 = vpack.c.bf16 %v9796_v0, %v9811_v31  ;;  %v9910_v0 = vmax.f32 %v7745_v52, 0.0 }
 0x7b0   :  { %v2570_v45 = vpop.f32.mrf.mxu3 }
 0x7b1   :  { %5922 = vmatmul.msk.bf16.gmra.mxu1 %vm118_vm0, %v2681_v14  ;;  %v2571_v61 = vadd.f32 %v7953_v48, %v2570_v45 }
 0x7b3   :  { %v8118_v41 = vadd.f32 %v2571_v61, %v9907_v1  ;;  %v9909_v1 = vmax.f32 %v7739_v17, 0.0 }
 0x7b5   :  { %v9795_v27 = vmax.f32 %v8118_v41, 0.0 }
 0x7b8   :  { %v2572_v26 = vpop.f32.mrf.mxu3 }
 0x7b9   :  { %v2573_v51 = vadd.f32 %v7953_v48, %v2572_v26 }
 0x7bb   :  { %v8123_v50 = vadd.f32 %v2573_v51, %v9908_v19 }
 0x7bd   :  { %v9794_v59 = vmax.f32 %v8123_v50, 0.0 }
 0x7be   :  { %v2785_v60 = vpop.f32.mrf.mxu1 }
 0x7bf   :  { %v2682_v53 = vpack.c.bf16 %v9794_v59, %v9795_v27  ;;  %v2786_v37 = vadd.f32 %v8134_v15, %v2785_v60 }
 0x7c0   :  { %v2575_v34 = vpop.f32.mrf.mxu3 }
 0x7c1   :  { %5923 = vmatmul.msk.bf16.gmra.mxu1 %vm118_vm0, %v2682_v53  ;;  %v2576_v44 = vadd.f32 %v7953_v48, %v2575_v34  ;;  %v2865_v26 = vmax.f32 %v2786_v37, 0.0  ;;  %v6303_v37 = vld [vmem:[%s9730_s1 + $0xb8] sm:$0xff] }
 0x7c2   :  { %3433 = vmatpush.bf16.msra.mxu3 %v6303_v37 }
 0x7c3   :  { %v8142_v51 = vadd.f32 %v2576_v44, %v9909_v1 }
 0x7c5   :  { %v9798_v60 = vmax.f32 %v8142_v51, 0.0 }
 0x7c6   :  { %v2787_v14 = vpop.f32.mrf.mxu1 }
 0x7c7   :  { %v2788_v45 = vadd.f32 %v8134_v15, %v2787_v14 }
 0x7c8   :  { %v2577_v61 = vpop.f32.mrf.mxu3 }
 0x7c9   :  { %v2866_v19 = vmax.f32 %v2788_v45, 0.0  ;;  %v2578_v59 = vadd.f32 %v7953_v48, %v2577_v61 }
 0x7cb   :  { %v2897_v27 = vpack.c.bf16 %v2866_v19, %v2865_v26  ;;  %v8147_v53 = vadd.f32 %v2578_v59, %v9910_v0  ;;  %v9911_v26 = vmax.f32 %v7762_v56, 0.0 }
 0x7cd   :  { %v9797_v34 = vmax.f32 %v8147_v53, 0.0  ;;  %5938 = vmatmul.msk.bf16.vlgmr.msra.gmra.mxu2 %vm316_vm1, %v2897_v27 }
 0x7ce   :  { %v2790_v14 = vpop.f32.mrf.mxu1 }
 0x7cf   :  { %v2683_v17 = vpack.c.bf16 %v9797_v34, %v9798_v60  ;;  %v2791_v52 = vadd.f32 %v8134_v15, %v2790_v14 }
 0x7d0   :  { %v2580_v44 = vpop.f32.mrf.mxu3 }
 0x7d1   :  { %5924 = vmatmul.msk.bf16.gmra.mxu1 %vm118_vm0, %v2683_v17  ;;  %v2581_v0 = vadd.f32 %v7953_v48, %v2580_v44  ;;  %v2867_v61 = vmax.f32 %v2791_v52, 0.0  ;;  %v9912_v17 = vmax.f32 %v7768_v18, 0.0 }
 0x7d3   :  { %v8165_v1 = vadd.f32 %v2581_v0, %v9911_v26 }
 0x7d5   :  { %v9800_v14 = vmax.f32 %v8165_v1, 0.0 }
 0x7d6   :  { %v2792_v59 = vpop.f32.mrf.mxu1 }
 0x7d7   :  { %v2793_v27 = vadd.f32 %v8134_v15, %v2792_v59 }
 0x7d8   :  { %v2582_v45 = vpop.f32.mrf.mxu3 }
 0x7d9   :  { %v2868_v19 = vmax.f32 %v2793_v27, 0.0  ;;  %v2583_v34 = vadd.f32 %v7953_v48, %v2582_v45 }
 0x7db   :  { %v2898_v60 = vpack.c.bf16 %v2868_v19, %v2867_v61  ;;  %v8170_v37 = vadd.f32 %v2583_v34, %v9912_v17 }
 0x7dd   :  { %v9799_v44 = vmax.f32 %v8170_v37, 0.0  ;;  %5939 = vmatmul.msk.bf16.gmra.mxu2 %vm316_vm1, %v2898_v60  ;;  %v9913_v60 = vmax.f32 %v7782_v35, 0.0 }
 0x7de   :  { %v2795_v59 = vpop.f32.mrf.mxu1 }
 0x7df   :  { %v2684_v56 = vpack.c.bf16 %v9799_v44, %v9800_v14  ;;  %v2796_v0 = vadd.f32 %v8134_v15, %v2795_v59  ;;  %v9914_v14 = vmax.f32 %v7788_v6, 0.0 }
 0x7e0   :  { %v2585_v52 = vpop.f32.mrf.mxu3 }
 0x7e1   :  { %5925 = vmatmul.msk.bf16.gmra.mxu1 %vm118_vm0, %v2684_v56  ;;  %v2586_v18 = vadd.f32 %v7953_v48, %v2585_v52  ;;  %v2869_v61 = vmax.f32 %v2796_v0, 0.0 }
 0x7e3   :  { %v8185_v26 = vadd.f32 %v2586_v18, %v9913_v60 }
 0x7e5   :  { %v9802_v59 = vmax.f32 %v8185_v26, 0.0 }
 0x7e6   :  { %v2797_v34 = vpop.f32.mrf.mxu1 }
 0x7e7   :  { %v2798_v27 = vadd.f32 %v8134_v15, %v2797_v34 }
 0x7e8   :  { %v2587_v45 = vpop.f32.mrf.mxu3 }
 0x7e9   :  { %v2870_v19 = vmax.f32 %v2798_v27, 0.0  ;;  %v2588_v17 = vadd.f32 %v7953_v48, %v2587_v45 }
 0x7eb   :  { %v2899_v44 = vpack.c.bf16 %v2870_v19, %v2869_v61  ;;  %v8190_v56 = vadd.f32 %v2588_v17, %v9914_v14 }
 0x7ed   :  { %v9801_v52 = vmax.f32 %v8190_v56, 0.0  ;;  %5940 = vmatmul.msk.bf16.gmra.mxu2 %vm316_vm1, %v2899_v44  ;;  %v9915_v44 = vmax.f32 %v7802_v7, 0.0 }
 0x7ee   :  { %v2800_v34 = vpop.f32.mrf.mxu1 }
 0x7ef   :  { %v2685_v35 = vpack.c.bf16 %v9801_v52, %v9802_v59  ;;  %v2801_v18 = vadd.f32 %v8134_v15, %v2800_v34  ;;  %v9916_v59 = vmax.f32 %v7808_v43, 0.0 }
 0x7f0   :  { %v2590_v0 = vpop.f32.mrf.mxu3 }
 0x7f1   :  { %5926 = vmatmul.msk.bf16.gmra.mxu1 %vm118_vm0, %v2685_v35  ;;  %v2591_v6 = vadd.f32 %v7953_v48, %v2590_v0  ;;  %v2871_v61 = vmax.f32 %v2801_v18, 0.0 }
 0x7f3   :  { %v8205_v60 = vadd.f32 %v2591_v6, %v9915_v44 }
 0x7f5   :  { %v9804_v34 = vmax.f32 %v8205_v60, 0.0 }
 0x7f6   :  { %v2802_v14 = vpop.f32.mrf.mxu1 }
 0x7f7   :  { %v2803_v27 = vadd.f32 %v8134_v15, %v2802_v14 }
 0x7f8   :  { %v2592_v45 = vpop.f32.mrf.mxu3 }
 0x7f9   :  { %v2872_v19 = vmax.f32 %v2803_v27, 0.0  ;;  %v2593_v17 = vadd.f32 %v7953_v48, %v2592_v45 }
 0x7fb   :  { %v2900_v52 = vpack.c.bf16 %v2872_v19, %v2871_v61  ;;  %v8210_v35 = vadd.f32 %v2593_v17, %v9916_v59 }
 0x7fd   :  { %v9803_v0 = vmax.f32 %v8210_v35, 0.0  ;;  %5941 = vmatmul.msk.bf16.gmra.mxu2 %vm316_vm1, %v2900_v52  ;;  %v9917_v52 = vmax.f32 %v7822_v47, 0.0 }
 0x7fe   :  { %v2805_v14 = vpop.f32.mrf.mxu1 }
 0x7ff   :  { %v2686_v7 = vpack.c.bf16 %v9803_v0, %v9804_v34  ;;  %v2806_v6 = vadd.f32 %v8134_v15, %v2805_v14  ;;  %v9918_v34 = vmax.f32 %v7828_v24, 0.0 }
 0x800   :  { %v2595_v18 = vpop.f32.mrf.mxu3 }
 0x801   :  { %5927 = vmatmul.msk.bf16.gmra.mxu1 %vm118_vm0, %v2686_v7  ;;  %v2596_v43 = vadd.f32 %v7953_v48, %v2595_v18  ;;  %v2873_v61 = vmax.f32 %v2806_v6, 0.0  ;;  %v6302_v6 = vld [vmem:[%s9730_s1 + $0xb0] sm:$0xff] }
 0x802   :  { %3434 = vmatpush.bf16.msra.mxu3 %v6302_v6 }
 0x803   :  { %v8225_v44 = vadd.f32 %v2596_v43, %v9917_v52  ;;  %v9919_v52 = vmax.f32 %v7845_v11, 0.0 }
 0x805   :  { %v9806_v14 = vmax.f32 %v8225_v44, 0.0 }
 0x806   :  { %v2807_v59 = vpop.f32.mrf.mxu1 }
 0x807   :  { %v2808_v27 = vadd.f32 %v8134_v15, %v2807_v59 }
 0x808   :  { %v2597_v45 = vpop.f32.mrf.mxu3 }
 0x809   :  { %v2874_v19 = vmax.f32 %v2808_v27, 0.0  ;;  %v2598_v17 = vadd.f32 %v7953_v48, %v2597_v45 }
 0x80b   :  { %v2901_v0 = vpack.c.bf16 %v2874_v19, %v2873_v61  ;;  %v8230_v7 = vadd.f32 %v2598_v17, %v9918_v34 }
 0x80d   :  { %v9805_v18 = vmax.f32 %v8230_v7, 0.0  ;;  %5942 = vmatmul.msk.bf16.gmra.mxu2 %vm316_vm1, %v2901_v0 }
 0x80e   :  { %v2810_v59 = vpop.f32.mrf.mxu1 }
 0x80f   :  { %v2687_v47 = vpack.c.bf16 %v9805_v18, %v9806_v14  ;;  %v2811_v24 = vadd.f32 %v8134_v15, %v2810_v59 }
 0x810   :  { %v2600_v43 = vpop.f32.mrf.mxu3 }
 0x811   :  { %5928 = vmatmul.msk.bf16.gmra.mxu1 %vm118_vm0, %v2687_v47  ;;  %v2601_v34 = vadd.f32 %v7953_v48, %v2600_v43  ;;  %v2875_v61 = vmax.f32 %v2811_v24, 0.0  ;;  %v9920_v47 = vmax.f32 %v7851_v38, 0.0 }
 0x813   :  { %v8248_v19 = vadd.f32 %v2601_v34, %v9919_v52 }
 0x815   :  { %v9808_v59 = vmax.f32 %v8248_v19, 0.0 }
 0x816   :  { %v2812_v27 = vpop.f32.mrf.mxu1 }
 0x817   :  { %v2813_v0 = vadd.f32 %v8134_v15, %v2812_v27 }
 0x818   :  { %v2602_v45 = vpop.f32.mrf.mxu3 }
 0x819   :  { %v2876_v17 = vmax.f32 %v2813_v0, 0.0  ;;  %v2603_v18 = vadd.f32 %v7953_v48, %v2602_v45 }
 0x81b   :  { %v2902_v14 = vpack.c.bf16 %v2876_v17, %v2875_v61  ;;  %v8253_v6 = vadd.f32 %v2603_v18, %v9920_v47 }
 0x81d   :  { %v9807_v43 = vmax.f32 %v8253_v6, 0.0  ;;  %5943 = vmatmul.msk.bf16.gmra.mxu2 %vm316_vm1, %v2902_v14  ;;  %v9921_v14 = vmax.f32 %v7865_v58, 0.0 }
 0x81e   :  { %v2815_v27 = vpop.f32.mrf.mxu1 }
 0x81f   :  { %v2688_v11 = vpack.c.bf16 %v9807_v43, %v9808_v59  ;;  %v2816_v34 = vadd.f32 %v8134_v15, %v2815_v27  ;;  %v9922_v59 = vmax.f32 %v7871_v3, 0.0 }
 0x820   :  { %v2605_v24 = vpop.f32.mrf.mxu3 }
 0x821   :  { %5929 = vmatmul.msk.bf16.gmra.mxu1 %vm118_vm0, %v2688_v11  ;;  %v2606_v38 = vadd.f32 %v7953_v48, %v2605_v24  ;;  %v2877_v61 = vmax.f32 %v2816_v34, 0.0 }
 0x823   :  { %v8268_v52 = vadd.f32 %v2606_v38, %v9921_v14 }
 0x825   :  { %v9810_v27 = vmax.f32 %v8268_v52, 0.0 }
 0x826   :  { %v2817_v18 = vpop.f32.mrf.mxu1 }
 0x827   :  { %v2818_v0 = vadd.f32 %v8134_v15, %v2817_v18 }
 0x828   :  { %v2607_v45 = vpop.f32.mrf.mxu3 }
 0x829   :  { %v2878_v17 = vmax.f32 %v2818_v0, 0.0  ;;  %v2608_v47 = vadd.f32 %v7953_v48, %v2607_v45 }
 0x82b   :  { %v2903_v43 = vpack.c.bf16 %v2878_v17, %v2877_v61  ;;  %v8273_v11 = vadd.f32 %v2608_v47, %v9922_v59 }
 0x82d   :  { %v9809_v24 = vmax.f32 %v8273_v11, 0.0  ;;  %5944 = vmatmul.msk.bf16.gmra.mxu2 %vm316_vm1, %v2903_v43 }
 0x82e   :  { %v2820_v18 = vpop.f32.mrf.mxu1 }
 0x82f   :  { %v2689_v58 = vpack.c.bf16 %v9809_v24, %v9810_v27  ;;  %v2821_v48 = vadd.f32 %v8134_v15, %v2820_v18  ;;  %v6301_v18 = vld [vmem:[%s9730_s1 + $0xa8] sm:$0xff] }
 0x830   :  { %3435 = vmatpush.bf16.msra.mxu3 %v6301_v18 }
 0x831   :  { %5930 = vmatmul.msk.bf16.gmra.mxu1 %vm118_vm0, %v2689_v58  ;;  %v2879_v59 = vmax.f32 %v2821_v48, 0.0 }
 0x836   :  { %v2822_v34 = vpop.f32.mrf.mxu1 }
 0x837   :  { %v2823_v3 = vadd.f32 %v8134_v15, %v2822_v34  ;;  %v8295_v34 = vld [vmem:[%s9733_s4 + $0x4] ss:$0 sm:$0xff] }
 0x839   :  { %v2880_v38 = vmax.f32 %v2823_v3, 0.0 }
 0x83b   :  { %v2904_v0 = vpack.c.bf16 %v2880_v38, %v2879_v59 }
 0x83d   :  { %5945 = vmatmul.msk.bf16.gmra.mxu2 %vm316_vm1, %v2904_v0 }
 0x83e   :  { %v2825_v45 = vpop.f32.mrf.mxu1 }
 0x83f   :  { %v2826_v43 = vadd.f32 %v8134_v15, %v2825_v45 }
 0x841   :  { %v2881_v17 = vmax.f32 %v2826_v43, 0.0 }
 0x846   :  { %v2827_v61 = vpop.f32.mrf.mxu1 }
 0x847   :  { %v2828_v14 = vadd.f32 %v8134_v15, %v2827_v61 }
 0x849   :  { %v2882_v47 = vmax.f32 %v2828_v14, 0.0 }
 0x84b   :  { %v2905_v24 = vpack.c.bf16 %v2882_v47, %v2881_v17 }
 0x84d   :  { %5946 = vmatmul.msk.bf16.gmra.mxu2 %vm316_vm1, %v2905_v24 }
 0x84e   :  { %v2830_v58 = vpop.f32.mrf.mxu1 }
 0x84f   :  { %v2831_v3 = vadd.f32 %v8134_v15, %v2830_v58 }
 0x850   :  { %v2984_v48 = vpop.f32.mrf.mxu2 }
 0x851   :  { %v2985_v38 = vadd.f32 %v8295_v34, %v2984_v48  ;;  %v2883_v45 = vmax.f32 %v2831_v3, 0.0  ;;  %v6304_v48 = vld [vmem:[%s9732_s3 + $0x28] sm:$0xff] }
 0x852   :  { %3635 = vmatpush.bf16.msra.mxu1 %v6304_v48 }
 0x853   :  { %v3064_v14 = vmax.f32 %v2985_v38, 0.0 }
 0x856   :  { %v2832_v59 = vpop.f32.mrf.mxu1 }
 0x857   :  { %v2833_v0 = vadd.f32 %v8134_v15, %v2832_v59 }
 0x858   :  { %v2986_v24 = vpop.f32.mrf.mxu2 }
 0x859   :  { %v2884_v43 = vmax.f32 %v2833_v0, 0.0  ;;  %v2987_v61 = vadd.f32 %v8295_v34, %v2986_v24 }
 0x85b   :  { %v2906_v17 = vpack.c.bf16 %v2884_v43, %v2883_v45  ;;  %v3065_v47 = vmax.f32 %v2987_v61, 0.0 }
 0x85d   :  { %v3096_v18 = vpack.c.bf16 %v3065_v47, %v3064_v14  ;;  %5947 = vmatmul.msk.bf16.gmra.mxu2 %vm316_vm1, %v2906_v17 }
 0x85e   :  { %v2835_v27 = vpop.f32.mrf.mxu1 }
 0x85f   :  { %5961 = vmatmul.msk.bf16.vlgmr.msra.gmra.mxu0 %vm316_vm1, %v3096_v18  ;;  %v2836_v3 = vadd.f32 %v8134_v15, %v2835_v27 }
 0x860   :  { %v2989_v58 = vpop.f32.mrf.mxu2 }
 0x861   :  { %v2990_v0 = vadd.f32 %v8295_v34, %v2989_v58  ;;  %v2885_v45 = vmax.f32 %v2836_v3, 0.0 }
 0x863   :  { %v3066_v14 = vmax.f32 %v2990_v0, 0.0 }
 0x866   :  { %v2837_v59 = vpop.f32.mrf.mxu1 }
 0x867   :  { %v2838_v38 = vadd.f32 %v8134_v15, %v2837_v59 }
 0x868   :  { %v2991_v24 = vpop.f32.mrf.mxu2 }
 0x869   :  { %v2886_v43 = vmax.f32 %v2838_v38, 0.0  ;;  %v2992_v61 = vadd.f32 %v8295_v34, %v2991_v24 }
 0x86b   :  { %v2907_v17 = vpack.c.bf16 %v2886_v43, %v2885_v45  ;;  %v3067_v47 = vmax.f32 %v2992_v61, 0.0 }
 0x86d   :  { %v3097_v18 = vpack.c.bf16 %v3067_v47, %v3066_v14  ;;  %5948 = vmatmul.msk.bf16.gmra.mxu2 %vm316_vm1, %v2907_v17 }
 0x86e   :  { %v2840_v31 = vpop.f32.mrf.mxu1 }
 0x86f   :  { %5962 = vmatmul.msk.bf16.gmra.mxu0 %vm316_vm1, %v3097_v18  ;;  %v2841_v48 = vadd.f32 %v8134_v15, %v2840_v31 }
 0x870   :  { %v2994_v27 = vpop.f32.mrf.mxu2 }
 0x871   :  { %v2995_v59 = vadd.f32 %v8295_v34, %v2994_v27  ;;  %v2887_v22 = vmax.f32 %v2841_v48, 0.0 }
 0x873   :  { %v3068_v45 = vmax.f32 %v2995_v59, 0.0 }
 0x876   :  { %v2842_v58 = vpop.f32.mrf.mxu1 }
 0x877   :  { %v2843_v3 = vadd.f32 %v8134_v15, %v2842_v58 }
 0x878   :  { %v2996_v38 = vpop.f32.mrf.mxu2 }
 0x879   :  { %v2888_v24 = vmax.f32 %v2843_v3, 0.0  ;;  %v2997_v0 = vadd.f32 %v8295_v34, %v2996_v38 }
 0x87b   :  { %v2908_v43 = vpack.c.bf16 %v2888_v24, %v2887_v22  ;;  %v3069_v61 = vmax.f32 %v2997_v0, 0.0 }
 0x87d   :  { %v3098_v14 = vpack.c.bf16 %v3069_v61, %v3068_v45  ;;  %5949 = vmatmul.msk.bf16.gmra.mxu2 %vm316_vm1, %v2908_v43  ;;  %v6300_v43 = vld [vmem:[%s9730_s1 + $0xa0] sm:$0xff] }
 0x87e   :  { %v2845_v17 = vpop.f32.mrf.mxu1  ;;  %3436 = vmatpush.bf16.msra.mxu3 %v6300_v43 }
 0x87f   :  { %5963 = vmatmul.msk.bf16.gmra.mxu0 %vm316_vm1, %v3098_v14  ;;  %v2846_v47 = vadd.f32 %v8134_v15, %v2845_v17 }
 0x880   :  { %v2999_v31 = vpop.f32.mrf.mxu2 }
 0x881   :  { %v3000_v27 = vadd.f32 %v8295_v34, %v2999_v31  ;;  %v2889_v3 = vmax.f32 %v2846_v47, 0.0 }
 0x883   :  { %v3070_v59 = vmax.f32 %v3000_v27, 0.0 }
 0x886   :  { %v2847_v18 = vpop.f32.mrf.mxu1 }
 0x887   :  { %v2848_v48 = vadd.f32 %v8134_v15, %v2847_v18 }
 0x888   :  { %v3001_v58 = vpop.f32.mrf.mxu2 }
 0x889   :  { %v2890_v38 = vmax.f32 %v2848_v48, 0.0  ;;  %v3002_v22 = vadd.f32 %v8295_v34, %v3001_v58 }
 0x88b   :  { %v2909_v24 = vpack.c.bf16 %v2890_v38, %v2889_v3  ;;  %v3071_v0 = vmax.f32 %v3002_v22, 0.0 }
 0x88d   :  { %v3099_v45 = vpack.c.bf16 %v3071_v0, %v3070_v59  ;;  %5950 = vmatmul.msk.bf16.gmra.mxu2 %vm316_vm1, %v2909_v24 }
 0x88e   :  { %v2850_v61 = vpop.f32.mrf.mxu1 }
 0x88f   :  { %5964 = vmatmul.msk.bf16.gmra.mxu0 %vm316_vm1, %v3099_v45  ;;  %v2851_v17 = vadd.f32 %v8134_v15, %v2850_v61 }
 0x890   :  { %v3004_v14 = vpop.f32.mrf.mxu2 }
 0x891   :  { %v3005_v47 = vadd.f32 %v8295_v34, %v3004_v14  ;;  %v2891_v48 = vmax.f32 %v2851_v17, 0.0 }
 0x893   :  { %v3072_v38 = vmax.f32 %v3005_v47, 0.0 }
 0x896   :  { %v2852_v31 = vpop.f32.mrf.mxu1 }
 0x897   :  { %v2853_v18 = vadd.f32 %v8134_v15, %v2852_v31 }
 0x898   :  { %v3006_v27 = vpop.f32.mrf.mxu2 }
 0x899   :  { %v2892_v58 = vmax.f32 %v2853_v18, 0.0  ;;  %v3007_v3 = vadd.f32 %v8295_v34, %v3006_v27 }
 0x89b   :  { %v2910_v22 = vpack.c.bf16 %v2892_v58, %v2891_v48  ;;  %v3073_v59 = vmax.f32 %v3007_v3, 0.0 }
 0x89d   :  { %v3100_v24 = vpack.c.bf16 %v3073_v59, %v3072_v38  ;;  %5951 = vmatmul.msk.bf16.gmra.mxu2 %vm316_vm1, %v2910_v22 }
 0x89e   :  { %v2855_v0 = vpop.f32.mrf.mxu1 }
 0x89f   :  { %5965 = vmatmul.msk.bf16.gmra.mxu0 %vm316_vm1, %v3100_v24  ;;  %v2856_v43 = vadd.f32 %v8134_v15, %v2855_v0 }
 0x8a0   :  { %v3009_v45 = vpop.f32.mrf.mxu2 }
 0x8a1   :  { %v3010_v14 = vadd.f32 %v8295_v34, %v3009_v45  ;;  %v2893_v18 = vmax.f32 %v2856_v43, 0.0 }
 0x8a3   :  { %v3074_v48 = vmax.f32 %v3010_v14, 0.0 }
 0x8a6   :  { %v2857_v61 = vpop.f32.mrf.mxu1 }
 0x8a7   :  { %v2858_v17 = vadd.f32 %v8134_v15, %v2857_v61 }
 0x8a8   :  { %v3011_v31 = vpop.f32.mrf.mxu2 }
 0x8a9   :  { %v2894_v27 = vmax.f32 %v2858_v17, 0.0  ;;  %v3012_v47 = vadd.f32 %v8295_v34, %v3011_v31 }
 0x8ab   :  { %v2911_v58 = vpack.c.bf16 %v2894_v27, %v2893_v18  ;;  %v3075_v3 = vmax.f32 %v3012_v47, 0.0 }
 0x8ad   :  { %v3101_v38 = vpack.c.bf16 %v3075_v3, %v3074_v48  ;;  %5952 = vmatmul.msk.bf16.gmra.mxu2 %vm316_vm1, %v2911_v58 }
 0x8ae   :  { %v2860_v22 = vpop.f32.mrf.mxu1 }
 0x8af   :  { %5966 = vmatmul.msk.bf16.gmra.mxu0 %vm316_vm1, %v3101_v38  ;;  %v2861_v24 = vadd.f32 %v8134_v15, %v2860_v22 }
 0x8b0   :  { %v3014_v59 = vpop.f32.mrf.mxu2 }
 0x8b1   :  { %v3015_v45 = vadd.f32 %v8295_v34, %v3014_v59  ;;  %v2895_v17 = vmax.f32 %v2861_v24, 0.0 }
 0x8b3   :  { %v3076_v18 = vmax.f32 %v3015_v45, 0.0 }
 0x8b6   :  { %v2862_v0 = vpop.f32.mrf.mxu1 }
 0x8b7   :  { %v2863_v43 = vadd.f32 %v8134_v15, %v2862_v0 }
 0x8b8   :  { %v3016_v61 = vpop.f32.mrf.mxu2 }
 0x8b9   :  { %v2896_v31 = vmax.f32 %v2863_v43, 0.0  ;;  %v3017_v14 = vadd.f32 %v8295_v34, %v3016_v61 }
 0x8bb   :  { %v2912_v27 = vpack.c.bf16 %v2896_v31, %v2895_v17  ;;  %v3077_v47 = vmax.f32 %v3017_v14, 0.0 }
 0x8bd   :  { %v3102_v48 = vpack.c.bf16 %v3077_v47, %v3076_v18  ;;  %5953 = vmatmul.msk.bf16.gmra.mxu2 %vm316_vm1, %v2912_v27  ;;  %v8353_v27 = vld [vmem:[%s9735_s6 + $0x4] ss:$0 sm:$0xff] }
 0x8bf   :  { %5967 = vmatmul.msk.bf16.gmra.mxu0 %vm316_vm1, %v3102_v48 }
 0x8c0   :  { %v3019_v58 = vpop.f32.mrf.mxu2 }
 0x8c1   :  { %v3020_v3 = vadd.f32 %v8295_v34, %v3019_v58 }
 0x8c3   :  { %v3078_v15 = vmax.f32 %v3020_v3, 0.0 }
 0x8c8   :  { %v3021_v38 = vpop.f32.mrf.mxu2 }
 0x8c9   :  { %v3022_v22 = vadd.f32 %v8295_v34, %v3021_v38 }
 0x8cb   :  { %v3079_v59 = vmax.f32 %v3022_v22, 0.0 }
 0x8cd   :  { %v3103_v24 = vpack.c.bf16 %v3079_v59, %v3078_v15 }
 0x8cf   :  { %5968 = vmatmul.msk.bf16.gmra.mxu0 %vm316_vm1, %v3103_v24 }
 0x8d0   :  { %v3024_v0 = vpop.f32.mrf.mxu2 }
 0x8d1   :  { %v3025_v45 = vadd.f32 %v8295_v34, %v3024_v0 }
 0x8d3   :  { %v3080_v17 = vmax.f32 %v3025_v45, 0.0 }
 0x8d8   :  { %v3026_v43 = vpop.f32.mrf.mxu2 }
 0x8d9   :  { %v3027_v61 = vadd.f32 %v8295_v34, %v3026_v43 }
 0x8db   :  { %v3081_v31 = vmax.f32 %v3027_v61, 0.0 }
 0x8dc   :  { %v3183_v14 = vpop.f32.mrf.mxu0 }
 0x8dd   :  { %v3104_v18 = vpack.c.bf16 %v3081_v31, %v3080_v17  ;;  %v3184_v48 = vadd.f32 %v8353_v27, %v3183_v14 }
 0x8df   :  { %5969 = vmatmul.msk.bf16.gmra.mxu0 %vm316_vm1, %v3104_v18  ;;  %v8359_v3 = vadd.f32 %v3184_v48, %v2642_v2 }
 0x8e0   :  { %v3029_v47 = vpop.f32.mrf.mxu2 }
 0x8e1   :  { %v3030_v22 = vadd.f32 %v8295_v34, %v3029_v47  ;;  %v3295_v24 = vmax.f32 %v8359_v3, 0.0 }
 0x8e3   :  { %v3082_v43 = vmax.f32 %v3030_v22, 0.0 }
 0x8e4   :  { %v3185_v58 = vpop.f32.mrf.mxu0 }
 0x8e5   :  { %v3186_v38 = vadd.f32 %v8353_v27, %v3185_v58 }
 0x8e7   :  { %v8365_v15 = vadd.f32 %v3186_v38, %v2643_v25 }
 0x8e8   :  { %v3031_v59 = vpop.f32.mrf.mxu2 }
 0x8e9   :  { %v3296_v0 = vmax.f32 %v8365_v15, 0.0  ;;  %v3032_v45 = vadd.f32 %v8295_v34, %v3031_v59  ;;  %v6311_v15 = vld [vmem:[%s9734_s5 + $0x30] sm:$0xff] }
 0x8ea   :  { %4487 = vmatpush.bf16.msrb.mxu1 %v6311_v15 }
 0x8eb   :  { %v3327_v8 = vpack.c.bf16 %v3296_v0, %v3295_v24  ;;  %v3083_v2 = vmax.f32 %v3032_v45, 0.0 }
 0x8ec   :  { %v3188_v61 = vpop.f32.mrf.mxu0 }
 0x8ed   :  { %v3105_v17 = vpack.c.bf16 %v3083_v2, %v3082_v43  ;;  %6002 = vmatmul.msk.bf16.vlgmr.msra.gmra.mxu3 %vm118_vm0, %v3327_v8  ;;  %v3189_v31 = vadd.f32 %v8353_v27, %v3188_v61 }
 0x8ef   :  { %5970 = vmatmul.msk.bf16.gmra.mxu0 %vm316_vm1, %v3105_v17  ;;  %v8382_v18 = vadd.f32 %v3189_v31, %v2644_v55 }
 0x8f0   :  { %v3034_v25 = vpop.f32.mrf.mxu2 }
 0x8f1   :  { %v3035_v48 = vadd.f32 %v8295_v34, %v3034_v25  ;;  %v3297_v22 = vmax.f32 %v8382_v18, 0.0 }
 0x8f3   :  { %v3084_v43 = vmax.f32 %v3035_v48, 0.0 }
 0x8f4   :  { %v3190_v14 = vpop.f32.mrf.mxu0 }
 0x8f5   :  { %v3191_v47 = vadd.f32 %v8353_v27, %v3190_v14 }
 0x8f7   :  { %v8388_v58 = vadd.f32 %v3191_v47, %v2645_v46 }
 0x8f8   :  { %v3036_v38 = vpop.f32.mrf.mxu2 }
 0x8f9   :  { %v3298_v59 = vmax.f32 %v8388_v58, 0.0  ;;  %v3037_v45 = vadd.f32 %v8295_v34, %v3036_v38 }
 0x8fb   :  { %v3328_v5 = vpack.c.bf16 %v3298_v59, %v3297_v22  ;;  %v3085_v55 = vmax.f32 %v3037_v45, 0.0 }
 0x8fc   :  { %v3193_v8 = vpop.f32.mrf.mxu0 }
 0x8fd   :  { %v3106_v2 = vpack.c.bf16 %v3085_v55, %v3084_v43  ;;  %6003 = vmatmul.msk.bf16.gmra.mxu3 %vm118_vm0, %v3328_v5  ;;  %v3194_v46 = vadd.f32 %v8353_v27, %v3193_v8 }
 0x8ff   :  { %5971 = vmatmul.msk.bf16.gmra.mxu0 %vm316_vm1, %v3106_v2  ;;  %v8402_v17 = vadd.f32 %v3194_v46, %v2646_v12 }
 0x900   :  { %v3039_v21 = vpop.f32.mrf.mxu2 }
 0x901   :  { %v3040_v25 = vadd.f32 %v8295_v34, %v3039_v21  ;;  %v3299_v47 = vmax.f32 %v8402_v17, 0.0 }
 0x903   :  { %v3086_v45 = vmax.f32 %v3040_v25, 0.0 }
 0x904   :  { %v3195_v61 = vpop.f32.mrf.mxu0 }
 0x905   :  { %v3196_v36 = vadd.f32 %v8353_v27, %v3195_v61 }
 0x907   :  { %v8408_v31 = vadd.f32 %v3196_v36, %v2647_v29 }
 0x908   :  { %v3041_v14 = vpop.f32.mrf.mxu2 }
 0x909   :  { %v3300_v48 = vmax.f32 %v8408_v31, 0.0  ;;  %v3042_v38 = vadd.f32 %v8295_v34, %v3041_v14 }
 0x90b   :  { %v3329_v42 = vpack.c.bf16 %v3300_v48, %v3299_v47  ;;  %v3087_v12 = vmax.f32 %v3042_v38, 0.0 }
 0x90c   :  { %v3198_v43 = vpop.f32.mrf.mxu0 }
 0x90d   :  { %v3107_v5 = vpack.c.bf16 %v3087_v12, %v3086_v45  ;;  %6004 = vmatmul.msk.bf16.gmra.mxu3 %vm118_vm0, %v3329_v42  ;;  %v3199_v29 = vadd.f32 %v8353_v27, %v3198_v43 }
 0x90f   :  { %5972 = vmatmul.msk.bf16.gmra.mxu0 %vm316_vm1, %v3107_v5  ;;  %v8422_v8 = vadd.f32 %v3199_v29, %v2648_v20 }
 0x910   :  { %v3044_v13 = vpop.f32.mrf.mxu2 }
 0x911   :  { %v3045_v21 = vadd.f32 %v8295_v34, %v3044_v13  ;;  %v3301_v36 = vmax.f32 %v8422_v8, 0.0 }
 0x913   :  { %v3088_v38 = vmax.f32 %v3045_v21, 0.0 }
 0x914   :  { %v3200_v55 = vpop.f32.mrf.mxu0 }
 0x915   :  { %v3201_v2 = vadd.f32 %v8353_v27, %v3200_v55 }
 0x917   :  { %v8428_v46 = vadd.f32 %v3201_v2, %v2649_v63 }
 0x918   :  { %v3046_v61 = vpop.f32.mrf.mxu2 }
 0x919   :  { %v3302_v25 = vmax.f32 %v8428_v46, 0.0  ;;  %v3047_v14 = vadd.f32 %v8295_v34, %v3046_v61 }
 0x91b   :  { %v3330_v32 = vpack.c.bf16 %v3302_v25, %v3301_v36  ;;  %v3089_v20 = vmax.f32 %v3047_v14, 0.0 }
 0x91c   :  { %v3203_v45 = vpop.f32.mrf.mxu0 }
 0x91d   :  { %v3108_v42 = vpack.c.bf16 %v3089_v20, %v3088_v38  ;;  %6005 = vmatmul.msk.bf16.gmra.mxu3 %vm118_vm0, %v3330_v32  ;;  %v3204_v63 = vadd.f32 %v8353_v27, %v3203_v45 }
 0x91f   :  { %5973 = vmatmul.msk.bf16.gmra.mxu0 %vm316_vm1, %v3108_v42  ;;  %v8442_v43 = vadd.f32 %v3204_v63, %v2650_v10 }
 0x920   :  { %v3049_v54 = vpop.f32.mrf.mxu2 }
 0x921   :  { %v3050_v13 = vadd.f32 %v8295_v34, %v3049_v54  ;;  %v3303_v2 = vmax.f32 %v8442_v43, 0.0 }
 0x923   :  { %v3090_v14 = vmax.f32 %v3050_v13, 0.0 }
 0x924   :  { %v3205_v12 = vpop.f32.mrf.mxu0 }
 0x925   :  { %v3206_v5 = vadd.f32 %v8353_v27, %v3205_v12 }
 0x927   :  { %v8448_v29 = vadd.f32 %v3206_v5, %v2651_v9 }
 0x928   :  { %v3051_v55 = vpop.f32.mrf.mxu2 }
 0x929   :  { %v3304_v21 = vmax.f32 %v8448_v29, 0.0  ;;  %v3052_v61 = vadd.f32 %v8295_v34, %v3051_v55 }
 0x92b   :  { %v3331_v33 = vpack.c.bf16 %v3304_v21, %v3303_v2  ;;  %v3091_v10 = vmax.f32 %v3052_v61, 0.0 }
 0x92c   :  { %v3208_v38 = vpop.f32.mrf.mxu0 }
 0x92d   :  { %v3109_v32 = vpack.c.bf16 %v3091_v10, %v3090_v14  ;;  %6006 = vmatmul.msk.bf16.gmra.mxu3 %vm118_vm0, %v3331_v33  ;;  %v3209_v9 = vadd.f32 %v8353_v27, %v3208_v38 }
 0x92f   :  { %5974 = vmatmul.msk.bf16.gmra.mxu0 %vm316_vm1, %v3109_v32  ;;  %v8462_v45 = vadd.f32 %v3209_v9, %v2652_v40  ;;  %v9923_v9 = vmax.f32 %v8088_v49, 0.0 }
 0x930   :  { %v3054_v28 = vpop.f32.mrf.mxu2 }
 0x931   :  { %v3055_v54 = vadd.f32 %v8295_v34, %v3054_v28  ;;  %v3305_v5 = vmax.f32 %v8462_v45, 0.0 }
 0x933   :  { %v3092_v61 = vmax.f32 %v3055_v54, 0.0 }
 0x934   :  { %v3210_v20 = vpop.f32.mrf.mxu0 }
 0x935   :  { %v3211_v42 = vadd.f32 %v8353_v27, %v3210_v20 }
 0x937   :  { %v8468_v63 = vadd.f32 %v3211_v42, %v2653_v16 }
 0x938   :  { %v3056_v12 = vpop.f32.mrf.mxu2 }
 0x939   :  { %v3306_v13 = vmax.f32 %v8468_v63, 0.0  ;;  %v3057_v55 = vadd.f32 %v8295_v34, %v3056_v12 }
 0x93b   :  { %v3332_v39 = vpack.c.bf16 %v3306_v13, %v3305_v5  ;;  %v3093_v40 = vmax.f32 %v3057_v55, 0.0 }
 0x93c   :  { %v3213_v14 = vpop.f32.mrf.mxu0 }
 0x93d   :  { %v3110_v33 = vpack.c.bf16 %v3093_v40, %v3092_v61  ;;  %6007 = vmatmul.msk.bf16.gmra.mxu3 %vm118_vm0, %v3332_v39  ;;  %v3214_v16 = vadd.f32 %v8353_v27, %v3213_v14 }
 0x93f   :  { %5975 = vmatmul.msk.bf16.gmra.mxu0 %vm316_vm1, %v3110_v33  ;;  %v8482_v38 = vadd.f32 %v3214_v16, %v2654_v4  ;;  %v9924_v33 = vmax.f32 %v8101_v30, 0.0  ;;  %v9925_v16 = vmax.f32 %v8106_v23, 0.0 }
 0x940   :  { %v3059_v62 = vpop.f32.mrf.mxu2 }
 0x941   :  { %v3060_v28 = vadd.f32 %v8295_v34, %v3059_v62  ;;  %v3307_v54 = vmax.f32 %v8482_v38, 0.0 }
 0x943   :  { %v3094_v61 = vmax.f32 %v3060_v28, 0.0 }
 0x944   :  { %v3215_v10 = vpop.f32.mrf.mxu0 }
 0x945   :  { %v3216_v32 = vadd.f32 %v8353_v27, %v3215_v10 }
 0x947   :  { %v8488_v20 = vadd.f32 %v3216_v32, %v9923_v9 }
 0x948   :  { %v3061_v42 = vpop.f32.mrf.mxu2 }
 0x949   :  { %v3308_v12 = vmax.f32 %v8488_v20, 0.0  ;;  %v3062_v55 = vadd.f32 %v8295_v34, %v3061_v42 }
 0x94b   :  { %v3333_v57 = vpack.c.bf16 %v3308_v12, %v3307_v54  ;;  %v3095_v4 = vmax.f32 %v3062_v55, 0.0 }
 0x94c   :  { %v3218_v39 = vpop.f32.mrf.mxu0 }
 0x94d   :  { %v3111_v40 = vpack.c.bf16 %v3095_v4, %v3094_v61  ;;  %6008 = vmatmul.msk.bf16.gmra.mxu3 %vm118_vm0, %v3333_v57  ;;  %v3219_v49 = vadd.f32 %v8353_v27, %v3218_v39  ;;  %v9926_v61 = vmax.f32 %v8118_v41, 0.0  ;;  %v9927_v4 = vmax.f32 %v8123_v50, 0.0  ;;  %v8537_v50 = vld [vmem:[%s9731_s2 + $0x5] ss:$0 sm:$0xff] }
 0x94f   :  { %5976 = vmatmul.msk.bf16.gmra.mxu0 %vm316_vm1, %v3111_v40  ;;  %v8502_v62 = vadd.f32 %v3219_v49, %v9924_v33 }
 0x951   :  { %v9830_v32 = vmax.f32 %v8502_v62, 0.0  ;;  %v9942_v20 = vmax.f32 %v8502_v62, 0.0 }
 0x954   :  { %v3220_v14 = vpop.f32.mrf.mxu0 }
 0x955   :  { %v3221_v34 = vadd.f32 %v8353_v27, %v3220_v14 }
 0x957   :  { %v8507_v10 = vadd.f32 %v3221_v34, %v9925_v16 }
 0x959   :  { %v9817_v28 = vmax.f32 %v8507_v10, 0.0 }
 0x95b   :  { %v3334_v9 = vpack.c.bf16 %v9817_v28, %v9830_v32 }
 0x95c   :  { %v3223_v42 = vpop.f32.mrf.mxu0 }
 0x95d   :  { %6009 = vmatmul.msk.bf16.gmra.mxu3 %vm118_vm0, %v3334_v9  ;;  %v3224_v30 = vadd.f32 %v8353_v27, %v3223_v42  ;;  %v9928_v9 = vmax.f32 %v8142_v51, 0.0 }
 0x95f   :  { %v8519_v23 = vadd.f32 %v3224_v30, %v9926_v61  ;;  %v9929_v61 = vmax.f32 %v8147_v53, 0.0 }
 0x961   :  { %v9814_v40 = vmax.f32 %v8519_v23, 0.0 }
 0x964   :  { %v3225_v55 = vpop.f32.mrf.mxu0 }
 0x965   :  { %v3226_v57 = vadd.f32 %v8353_v27, %v3225_v55 }
 0x967   :  { %v8524_v39 = vadd.f32 %v3226_v57, %v9927_v4 }
 0x969   :  { %v9813_v49 = vmax.f32 %v8524_v39, 0.0 }
 0x96b   :  { %v3335_v14 = vpack.c.bf16 %v9813_v49, %v9814_v40 }
 0x96c   :  { %v3228_v33 = vpop.f32.mrf.mxu0 }
 0x96d   :  { %6010 = vmatmul.msk.bf16.gmra.mxu3 %vm118_vm0, %v3335_v14  ;;  %v3229_v34 = vadd.f32 %v8353_v27, %v3228_v33 }
 0x96f   :  { %v8541_v42 = vadd.f32 %v3229_v34, %v9928_v9 }
 0x970   :  { %v3438_v41 = vpop.f32.mrf.mxu3 }
 0x971   :  { %v3439_v55 = vadd.f32 %v8537_v50, %v3438_v41  ;;  %v9816_v14 = vmax.f32 %v8541_v42, 0.0 }
 0x973   :  { %v3518_v40 = vmax.f32 %v3439_v55, 0.0 }
 0x974   :  { %v3230_v16 = vpop.f32.mrf.mxu0 }
 0x975   :  { %v3231_v30 = vadd.f32 %v8353_v27, %v3230_v16 }
 0x977   :  { %v8547_v57 = vadd.f32 %v3231_v30, %v9929_v61  ;;  %v6309_v30 = vld [vmem:[%s9730_s1 + $0xd8] sm:$0xff]  ;;  %v9930_v61 = vmax.f32 %v8165_v1, 0.0 }
 0x978   :  { %v3440_v4 = vpop.f32.mrf.mxu3  ;;  %4086 = vmatpush.bf16.msrb.mxu0 %v6309_v30 }
 0x979   :  { %v9815_v33 = vmax.f32 %v8547_v57, 0.0  ;;  %v3441_v49 = vadd.f32 %v8537_v50, %v3440_v4 }
 0x97b   :  { %v3336_v51 = vpack.c.bf16 %v9815_v33, %v9816_v14  ;;  %v3519_v34 = vmax.f32 %v3441_v49, 0.0 }
 0x97c   :  { %v3233_v16 = vpop.f32.mrf.mxu0 }
 0x97d   :  { %v3550_v41 = vpack.c.bf16 %v3519_v34, %v3518_v40  ;;  %6011 = vmatmul.msk.bf16.gmra.mxu3 %vm118_vm0, %v3336_v51  ;;  %v3234_v9 = vadd.f32 %v8353_v27, %v3233_v16  ;;  %v9931_v51 = vmax.f32 %v8170_v37, 0.0 }
 0x97f   :  { %6025 = vmatmul.msk.bf16.vlgmr.msra.gmra.mxu1 %vm316_vm1, %v3550_v41  ;;  %v8564_v4 = vadd.f32 %v3234_v9, %v9930_v61 }
 0x980   :  { %v3443_v53 = vpop.f32.mrf.mxu3 }
 0x981   :  { %v3444_v40 = vadd.f32 %v8537_v50, %v3443_v53  ;;  %v9819_v16 = vmax.f32 %v8564_v4, 0.0 }
 0x983   :  { %v3520_v14 = vmax.f32 %v3444_v40, 0.0 }
 0x984   :  { %v3235_v55 = vpop.f32.mrf.mxu0 }
 0x985   :  { %v3236_v49 = vadd.f32 %v8353_v27, %v3235_v55 }
 0x987   :  { %v8570_v34 = vadd.f32 %v3236_v49, %v9931_v51  ;;  %v9932_v51 = vmax.f32 %v8185_v26, 0.0 }
 0x988   :  { %v3445_v41 = vpop.f32.mrf.mxu3 }
 0x989   :  { %v9818_v33 = vmax.f32 %v8570_v34, 0.0  ;;  %v3446_v30 = vadd.f32 %v8537_v50, %v3445_v41 }
 0x98b   :  { %v3337_v1 = vpack.c.bf16 %v9818_v33, %v9819_v16  ;;  %v3521_v9 = vmax.f32 %v3446_v30, 0.0  ;;  %v9933_v30 = vmax.f32 %v8190_v56, 0.0 }
 0x98c   :  { %v3238_v55 = vpop.f32.mrf.mxu0 }
 0x98d   :  { %v3551_v53 = vpack.c.bf16 %v3521_v9, %v3520_v14  ;;  %6012 = vmatmul.msk.bf16.gmra.mxu3 %vm118_vm0, %v3337_v1  ;;  %v3239_v61 = vadd.f32 %v8353_v27, %v3238_v55 }
 0x98f   :  { %6026 = vmatmul.msk.bf16.gmra.mxu1 %vm316_vm1, %v3551_v53  ;;  %v8584_v41 = vadd.f32 %v3239_v61, %v9932_v51 }
 0x990   :  { %v3448_v37 = vpop.f32.mrf.mxu3 }
 0x991   :  { %v3449_v28 = vadd.f32 %v8537_v50, %v3448_v37  ;;  %v9821_v1 = vmax.f32 %v8584_v41, 0.0 }
 0x993   :  { %v3522_v53 = vmax.f32 %v3449_v28, 0.0 }
 0x994   :  { %v3240_v49 = vpop.f32.mrf.mxu0 }
 0x995   :  { %v3241_v40 = vadd.f32 %v8353_v27, %v3240_v49 }
 0x997   :  { %v8590_v33 = vadd.f32 %v3241_v40, %v9933_v30  ;;  %v9934_v30 = vmax.f32 %v8205_v60, 0.0 }
 0x998   :  { %v3450_v14 = vpop.f32.mrf.mxu3 }
 0x999   :  { %v9820_v9 = vmax.f32 %v8590_v33, 0.0  ;;  %v3451_v55 = vadd.f32 %v8537_v50, %v3450_v14 }
 0x99b   :  { %v3338_v26 = vpack.c.bf16 %v9820_v9, %v9821_v1  ;;  %v3523_v61 = vmax.f32 %v3451_v55, 0.0  ;;  %v9935_v55 = vmax.f32 %v8210_v35, 0.0 }
 0x99c   :  { %v3243_v49 = vpop.f32.mrf.mxu0 }
 0x99d   :  { %v3552_v37 = vpack.c.bf16 %v3523_v61, %v3522_v53  ;;  %6013 = vmatmul.msk.bf16.gmra.mxu3 %vm118_vm0, %v3338_v26  ;;  %v3244_v51 = vadd.f32 %v8353_v27, %v3243_v49 }
 0x99f   :  { %6027 = vmatmul.msk.bf16.gmra.mxu1 %vm316_vm1, %v3552_v37  ;;  %v8604_v14 = vadd.f32 %v3244_v51, %v9934_v30 }
 0x9a0   :  { %v3453_v56 = vpop.f32.mrf.mxu3 }
 0x9a1   :  { %v3454_v16 = vadd.f32 %v8537_v50, %v3453_v56  ;;  %v9825_v26 = vmax.f32 %v8604_v14, 0.0 }
 0x9a3   :  { %v3524_v37 = vmax.f32 %v3454_v16, 0.0 }
 0x9a4   :  { %v3245_v40 = vpop.f32.mrf.mxu0 }
 0x9a5   :  { %v3246_v28 = vadd.f32 %v8353_v27, %v3245_v40 }
 0x9a7   :  { %v8610_v9 = vadd.f32 %v3246_v28, %v9935_v55  ;;  %v9936_v55 = vmax.f32 %v8225_v44, 0.0 }
 0x9a8   :  { %v3455_v53 = vpop.f32.mrf.mxu3 }
 0x9a9   :  { %v9822_v61 = vmax.f32 %v8610_v9, 0.0  ;;  %v3456_v49 = vadd.f32 %v8537_v50, %v3455_v53 }
 0x9ab   :  { %v3339_v60 = vpack.c.bf16 %v9822_v61, %v9825_v26  ;;  %v3525_v51 = vmax.f32 %v3456_v49, 0.0  ;;  %v9937_v49 = vmax.f32 %v8230_v7, 0.0  ;;  %v6308_v7 = vld [vmem:[%s9730_s1 + $0xd0] sm:$0xff] }
 0x9ac   :  { %v3248_v40 = vpop.f32.mrf.mxu0  ;;  %4087 = vmatpush.bf16.msrb.mxu0 %v6308_v7 }
 0x9ad   :  { %v3553_v56 = vpack.c.bf16 %v3525_v51, %v3524_v37  ;;  %6014 = vmatmul.msk.bf16.gmra.mxu3 %vm118_vm0, %v3339_v60  ;;  %v3249_v30 = vadd.f32 %v8353_v27, %v3248_v40 }
 0x9af   :  { %6028 = vmatmul.msk.bf16.gmra.mxu1 %vm316_vm1, %v3553_v56  ;;  %v8624_v53 = vadd.f32 %v3249_v30, %v9936_v55 }
 0x9b0   :  { %v3458_v35 = vpop.f32.mrf.mxu3 }
 0x9b1   :  { %v3459_v1 = vadd.f32 %v8537_v50, %v3458_v35  ;;  %v9824_v60 = vmax.f32 %v8624_v53, 0.0 }
 0x9b3   :  { %v3526_v56 = vmax.f32 %v3459_v1, 0.0 }
 0x9b4   :  { %v3250_v28 = vpop.f32.mrf.mxu0 }
 0x9b5   :  { %v3251_v16 = vadd.f32 %v8353_v27, %v3250_v28 }
 0x9b7   :  { %v8630_v61 = vadd.f32 %v3251_v16, %v9937_v49  ;;  %v9938_v49 = vmax.f32 %v8248_v19, 0.0 }
 0x9b8   :  { %v3460_v37 = vpop.f32.mrf.mxu3 }
 0x9b9   :  { %v9823_v51 = vmax.f32 %v8630_v61, 0.0  ;;  %v3461_v40 = vadd.f32 %v8537_v50, %v3460_v37 }
 0x9bb   :  { %v3340_v44 = vpack.c.bf16 %v9823_v51, %v9824_v60  ;;  %v3527_v30 = vmax.f32 %v3461_v40, 0.0 }
 0x9bc   :  { %v3253_v28 = vpop.f32.mrf.mxu0 }
 0x9bd   :  { %v3554_v35 = vpack.c.bf16 %v3527_v30, %v3526_v56  ;;  %6015 = vmatmul.msk.bf16.gmra.mxu3 %vm118_vm0, %v3340_v44  ;;  %v3254_v16 = vadd.f32 %v8353_v27, %v3253_v28  ;;  %v9939_v44 = vmax.f32 %v8253_v6, 0.0 }
 0x9bf   :  { %6029 = vmatmul.msk.bf16.gmra.mxu1 %vm316_vm1, %v3554_v35  ;;  %v8647_v37 = vadd.f32 %v3254_v16, %v9938_v49 }
 0x9c0   :  { %v3463_v55 = vpop.f32.mrf.mxu3 }
 0x9c1   :  { %v3464_v56 = vadd.f32 %v8537_v50, %v3463_v55  ;;  %v9829_v51 = vmax.f32 %v8647_v37, 0.0 }
 0x9c3   :  { %v3528_v7 = vmax.f32 %v3464_v56, 0.0 }
 0x9c4   :  { %v3255_v1 = vpop.f32.mrf.mxu0 }
 0x9c5   :  { %v3256_v40 = vadd.f32 %v8353_v27, %v3255_v1 }
 0x9c7   :  { %v8653_v30 = vadd.f32 %v3256_v40, %v9939_v44  ;;  %v9940_v44 = vmax.f32 %v8268_v52, 0.0 }
 0x9c8   :  { %v3465_v35 = vpop.f32.mrf.mxu3 }
 0x9c9   :  { %v9826_v60 = vmax.f32 %v8653_v30, 0.0  ;;  %v3466_v28 = vadd.f32 %v8537_v50, %v3465_v35 }
 0x9cb   :  { %v3341_v19 = vpack.c.bf16 %v9826_v60, %v9829_v51  ;;  %v3529_v16 = vmax.f32 %v3466_v28, 0.0  ;;  %v9941_v28 = vmax.f32 %v8273_v11, 0.0 }
 0x9cc   :  { %v3258_v1 = vpop.f32.mrf.mxu0 }
 0x9cd   :  { %v3555_v55 = vpack.c.bf16 %v3529_v16, %v3528_v7  ;;  %6016 = vmatmul.msk.bf16.gmra.mxu3 %vm118_vm0, %v3341_v19  ;;  %v3259_v49 = vadd.f32 %v8353_v27, %v3258_v1 }
 0x9cf   :  { %6030 = vmatmul.msk.bf16.gmra.mxu1 %vm316_vm1, %v3555_v55  ;;  %v8667_v35 = vadd.f32 %v3259_v49, %v9940_v44 }
 0x9d0   :  { %v3468_v6 = vpop.f32.mrf.mxu3 }
 0x9d1   :  { %v3469_v26 = vadd.f32 %v8537_v50, %v3468_v6  ;;  %v9828_v19 = vmax.f32 %v8667_v35, 0.0 }
 0x9d3   :  { %v3530_v55 = vmax.f32 %v3469_v26, 0.0 }
 0x9d4   :  { %v3260_v40 = vpop.f32.mrf.mxu0 }
 0x9d5   :  { %v3261_v56 = vadd.f32 %v8353_v27, %v3260_v40 }
 0x9d7   :  { %v8673_v60 = vadd.f32 %v3261_v56, %v9941_v28 }
 0x9d8   :  { %v3470_v7 = vpop.f32.mrf.mxu3 }
 0x9d9   :  { %v9827_v16 = vmax.f32 %v8673_v60, 0.0  ;;  %v3471_v1 = vadd.f32 %v8537_v50, %v3470_v7 }
 0x9db   :  { %v3342_v52 = vpack.c.bf16 %v9827_v16, %v9828_v19  ;;  %v3531_v27 = vmax.f32 %v3471_v1, 0.0 }
 0x9dd   :  { %v3556_v49 = vpack.c.bf16 %v3531_v27, %v3530_v55  ;;  %6017 = vmatmul.msk.bf16.gmra.mxu3 %vm118_vm0, %v3342_v52 }
 0x9df   :  { %6031 = vmatmul.msk.bf16.gmra.mxu1 %vm316_vm1, %v3556_v49 }
 0x9e0   :  { %v3473_v11 = vpop.f32.mrf.mxu3 }
 0x9e1   :  { %v3474_v6 = vadd.f32 %v8537_v50, %v3473_v11  ;;  %v8692_v11 = vld [vmem:[%s9733_s4 + $0x5] ss:$0 sm:$0xff] }
 0x9e3   :  { %v3532_v56 = vmax.f32 %v3474_v6, 0.0  ;;  %v6307_v6 = vld [vmem:[%s9730_s1 + $0xc8] sm:$0xff] }
 0x9e4   :  { %4088 = vmatpush.bf16.msrb.mxu0 %v6307_v6 }
 0x9e8   :  { %v3475_v40 = vpop.f32.mrf.mxu3 }
 0x9e9   :  { %v3476_v44 = vadd.f32 %v8537_v50, %v3475_v40 }
 0x9eb   :  { %v3533_v28 = vmax.f32 %v3476_v44, 0.0 }
 0x9ed   :  { %v3557_v26 = vpack.c.bf16 %v3533_v28, %v3532_v56 }
 0x9ef   :  { %6032 = vmatmul.msk.bf16.gmra.mxu1 %vm316_vm1, %v3557_v26 }
 0x9f0   :  { %v3478_v7 = vpop.f32.mrf.mxu3 }
 0x9f1   :  { %v3479_v16 = vadd.f32 %v8537_v50, %v3478_v7 }
 0x9f3   :  { %v3534_v52 = vmax.f32 %v3479_v16, 0.0 }
 0x9f8   :  { %v3480_v1 = vpop.f32.mrf.mxu3 }
 0x9f9   :  { %v3481_v55 = vadd.f32 %v8537_v50, %v3480_v1 }
 0x9fb   :  { %v3535_v27 = vmax.f32 %v3481_v55, 0.0 }
 0x9fc   :  { %v3637_v49 = vpop.f32.mrf.mxu1 }
 0x9fd   :  { %v3558_v19 = vpack.c.bf16 %v3535_v27, %v3534_v52  ;;  %v3638_v44 = vadd.f32 %v8692_v11, %v3637_v49  ;;  %v6310_v49 = vld [vmem:[%s9732_s3 + $0x30] sm:$0xff] }
 0x9fe   :  { %4288 = vmatpush.bf16.msrb.mxu3 %v6310_v49 }
 0x9ff   :  { %6033 = vmatmul.msk.bf16.gmra.mxu1 %vm316_vm1, %v3558_v19  ;;  %v3717_v28 = vmax.f32 %v3638_v44, 0.0 }
 0xa00   :  { %v3483_v40 = vpop.f32.mrf.mxu3 }
 0xa01   :  { %v3484_v26 = vadd.f32 %v8537_v50, %v3483_v40 }
 0xa03   :  { %v3536_v19 = vmax.f32 %v3484_v26, 0.0 }
 0xa04   :  { %v3639_v56 = vpop.f32.mrf.mxu1 }
 0xa05   :  { %v3640_v16 = vadd.f32 %v8692_v11, %v3639_v56 }
 0xa07   :  { %v3718_v7 = vmax.f32 %v3640_v16, 0.0 }
 0xa08   :  { %v3485_v1 = vpop.f32.mrf.mxu3 }
 0xa09   :  { %v3749_v55 = vpack.c.bf16 %v3718_v7, %v3717_v28  ;;  %v3486_v52 = vadd.f32 %v8537_v50, %v3485_v1 }
 0xa0b   :  { %v3537_v27 = vmax.f32 %v3486_v52, 0.0  ;;  %6048 = vmatmul.msk.bf16.vlgmr.msrb.gmra.mxu2 %vm316_vm1, %v3749_v55 }
 0xa0c   :  { %v3642_v51 = vpop.f32.mrf.mxu1 }
 0xa0d   :  { %v3559_v32 = vpack.c.bf16 %v3537_v27, %v3536_v19  ;;  %v3643_v40 = vadd.f32 %v8692_v11, %v3642_v51 }
 0xa0f   :  { %6034 = vmatmul.msk.bf16.gmra.mxu1 %vm316_vm1, %v3559_v32  ;;  %v3719_v16 = vmax.f32 %v3643_v40, 0.0 }
 0xa10   :  { %v3488_v6 = vpop.f32.mrf.mxu3 }
 0xa11   :  { %v3489_v28 = vadd.f32 %v8537_v50, %v3488_v6 }
 0xa13   :  { %v3538_v52 = vmax.f32 %v3489_v28, 0.0 }
 0xa14   :  { %v3644_v44 = vpop.f32.mrf.mxu1 }
 0xa15   :  { %v3645_v56 = vadd.f32 %v8692_v11, %v3644_v44 }
 0xa17   :  { %v3720_v26 = vmax.f32 %v3645_v56, 0.0 }
 0xa18   :  { %v3490_v7 = vpop.f32.mrf.mxu3 }
 0xa19   :  { %v3750_v1 = vpack.c.bf16 %v3720_v26, %v3719_v16  ;;  %v3491_v55 = vadd.f32 %v8537_v50, %v3490_v7 }
 0xa1b   :  { %v3539_v19 = vmax.f32 %v3491_v55, 0.0  ;;  %6049 = vmatmul.msk.bf16.gmra.mxu2 %vm316_vm1, %v3750_v1 }
 0xa1c   :  { %v3647_v32 = vpop.f32.mrf.mxu1 }
 0xa1d   :  { %v3560_v27 = vpack.c.bf16 %v3539_v19, %v3538_v52  ;;  %v3648_v49 = vadd.f32 %v8692_v11, %v3647_v32 }
 0xa1f   :  { %6035 = vmatmul.msk.bf16.gmra.mxu1 %vm316_vm1, %v3560_v27  ;;  %v3721_v6 = vmax.f32 %v3648_v49, 0.0 }
 0xa20   :  { %v3493_v51 = vpop.f32.mrf.mxu3 }
 0xa21   :  { %v3494_v56 = vadd.f32 %v8537_v50, %v3493_v51 }
 0xa23   :  { %v3540_v55 = vmax.f32 %v3494_v56, 0.0 }
 0xa24   :  { %v3649_v44 = vpop.f32.mrf.mxu1 }
 0xa25   :  { %v3650_v40 = vadd.f32 %v8692_v11, %v3649_v44 }
 0xa27   :  { %v3722_v16 = vmax.f32 %v3650_v40, 0.0 }
 0xa28   :  { %v3495_v26 = vpop.f32.mrf.mxu3 }
 0xa29   :  { %v3751_v7 = vpack.c.bf16 %v3722_v16, %v3721_v6  ;;  %v3496_v28 = vadd.f32 %v8537_v50, %v3495_v26 }
 0xa2b   :  { %v3541_v1 = vmax.f32 %v3496_v28, 0.0  ;;  %6050 = vmatmul.msk.bf16.gmra.mxu2 %vm316_vm1, %v3751_v7 }
 0xa2c   :  { %v3652_v52 = vpop.f32.mrf.mxu1 }
 0xa2d   :  { %v3561_v19 = vpack.c.bf16 %v3541_v1, %v3540_v55  ;;  %v3653_v27 = vadd.f32 %v8692_v11, %v3652_v52  ;;  %v6306_v52 = vld [vmem:[%s9730_s1 + $0xc0] sm:$0xff] }
 0xa2e   :  { %4089 = vmatpush.bf16.msrb.mxu0 %v6306_v52 }
 0xa2f   :  { %6036 = vmatmul.msk.bf16.gmra.mxu1 %vm316_vm1, %v3561_v19  ;;  %v3723_v51 = vmax.f32 %v3653_v27, 0.0 }
 0xa30   :  { %v3498_v32 = vpop.f32.mrf.mxu3 }
 0xa31   :  { %v3499_v40 = vadd.f32 %v8537_v50, %v3498_v32 }
 0xa33   :  { %v3542_v28 = vmax.f32 %v3499_v40, 0.0 }
 0xa34   :  { %v3654_v44 = vpop.f32.mrf.mxu1 }
 0xa35   :  { %v3655_v49 = vadd.f32 %v8692_v11, %v3654_v44 }
 0xa37   :  { %v3724_v6 = vmax.f32 %v3655_v49, 0.0 }
 0xa38   :  { %v3500_v16 = vpop.f32.mrf.mxu3 }
 0xa39   :  { %v3752_v26 = vpack.c.bf16 %v3724_v6, %v3723_v51  ;;  %v3501_v56 = vadd.f32 %v8537_v50, %v3500_v16 }
 0xa3b   :  { %v3543_v7 = vmax.f32 %v3501_v56, 0.0  ;;  %6051 = vmatmul.msk.bf16.gmra.mxu2 %vm316_vm1, %v3752_v26 }
 0xa3c   :  { %v3657_v55 = vpop.f32.mrf.mxu1 }
 0xa3d   :  { %v3562_v1 = vpack.c.bf16 %v3543_v7, %v3542_v28  ;;  %v3658_v32 = vadd.f32 %v8692_v11, %v3657_v55 }
 0xa3f   :  { %6037 = vmatmul.msk.bf16.gmra.mxu1 %vm316_vm1, %v3562_v1  ;;  %v3725_v49 = vmax.f32 %v3658_v32, 0.0 }
 0xa40   :  { %v3503_v19 = vpop.f32.mrf.mxu3 }
 0xa41   :  { %v3504_v51 = vadd.f32 %v8537_v50, %v3503_v19 }
 0xa43   :  { %v3544_v56 = vmax.f32 %v3504_v51, 0.0 }
 0xa44   :  { %v3659_v27 = vpop.f32.mrf.mxu1 }
 0xa45   :  { %v3660_v44 = vadd.f32 %v8692_v11, %v3659_v27 }
 0xa47   :  { %v3726_v40 = vmax.f32 %v3660_v44, 0.0 }
 0xa48   :  { %v3505_v6 = vpop.f32.mrf.mxu3 }
 0xa49   :  { %v3753_v16 = vpack.c.bf16 %v3726_v40, %v3725_v49  ;;  %v3506_v26 = vadd.f32 %v8537_v50, %v3505_v6 }
 0xa4b   :  { %v3545_v28 = vmax.f32 %v3506_v26, 0.0  ;;  %6052 = vmatmul.msk.bf16.gmra.mxu2 %vm316_vm1, %v3753_v16 }
 0xa4c   :  { %v3662_v7 = vpop.f32.mrf.mxu1 }
 0xa4d   :  { %v3563_v1 = vpack.c.bf16 %v3545_v28, %v3544_v56  ;;  %v3663_v52 = vadd.f32 %v8692_v11, %v3662_v7 }
 0xa4f   :  { %6038 = vmatmul.msk.bf16.gmra.mxu1 %vm316_vm1, %v3563_v1  ;;  %v3727_v19 = vmax.f32 %v3663_v52, 0.0 }
 0xa50   :  { %v3508_v55 = vpop.f32.mrf.mxu3 }
 0xa51   :  { %v3509_v44 = vadd.f32 %v8537_v50, %v3508_v55 }
 0xa53   :  { %v3546_v26 = vmax.f32 %v3509_v44, 0.0 }
 0xa54   :  { %v3664_v27 = vpop.f32.mrf.mxu1 }
 0xa55   :  { %v3665_v32 = vadd.f32 %v8692_v11, %v3664_v27 }
 0xa57   :  { %v3728_v49 = vmax.f32 %v3665_v32, 0.0 }
 0xa58   :  { %v3510_v40 = vpop.f32.mrf.mxu3 }
 0xa59   :  { %v3754_v6 = vpack.c.bf16 %v3728_v49, %v3727_v19  ;;  %v3511_v51 = vadd.f32 %v8537_v50, %v3510_v40 }
 0xa5b   :  { %v3547_v16 = vmax.f32 %v3511_v51, 0.0  ;;  %6053 = vmatmul.msk.bf16.gmra.mxu2 %vm316_vm1, %v3754_v6 }
 0xa5c   :  { %v3667_v56 = vpop.f32.mrf.mxu1 }
 0xa5d   :  { %v3564_v28 = vpack.c.bf16 %v3547_v16, %v3546_v26  ;;  %v3668_v1 = vadd.f32 %v8692_v11, %v3667_v56 }
 0xa5f   :  { %6039 = vmatmul.msk.bf16.gmra.mxu1 %vm316_vm1, %v3564_v28  ;;  %v3729_v55 = vmax.f32 %v3668_v1, 0.0 }
 0xa60   :  { %v3513_v7 = vpop.f32.mrf.mxu3 }
 0xa61   :  { %v3514_v32 = vadd.f32 %v8537_v50, %v3513_v7 }
 0xa63   :  { %v3548_v51 = vmax.f32 %v3514_v32, 0.0 }
 0xa64   :  { %v3669_v27 = vpop.f32.mrf.mxu1 }
 0xa65   :  { %v3670_v52 = vadd.f32 %v8692_v11, %v3669_v27 }
 0xa67   :  { %v3730_v19 = vmax.f32 %v3670_v52, 0.0 }
 0xa68   :  { %v3515_v49 = vpop.f32.mrf.mxu3 }
 0xa69   :  { %v3755_v40 = vpack.c.bf16 %v3730_v19, %v3729_v55  ;;  %v3516_v44 = vadd.f32 %v8537_v50, %v3515_v49 }
 0xa6b   :  { %v3549_v6 = vmax.f32 %v3516_v44, 0.0  ;;  %6054 = vmatmul.msk.bf16.gmra.mxu2 %vm316_vm1, %v3755_v40 }
 0xa6c   :  { %v3672_v26 = vpop.f32.mrf.mxu1 }
 0xa6d   :  { %v3565_v16 = vpack.c.bf16 %v3549_v6, %v3548_v51  ;;  %v3673_v56 = vadd.f32 %v8692_v11, %v3672_v26  ;;  %v8755_v26 = vld [vmem:[%s9735_s6 + $0x5] ss:$0 sm:$0xff] }
 0xa6f   :  { %6040 = vmatmul.msk.bf16.gmra.mxu1 %vm316_vm1, %v3565_v16  ;;  %v3731_v27 = vmax.f32 %v3673_v56, 0.0 }
 0xa74   :  { %v3674_v28 = vpop.f32.mrf.mxu1 }
 0xa75   :  { %v3675_v1 = vadd.f32 %v8692_v11, %v3674_v28 }
 0xa77   :  { %v3732_v7 = vmax.f32 %v3675_v1, 0.0 }
 0xa79   :  { %v3756_v52 = vpack.c.bf16 %v3732_v7, %v3731_v27 }
 0xa7b   :  { %6055 = vmatmul.msk.bf16.gmra.mxu2 %vm316_vm1, %v3756_v52 }
 0xa7c   :  { %v3677_v55 = vpop.f32.mrf.mxu1 }
 0xa7d   :  { %v3678_v50 = vadd.f32 %v8692_v11, %v3677_v55 }
 0xa7f   :  { %v3733_v49 = vmax.f32 %v3678_v50, 0.0 }
 0xa84   :  { %v3679_v32 = vpop.f32.mrf.mxu1 }
 0xa85   :  { %v3680_v19 = vadd.f32 %v8692_v11, %v3679_v32 }
 0xa87   :  { %v3734_v40 = vmax.f32 %v3680_v19, 0.0 }
 0xa89   :  { %v3757_v44 = vpack.c.bf16 %v3734_v40, %v3733_v49 }
 0xa8b   :  { %6056 = vmatmul.msk.bf16.gmra.mxu2 %vm316_vm1, %v3757_v44 }
 0xa8c   :  { %v3682_v51 = vpop.f32.mrf.mxu1 }
 0xa8d   :  { %v3683_v16 = vadd.f32 %v8692_v11, %v3682_v51 }
 0xa8e   :  { %v3836_v6 = vpop.f32.mrf.mxu2 }
 0xa8f   :  { %v3837_v56 = vadd.f32 %v8755_v26, %v3836_v6  ;;  %v3735_v7 = vmax.f32 %v3683_v16, 0.0 }
 0xa91   :  { %v8762_v52 = vadd.f32 %v3837_v56, %v3295_v24 }
 0xa93   :  { %v3948_v49 = vmax.f32 %v8762_v52, 0.0 }
 0xa94   :  { %v3684_v28 = vpop.f32.mrf.mxu1 }
 0xa95   :  { %v3685_v1 = vadd.f32 %v8692_v11, %v3684_v28 }
 0xa96   :  { %v3838_v27 = vpop.f32.mrf.mxu2 }
 0xa97   :  { %v3736_v55 = vmax.f32 %v3685_v1, 0.0  ;;  %v3839_v50 = vadd.f32 %v8755_v26, %v3838_v27 }
 0xa99   :  { %v3758_v32 = vpack.c.bf16 %v3736_v55, %v3735_v7  ;;  %v8767_v19 = vadd.f32 %v3839_v50, %v3296_v0 }
 0xa9b   :  { %v3949_v40 = vmax.f32 %v8767_v19, 0.0  ;;  %6057 = vmatmul.msk.bf16.gmra.mxu2 %vm316_vm1, %v3758_v32  ;;  %v6317_v19 = vld [vmem:[%s9734_s5 + $0x38] sm:$0xff] }
 0xa9c   :  { %v3687_v44 = vpop.f32.mrf.mxu1  ;;  %5140 = vmatpush.bf16.msra.mxu3 %v6317_v19 }
 0xa9d   :  { %v3980_v3 = vpack.c.bf16 %v3949_v40, %v3948_v49  ;;  %v3688_v0 = vadd.f32 %v8692_v11, %v3687_v44 }
 0xa9e   :  { %v3841_v24 = vpop.f32.mrf.mxu2 }
 0xa9f   :  { %6089 = vmatmul.msk.bf16.vlgmr.msrb.gmra.mxu0 %vm118_vm0, %v3980_v3  ;;  %v3842_v51 = vadd.f32 %v8755_v26, %v3841_v24  ;;  %v3737_v28 = vmax.f32 %v3688_v0, 0.0 }
 0xaa1   :  { %v8785_v1 = vadd.f32 %v3842_v51, %v3297_v22 }
 0xaa3   :  { %v3950_v32 = vmax.f32 %v8785_v1, 0.0 }
 0xaa4   :  { %v3689_v6 = vpop.f32.mrf.mxu1 }
 0xaa5   :  { %v3690_v16 = vadd.f32 %v8692_v11, %v3689_v6 }
 0xaa6   :  { %v3843_v56 = vpop.f32.mrf.mxu2 }
 0xaa7   :  { %v3738_v27 = vmax.f32 %v3690_v16, 0.0  ;;  %v3844_v7 = vadd.f32 %v8755_v26, %v3843_v56 }
 0xaa9   :  { %v3759_v55 = vpack.c.bf16 %v3738_v27, %v3737_v28  ;;  %v8790_v50 = vadd.f32 %v3844_v7, %v3298_v59 }
 0xaab   :  { %v3951_v44 = vmax.f32 %v8790_v50, 0.0  ;;  %6058 = vmatmul.msk.bf16.gmra.mxu2 %vm316_vm1, %v3759_v55 }
 0xaac   :  { %v3692_v3 = vpop.f32.mrf.mxu1 }
 0xaad   :  { %v3981_v18 = vpack.c.bf16 %v3951_v44, %v3950_v32  ;;  %v3693_v24 = vadd.f32 %v8692_v11, %v3692_v3 }
 0xaae   :  { %v3846_v22 = vpop.f32.mrf.mxu2 }
 0xaaf   :  { %6090 = vmatmul.msk.bf16.gmra.mxu0 %vm118_vm0, %v3981_v18  ;;  %v3847_v58 = vadd.f32 %v8755_v26, %v3846_v22  ;;  %v3739_v51 = vmax.f32 %v3693_v24, 0.0 }
 0xab1   :  { %v8805_v6 = vadd.f32 %v3847_v58, %v3299_v47 }
 0xab3   :  { %v3952_v7 = vmax.f32 %v8805_v6, 0.0 }
 0xab4   :  { %v3694_v59 = vpop.f32.mrf.mxu1 }
 0xab5   :  { %v3695_v15 = vadd.f32 %v8692_v11, %v3694_v59 }
 0xab6   :  { %v3848_v0 = vpop.f32.mrf.mxu2 }
 0xab7   :  { %v3740_v16 = vmax.f32 %v3695_v15, 0.0  ;;  %v3849_v56 = vadd.f32 %v8755_v26, %v3848_v0 }
 0xab9   :  { %v3760_v28 = vpack.c.bf16 %v3740_v16, %v3739_v51  ;;  %v8810_v27 = vadd.f32 %v3849_v56, %v3300_v48 }
 0xabb   :  { %v3953_v55 = vmax.f32 %v8810_v27, 0.0  ;;  %6059 = vmatmul.msk.bf16.gmra.mxu2 %vm316_vm1, %v3760_v28 }
 0xabc   :  { %v3697_v3 = vpop.f32.mrf.mxu1 }
 0xabd   :  { %v3982_v17 = vpack.c.bf16 %v3953_v55, %v3952_v7  ;;  %v3698_v18 = vadd.f32 %v8692_v11, %v3697_v3 }
 0xabe   :  { %v3851_v47 = vpop.f32.mrf.mxu2 }
 0xabf   :  { %6091 = vmatmul.msk.bf16.gmra.mxu0 %vm118_vm0, %v3982_v17  ;;  %v3852_v31 = vadd.f32 %v8755_v26, %v3851_v47  ;;  %v3741_v58 = vmax.f32 %v3698_v18, 0.0 }
 0xac1   :  { %v8825_v59 = vadd.f32 %v3852_v31, %v3301_v36 }
 0xac3   :  { %v3954_v56 = vmax.f32 %v8825_v59, 0.0 }
 0xac4   :  { %v3699_v48 = vpop.f32.mrf.mxu1 }
 0xac5   :  { %v3700_v22 = vadd.f32 %v8692_v11, %v3699_v48 }
 0xac6   :  { %v3853_v24 = vpop.f32.mrf.mxu2 }
 0xac7   :  { %v3742_v15 = vmax.f32 %v3700_v22, 0.0  ;;  %v3854_v0 = vadd.f32 %v8755_v26, %v3853_v24 }
 0xac9   :  { %v3761_v51 = vpack.c.bf16 %v3742_v15, %v3741_v58  ;;  %v8830_v16 = vadd.f32 %v3854_v0, %v3302_v25 }
 0xacb   :  { %v3955_v28 = vmax.f32 %v8830_v16, 0.0  ;;  %6060 = vmatmul.msk.bf16.gmra.mxu2 %vm316_vm1, %v3761_v51 }
 0xacc   :  { %v3702_v3 = vpop.f32.mrf.mxu1 }
 0xacd   :  { %v3983_v8 = vpack.c.bf16 %v3955_v28, %v3954_v56  ;;  %v3703_v17 = vadd.f32 %v8692_v11, %v3702_v3 }
 0xace   :  { %v3856_v36 = vpop.f32.mrf.mxu2 }
 0xacf   :  { %6092 = vmatmul.msk.bf16.gmra.mxu0 %vm118_vm0, %v3983_v8  ;;  %v3857_v46 = vadd.f32 %v8755_v26, %v3856_v36  ;;  %v3743_v31 = vmax.f32 %v3703_v17, 0.0 }
 0xad1   :  { %v8845_v48 = vadd.f32 %v3857_v46, %v3303_v2 }
 0xad3   :  { %v3956_v0 = vmax.f32 %v8845_v48, 0.0 }
 0xad4   :  { %v3704_v25 = vpop.f32.mrf.mxu1 }
 0xad5   :  { %v3705_v47 = vadd.f32 %v8692_v11, %v3704_v25 }
 0xad6   :  { %v3858_v18 = vpop.f32.mrf.mxu2 }
 0xad7   :  { %v3744_v22 = vmax.f32 %v3705_v47, 0.0  ;;  %v3859_v24 = vadd.f32 %v8755_v26, %v3858_v18 }
 0xad9   :  { %v3762_v58 = vpack.c.bf16 %v3744_v22, %v3743_v31  ;;  %v8850_v15 = vadd.f32 %v3859_v24, %v3304_v21 }
 0xadb   :  { %v3957_v51 = vmax.f32 %v8850_v15, 0.0  ;;  %6061 = vmatmul.msk.bf16.gmra.mxu2 %vm316_vm1, %v3762_v58 }
 0xadc   :  { %v3707_v3 = vpop.f32.mrf.mxu1 }
 0xadd   :  { %v3984_v43 = vpack.c.bf16 %v3957_v51, %v3956_v0  ;;  %v3708_v8 = vadd.f32 %v8692_v11, %v3707_v3 }
 0xade   :  { %v3861_v2 = vpop.f32.mrf.mxu2 }
 0xadf   :  { %6093 = vmatmul.msk.bf16.gmra.mxu0 %vm118_vm0, %v3984_v43  ;;  %v3862_v29 = vadd.f32 %v8755_v26, %v3861_v2  ;;  %v3745_v46 = vmax.f32 %v3708_v8, 0.0 }
 0xae1   :  { %v8865_v25 = vadd.f32 %v3862_v29, %v3305_v5 }
 0xae3   :  { %v3958_v24 = vmax.f32 %v8865_v25, 0.0 }
 0xae4   :  { %v3709_v21 = vpop.f32.mrf.mxu1 }
 0xae5   :  { %v3710_v36 = vadd.f32 %v8692_v11, %v3709_v21 }
 0xae6   :  { %v3863_v17 = vpop.f32.mrf.mxu2 }
 0xae7   :  { %v3746_v47 = vmax.f32 %v3710_v36, 0.0  ;;  %v3864_v18 = vadd.f32 %v8755_v26, %v3863_v17 }
 0xae9   :  { %v3763_v31 = vpack.c.bf16 %v3746_v47, %v3745_v46  ;;  %v8870_v22 = vadd.f32 %v3864_v18, %v3306_v13 }
 0xaeb   :  { %v3959_v58 = vmax.f32 %v8870_v22, 0.0  ;;  %6062 = vmatmul.msk.bf16.gmra.mxu2 %vm316_vm1, %v3763_v31 }
 0xaec   :  { %v3712_v3 = vpop.f32.mrf.mxu1 }
 0xaed   :  { %v3985_v45 = vpack.c.bf16 %v3959_v58, %v3958_v24  ;;  %v3713_v43 = vadd.f32 %v8692_v11, %v3712_v3 }
 0xaee   :  { %v3866_v5 = vpop.f32.mrf.mxu2 }
 0xaef   :  { %6094 = vmatmul.msk.bf16.gmra.mxu0 %vm118_vm0, %v3985_v45  ;;  %v3867_v63 = vadd.f32 %v8755_v26, %v3866_v5  ;;  %v3747_v29 = vmax.f32 %v3713_v43, 0.0  ;;  %v9943_v5 = vmax.f32 %v8507_v10, 0.0 }
 0xaf1   :  { %v8885_v21 = vadd.f32 %v3867_v63, %v3307_v54 }
 0xaf3   :  { %v3960_v18 = vmax.f32 %v8885_v21, 0.0 }
 0xaf4   :  { %v3714_v13 = vpop.f32.mrf.mxu1 }
 0xaf5   :  { %v3715_v2 = vadd.f32 %v8692_v11, %v3714_v13 }
 0xaf6   :  { %v3868_v8 = vpop.f32.mrf.mxu2 }
 0xaf7   :  { %v3748_v36 = vmax.f32 %v3715_v2, 0.0  ;;  %v3869_v17 = vadd.f32 %v8755_v26, %v3868_v8 }
 0xaf9   :  { %v3764_v46 = vpack.c.bf16 %v3748_v36, %v3747_v29  ;;  %v8890_v47 = vadd.f32 %v3869_v17, %v3308_v12  ;;  %v9944_v36 = vmax.f32 %v8519_v23, 0.0  ;;  %v8936_v23 = vld [vmem:[%s9731_s2 + $0x6] ss:$0 sm:$0xff] }
 0xafb   :  { %v9849_v31 = vmax.f32 %v8890_v47, 0.0  ;;  %6063 = vmatmul.msk.bf16.gmra.mxu2 %vm316_vm1, %v3764_v46  ;;  %v9945_v46 = vmax.f32 %v8524_v39, 0.0 }
 0xafd   :  { %v3986_v38 = vpack.c.bf16 %v9849_v31, %v3960_v18 }
 0xafe   :  { %v3871_v54 = vpop.f32.mrf.mxu2 }
 0xaff   :  { %6095 = vmatmul.msk.bf16.gmra.mxu0 %vm118_vm0, %v3986_v38  ;;  %v3872_v11 = vadd.f32 %v8755_v26, %v3871_v54 }
 0xb01   :  { %v8903_v12 = vadd.f32 %v3872_v11, %v9942_v20 }
 0xb03   :  { %v9848_v63 = vmax.f32 %v8903_v12, 0.0 }
 0xb06   :  { %v3873_v3 = vpop.f32.mrf.mxu2 }
 0xb07   :  { %v3874_v45 = vadd.f32 %v8755_v26, %v3873_v3 }
 0xb09   :  { %v8908_v43 = vadd.f32 %v3874_v45, %v9943_v5 }
 0xb0b   :  { %v9833_v13 = vmax.f32 %v8908_v43, 0.0 }
 0xb0d   :  { %v3987_v2 = vpack.c.bf16 %v9833_v13, %v9848_v63  ;;  %v9947_v13 = vmax.f32 %v8547_v57, 0.0 }
 0xb0e   :  { %v3876_v8 = vpop.f32.mrf.mxu2 }
 0xb0f   :  { %6096 = vmatmul.msk.bf16.gmra.mxu0 %vm118_vm0, %v3987_v2  ;;  %v3877_v62 = vadd.f32 %v8755_v26, %v3876_v8 }
 0xb11   :  { %v8920_v10 = vadd.f32 %v3877_v62, %v9944_v36  ;;  %v9946_v36 = vmax.f32 %v8541_v42, 0.0 }
 0xb13   :  { %v9832_v54 = vmax.f32 %v8920_v10, 0.0 }
 0xb16   :  { %v3878_v29 = vpop.f32.mrf.mxu2 }
 0xb17   :  { %v3879_v17 = vadd.f32 %v8755_v26, %v3878_v29 }
 0xb19   :  { %v8925_v38 = vadd.f32 %v3879_v17, %v9945_v46 }
 0xb1b   :  { %v9831_v11 = vmax.f32 %v8925_v38, 0.0 }
 0xb1c   :  { %v4091_v3 = vpop.f32.mrf.mxu0 }
 0xb1d   :  { %v3988_v20 = vpack.c.bf16 %v9831_v11, %v9832_v54  ;;  %v4092_v39 = vadd.f32 %v8936_v23, %v4091_v3 }
 0xb1e   :  { %v3881_v45 = vpop.f32.mrf.mxu2 }
 0xb1f   :  { %6097 = vmatmul.msk.bf16.gmra.mxu0 %vm118_vm0, %v3988_v20  ;;  %v3882_v5 = vadd.f32 %v8755_v26, %v3881_v45  ;;  %v4171_v29 = vmax.f32 %v4092_v39, 0.0  ;;  %v6315_v39 = vld [vmem:[%s9730_s1 + $0xf8] sm:$0xff] }
 0xb20   :  { %4739 = vmatpush.bf16.msra.mxu2 %v6315_v39 }
 0xb21   :  { %v8944_v17 = vadd.f32 %v3882_v5, %v9946_v36 }
 0xb23   :  { %v9835_v3 = vmax.f32 %v8944_v17, 0.0 }
 0xb24   :  { %v4093_v2 = vpop.f32.mrf.mxu0 }
 0xb25   :  { %v4094_v8 = vadd.f32 %v8936_v23, %v4093_v2 }
 0xb26   :  { %v3883_v62 = vpop.f32.mrf.mxu2 }
 0xb27   :  { %v4172_v46 = vmax.f32 %v4094_v8, 0.0  ;;  %v3884_v11 = vadd.f32 %v8755_v26, %v3883_v62 }
 0xb29   :  { %v4203_v54 = vpack.c.bf16 %v4172_v46, %v4171_v29  ;;  %v8949_v20 = vadd.f32 %v3884_v11, %v9947_v13  ;;  %v9948_v29 = vmax.f32 %v8564_v4, 0.0 }
 0xb2b   :  { %v9834_v45 = vmax.f32 %v8949_v20, 0.0  ;;  %6112 = vmatmul.msk.bf16.vlgmr.msrb.gmra.mxu3 %vm316_vm1, %v4203_v54 }
 0xb2c   :  { %v4096_v2 = vpop.f32.mrf.mxu0 }
 0xb2d   :  { %v3989_v42 = vpack.c.bf16 %v9834_v45, %v9835_v3  ;;  %v4097_v57 = vadd.f32 %v8936_v23, %v4096_v2 }
 0xb2e   :  { %v3886_v5 = vpop.f32.mrf.mxu2 }
 0xb2f   :  { %6098 = vmatmul.msk.bf16.gmra.mxu0 %vm118_vm0, %v3989_v42  ;;  %v3887_v13 = vadd.f32 %v8755_v26, %v3886_v5  ;;  %v4173_v62 = vmax.f32 %v4097_v57, 0.0  ;;  %v9949_v42 = vmax.f32 %v8570_v34, 0.0 }
 0xb31   :  { %v8967_v36 = vadd.f32 %v3887_v13, %v9948_v29 }
 0xb33   :  { %v9837_v2 = vmax.f32 %v8967_v36, 0.0 }
 0xb34   :  { %v4098_v11 = vpop.f32.mrf.mxu0 }
 0xb35   :  { %v4099_v54 = vadd.f32 %v8936_v23, %v4098_v11 }
 0xb36   :  { %v3888_v8 = vpop.f32.mrf.mxu2 }
 0xb37   :  { %v4174_v46 = vmax.f32 %v4099_v54, 0.0  ;;  %v3889_v45 = vadd.f32 %v8755_v26, %v3888_v8 }
 0xb39   :  { %v4204_v3 = vpack.c.bf16 %v4174_v46, %v4173_v62  ;;  %v8972_v39 = vadd.f32 %v3889_v45, %v9949_v42 }
 0xb3b   :  { %v9836_v5 = vmax.f32 %v8972_v39, 0.0  ;;  %6113 = vmatmul.msk.bf16.gmra.mxu3 %vm316_vm1, %v4204_v3  ;;  %v9950_v3 = vmax.f32 %v8584_v41, 0.0 }
 0xb3c   :  { %v4101_v11 = vpop.f32.mrf.mxu0 }
 0xb3d   :  { %v3990_v4 = vpack.c.bf16 %v9836_v5, %v9837_v2  ;;  %v4102_v13 = vadd.f32 %v8936_v23, %v4101_v11  ;;  %v9951_v2 = vmax.f32 %v8590_v33, 0.0 }
 0xb3e   :  { %v3891_v57 = vpop.f32.mrf.mxu2 }
 0xb3f   :  { %6099 = vmatmul.msk.bf16.gmra.mxu0 %vm118_vm0, %v3990_v4  ;;  %v3892_v34 = vadd.f32 %v8755_v26, %v3891_v57  ;;  %v4175_v62 = vmax.f32 %v4102_v13, 0.0 }
 0xb41   :  { %v8987_v29 = vadd.f32 %v3892_v34, %v9950_v3 }
 0xb43   :  { %v9839_v11 = vmax.f32 %v8987_v29, 0.0 }
 0xb44   :  { %v4103_v45 = vpop.f32.mrf.mxu0 }
 0xb45   :  { %v4104_v54 = vadd.f32 %v8936_v23, %v4103_v45 }
 0xb46   :  { %v3893_v8 = vpop.f32.mrf.mxu2 }
 0xb47   :  { %v4176_v46 = vmax.f32 %v4104_v54, 0.0  ;;  %v3894_v42 = vadd.f32 %v8755_v26, %v3893_v8 }
 0xb49   :  { %v4205_v5 = vpack.c.bf16 %v4176_v46, %v4175_v62  ;;  %v8992_v4 = vadd.f32 %v3894_v42, %v9951_v2 }
 0xb4b   :  { %v9838_v57 = vmax.f32 %v8992_v4, 0.0  ;;  %6114 = vmatmul.msk.bf16.gmra.mxu3 %vm316_vm1, %v4205_v5  ;;  %v9952_v5 = vmax.f32 %v8604_v14, 0.0 }
 0xb4c   :  { %v4106_v45 = vpop.f32.mrf.mxu0 }
 0xb4d   :  { %v3991_v41 = vpack.c.bf16 %v9838_v57, %v9839_v11  ;;  %v4107_v34 = vadd.f32 %v8936_v23, %v4106_v45  ;;  %v9953_v11 = vmax.f32 %v8610_v9, 0.0 }
 0xb4e   :  { %v3896_v13 = vpop.f32.mrf.mxu2 }
 0xb4f   :  { %6100 = vmatmul.msk.bf16.gmra.mxu0 %vm118_vm0, %v3991_v41  ;;  %v3897_v33 = vadd.f32 %v8755_v26, %v3896_v13  ;;  %v4177_v62 = vmax.f32 %v4107_v34, 0.0 }
 0xb51   :  { %v9007_v3 = vadd.f32 %v3897_v33, %v9952_v5 }
 0xb53   :  { %v9841_v45 = vmax.f32 %v9007_v3, 0.0 }
 0xb54   :  { %v4108_v2 = vpop.f32.mrf.mxu0 }
 0xb55   :  { %v4109_v54 = vadd.f32 %v8936_v23, %v4108_v2 }
 0xb56   :  { %v3898_v8 = vpop.f32.mrf.mxu2 }
 0xb57   :  { %v4178_v46 = vmax.f32 %v4109_v54, 0.0  ;;  %v3899_v42 = vadd.f32 %v8755_v26, %v3898_v8 }
 0xb59   :  { %v4206_v57 = vpack.c.bf16 %v4178_v46, %v4177_v62  ;;  %v9012_v41 = vadd.f32 %v3899_v42, %v9953_v11 }
 0xb5b   :  { %v9840_v13 = vmax.f32 %v9012_v41, 0.0  ;;  %6115 = vmatmul.msk.bf16.gmra.mxu3 %vm316_vm1, %v4206_v57  ;;  %v9954_v57 = vmax.f32 %v8624_v53, 0.0 }
 0xb5c   :  { %v4111_v2 = vpop.f32.mrf.mxu0 }
 0xb5d   :  { %v3992_v14 = vpack.c.bf16 %v9840_v13, %v9841_v45  ;;  %v4112_v33 = vadd.f32 %v8936_v23, %v4111_v2  ;;  %v9955_v45 = vmax.f32 %v8630_v61, 0.0 }
 0xb5e   :  { %v3901_v34 = vpop.f32.mrf.mxu2 }
 0xb5f   :  { %6101 = vmatmul.msk.bf16.gmra.mxu0 %vm118_vm0, %v3992_v14  ;;  %v3902_v9 = vadd.f32 %v8755_v26, %v3901_v34  ;;  %v4179_v62 = vmax.f32 %v4112_v33, 0.0  ;;  %v6314_v33 = vld [vmem:[%s9730_s1 + $0xf0] sm:$0xff] }
 0xb60   :  { %4740 = vmatpush.bf16.msra.mxu2 %v6314_v33 }
 0xb61   :  { %v9027_v5 = vadd.f32 %v3902_v9, %v9954_v57  ;;  %v9956_v57 = vmax.f32 %v8647_v37, 0.0 }
 0xb63   :  { %v9843_v2 = vmax.f32 %v9027_v5, 0.0 }
 0xb64   :  { %v4113_v11 = vpop.f32.mrf.mxu0 }
 0xb65   :  { %v4114_v54 = vadd.f32 %v8936_v23, %v4113_v11 }
 0xb66   :  { %v3903_v8 = vpop.f32.mrf.mxu2 }
 0xb67   :  { %v4180_v46 = vmax.f32 %v4114_v54, 0.0  ;;  %v3904_v42 = vadd.f32 %v8755_v26, %v3903_v8 }
 0xb69   :  { %v4207_v13 = vpack.c.bf16 %v4180_v46, %v4179_v62  ;;  %v9032_v14 = vadd.f32 %v3904_v42, %v9955_v45 }
 0xb6b   :  { %v9842_v34 = vmax.f32 %v9032_v14, 0.0  ;;  %6116 = vmatmul.msk.bf16.gmra.mxu3 %vm316_vm1, %v4207_v13 }
 0xb6c   :  { %v4116_v11 = vpop.f32.mrf.mxu0 }
 0xb6d   :  { %v3993_v53 = vpack.c.bf16 %v9842_v34, %v9843_v2  ;;  %v4117_v61 = vadd.f32 %v8936_v23, %v4116_v11 }
 0xb6e   :  { %v3906_v9 = vpop.f32.mrf.mxu2 }
 0xb6f   :  { %6102 = vmatmul.msk.bf16.gmra.mxu0 %vm118_vm0, %v3993_v53  ;;  %v3907_v45 = vadd.f32 %v8755_v26, %v3906_v9  ;;  %v4181_v62 = vmax.f32 %v4117_v61, 0.0  ;;  %v9957_v53 = vmax.f32 %v8653_v30, 0.0 }
 0xb71   :  { %v9050_v46 = vadd.f32 %v3907_v45, %v9956_v57 }
 0xb73   :  { %v9845_v11 = vmax.f32 %v9050_v46, 0.0 }
 0xb74   :  { %v4118_v54 = vpop.f32.mrf.mxu0 }
 0xb75   :  { %v4119_v13 = vadd.f32 %v8936_v23, %v4118_v54 }
 0xb76   :  { %v3908_v8 = vpop.f32.mrf.mxu2 }
 0xb77   :  { %v4182_v42 = vmax.f32 %v4119_v13, 0.0  ;;  %v3909_v34 = vadd.f32 %v8755_v26, %v3908_v8 }
 0xb79   :  { %v4208_v2 = vpack.c.bf16 %v4182_v42, %v4181_v62  ;;  %v9055_v33 = vadd.f32 %v3909_v34, %v9957_v53 }
 0xb7b   :  { %v9844_v9 = vmax.f32 %v9055_v33, 0.0  ;;  %6117 = vmatmul.msk.bf16.gmra.mxu3 %vm316_vm1, %v4208_v2  ;;  %v9958_v2 = vmax.f32 %v8667_v35, 0.0 }
 0xb7c   :  { %v4121_v54 = vpop.f32.mrf.mxu0 }
 0xb7d   :  { %v3994_v37 = vpack.c.bf16 %v9844_v9, %v9845_v11  ;;  %v4122_v45 = vadd.f32 %v8936_v23, %v4121_v54  ;;  %v9959_v11 = vmax.f32 %v8673_v60, 0.0 }
 0xb7e   :  { %v3911_v61 = vpop.f32.mrf.mxu2 }
 0xb7f   :  { %6103 = vmatmul.msk.bf16.gmra.mxu0 %vm118_vm0, %v3994_v37  ;;  %v3912_v30 = vadd.f32 %v8755_v26, %v3911_v61  ;;  %v4183_v62 = vmax.f32 %v4122_v45, 0.0 }
 0xb81   :  { %v9070_v57 = vadd.f32 %v3912_v30, %v9958_v2 }
 0xb83   :  { %v9847_v54 = vmax.f32 %v9070_v57, 0.0 }
 0xb84   :  { %v4123_v34 = vpop.f32.mrf.mxu0 }
 0xb85   :  { %v4124_v13 = vadd.f32 %v8936_v23, %v4123_v34 }
 0xb86   :  { %v3913_v8 = vpop.f32.mrf.mxu2 }
 0xb87   :  { %v4184_v42 = vmax.f32 %v4124_v13, 0.0  ;;  %v3914_v53 = vadd.f32 %v8755_v26, %v3913_v8 }
 0xb89   :  { %v4209_v9 = vpack.c.bf16 %v4184_v42, %v4183_v62  ;;  %v9075_v37 = vadd.f32 %v3914_v53, %v9959_v11 }
 0xb8b   :  { %v9846_v61 = vmax.f32 %v9075_v37, 0.0  ;;  %6118 = vmatmul.msk.bf16.gmra.mxu3 %vm316_vm1, %v4209_v9 }
 0xb8c   :  { %v4126_v34 = vpop.f32.mrf.mxu0 }
 0xb8d   :  { %v3995_v35 = vpack.c.bf16 %v9846_v61, %v9847_v54  ;;  %v4127_v26 = vadd.f32 %v8936_v23, %v4126_v34  ;;  %v6313_v34 = vld [vmem:[%s9730_s1 + $0xe8] sm:$0xff] }
 0xb8e   :  { %4741 = vmatpush.bf16.msra.mxu2 %v6313_v34 }
 0xb8f   :  { %6104 = vmatmul.msk.bf16.gmra.mxu0 %vm118_vm0, %v3995_v35  ;;  %v4185_v11 = vmax.f32 %v4127_v26, 0.0 }
 0xb94   :  { %v4128_v45 = vpop.f32.mrf.mxu0 }
 0xb95   :  { %v4129_v60 = vadd.f32 %v8936_v23, %v4128_v45  ;;  %v9097_v45 = vld [vmem:[%s9733_s4 + $0x6] ss:$0 sm:$0xff] }
 0xb97   :  { %v4186_v30 = vmax.f32 %v4129_v60, 0.0 }
 0xb99   :  { %v4210_v13 = vpack.c.bf16 %v4186_v30, %v4185_v11 }
 0xb9b   :  { %6119 = vmatmul.msk.bf16.gmra.mxu3 %vm316_vm1, %v4210_v13 }
 0xb9c   :  { %v4131_v8 = vpop.f32.mrf.mxu0 }
 0xb9d   :  { %v4132_v9 = vadd.f32 %v8936_v23, %v4131_v8 }
 0xb9f   :  { %v4187_v42 = vmax.f32 %v4132_v9, 0.0 }
 0xba4   :  { %v4133_v62 = vpop.f32.mrf.mxu0 }
 0xba5   :  { %v4134_v2 = vadd.f32 %v8936_v23, %v4133_v62 }
 0xba7   :  { %v4188_v53 = vmax.f32 %v4134_v2, 0.0 }
 0xba9   :  { %v4211_v61 = vpack.c.bf16 %v4188_v53, %v4187_v42 }
 0xbab   :  { %6120 = vmatmul.msk.bf16.gmra.mxu3 %vm316_vm1, %v4211_v61 }
 0xbac   :  { %v4136_v35 = vpop.f32.mrf.mxu0 }
 0xbad   :  { %v4137_v60 = vadd.f32 %v8936_v23, %v4136_v35 }
 0xbae   :  { %v4290_v26 = vpop.f32.mrf.mxu3 }
 0xbaf   :  { %v4291_v30 = vadd.f32 %v9097_v45, %v4290_v26  ;;  %v4189_v8 = vmax.f32 %v4137_v60, 0.0  ;;  %v6316_v26 = vld [vmem:[%s9732_s3 + $0x38] sm:$0xff] }
 0xbb0   :  { %4941 = vmatpush.bf16.msra.mxu0 %v6316_v26 }
 0xbb1   :  { %v4370_v2 = vmax.f32 %v4291_v30, 0.0 }
 0xbb4   :  { %v4138_v11 = vpop.f32.mrf.mxu0 }
 0xbb5   :  { %v4139_v13 = vadd.f32 %v8936_v23, %v4138_v11 }
 0xbb6   :  { %v4292_v61 = vpop.f32.mrf.mxu3 }
 0xbb7   :  { %v4190_v9 = vmax.f32 %v4139_v13, 0.0  ;;  %v4293_v62 = vadd.f32 %v9097_v45, %v4292_v61 }
 0xbb9   :  { %v4212_v42 = vpack.c.bf16 %v4190_v9, %v4189_v8  ;;  %v4371_v53 = vmax.f32 %v4293_v62, 0.0 }
 0xbbb   :  { %v4402_v34 = vpack.c.bf16 %v4371_v53, %v4370_v2  ;;  %6121 = vmatmul.msk.bf16.gmra.mxu3 %vm316_vm1, %v4212_v42 }
 0xbbc   :  { %v4141_v54 = vpop.f32.mrf.mxu0 }
 0xbbd   :  { %6135 = vmatmul.msk.bf16.vlgmr.msrb.gmra.mxu1 %vm316_vm1, %v4402_v34  ;;  %v4142_v60 = vadd.f32 %v8936_v23, %v4141_v54 }
 0xbbe   :  { %v4295_v35 = vpop.f32.mrf.mxu3 }
 0xbbf   :  { %v4296_v13 = vadd.f32 %v9097_v45, %v4295_v35  ;;  %v4191_v8 = vmax.f32 %v4142_v60, 0.0 }
 0xbc1   :  { %v4372_v2 = vmax.f32 %v4296_v13, 0.0 }
 0xbc4   :  { %v4143_v11 = vpop.f32.mrf.mxu0 }
 0xbc5   :  { %v4144_v30 = vadd.f32 %v8936_v23, %v4143_v11 }
 0xbc6   :  { %v4297_v61 = vpop.f32.mrf.mxu3 }
 0xbc7   :  { %v4192_v9 = vmax.f32 %v4144_v30, 0.0  ;;  %v4298_v62 = vadd.f32 %v9097_v45, %v4297_v61 }
 0xbc9   :  { %v4213_v42 = vpack.c.bf16 %v4192_v9, %v4191_v8  ;;  %v4373_v53 = vmax.f32 %v4298_v62, 0.0 }
 0xbcb   :  { %v4403_v34 = vpack.c.bf16 %v4373_v53, %v4372_v2  ;;  %6122 = vmatmul.msk.bf16.gmra.mxu3 %vm316_vm1, %v4213_v42 }
 0xbcc   :  { %v4146_v63 = vpop.f32.mrf.mxu0 }
 0xbcd   :  { %6136 = vmatmul.msk.bf16.gmra.mxu1 %vm316_vm1, %v4403_v34  ;;  %v4147_v26 = vadd.f32 %v8936_v23, %v4146_v63 }
 0xbce   :  { %v4300_v54 = vpop.f32.mrf.mxu3 }
 0xbcf   :  { %v4301_v11 = vadd.f32 %v9097_v45, %v4300_v54  ;;  %v4193_v31 = vmax.f32 %v4147_v26, 0.0 }
 0xbd1   :  { %v4374_v8 = vmax.f32 %v4301_v11, 0.0 }
 0xbd4   :  { %v4148_v35 = vpop.f32.mrf.mxu0 }
 0xbd5   :  { %v4149_v60 = vadd.f32 %v8936_v23, %v4148_v35 }
 0xbd6   :  { %v4302_v30 = vpop.f32.mrf.mxu3 }
 0xbd7   :  { %v4194_v61 = vmax.f32 %v4149_v60, 0.0  ;;  %v4303_v13 = vadd.f32 %v9097_v45, %v4302_v30 }
 0xbd9   :  { %v4214_v9 = vpack.c.bf16 %v4194_v61, %v4193_v31  ;;  %v4375_v62 = vmax.f32 %v4303_v13, 0.0 }
 0xbdb   :  { %v4404_v2 = vpack.c.bf16 %v4375_v62, %v4374_v8  ;;  %6123 = vmatmul.msk.bf16.gmra.mxu3 %vm316_vm1, %v4214_v9  ;;  %v6312_v9 = vld [vmem:[%s9730_s1 + $0xe0] sm:$0xff] }
 0xbdc   :  { %v4151_v42 = vpop.f32.mrf.mxu0  ;;  %4742 = vmatpush.bf16.msra.mxu2 %v6312_v9 }
 0xbdd   :  { %6137 = vmatmul.msk.bf16.gmra.mxu1 %vm316_vm1, %v4404_v2  ;;  %v4152_v53 = vadd.f32 %v8936_v23, %v4151_v42 }
 0xbde   :  { %v4305_v63 = vpop.f32.mrf.mxu3 }
 0xbdf   :  { %v4306_v54 = vadd.f32 %v9097_v45, %v4305_v63  ;;  %v4195_v60 = vmax.f32 %v4152_v53, 0.0 }
 0xbe1   :  { %v4376_v11 = vmax.f32 %v4306_v54, 0.0 }
 0xbe4   :  { %v4153_v34 = vpop.f32.mrf.mxu0 }
 0xbe5   :  { %v4154_v26 = vadd.f32 %v8936_v23, %v4153_v34 }
 0xbe6   :  { %v4307_v35 = vpop.f32.mrf.mxu3 }
 0xbe7   :  { %v4196_v30 = vmax.f32 %v4154_v26, 0.0  ;;  %v4308_v31 = vadd.f32 %v9097_v45, %v4307_v35 }
 0xbe9   :  { %v4215_v61 = vpack.c.bf16 %v4196_v30, %v4195_v60  ;;  %v4377_v13 = vmax.f32 %v4308_v31, 0.0 }
 0xbeb   :  { %v4405_v8 = vpack.c.bf16 %v4377_v13, %v4376_v11  ;;  %6124 = vmatmul.msk.bf16.gmra.mxu3 %vm316_vm1, %v4215_v61 }
 0xbec   :  { %v4156_v62 = vpop.f32.mrf.mxu0 }
 0xbed   :  { %6138 = vmatmul.msk.bf16.gmra.mxu1 %vm316_vm1, %v4405_v8  ;;  %v4157_v42 = vadd.f32 %v8936_v23, %v4156_v62 }
 0xbee   :  { %v4310_v2 = vpop.f32.mrf.mxu3 }
 0xbef   :  { %v4311_v53 = vadd.f32 %v9097_v45, %v4310_v2  ;;  %v4197_v26 = vmax.f32 %v4157_v42, 0.0 }
 0xbf1   :  { %v4378_v30 = vmax.f32 %v4311_v53, 0.0 }
 0xbf4   :  { %v4158_v63 = vpop.f32.mrf.mxu0 }
 0xbf5   :  { %v4159_v34 = vadd.f32 %v8936_v23, %v4158_v63 }
 0xbf6   :  { %v4312_v54 = vpop.f32.mrf.mxu3 }
 0xbf7   :  { %v4198_v35 = vmax.f32 %v4159_v34, 0.0  ;;  %v4313_v60 = vadd.f32 %v9097_v45, %v4312_v54 }
 0xbf9   :  { %v4216_v31 = vpack.c.bf16 %v4198_v35, %v4197_v26  ;;  %v4379_v11 = vmax.f32 %v4313_v60, 0.0 }
 0xbfb   :  { %v4406_v61 = vpack.c.bf16 %v4379_v11, %v4378_v30  ;;  %6125 = vmatmul.msk.bf16.gmra.mxu3 %vm316_vm1, %v4216_v31 }
 0xbfc   :  { %v4161_v13 = vpop.f32.mrf.mxu0 }
 0xbfd   :  { %6139 = vmatmul.msk.bf16.gmra.mxu1 %vm316_vm1, %v4406_v61  ;;  %v4162_v9 = vadd.f32 %v8936_v23, %v4161_v13 }
 0xbfe   :  { %v4315_v8 = vpop.f32.mrf.mxu3 }
 0xbff   :  { %v4316_v2 = vadd.f32 %v9097_v45, %v4315_v8  ;;  %v4199_v34 = vmax.f32 %v4162_v9, 0.0 }
 0xc01   :  { %v4380_v26 = vmax.f32 %v4316_v2, 0.0 }
 0xc04   :  { %v4163_v62 = vpop.f32.mrf.mxu0 }
 0xc05   :  { %v4164_v42 = vadd.f32 %v8936_v23, %v4163_v62 }
 0xc06   :  { %v4317_v63 = vpop.f32.mrf.mxu3 }
 0xc07   :  { %v4200_v54 = vmax.f32 %v4164_v42, 0.0  ;;  %v4318_v53 = vadd.f32 %v9097_v45, %v4317_v63 }
 0xc09   :  { %v4217_v35 = vpack.c.bf16 %v4200_v54, %v4199_v34  ;;  %v4381_v60 = vmax.f32 %v4318_v53, 0.0 }
 0xc0b   :  { %v4407_v30 = vpack.c.bf16 %v4381_v60, %v4380_v26  ;;  %6126 = vmatmul.msk.bf16.gmra.mxu3 %vm316_vm1, %v4217_v35 }
 0xc0c   :  { %v4166_v31 = vpop.f32.mrf.mxu0 }
 0xc0d   :  { %6140 = vmatmul.msk.bf16.gmra.mxu1 %vm316_vm1, %v4407_v30  ;;  %v4167_v61 = vadd.f32 %v8936_v23, %v4166_v31 }
 0xc0e   :  { %v4320_v11 = vpop.f32.mrf.mxu3 }
 0xc0f   :  { %v4321_v8 = vadd.f32 %v9097_v45, %v4320_v11  ;;  %v4201_v42 = vmax.f32 %v4167_v61, 0.0 }
 0xc11   :  { %v4382_v34 = vmax.f32 %v4321_v8, 0.0 }
 0xc14   :  { %v4168_v13 = vpop.f32.mrf.mxu0 }
 0xc15   :  { %v4169_v9 = vadd.f32 %v8936_v23, %v4168_v13 }
 0xc16   :  { %v4322_v62 = vpop.f32.mrf.mxu3 }
 0xc17   :  { %v4202_v63 = vmax.f32 %v4169_v9, 0.0  ;;  %v4323_v2 = vadd.f32 %v9097_v45, %v4322_v62 }
 0xc19   :  { %v4218_v54 = vpack.c.bf16 %v4202_v63, %v4201_v42  ;;  %v4383_v53 = vmax.f32 %v4323_v2, 0.0 }
 0xc1b   :  { %v4408_v26 = vpack.c.bf16 %v4383_v53, %v4382_v34  ;;  %6127 = vmatmul.msk.bf16.gmra.mxu3 %vm316_vm1, %v4218_v54  ;;  %v9155_v54 = vld [vmem:[%s9735_s6 + $0x6] ss:$0 sm:$0xff] }
 0xc1d   :  { %6141 = vmatmul.msk.bf16.gmra.mxu1 %vm316_vm1, %v4408_v26 }
 0xc1e   :  { %v4325_v35 = vpop.f32.mrf.mxu3 }
 0xc1f   :  { %v4326_v60 = vadd.f32 %v9097_v45, %v4325_v35 }
 0xc21   :  { %v4384_v23 = vmax.f32 %v4326_v60, 0.0 }
 0xc26   :  { %v4327_v30 = vpop.f32.mrf.mxu3 }
 0xc27   :  { %v4328_v31 = vadd.f32 %v9097_v45, %v4327_v30 }
 0xc29   :  { %v4385_v11 = vmax.f32 %v4328_v31, 0.0 }
 0xc2b   :  { %v4409_v61 = vpack.c.bf16 %v4385_v11, %v4384_v23 }
 0xc2d   :  { %6142 = vmatmul.msk.bf16.gmra.mxu1 %vm316_vm1, %v4409_v61 }
 0xc2e   :  { %v4330_v13 = vpop.f32.mrf.mxu3 }
 0xc2f   :  { %v4331_v8 = vadd.f32 %v9097_v45, %v4330_v13 }
 0xc31   :  { %v4386_v42 = vmax.f32 %v4331_v8, 0.0 }
 0xc36   :  { %v4332_v9 = vpop.f32.mrf.mxu3 }
 0xc37   :  { %v4333_v62 = vadd.f32 %v9097_v45, %v4332_v9 }
 0xc39   :  { %v4387_v63 = vmax.f32 %v4333_v62, 0.0 }
 0xc3a   :  { %v4489_v2 = vpop.f32.mrf.mxu1 }
 0xc3b   :  { %v4410_v34 = vpack.c.bf16 %v4387_v63, %v4386_v42  ;;  %v4490_v26 = vadd.f32 %v9155_v54, %v4489_v2 }
 0xc3d   :  { %6143 = vmatmul.msk.bf16.gmra.mxu1 %vm316_vm1, %v4410_v34  ;;  %v9161_v60 = vadd.f32 %v4490_v26, %v3948_v49 }
 0xc3e   :  { %v4335_v53 = vpop.f32.mrf.mxu3 }
 0xc3f   :  { %v4336_v31 = vadd.f32 %v9097_v45, %v4335_v53  ;;  %v4601_v61 = vmax.f32 %v9161_v60, 0.0 }
 0xc41   :  { %v4388_v9 = vmax.f32 %v4336_v31, 0.0 }
 0xc42   :  { %v4491_v35 = vpop.f32.mrf.mxu1 }
 0xc43   :  { %v4492_v30 = vadd.f32 %v9155_v54, %v4491_v35 }
 0xc45   :  { %v9167_v23 = vadd.f32 %v4492_v30, %v3949_v40 }
 0xc46   :  { %v4337_v11 = vpop.f32.mrf.mxu3 }
 0xc47   :  { %v4602_v13 = vmax.f32 %v9167_v23, 0.0  ;;  %v4338_v8 = vadd.f32 %v9097_v45, %v4337_v11 }
 0xc49   :  { %v4633_v52 = vpack.c.bf16 %v4602_v13, %v4601_v61  ;;  %v4389_v49 = vmax.f32 %v4338_v8, 0.0 }
 0xc4a   :  { %v4494_v62 = vpop.f32.mrf.mxu1 }
 0xc4b   :  { %v4411_v42 = vpack.c.bf16 %v4389_v49, %v4388_v9  ;;  %6176 = vmatmul.msk.bf16.vlgmr.msra.gmra.mxu2 %vm118_vm0, %v4633_v52  ;;  %v4495_v63 = vadd.f32 %v9155_v54, %v4494_v62 }
 0xc4d   :  { %6144 = vmatmul.msk.bf16.gmra.mxu1 %vm316_vm1, %v4411_v42  ;;  %v9184_v34 = vadd.f32 %v4495_v63, %v3950_v32 }
 0xc4e   :  { %v4340_v40 = vpop.f32.mrf.mxu3 }
 0xc4f   :  { %v4341_v26 = vadd.f32 %v9097_v45, %v4340_v40  ;;  %v4603_v31 = vmax.f32 %v9184_v34, 0.0 }
 0xc51   :  { %v4390_v9 = vmax.f32 %v4341_v26, 0.0 }
 0xc52   :  { %v4496_v2 = vpop.f32.mrf.mxu1 }
 0xc53   :  { %v4497_v53 = vadd.f32 %v9155_v54, %v4496_v2 }
 0xc55   :  { %v9190_v35 = vadd.f32 %v4497_v53, %v3951_v44 }
 0xc56   :  { %v4342_v30 = vpop.f32.mrf.mxu3 }
 0xc57   :  { %v4604_v11 = vmax.f32 %v9190_v35, 0.0  ;;  %v4343_v8 = vadd.f32 %v9097_v45, %v4342_v30 }
 0xc59   :  { %v4634_v1 = vpack.c.bf16 %v4604_v11, %v4603_v31  ;;  %v4391_v32 = vmax.f32 %v4343_v8, 0.0 }
 0xc5a   :  { %v4499_v52 = vpop.f32.mrf.mxu1 }
 0xc5b   :  { %v4412_v49 = vpack.c.bf16 %v4391_v32, %v4390_v9  ;;  %6177 = vmatmul.msk.bf16.gmra.mxu2 %vm118_vm0, %v4634_v1  ;;  %v4500_v44 = vadd.f32 %v9155_v54, %v4499_v52 }
 0xc5d   :  { %6145 = vmatmul.msk.bf16.gmra.mxu1 %vm316_vm1, %v4412_v49  ;;  %v9204_v42 = vadd.f32 %v4500_v44, %v3952_v7 }
 0xc5e   :  { %v4345_v50 = vpop.f32.mrf.mxu3 }
 0xc5f   :  { %v4346_v40 = vadd.f32 %v9097_v45, %v4345_v50  ;;  %v4605_v53 = vmax.f32 %v9204_v42, 0.0 }
 0xc61   :  { %v4392_v8 = vmax.f32 %v4346_v40, 0.0 }
 0xc62   :  { %v4501_v62 = vpop.f32.mrf.mxu1 }
 0xc63   :  { %v4502_v19 = vadd.f32 %v9155_v54, %v4501_v62 }
 0xc65   :  { %v9210_v63 = vadd.f32 %v4502_v19, %v3953_v55 }
 0xc66   :  { %v4347_v2 = vpop.f32.mrf.mxu3 }
 0xc67   :  { %v4606_v26 = vmax.f32 %v9210_v63, 0.0  ;;  %v4348_v30 = vadd.f32 %v9097_v45, %v4347_v2 }
 0xc69   :  { %v4635_v6 = vpack.c.bf16 %v4606_v26, %v4605_v53  ;;  %v4393_v7 = vmax.f32 %v4348_v30, 0.0 }
 0xc6a   :  { %v4504_v9 = vpop.f32.mrf.mxu1 }
 0xc6b   :  { %v4413_v1 = vpack.c.bf16 %v4393_v7, %v4392_v8  ;;  %6178 = vmatmul.msk.bf16.gmra.mxu2 %vm118_vm0, %v4635_v6  ;;  %v4505_v55 = vadd.f32 %v9155_v54, %v4504_v9 }
 0xc6d   :  { %6146 = vmatmul.msk.bf16.gmra.mxu1 %vm316_vm1, %v4413_v1  ;;  %v9224_v52 = vadd.f32 %v4505_v55, %v3954_v56 }
 0xc6e   :  { %v4350_v27 = vpop.f32.mrf.mxu3 }
 0xc6f   :  { %v4351_v50 = vadd.f32 %v9097_v45, %v4350_v27  ;;  %v4607_v19 = vmax.f32 %v9224_v52, 0.0 }
 0xc71   :  { %v4394_v30 = vmax.f32 %v4351_v50, 0.0 }
 0xc72   :  { %v4506_v32 = vpop.f32.mrf.mxu1 }
 0xc73   :  { %v4507_v49 = vadd.f32 %v9155_v54, %v4506_v32 }
 0xc75   :  { %v9230_v44 = vadd.f32 %v4507_v49, %v3955_v28 }
 0xc76   :  { %v4352_v62 = vpop.f32.mrf.mxu3 }
 0xc77   :  { %v4608_v40 = vmax.f32 %v9230_v44, 0.0  ;;  %v4353_v2 = vadd.f32 %v9097_v45, %v4352_v62 }
 0xc79   :  { %v4636_v59 = vpack.c.bf16 %v4608_v40, %v4607_v19  ;;  %v4395_v56 = vmax.f32 %v4353_v2, 0.0 }
 0xc7a   :  { %v4509_v8 = vpop.f32.mrf.mxu1 }
 0xc7b   :  { %v4414_v6 = vpack.c.bf16 %v4395_v56, %v4394_v30  ;;  %6179 = vmatmul.msk.bf16.gmra.mxu2 %vm118_vm0, %v4636_v59  ;;  %v4510_v28 = vadd.f32 %v9155_v54, %v4509_v8 }
 0xc7d   :  { %6147 = vmatmul.msk.bf16.gmra.mxu1 %vm316_vm1, %v4414_v6  ;;  %v9244_v9 = vadd.f32 %v4510_v28, %v3956_v0 }
 0xc7e   :  { %v4355_v16 = vpop.f32.mrf.mxu3 }
 0xc7f   :  { %v4356_v27 = vadd.f32 %v9097_v45, %v4355_v16  ;;  %v4609_v49 = vmax.f32 %v9244_v9, 0.0 }
 0xc81   :  { %v4396_v2 = vmax.f32 %v4356_v27, 0.0 }
 0xc82   :  { %v4511_v7 = vpop.f32.mrf.mxu1 }
 0xc83   :  { %v4512_v1 = vadd.f32 %v9155_v54, %v4511_v7 }
 0xc85   :  { %v9250_v55 = vadd.f32 %v4512_v1, %v3957_v51 }
 0xc86   :  { %v4357_v32 = vpop.f32.mrf.mxu3 }
 0xc87   :  { %v4610_v50 = vmax.f32 %v9250_v55, 0.0  ;;  %v4358_v62 = vadd.f32 %v9097_v45, %v4357_v32 }
 0xc89   :  { %v4637_v48 = vpack.c.bf16 %v4610_v50, %v4609_v49  ;;  %v4397_v0 = vmax.f32 %v4358_v62, 0.0 }
 0xc8a   :  { %v4514_v30 = vpop.f32.mrf.mxu1 }
 0xc8b   :  { %v4415_v59 = vpack.c.bf16 %v4397_v0, %v4396_v2  ;;  %6180 = vmatmul.msk.bf16.gmra.mxu2 %vm118_vm0, %v4637_v48  ;;  %v4515_v51 = vadd.f32 %v9155_v54, %v4514_v30 }
 0xc8d   :  { %6148 = vmatmul.msk.bf16.gmra.mxu1 %vm316_vm1, %v4415_v59  ;;  %v9264_v8 = vadd.f32 %v4515_v51, %v3958_v24  ;;  %v9960_v51 = vmax.f32 %v8890_v47, 0.0 }
 0xc8e   :  { %v4360_v15 = vpop.f32.mrf.mxu3 }
 0xc8f   :  { %v4361_v16 = vadd.f32 %v9097_v45, %v4360_v15  ;;  %v4611_v1 = vmax.f32 %v9264_v8, 0.0 }
 0xc91   :  { %v4398_v62 = vmax.f32 %v4361_v16, 0.0 }
 0xc92   :  { %v4516_v56 = vpop.f32.mrf.mxu1 }
 0xc93   :  { %v4517_v6 = vadd.f32 %v9155_v54, %v4516_v56 }
 0xc95   :  { %v9270_v28 = vadd.f32 %v4517_v6, %v3959_v58 }
 0xc96   :  { %v4362_v7 = vpop.f32.mrf.mxu3 }
 0xc97   :  { %v4612_v27 = vmax.f32 %v9270_v28, 0.0  ;;  %v4363_v32 = vadd.f32 %v9097_v45, %v4362_v7 }
 0xc99   :  { %v4638_v25 = vpack.c.bf16 %v4612_v27, %v4611_v1  ;;  %v4399_v24 = vmax.f32 %v4363_v32, 0.0 }
 0xc9a   :  { %v4519_v2 = vpop.f32.mrf.mxu1 }
 0xc9b   :  { %v4416_v48 = vpack.c.bf16 %v4399_v24, %v4398_v62  ;;  %6181 = vmatmul.msk.bf16.gmra.mxu2 %vm118_vm0, %v4638_v25  ;;  %v4520_v58 = vadd.f32 %v9155_v54, %v4519_v2 }
 0xc9d   :  { %6149 = vmatmul.msk.bf16.gmra.mxu1 %vm316_vm1, %v4416_v48  ;;  %v9284_v30 = vadd.f32 %v4520_v58, %v3960_v18  ;;  %v9961_v48 = vmax.f32 %v8903_v12, 0.0  ;;  %v9962_v58 = vmax.f32 %v8908_v43, 0.0 }
 0xc9e   :  { %v4365_v22 = vpop.f32.mrf.mxu3 }
 0xc9f   :  { %v4366_v15 = vadd.f32 %v9097_v45, %v4365_v22  ;;  %v4613_v16 = vmax.f32 %v9284_v30, 0.0 }
 0xca1   :  { %v4400_v62 = vmax.f32 %v4366_v15, 0.0 }
 0xca2   :  { %v4521_v0 = vpop.f32.mrf.mxu1 }
 0xca3   :  { %v4522_v59 = vadd.f32 %v9155_v54, %v4521_v0 }
 0xca5   :  { %v9290_v56 = vadd.f32 %v4522_v59, %v9960_v51 }
 0xca6   :  { %v4367_v6 = vpop.f32.mrf.mxu3 }
 0xca7   :  { %v4614_v7 = vmax.f32 %v9290_v56, 0.0  ;;  %v4368_v32 = vadd.f32 %v9097_v45, %v4367_v6 }
 0xca9   :  { %v4639_v21 = vpack.c.bf16 %v4614_v7, %v4613_v16  ;;  %v4401_v18 = vmax.f32 %v4368_v32, 0.0 }
 0xcaa   :  { %v4524_v25 = vpop.f32.mrf.mxu1 }
 0xcab   :  { %v4417_v24 = vpack.c.bf16 %v4401_v18, %v4400_v62  ;;  %6182 = vmatmul.msk.bf16.gmra.mxu2 %vm118_vm0, %v4639_v21  ;;  %v4525_v47 = vadd.f32 %v9155_v54, %v4524_v25  ;;  %v9963_v62 = vmax.f32 %v8920_v10, 0.0  ;;  %v9964_v18 = vmax.f32 %v8925_v38, 0.0  ;;  %v9339_v38 = vld [vmem:[%s9731_s2 + $0x7] ss:$0 sm:$0xff] }
 0xcad   :  { %6150 = vmatmul.msk.bf16.gmra.mxu1 %vm316_vm1, %v4417_v24  ;;  %v9304_v22 = vadd.f32 %v4525_v47, %v9961_v48 }
 0xcaf   :  { %v9867_v59 = vmax.f32 %v9304_v22, 0.0 }
 0xcb2   :  { %v4526_v2 = vpop.f32.mrf.mxu1 }
 0xcb3   :  { %v4527_v45 = vadd.f32 %v9155_v54, %v4526_v2 }
 0xcb5   :  { %v9309_v0 = vadd.f32 %v4527_v45, %v9962_v58 }
 0xcb7   :  { %v9854_v15 = vmax.f32 %v9309_v0, 0.0  ;;  %v9980_v56 = vmax.f32 %v9309_v0, 0.0 }
 0xcb9   :  { %v4640_v51 = vpack.c.bf16 %v9854_v15, %v9867_v59 }
 0xcba   :  { %v4529_v6 = vpop.f32.mrf.mxu1 }
 0xcbb   :  { %6183 = vmatmul.msk.bf16.gmra.mxu2 %vm118_vm0, %v4640_v51  ;;  %v4530_v12 = vadd.f32 %v9155_v54, %v4529_v6  ;;  %v9965_v51 = vmax.f32 %v8944_v17, 0.0 }
 0xcbd   :  { %v9321_v43 = vadd.f32 %v4530_v12, %v9963_v62  ;;  %v9966_v62 = vmax.f32 %v8949_v20, 0.0 }
 0xcbf   :  { %v9851_v24 = vmax.f32 %v9321_v43, 0.0 }
 0xcc2   :  { %v4531_v32 = vpop.f32.mrf.mxu1 }
 0xcc3   :  { %v4532_v21 = vadd.f32 %v9155_v54, %v4531_v32 }
 0xcc5   :  { %v9326_v25 = vadd.f32 %v4532_v21, %v9964_v18 }
 0xcc7   :  { %v9850_v47 = vmax.f32 %v9326_v25, 0.0 }
 0xcc9   :  { %v4641_v2 = vpack.c.bf16 %v9850_v47, %v9851_v24 }
 0xcca   :  { %v4534_v48 = vpop.f32.mrf.mxu1 }
 0xccb   :  { %6184 = vmatmul.msk.bf16.gmra.mxu2 %vm118_vm0, %v4641_v2  ;;  %v4535_v45 = vadd.f32 %v9155_v54, %v4534_v48 }
 0xccd   :  { %v9343_v6 = vadd.f32 %v4535_v45, %v9965_v51 }
 0xcce   :  { %v4744_v10 = vpop.f32.mrf.mxu2 }
 0xccf   :  { %v4745_v32 = vadd.f32 %v9339_v38, %v4744_v10  ;;  %v9853_v2 = vmax.f32 %v9343_v6, 0.0 }
 0xcd1   :  { %v4824_v24 = vmax.f32 %v4745_v32, 0.0 }
 0xcd2   :  { %v4536_v58 = vpop.f32.mrf.mxu1 }
 0xcd3   :  { %v4537_v12 = vadd.f32 %v9155_v54, %v4536_v58 }
 0xcd5   :  { %v9349_v21 = vadd.f32 %v4537_v12, %v9966_v62  ;;  %v6321_v12 = vld [vmem:[%s9736_s7 + $0x18] sm:$0xff]  ;;  %v9967_v62 = vmax.f32 %v8967_v36, 0.0 }
 0xcd6   :  { %v4746_v18 = vpop.f32.mrf.mxu2  ;;  %5422 = vmatpush.bf16.msra.mxu1 %v6321_v12 }
 0xcd7   :  { %v9852_v48 = vmax.f32 %v9349_v21, 0.0  ;;  %v4747_v47 = vadd.f32 %v9339_v38, %v4746_v18 }
 0xcd9   :  { %v4642_v17 = vpack.c.bf16 %v9852_v48, %v9853_v2  ;;  %v4825_v45 = vmax.f32 %v4747_v47, 0.0 }
 0xcda   :  { %v4539_v58 = vpop.f32.mrf.mxu1 }
 0xcdb   :  { %v4856_v10 = vpack.c.bf16 %v4825_v45, %v4824_v24  ;;  %6185 = vmatmul.msk.bf16.gmra.mxu2 %vm118_vm0, %v4642_v17  ;;  %v4540_v51 = vadd.f32 %v9155_v54, %v4539_v58  ;;  %v9968_v17 = vmax.f32 %v8972_v39, 0.0 }
 0xcdd   :  { %6199 = vmatmul.msk.bf16.vlgmr.msra.gmra.mxu0 %vm316_vm1, %v4856_v10  ;;  %v9366_v18 = vadd.f32 %v4540_v51, %v9967_v62 }
 0xcde   :  { %v4749_v20 = vpop.f32.mrf.mxu2 }
 0xcdf   :  { %v4750_v24 = vadd.f32 %v9339_v38, %v4749_v20  ;;  %v9856_v58 = vmax.f32 %v9366_v18, 0.0 }
 0xce1   :  { %v4826_v15 = vmax.f32 %v4750_v24, 0.0 }
 0xce2   :  { %v4541_v32 = vpop.f32.mrf.mxu1 }
 0xce3   :  { %v4542_v47 = vadd.f32 %v9155_v54, %v4541_v32 }
 0xce5   :  { %v9372_v45 = vadd.f32 %v4542_v47, %v9968_v17  ;;  %v9969_v47 = vmax.f32 %v8987_v29, 0.0 }
 0xce6   :  { %v4751_v10 = vpop.f32.mrf.mxu2 }
 0xce7   :  { %v9855_v48 = vmax.f32 %v9372_v45, 0.0  ;;  %v4752_v2 = vadd.f32 %v9339_v38, %v4751_v10 }
 0xce9   :  { %v4643_v36 = vpack.c.bf16 %v9855_v48, %v9856_v58  ;;  %v4827_v51 = vmax.f32 %v4752_v2, 0.0  ;;  %v9970_v2 = vmax.f32 %v8992_v4, 0.0 }
 0xcea   :  { %v4544_v12 = vpop.f32.mrf.mxu1 }
 0xceb   :  { %v4857_v20 = vpack.c.bf16 %v4827_v51, %v4826_v15  ;;  %6186 = vmatmul.msk.bf16.gmra.mxu2 %vm118_vm0, %v4643_v36  ;;  %v4545_v32 = vadd.f32 %v9155_v54, %v4544_v12 }
 0xced   :  { %6200 = vmatmul.msk.bf16.gmra.mxu0 %vm316_vm1, %v4857_v20  ;;  %v9386_v17 = vadd.f32 %v4545_v32, %v9969_v47 }
 0xcee   :  { %v4754_v39 = vpop.f32.mrf.mxu2 }
 0xcef   :  { %v4755_v10 = vadd.f32 %v9339_v38, %v4754_v39  ;;  %v9858_v36 = vmax.f32 %v9386_v17, 0.0 }
 0xcf1   :  { %v4828_v20 = vmax.f32 %v4755_v10, 0.0 }
 0xcf2   :  { %v4546_v62 = vpop.f32.mrf.mxu1 }
 0xcf3   :  { %v4547_v24 = vadd.f32 %v9155_v54, %v4546_v62 }
 0xcf5   :  { %v9392_v48 = vadd.f32 %v4547_v24, %v9970_v2  ;;  %v9971_v2 = vmax.f32 %v9007_v3, 0.0 }
 0xcf6   :  { %v4756_v15 = vpop.f32.mrf.mxu2 }
 0xcf7   :  { %v9857_v51 = vmax.f32 %v9392_v48, 0.0  ;;  %v4757_v12 = vadd.f32 %v9339_v38, %v4756_v15 }
 0xcf9   :  { %v4644_v29 = vpack.c.bf16 %v9857_v51, %v9858_v36  ;;  %v4829_v32 = vmax.f32 %v4757_v12, 0.0  ;;  %v9972_v12 = vmax.f32 %v9012_v41, 0.0 }
 0xcfa   :  { %v4549_v62 = vpop.f32.mrf.mxu1 }
 0xcfb   :  { %v4858_v39 = vpack.c.bf16 %v4829_v32, %v4828_v20  ;;  %6187 = vmatmul.msk.bf16.gmra.mxu2 %vm118_vm0, %v4644_v29  ;;  %v4550_v47 = vadd.f32 %v9155_v54, %v4549_v62 }
 0xcfd   :  { %6201 = vmatmul.msk.bf16.gmra.mxu0 %vm316_vm1, %v4858_v39  ;;  %v9406_v15 = vadd.f32 %v4550_v47, %v9971_v2 }
 0xcfe   :  { %v4759_v4 = vpop.f32.mrf.mxu2 }
 0xcff   :  { %v4760_v58 = vadd.f32 %v9339_v38, %v4759_v4  ;;  %v9862_v29 = vmax.f32 %v9406_v15, 0.0 }
 0xd01   :  { %v4830_v39 = vmax.f32 %v4760_v58, 0.0 }
 0xd02   :  { %v4551_v24 = vpop.f32.mrf.mxu1 }
 0xd03   :  { %v4552_v10 = vadd.f32 %v9155_v54, %v4551_v24 }
 0xd05   :  { %v9412_v51 = vadd.f32 %v4552_v10, %v9972_v12  ;;  %v9973_v12 = vmax.f32 %v9027_v5, 0.0 }
 0xd06   :  { %v4761_v20 = vpop.f32.mrf.mxu2 }
 0xd07   :  { %v9859_v32 = vmax.f32 %v9412_v51, 0.0  ;;  %v4762_v62 = vadd.f32 %v9339_v38, %v4761_v20 }
 0xd09   :  { %v4645_v3 = vpack.c.bf16 %v9859_v32, %v9862_v29  ;;  %v4831_v47 = vmax.f32 %v4762_v62, 0.0  ;;  %v9974_v62 = vmax.f32 %v9032_v14, 0.0 }
 0xd0a   :  { %v4554_v24 = vpop.f32.mrf.mxu1 }
 0xd0b   :  { %v4859_v4 = vpack.c.bf16 %v4831_v47, %v4830_v39  ;;  %6188 = vmatmul.msk.bf16.gmra.mxu2 %vm118_vm0, %v4645_v3  ;;  %v4555_v2 = vadd.f32 %v9155_v54, %v4554_v24 }
 0xd0d   :  { %6202 = vmatmul.msk.bf16.gmra.mxu0 %vm316_vm1, %v4859_v4  ;;  %v9426_v20 = vadd.f32 %v4555_v2, %v9973_v12 }
 0xd0e   :  { %v4764_v41 = vpop.f32.mrf.mxu2 }
 0xd0f   :  { %v4765_v36 = vadd.f32 %v9339_v38, %v4764_v41  ;;  %v9861_v3 = vmax.f32 %v9426_v20, 0.0 }
 0xd11   :  { %v4832_v4 = vmax.f32 %v4765_v36, 0.0 }
 0xd12   :  { %v4556_v10 = vpop.f32.mrf.mxu1 }
 0xd13   :  { %v4557_v58 = vadd.f32 %v9155_v54, %v4556_v10 }
 0xd15   :  { %v9432_v32 = vadd.f32 %v4557_v58, %v9974_v62  ;;  %v6320_v58 = vld [vmem:[%s9736_s7 + $0x10] sm:$0xff]  ;;  %v9975_v62 = vmax.f32 %v9050_v46, 0.0 }
 0xd16   :  { %v4766_v39 = vpop.f32.mrf.mxu2  ;;  %5423 = vmatpush.bf16.msra.mxu1 %v6320_v58 }
 0xd17   :  { %v9860_v47 = vmax.f32 %v9432_v32, 0.0  ;;  %v4767_v24 = vadd.f32 %v9339_v38, %v4766_v39 }
 0xd19   :  { %v4646_v5 = vpack.c.bf16 %v9860_v47, %v9861_v3  ;;  %v4833_v2 = vmax.f32 %v4767_v24, 0.0 }
 0xd1a   :  { %v4559_v10 = vpop.f32.mrf.mxu1 }
 0xd1b   :  { %v4860_v41 = vpack.c.bf16 %v4833_v2, %v4832_v4  ;;  %6189 = vmatmul.msk.bf16.gmra.mxu2 %vm118_vm0, %v4646_v5  ;;  %v4560_v12 = vadd.f32 %v9155_v54, %v4559_v10  ;;  %v9976_v5 = vmax.f32 %v9055_v33, 0.0 }
 0xd1d   :  { %6203 = vmatmul.msk.bf16.gmra.mxu0 %vm316_vm1, %v4860_v41  ;;  %v9449_v39 = vadd.f32 %v4560_v12, %v9975_v62 }
 0xd1e   :  { %v4769_v14 = vpop.f32.mrf.mxu2 }
 0xd1f   :  { %v4770_v4 = vadd.f32 %v9339_v38, %v4769_v14  ;;  %v9866_v10 = vmax.f32 %v9449_v39, 0.0 }
 0xd21   :  { %v4834_v29 = vmax.f32 %v4770_v4, 0.0 }
 0xd22   :  { %v4561_v36 = vpop.f32.mrf.mxu1 }
 0xd23   :  { %v4562_v24 = vadd.f32 %v9155_v54, %v4561_v36 }
 0xd25   :  { %v9455_v2 = vadd.f32 %v4562_v24, %v9976_v5  ;;  %v9977_v24 = vmax.f32 %v9070_v57, 0.0 }
 0xd26   :  { %v4771_v41 = vpop.f32.mrf.mxu2 }
 0xd27   :  { %v9863_v47 = vmax.f32 %v9455_v2, 0.0  ;;  %v4772_v3 = vadd.f32 %v9339_v38, %v4771_v41 }
 0xd29   :  { %v4647_v46 = vpack.c.bf16 %v9863_v47, %v9866_v10  ;;  %v4835_v12 = vmax.f32 %v4772_v3, 0.0  ;;  %v9978_v3 = vmax.f32 %v9075_v37, 0.0 }
 0xd2a   :  { %v4564_v58 = vpop.f32.mrf.mxu1 }
 0xd2b   :  { %v4861_v14 = vpack.c.bf16 %v4835_v12, %v4834_v29  ;;  %6190 = vmatmul.msk.bf16.gmra.mxu2 %vm118_vm0, %v4647_v46  ;;  %v4565_v36 = vadd.f32 %v9155_v54, %v4564_v58 }
 0xd2d   :  { %6204 = vmatmul.msk.bf16.gmra.mxu0 %vm316_vm1, %v4861_v14  ;;  %v9469_v5 = vadd.f32 %v4565_v36, %v9977_v24 }
 0xd2e   :  { %v4774_v33 = vpop.f32.mrf.mxu2 }
 0xd2f   :  { %v4775_v41 = vadd.f32 %v9339_v38, %v4774_v33  ;;  %v9865_v46 = vmax.f32 %v9469_v5, 0.0 }
 0xd31   :  { %v4836_v14 = vmax.f32 %v4775_v41, 0.0 }
 0xd32   :  { %v4566_v62 = vpop.f32.mrf.mxu1 }
 0xd33   :  { %v4567_v4 = vadd.f32 %v9155_v54, %v4566_v62 }
 0xd35   :  { %v9475_v47 = vadd.f32 %v4567_v4, %v9978_v3 }
 0xd36   :  { %v4776_v29 = vpop.f32.mrf.mxu2 }
 0xd37   :  { %v9864_v12 = vmax.f32 %v9475_v47, 0.0  ;;  %v4777_v58 = vadd.f32 %v9339_v38, %v4776_v29 }
 0xd39   :  { %v4648_v57 = vpack.c.bf16 %v9864_v12, %v9865_v46  ;;  %v4837_v54 = vmax.f32 %v4777_v58, 0.0 }
 0xd3b   :  { %v4862_v36 = vpack.c.bf16 %v4837_v54, %v4836_v14  ;;  %6191 = vmatmul.msk.bf16.gmra.mxu2 %vm118_vm0, %v4648_v57 }
 0xd3d   :  { %6205 = vmatmul.msk.bf16.gmra.mxu0 %vm316_vm1, %v4862_v36 }
 0xd3e   :  { %v4779_v37 = vpop.f32.mrf.mxu2 }
 0xd3f   :  { %v4780_v33 = vadd.f32 %v9339_v38, %v4779_v37  ;;  %v9494_v37 = vld [vmem:[%s9733_s4 + $0x7] ss:$0 sm:$0xff] }
 0xd41   :  { %v4838_v4 = vmax.f32 %v4780_v33, 0.0 }
 0xd46   :  { %v4781_v62 = vpop.f32.mrf.mxu2 }
 0xd47   :  { %v4782_v24 = vadd.f32 %v9339_v38, %v4781_v62 }
 0xd49   :  { %v4839_v3 = vmax.f32 %v4782_v24, 0.0  ;;  %v6319_v24 = vld [vmem:[%s9736_s7 + $0x8] sm:$0xff] }
 0xd4a   :  { %5424 = vmatpush.bf16.msra.mxu1 %v6319_v24 }
 0xd4b   :  { %v4863_v41 = vpack.c.bf16 %v4839_v3, %v4838_v4 }
 0xd4d   :  { %6206 = vmatmul.msk.bf16.gmra.mxu0 %vm316_vm1, %v4863_v41 }
 0xd4e   :  { %v4784_v29 = vpop.f32.mrf.mxu2 }
 0xd4f   :  { %v4785_v12 = vadd.f32 %v9339_v38, %v4784_v29 }
 0xd51   :  { %v4840_v57 = vmax.f32 %v4785_v12, 0.0 }
 0xd56   :  { %v4786_v58 = vpop.f32.mrf.mxu2 }
 0xd57   :  { %v4787_v14 = vadd.f32 %v9339_v38, %v4786_v58 }
 0xd59   :  { %v4841_v54 = vmax.f32 %v4787_v14, 0.0 }
 0xd5a   :  { %v4943_v36 = vpop.f32.mrf.mxu0 }
 0xd5b   :  { %v4864_v46 = vpack.c.bf16 %v4841_v54, %v4840_v57  ;;  %v4944_v62 = vadd.f32 %v9494_v37, %v4943_v36 }
 0xd5d   :  { %6207 = vmatmul.msk.bf16.gmra.mxu0 %vm316_vm1, %v4864_v46  ;;  %v5023_v3 = vmax.f32 %v4944_v62, 0.0 }
 0xd5e   :  { %v4789_v33 = vpop.f32.mrf.mxu2 }
 0xd5f   :  { %v4790_v41 = vadd.f32 %v9339_v38, %v4789_v33 }
 0xd61   :  { %v4842_v46 = vmax.f32 %v4790_v41, 0.0 }
 0xd62   :  { %v4945_v4 = vpop.f32.mrf.mxu0 }
 0xd63   :  { %v4946_v12 = vadd.f32 %v9494_v37, %v4945_v4 }
 0xd65   :  { %v5024_v29 = vmax.f32 %v4946_v12, 0.0 }
 0xd66   :  { %v4791_v58 = vpop.f32.mrf.mxu2 }
 0xd67   :  { %v5055_v14 = vpack.c.bf16 %v5024_v29, %v5023_v3  ;;  %v4792_v57 = vadd.f32 %v9339_v38, %v4791_v58 }
 0xd69   :  { %v4843_v54 = vmax.f32 %v4792_v57, 0.0  ;;  %6222 = vmatmul.msk.bf16.vlgmr.msra.gmra.mxu3 %vm316_vm1, %v5055_v14 }
 0xd6a   :  { %v4948_v36 = vpop.f32.mrf.mxu0 }
 0xd6b   :  { %v4865_v10 = vpack.c.bf16 %v4843_v54, %v4842_v46  ;;  %v4949_v4 = vadd.f32 %v9494_v37, %v4948_v36 }
 0xd6d   :  { %6208 = vmatmul.msk.bf16.gmra.mxu0 %vm316_vm1, %v4865_v10  ;;  %v5025_v33 = vmax.f32 %v4949_v4, 0.0 }
 0xd6e   :  { %v4794_v59 = vpop.f32.mrf.mxu2 }
 0xd6f   :  { %v4795_v12 = vadd.f32 %v9339_v38, %v4794_v59 }
 0xd71   :  { %v4844_v57 = vmax.f32 %v4795_v12, 0.0 }
 0xd72   :  { %v4950_v24 = vpop.f32.mrf.mxu0 }
 0xd73   :  { %v4951_v62 = vadd.f32 %v9494_v37, %v4950_v24 }
 0xd75   :  { %v5026_v3 = vmax.f32 %v4951_v62, 0.0 }
 0xd76   :  { %v4796_v29 = vpop.f32.mrf.mxu2 }
 0xd77   :  { %v5056_v58 = vpack.c.bf16 %v5026_v3, %v5025_v33  ;;  %v4797_v41 = vadd.f32 %v9339_v38, %v4796_v29 }
 0xd79   :  { %v4845_v14 = vmax.f32 %v4797_v41, 0.0  ;;  %6223 = vmatmul.msk.bf16.gmra.mxu3 %vm316_vm1, %v5056_v58 }
 0xd7a   :  { %v4953_v46 = vpop.f32.mrf.mxu0 }
 0xd7b   :  { %v4866_v10 = vpack.c.bf16 %v4845_v14, %v4844_v57  ;;  %v4954_v36 = vadd.f32 %v9494_v37, %v4953_v46 }
 0xd7d   :  { %6209 = vmatmul.msk.bf16.gmra.mxu0 %vm316_vm1, %v4866_v10  ;;  %v5027_v59 = vmax.f32 %v4954_v36, 0.0 }
 0xd7e   :  { %v4799_v54 = vpop.f32.mrf.mxu2 }
 0xd7f   :  { %v4800_v62 = vadd.f32 %v9339_v38, %v4799_v54 }
 0xd81   :  { %v4846_v41 = vmax.f32 %v4800_v62, 0.0 }
 0xd82   :  { %v4955_v24 = vpop.f32.mrf.mxu0 }
 0xd83   :  { %v4956_v4 = vadd.f32 %v9494_v37, %v4955_v24 }
 0xd85   :  { %v5028_v33 = vmax.f32 %v4956_v4, 0.0 }
 0xd86   :  { %v4801_v3 = vpop.f32.mrf.mxu2 }
 0xd87   :  { %v5057_v29 = vpack.c.bf16 %v5028_v33, %v5027_v59  ;;  %v4802_v12 = vadd.f32 %v9339_v38, %v4801_v3 }
 0xd89   :  { %v4847_v58 = vmax.f32 %v4802_v12, 0.0  ;;  %6224 = vmatmul.msk.bf16.gmra.mxu3 %vm316_vm1, %v5057_v29 }
 0xd8a   :  { %v4958_v57 = vpop.f32.mrf.mxu0 }
 0xd8b   :  { %v4867_v14 = vpack.c.bf16 %v4847_v58, %v4846_v41  ;;  %v4959_v10 = vadd.f32 %v9494_v37, %v4958_v57 }
 0xd8d   :  { %6210 = vmatmul.msk.bf16.gmra.mxu0 %vm316_vm1, %v4867_v14  ;;  %v5029_v54 = vmax.f32 %v4959_v10, 0.0 }
 0xd8e   :  { %v4804_v46 = vpop.f32.mrf.mxu2 }
 0xd8f   :  { %v4805_v4 = vadd.f32 %v9339_v38, %v4804_v46  ;;  %v6318_v46 = vld [vmem:[%s9736_s7] sm:$0xff] }
 0xd90   :  { %5425 = vmatpush.bf16.msra.mxu1 %v6318_v46 }
 0xd91   :  { %v4848_v12 = vmax.f32 %v4805_v4, 0.0 }
 0xd92   :  { %v4960_v24 = vpop.f32.mrf.mxu0 }
 0xd93   :  { %v4961_v36 = vadd.f32 %v9494_v37, %v4960_v24 }
 0xd95   :  { %v5030_v59 = vmax.f32 %v4961_v36, 0.0 }
 0xd96   :  { %v4806_v33 = vpop.f32.mrf.mxu2 }
 0xd97   :  { %v5058_v3 = vpack.c.bf16 %v5030_v59, %v5029_v54  ;;  %v4807_v62 = vadd.f32 %v9339_v38, %v4806_v33 }
 0xd99   :  { %v4849_v29 = vmax.f32 %v4807_v62, 0.0  ;;  %6225 = vmatmul.msk.bf16.gmra.mxu3 %vm316_vm1, %v5058_v3 }
 0xd9a   :  { %v4963_v41 = vpop.f32.mrf.mxu0 }
 0xd9b   :  { %v4868_v58 = vpack.c.bf16 %v4849_v29, %v4848_v12  ;;  %v4964_v14 = vadd.f32 %v9494_v37, %v4963_v41 }
 0xd9d   :  { %6211 = vmatmul.msk.bf16.gmra.mxu0 %vm316_vm1, %v4868_v58  ;;  %v5031_v36 = vmax.f32 %v4964_v14, 0.0 }
 0xd9e   :  { %v4809_v57 = vpop.f32.mrf.mxu2 }
 0xd9f   :  { %v4810_v54 = vadd.f32 %v9339_v38, %v4809_v57 }
 0xda1   :  { %v4850_v62 = vmax.f32 %v4810_v54, 0.0 }
 0xda2   :  { %v4965_v10 = vpop.f32.mrf.mxu0 }
 0xda3   :  { %v4966_v24 = vadd.f32 %v9494_v37, %v4965_v10 }
 0xda5   :  { %v5032_v4 = vmax.f32 %v4966_v24, 0.0 }
 0xda6   :  { %v4811_v59 = vpop.f32.mrf.mxu2 }
 0xda7   :  { %v5059_v33 = vpack.c.bf16 %v5032_v4, %v5031_v36  ;;  %v4812_v3 = vadd.f32 %v9339_v38, %v4811_v59 }
 0xda9   :  { %v4851_v12 = vmax.f32 %v4812_v3, 0.0  ;;  %6226 = vmatmul.msk.bf16.gmra.mxu3 %vm316_vm1, %v5059_v33 }
 0xdaa   :  { %v4968_v29 = vpop.f32.mrf.mxu0 }
 0xdab   :  { %v4869_v41 = vpack.c.bf16 %v4851_v12, %v4850_v62  ;;  %v4969_v10 = vadd.f32 %v9494_v37, %v4968_v29 }
 0xdad   :  { %6212 = vmatmul.msk.bf16.gmra.mxu0 %vm316_vm1, %v4869_v41  ;;  %v5033_v57 = vmax.f32 %v4969_v10, 0.0 }
 0xdae   :  { %v4814_v58 = vpop.f32.mrf.mxu2 }
 0xdaf   :  { %v4815_v24 = vadd.f32 %v9339_v38, %v4814_v58 }
 0xdb1   :  { %v4852_v3 = vmax.f32 %v4815_v24, 0.0 }
 0xdb2   :  { %v4970_v46 = vpop.f32.mrf.mxu0 }
 0xdb3   :  { %v4971_v14 = vadd.f32 %v9494_v37, %v4970_v46 }
 0xdb5   :  { %v5034_v36 = vmax.f32 %v4971_v14, 0.0 }
 0xdb6   :  { %v4816_v4 = vpop.f32.mrf.mxu2 }
 0xdb7   :  { %v5060_v59 = vpack.c.bf16 %v5034_v36, %v5033_v57  ;;  %v4817_v54 = vadd.f32 %v9339_v38, %v4816_v4 }
 0xdb9   :  { %v4853_v33 = vmax.f32 %v4817_v54, 0.0  ;;  %6227 = vmatmul.msk.bf16.gmra.mxu3 %vm316_vm1, %v5060_v59 }
 0xdba   :  { %v4973_v62 = vpop.f32.mrf.mxu0 }
 0xdbb   :  { %v4870_v12 = vpack.c.bf16 %v4853_v33, %v4852_v3  ;;  %v4974_v41 = vadd.f32 %v9494_v37, %v4973_v62 }
 0xdbd   :  { %6213 = vmatmul.msk.bf16.gmra.mxu0 %vm316_vm1, %v4870_v12  ;;  %v5035_v58 = vmax.f32 %v4974_v41, 0.0 }
 0xdbe   :  { %v4819_v29 = vpop.f32.mrf.mxu2 }
 0xdbf   :  { %v4820_v14 = vadd.f32 %v9339_v38, %v4819_v29 }
 0xdc1   :  { %v4854_v54 = vmax.f32 %v4820_v14, 0.0 }
 0xdc2   :  { %v4975_v46 = vpop.f32.mrf.mxu0 }
 0xdc3   :  { %v4976_v10 = vadd.f32 %v9494_v37, %v4975_v46 }
 0xdc5   :  { %v5036_v57 = vmax.f32 %v4976_v10, 0.0 }
 0xdc6   :  { %v4821_v36 = vpop.f32.mrf.mxu2 }
 0xdc7   :  { %v5061_v4 = vpack.c.bf16 %v5036_v57, %v5035_v58  ;;  %v4822_v24 = vadd.f32 %v9339_v38, %v4821_v36 }
 0xdc9   :  { %v4855_v59 = vmax.f32 %v4822_v24, 0.0  ;;  %6228 = vmatmul.msk.bf16.gmra.mxu3 %vm316_vm1, %v5061_v4 }
 0xdca   :  { %v4978_v3 = vpop.f32.mrf.mxu0 }
 0xdcb   :  { %v4871_v33 = vpack.c.bf16 %v4855_v59, %v4854_v54  ;;  %v4979_v62 = vadd.f32 %v9494_v37, %v4978_v3  ;;  %v9554_v59 = vld [vmem:[%s9735_s6 + $0x7] ss:$0 sm:$0xff] }
 0xdcd   :  { %6214 = vmatmul.msk.bf16.gmra.mxu0 %vm316_vm1, %v4871_v33  ;;  %v5037_v46 = vmax.f32 %v4979_v62, 0.0 }
 0xdd2   :  { %v4980_v12 = vpop.f32.mrf.mxu0 }
 0xdd3   :  { %v4981_v41 = vadd.f32 %v9494_v37, %v4980_v12 }
 0xdd5   :  { %v5038_v29 = vmax.f32 %v4981_v41, 0.0 }
 0xdd7   :  { %v5062_v10 = vpack.c.bf16 %v5038_v29, %v5037_v46 }
 0xdd9   :  { %6229 = vmatmul.msk.bf16.gmra.mxu3 %vm316_vm1, %v5062_v10 }
 0xdda   :  { %v4983_v58 = vpop.f32.mrf.mxu0 }
 0xddb   :  { %v4984_v38 = vadd.f32 %v9494_v37, %v4983_v58 }
 0xddd   :  { %v5039_v36 = vmax.f32 %v4984_v38, 0.0 }
 0xde2   :  { %v4985_v14 = vpop.f32.mrf.mxu0 }
 0xde3   :  { %v4986_v57 = vadd.f32 %v9494_v37, %v4985_v14 }
 0xde5   :  { %v5040_v4 = vmax.f32 %v4986_v57, 0.0 }
 0xde7   :  { %v5063_v24 = vpack.c.bf16 %v5040_v4, %v5039_v36 }
 0xde9   :  { %6230 = vmatmul.msk.bf16.gmra.mxu3 %vm316_vm1, %v5063_v24 }
 0xdea   :  { %v4988_v54 = vpop.f32.mrf.mxu0 }
 0xdeb   :  { %v4989_v62 = vadd.f32 %v9494_v37, %v4988_v54 }
 0xdec   :  { %v5142_v3 = vpop.f32.mrf.mxu3 }
 0xded   :  { %v5143_v33 = vadd.f32 %v9554_v59, %v5142_v3  ;;  %v5041_v10 = vmax.f32 %v4989_v62, 0.0 }
 0xdef   :  { %v5222_v41 = vadd.f32 %v5143_v33, %v4601_v61 }
 0xdf1   :  { %v5254_v14 = vmax.f32 %v5222_v41, 0.0 }
 0xdf2   :  { %v4990_v12 = vpop.f32.mrf.mxu0 }
 0xdf3   :  { %v4991_v46 = vadd.f32 %v9494_v37, %v4990_v12  ;;  %v5286_v54 = vmax.f32 %v5254_v14, 0.0 }
 0xdf4   :  { %v5144_v29 = vpop.f32.mrf.mxu3 }
 0xdf5   :  { %v5042_v58 = vmax.f32 %v4991_v46, 0.0  ;;  %v5145_v38 = vadd.f32 %v9554_v59, %v5144_v29 }
 0xdf7   :  { %v5064_v57 = vpack.c.bf16 %v5042_v58, %v5041_v10  ;;  %v5223_v36 = vadd.f32 %v5145_v38, %v4602_v13 }
 0xdf9   :  { %v5255_v4 = vmax.f32 %v5223_v36, 0.0  ;;  %6231 = vmatmul.msk.bf16.gmra.mxu3 %vm316_vm1, %v5064_v57 }
 0xdfa   :  { %v4993_v24 = vpop.f32.mrf.mxu0 }
 0xdfb   :  { %v5287_v3 = vmax.f32 %v5255_v4, 0.0  ;;  %v4994_v62 = vadd.f32 %v9494_v37, %v4993_v24 }
 0xdfc   :  { %v5147_v60 = vpop.f32.mrf.mxu3 }
 0xdfd   :  { %v5318_v61 = vpack.c.bf16 %v5287_v3, %v5286_v54  ;;  %v5148_v33 = vadd.f32 %v9554_v59, %v5147_v60  ;;  %v5043_v46 = vmax.f32 %v4994_v62, 0.0 }
 0xdff   :  { %6254 = vmatmul.msk.bf16.vlgmr.msra.gmra.mxu1 %vm118_vm0, %v5318_v61  ;;  %v5224_v41 = vadd.f32 %v5148_v33, %v4603_v31 }
 0xe01   :  { %v5256_v58 = vmax.f32 %v5224_v41, 0.0 }
 0xe02   :  { %v4995_v12 = vpop.f32.mrf.mxu0 }
 0xe03   :  { %v4996_v23 = vadd.f32 %v9494_v37, %v4995_v12  ;;  %v5288_v4 = vmax.f32 %v5256_v58, 0.0 }
 0xe04   :  { %v5149_v13 = vpop.f32.mrf.mxu3 }
 0xe05   :  { %v5044_v29 = vmax.f32 %v4996_v23, 0.0  ;;  %v5150_v10 = vadd.f32 %v9554_v59, %v5149_v13 }
 0xe07   :  { %v5065_v38 = vpack.c.bf16 %v5044_v29, %v5043_v46  ;;  %v5225_v14 = vadd.f32 %v5150_v10, %v4604_v11 }
 0xe09   :  { %v5257_v57 = vmax.f32 %v5225_v14, 0.0  ;;  %6232 = vmatmul.msk.bf16.gmra.mxu3 %vm316_vm1, %v5065_v38 }
 0xe0a   :  { %v4998_v36 = vpop.f32.mrf.mxu0 }
 0xe0b   :  { %v5289_v24 = vmax.f32 %v5257_v57, 0.0  ;;  %v4999_v3 = vadd.f32 %v9494_v37, %v4998_v36 }
 0xe0c   :  { %v5152_v34 = vpop.f32.mrf.mxu3 }
 0xe0d   :  { %v5319_v31 = vpack.c.bf16 %v5289_v24, %v5288_v4  ;;  %v5153_v54 = vadd.f32 %v9554_v59, %v5152_v34  ;;  %v5045_v33 = vmax.f32 %v4999_v3, 0.0 }
 0xe0f   :  { %6255 = vmatmul.msk.bf16.gmra.mxu1 %vm118_vm0, %v5319_v31  ;;  %v5226_v61 = vadd.f32 %v5153_v54, %v4605_v53 }
 0xe11   :  { %v5258_v41 = vmax.f32 %v5226_v61, 0.0 }
 0xe12   :  { %v5000_v60 = vpop.f32.mrf.mxu0 }
 0xe13   :  { %v5001_v35 = vadd.f32 %v9494_v37, %v5000_v60  ;;  %v5290_v10 = vmax.f32 %v5258_v41, 0.0 }
 0xe14   :  { %v5154_v11 = vpop.f32.mrf.mxu3 }
 0xe15   :  { %v5046_v62 = vmax.f32 %v5001_v35, 0.0  ;;  %v5155_v12 = vadd.f32 %v9554_v59, %v5154_v11 }
 0xe17   :  { %v5066_v23 = vpack.c.bf16 %v5046_v62, %v5045_v33  ;;  %v5227_v13 = vadd.f32 %v5155_v12, %v4606_v26 }
 0xe19   :  { %v5259_v46 = vmax.f32 %v5227_v13, 0.0  ;;  %6233 = vmatmul.msk.bf16.gmra.mxu3 %vm316_vm1, %v5066_v23 }
 0xe1a   :  { %v5003_v29 = vpop.f32.mrf.mxu0 }
 0xe1b   :  { %v5291_v58 = vmax.f32 %v5259_v46, 0.0  ;;  %v5004_v14 = vadd.f32 %v9494_v37, %v5003_v29 }
 0xe1c   :  { %v5157_v42 = vpop.f32.mrf.mxu3 }
 0xe1d   :  { %v5320_v53 = vpack.c.bf16 %v5291_v58, %v5290_v10  ;;  %v5158_v38 = vadd.f32 %v9554_v59, %v5157_v42  ;;  %v5047_v4 = vmax.f32 %v5004_v14, 0.0 }
 0xe1f   :  { %6256 = vmatmul.msk.bf16.gmra.mxu1 %vm118_vm0, %v5320_v53  ;;  %v5228_v36 = vadd.f32 %v5158_v38, %v4607_v19 }
 0xe21   :  { %v5260_v31 = vmax.f32 %v5228_v36, 0.0 }
 0xe22   :  { %v5005_v57 = vpop.f32.mrf.mxu0 }
 0xe23   :  { %v5006_v63 = vadd.f32 %v9494_v37, %v5005_v57  ;;  %v5292_v35 = vmax.f32 %v5260_v31, 0.0 }
 0xe24   :  { %v5159_v26 = vpop.f32.mrf.mxu3 }
 0xe25   :  { %v5048_v24 = vmax.f32 %v5006_v63, 0.0  ;;  %v5160_v34 = vadd.f32 %v9554_v59, %v5159_v26 }
 0xe27   :  { %v5067_v54 = vpack.c.bf16 %v5048_v24, %v5047_v4  ;;  %v5229_v3 = vadd.f32 %v5160_v34, %v4608_v40 }
 0xe29   :  { %v5261_v60 = vmax.f32 %v5229_v3, 0.0  ;;  %6234 = vmatmul.msk.bf16.gmra.mxu3 %vm316_vm1, %v5067_v54 }
 0xe2a   :  { %v5008_v61 = vpop.f32.mrf.mxu0 }
 0xe2b   :  { %v5293_v11 = vmax.f32 %v5261_v60, 0.0  ;;  %v5009_v62 = vadd.f32 %v9494_v37, %v5008_v61 }
 0xe2c   :  { %v5162_v52 = vpop.f32.mrf.mxu3 }
 0xe2d   :  { %v5321_v19 = vpack.c.bf16 %v5293_v11, %v5292_v35  ;;  %v5163_v33 = vadd.f32 %v9554_v59, %v5162_v52  ;;  %v5049_v23 = vmax.f32 %v5009_v62, 0.0 }
 0xe2f   :  { %6257 = vmatmul.msk.bf16.gmra.mxu1 %vm118_vm0, %v5321_v19  ;;  %v5230_v41 = vadd.f32 %v5163_v33, %v4609_v49 }
 0xe31   :  { %v5262_v29 = vmax.f32 %v5230_v41, 0.0 }
 0xe32   :  { %v5010_v12 = vpop.f32.mrf.mxu0 }
 0xe33   :  { %v5011_v44 = vadd.f32 %v9494_v37, %v5010_v12  ;;  %v5294_v38 = vmax.f32 %v5262_v29, 0.0 }
 0xe34   :  { %v5164_v40 = vpop.f32.mrf.mxu3 }
 0xe35   :  { %v5050_v13 = vmax.f32 %v5011_v44, 0.0  ;;  %v5165_v46 = vadd.f32 %v9554_v59, %v5164_v40 }
 0xe37   :  { %v5068_v10 = vpack.c.bf16 %v5050_v13, %v5049_v23  ;;  %v5231_v58 = vadd.f32 %v5165_v46, %v4610_v50 }
 0xe39   :  { %v5263_v42 = vmax.f32 %v5231_v58, 0.0  ;;  %6235 = vmatmul.msk.bf16.gmra.mxu3 %vm316_vm1, %v5068_v10 }
 0xe3a   :  { %v5013_v53 = vpop.f32.mrf.mxu0 }
 0xe3b   :  { %v5295_v14 = vmax.f32 %v5263_v42, 0.0  ;;  %v5014_v36 = vadd.f32 %v9494_v37, %v5013_v53 }
 0xe3c   :  { %v5167_v9 = vpop.f32.mrf.mxu3 }
 0xe3d   :  { %v5322_v49 = vpack.c.bf16 %v5295_v14, %v5294_v38  ;;  %v5168_v57 = vadd.f32 %v9554_v59, %v5167_v9  ;;  %v5051_v4 = vmax.f32 %v5014_v36, 0.0 }
 0xe3f   :  { %6258 = vmatmul.msk.bf16.gmra.mxu1 %vm118_vm0, %v5322_v49  ;;  %v5232_v26 = vadd.f32 %v5168_v57, %v4611_v1 }
 0xe41   :  { %v5264_v31 = vmax.f32 %v5232_v26, 0.0 }
 0xe42   :  { %v5015_v63 = vpop.f32.mrf.mxu0 }
 0xe43   :  { %v5016_v55 = vadd.f32 %v9494_v37, %v5015_v63  ;;  %v5296_v35 = vmax.f32 %v5264_v31, 0.0 }
 0xe44   :  { %v5169_v50 = vpop.f32.mrf.mxu3 }
 0xe45   :  { %v5052_v24 = vmax.f32 %v5016_v55, 0.0  ;;  %v5170_v34 = vadd.f32 %v9554_v59, %v5169_v50  ;;  %v9981_v55 = vmax.f32 %v9321_v43, 0.0 }
 0xe47   :  { %v5069_v54 = vpack.c.bf16 %v5052_v24, %v5051_v4  ;;  %v5233_v3 = vadd.f32 %v5170_v34, %v4612_v27  ;;  %v9982_v34 = vmax.f32 %v9326_v25, 0.0  ;;  %v9983_v25 = vmax.f32 %v9343_v6, 0.0 }
 0xe49   :  { %v5265_v60 = vmax.f32 %v5233_v3, 0.0  ;;  %6236 = vmatmul.msk.bf16.gmra.mxu3 %vm316_vm1, %v5069_v54  ;;  %v9642_v54 = vld [vmem:[%s9737_s8] ss:$0 sm:$0xff]  ;;  %s6382_s8 = smov [#allocation2]  }
 0xe4a   :  { %v5018_v61 = vpop.f32.mrf.mxu0  ;;  %s5543_s24 = sshll.u32 %s6382_s8, 4  ;;  %s5544_s24 = int_to_ptr.vmem [resolvable:$true] %s5543_s24 }
 0xe4b   :  { %v5297_v11 = vmax.f32 %v5265_v60, 0.0  ;;  %v5019_v19 = vadd.f32 %v9494_v37, %v5018_v61 }
 0xe4c   :  { %v5172_v8 = vpop.f32.mrf.mxu3 }
 0xe4d   :  { %v5323_v1 = vpack.c.bf16 %v5297_v11, %v5296_v35  ;;  %v5173_v52 = vadd.f32 %v9554_v59, %v5172_v8  ;;  %v5053_v12 = vmax.f32 %v5019_v19, 0.0 }
 0xe4f   :  { %6259 = vmatmul.msk.bf16.gmra.mxu1 %vm118_vm0, %v5323_v1  ;;  %v5234_v62 = vadd.f32 %v5173_v52, %v4613_v16 }
 0xe51   :  { %v5266_v40 = vmax.f32 %v5234_v62, 0.0 }
 0xe52   :  { %v5020_v33 = vpop.f32.mrf.mxu0 }
 0xe53   :  { %v5021_v28 = vadd.f32 %v9494_v37, %v5020_v33  ;;  %v5298_v29 = vmax.f32 %v5266_v40, 0.0  ;;  %v9979_v37 = vmax.f32 %v9304_v22, 0.0 }
 0xe54   :  { %v5174_v27 = vpop.f32.mrf.mxu3 }
 0xe55   :  { %v5054_v41 = vmax.f32 %v5021_v28, 0.0  ;;  %v5175_v44 = vadd.f32 %v9554_v59, %v5174_v27  ;;  %v9984_v27 = vmax.f32 %v9349_v21, 0.0 }
 0xe57   :  { %v5070_v23 = vpack.c.bf16 %v5054_v41, %v5053_v12  ;;  %v5235_v13 = vadd.f32 %v5175_v44, %v4614_v7 }
 0xe59   :  { %v5267_v46 = vmax.f32 %v5235_v13, 0.0  ;;  %6237 = vmatmul.msk.bf16.gmra.mxu3 %vm316_vm1, %v5070_v23 }
 0xe5b   :  { %v5299_v10 = vmax.f32 %v5267_v46, 0.0 }
 0xe5c   :  { %v5177_v58 = vpop.f32.mrf.mxu3 }
 0xe5d   :  { %v5324_v30 = vpack.c.bf16 %v5299_v10, %v5298_v29  ;;  %v5178_v16 = vadd.f32 %v9554_v59, %v5177_v58  ;;  %v9985_v10 = vmax.f32 %v9366_v18, 0.0 }
 0xe5f   :  { %6260 = vmatmul.msk.bf16.gmra.mxu1 %vm118_vm0, %v5324_v30  ;;  %v5236_v42 = vadd.f32 %v5178_v16, %v9979_v37 }
 0xe61   :  { %v5268_v14 = vmax.f32 %v5236_v42, 0.0 }
 0xe63   :  { %v5300_v49 = vmax.f32 %v5268_v14, 0.0 }
 0xe64   :  { %v5179_v53 = vpop.f32.mrf.mxu3 }
 0xe65   :  { %v5180_v38 = vadd.f32 %v9554_v59, %v5179_v53  ;;  %v9986_v53 = vmax.f32 %v9372_v45, 0.0 }
 0xe67   :  { %v5237_v7 = vadd.f32 %v5180_v38, %v9980_v56 }
 0xe69   :  { %v5269_v9 = vmax.f32 %v5237_v7, 0.0 }
 0xe6b   :  { %v5301_v57 = vmax.f32 %v5269_v9, 0.0 }
 0xe6c   :  { %v5182_v36 = vpop.f32.mrf.mxu3 }
 0xe6d   :  { %v5325_v63 = vpack.c.bf16 %v5301_v57, %v5300_v49  ;;  %v5183_v26 = vadd.f32 %v9554_v59, %v5182_v36 }
 0xe6f   :  { %6261 = vmatmul.msk.bf16.gmra.mxu1 %vm118_vm0, %v5325_v63  ;;  %v5238_v22 = vadd.f32 %v5183_v26, %v9981_v55  ;;  %v9987_v63 = vmax.f32 %v9386_v17, 0.0 }
 0xe71   :  { %v5270_v24 = vmax.f32 %v5238_v22, 0.0 }
 0xe73   :  { %v5302_v3 = vmax.f32 %v5270_v24, 0.0  ;;  %v9988_v24 = vmax.f32 %v9392_v48, 0.0 }
 0xe74   :  { %v5184_v50 = vpop.f32.mrf.mxu3 }
 0xe75   :  { %v5185_v4 = vadd.f32 %v9554_v59, %v5184_v50 }
 0xe77   :  { %v5239_v0 = vadd.f32 %v5185_v4, %v9982_v34 }
 0xe79   :  { %v5271_v31 = vmax.f32 %v5239_v0, 0.0 }
 0xe7b   :  { %v5303_v60 = vmax.f32 %v5271_v31, 0.0 }
 0xe7c   :  { %v5187_v61 = vpop.f32.mrf.mxu3  ;;  %v5427_v35 = vpop.f32.mrf.mxu1 }
 0xe7d   :  { %v5326_v11 = vpack.c.bf16 %v5303_v60, %v5302_v3  ;;  %v5428_v43 = vadd.f32 %v9642_v54, %v5427_v35  ;;  %v5188_v8 = vadd.f32 %v9554_v59, %v5187_v61 }
 0xe7f   :  { %5507 = vst [vmem:[#allocation2] sm:$0xff] %v5428_v43  ;;  %6262 = vmatmul.msk.bf16.gmra.mxu1 %vm118_vm0, %v5326_v11  ;;  %v5240_v1 = vadd.f32 %v5188_v8, %v9983_v25  ;;  %v9989_v43 = vmax.f32 %v9406_v15, 0.0 }
 0xe81   :  { %v5272_v28 = vmax.f32 %v5240_v1, 0.0 }
 0xe83   :  { %v5304_v44 = vmax.f32 %v5272_v28, 0.0 }
 0xe84   :  { %v5189_v52 = vpop.f32.mrf.mxu3  ;;  %v5429_v19 = vpop.f32.mrf.mxu1 }
 0xe85   :  { %v5190_v33 = vadd.f32 %v9554_v59, %v5189_v52  ;;  %v5430_v62 = vadd.f32 %v9642_v54, %v5429_v19 }
 0xe87   :  { %v5241_v12 = vadd.f32 %v5190_v33, %v9984_v27  ;;  %5508 = vst [vmem:[#allocation2 + $0x8] sm:$0xff] %v5430_v62  ;;  %v9990_v33 = vmax.f32 %v9412_v51, 0.0 }
 0xe89   :  { %v5273_v41 = vmax.f32 %v5241_v12, 0.0 }
 0xe8b   :  { %v5305_v40 = vmax.f32 %v5273_v41, 0.0 }
 0xe8c   :  { %v5192_v23 = vpop.f32.mrf.mxu3  ;;  %v5432_v13 = vpop.f32.mrf.mxu1 }
 0xe8d   :  { %v5327_v46 = vpack.c.bf16 %v5305_v40, %v5304_v44  ;;  %v5433_v6 = vadd.f32 %v9642_v54, %v5432_v13  ;;  %v5193_v29 = vadd.f32 %v9554_v59, %v5192_v23  ;;  %v9991_v13 = vmax.f32 %v9426_v20, 0.0 }
 0xe8f   :  { %5509 = vst [vmem:[#allocation2 + $0x10] sm:$0xff] %v5433_v6  ;;  %6263 = vmatmul.msk.bf16.gmra.mxu1 %vm118_vm0, %v5327_v46  ;;  %v5242_v58 = vadd.f32 %v5193_v29, %v9985_v10 }
 0xe91   :  { %v5274_v42 = vmax.f32 %v5242_v58, 0.0 }
 0xe93   :  { %v5306_v56 = vmax.f32 %v5274_v42, 0.0 }
 0xe94   :  { %v5194_v30 = vpop.f32.mrf.mxu3  ;;  %v5434_v21 = vpop.f32.mrf.mxu1 }
 0xe95   :  { %v5195_v16 = vadd.f32 %v9554_v59, %v5194_v30  ;;  %v5435_v37 = vadd.f32 %v9642_v54, %v5434_v21  ;;  %v9992_v30 = vmax.f32 %v9432_v32, 0.0 }
 0xe97   :  { %v5243_v38 = vadd.f32 %v5195_v16, %v9986_v53  ;;  %5510 = vst [vmem:[#allocation2 + $0x18] sm:$0xff] %v5435_v37 }
 0xe99   :  { %v5275_v14 = vmax.f32 %v5243_v38, 0.0 }
 0xe9b   :  { %v5307_v7 = vmax.f32 %v5275_v14, 0.0 }
 0xe9c   :  { %v5197_v9 = vpop.f32.mrf.mxu3  ;;  %v5437_v49 = vpop.f32.mrf.mxu1 }
 0xe9d   :  { %v5328_v57 = vpack.c.bf16 %v5307_v7, %v5306_v56  ;;  %v5438_v18 = vadd.f32 %v9642_v54, %v5437_v49  ;;  %v5198_v36 = vadd.f32 %v9554_v59, %v5197_v9  ;;  %v9993_v7 = vmax.f32 %v9449_v39, 0.0 }
 0xe9f   :  { %5511 = vst [vmem:[#allocation2 + $0x20] sm:$0xff] %v5438_v18  ;;  %6264 = vmatmul.msk.bf16.gmra.mxu1 %vm118_vm0, %v5328_v57  ;;  %v5244_v26 = vadd.f32 %v5198_v36, %v9987_v63  ;;  %v9994_v63 = vmax.f32 %v9455_v2, 0.0 }
 0xea1   :  { %v5276_v4 = vmax.f32 %v5244_v26, 0.0 }
 0xea3   :  { %v5308_v31 = vmax.f32 %v5276_v4, 0.0 }
 0xea4   :  { %v5199_v55 = vpop.f32.mrf.mxu3  ;;  %v5439_v45 = vpop.f32.mrf.mxu1 }
 0xea5   :  { %v5200_v22 = vadd.f32 %v9554_v59, %v5199_v55  ;;  %v5440_v50 = vadd.f32 %v9642_v54, %v5439_v45 }
 0xea7   :  { %v5245_v34 = vadd.f32 %v5200_v22, %v9988_v24  ;;  %5512 = vst [vmem:[#allocation2 + $0x28] sm:$0xff] %v5440_v50 }
 0xea9   :  { %v5277_v0 = vmax.f32 %v5245_v34, 0.0 }
 0xeab   :  { %v5309_v3 = vmax.f32 %v5277_v0, 0.0  ;;  %v9995_v0 = vmax.f32 %v9469_v5, 0.0 }
 0xeac   :  { %v5202_v60 = vpop.f32.mrf.mxu3  ;;  %v5442_v61 = vpop.f32.mrf.mxu1 }
 0xead   :  { %v5329_v35 = vpack.c.bf16 %v5309_v3, %v5308_v31  ;;  %v5443_v17 = vadd.f32 %v9642_v54, %v5442_v61  ;;  %v5203_v11 = vadd.f32 %v9554_v59, %v5202_v60 }
 0xeaf   :  { %5513 = vst [vmem:[#allocation2 + $0x30] sm:$0xff] %v5443_v17  ;;  %6265 = vmatmul.msk.bf16.gmra.mxu1 %vm118_vm0, %v5329_v35  ;;  %v5246_v8 = vadd.f32 %v5203_v11, %v9989_v43  ;;  %v9996_v17 = vmax.f32 %v9475_v47, 0.0 }
 0xeb1   :  { %v5278_v19 = vmax.f32 %v5246_v8, 0.0 }
 0xeb3   :  { %v5310_v27 = vmax.f32 %v5278_v19, 0.0 }
 0xeb4   :  { %v5204_v25 = vpop.f32.mrf.mxu3  ;;  %v5444_v48 = vpop.f32.mrf.mxu1 }
 0xeb5   :  { %v5205_v1 = vadd.f32 %v9554_v59, %v5204_v25  ;;  %v5445_v52 = vadd.f32 %v9642_v54, %v5444_v48 }
 0xeb7   :  { %v5247_v62 = vadd.f32 %v5205_v1, %v9990_v33  ;;  %5514 = vst [vmem:[#allocation2 + $0x38] sm:$0xff] %v5445_v52 }
 0xeb9   :  { %v5279_v28 = vmax.f32 %v5247_v62, 0.0 }
 0xebb   :  { %v5311_v12 = vmax.f32 %v5279_v28, 0.0 }
 0xebc   :  { %v5207_v41 = vpop.f32.mrf.mxu3  ;;  %v5447_v44 = vpop.f32.mrf.mxu1 }
 0xebd   :  { %v5330_v40 = vpack.c.bf16 %v5311_v12, %v5310_v27  ;;  %v5448_v15 = vadd.f32 %v9642_v54, %v5447_v44  ;;  %v5208_v23 = vadd.f32 %v9554_v59, %v5207_v41 }
 0xebf   :  { %5515 = vst [vmem:[#allocation2 + $0x40] sm:$0xff] %v5448_v15  ;;  %6266 = vmatmul.msk.bf16.gmra.mxu1 %vm118_vm0, %v5330_v40  ;;  %v5248_v46 = vadd.f32 %v5208_v23, %v9991_v13 }
 0xec1   :  { %v5280_v58 = vmax.f32 %v5248_v46, 0.0 }
 0xec3   :  { %v5312_v37 = vmax.f32 %v5280_v58, 0.0 }
 0xec4   :  { %v5209_v6 = vpop.f32.mrf.mxu3  ;;  %v5449_v51 = vpop.f32.mrf.mxu1 }
 0xec5   :  { %v5210_v29 = vadd.f32 %v9554_v59, %v5209_v6  ;;  %v5450_v10 = vadd.f32 %v9642_v54, %v5449_v51 }
 0xec7   :  { %v5249_v21 = vadd.f32 %v5210_v29, %v9992_v30  ;;  %5516 = vst [vmem:[#allocation2 + $0x48] sm:$0xff] %v5450_v10 }
 0xec9   :  { %v5281_v16 = vmax.f32 %v5249_v21, 0.0 }
 0xecb   :  { %v5313_v42 = vmax.f32 %v5281_v16, 0.0 }
 0xecc   :  { %v5212_v53 = vpop.f32.mrf.mxu3  ;;  %v5452_v38 = vpop.f32.mrf.mxu1 }
 0xecd   :  { %v5331_v14 = vpack.c.bf16 %v5313_v42, %v5312_v37  ;;  %v5453_v20 = vadd.f32 %v9642_v54, %v5452_v38  ;;  %v5213_v56 = vadd.f32 %v9554_v59, %v5212_v53 }
 0xecf   :  { %5517 = vst [vmem:[#allocation2 + $0x50] sm:$0xff] %v5453_v20  ;;  %6267 = vmatmul.msk.bf16.gmra.mxu1 %vm118_vm0, %v5331_v14  ;;  %v5250_v9 = vadd.f32 %v5213_v56, %v9993_v7 }
 0xed1   :  { %v5282_v36 = vmax.f32 %v5250_v9, 0.0 }
 0xed3   :  { %v5314_v45 = vmax.f32 %v5282_v36, 0.0 }
 0xed4   :  { %v5214_v49 = vpop.f32.mrf.mxu3  ;;  %v5454_v32 = vpop.f32.mrf.mxu1 }
 0xed5   :  { %v5215_v57 = vadd.f32 %v9554_v59, %v5214_v49  ;;  %v5455_v18 = vadd.f32 %v9642_v54, %v5454_v32 }
 0xed7   :  { %v5251_v26 = vadd.f32 %v5215_v57, %v9994_v63  ;;  %5518 = vst [vmem:[#allocation2 + $0x58] sm:$0xff] %v5455_v18 }
 0xed9   :  { %v5283_v55 = vmax.f32 %v5251_v26, 0.0 }
 0xedb   :  { %v5315_v22 = vmax.f32 %v5283_v55, 0.0 }
 0xedc   :  { %v5217_v50 = vpop.f32.mrf.mxu3  ;;  %v5457_v4 = vpop.f32.mrf.mxu1 }
 0xedd   :  { %v5332_v24 = vpack.c.bf16 %v5315_v22, %v5314_v45  ;;  %v5458_v39 = vadd.f32 %v9642_v54, %v5457_v4  ;;  %v5218_v34 = vadd.f32 %v9554_v59, %v5217_v50 }
 0xedf   :  { %5519 = vst [vmem:[#allocation2 + $0x60] sm:$0xff] %v5458_v39  ;;  %6268 = vmatmul.msk.bf16.gmra.mxu1 %vm118_vm0, %v5332_v24  ;;  %v5252_v31 = vadd.f32 %v5218_v34, %v9995_v0 }
 0xee1   :  { %v5284_v35 = vmax.f32 %v5252_v31, 0.0 }
 0xee3   :  { %v5316_v8 = vmax.f32 %v5284_v35, 0.0 }
 0xee4   :  { %v5219_v3 = vpop.f32.mrf.mxu3  ;;  %v5459_v2 = vpop.f32.mrf.mxu1 }
 0xee5   :  { %v5220_v60 = vadd.f32 %v9554_v59, %v5219_v3  ;;  %v5460_v61 = vadd.f32 %v9642_v54, %v5459_v2 }
 0xee7   :  { %v5253_v11 = vadd.f32 %v5220_v60, %v9996_v17  ;;  %5520 = vst [vmem:[#allocation2 + $0x68] sm:$0xff] %v5460_v61 }
 0xee9   :  { %v5285_v43 = vmax.f32 %v5253_v11, 0.0 }
 0xeeb   :  { %v5317_v25 = vmax.f32 %v5285_v43, 0.0 }
 0xeec   :  { %v5462_v48 = vpop.f32.mrf.mxu1 }
 0xeed   :  { %v5333_v1 = vpack.c.bf16 %v5317_v25, %v5316_v8  ;;  %v5463_v52 = vadd.f32 %v9642_v54, %v5462_v48 }
 0xeef   :  { %5521 = vst [vmem:[#allocation2 + $0x70] sm:$0xff] %v5463_v52  ;;  %6269 = vmatmul.msk.bf16.gmra.mxu1 %vm118_vm0, %v5333_v1 }
 0xef4   :  { %v5464_v5 = vpop.f32.mrf.mxu1 }
 0xef5   :  { %v5465_v59 = vadd.f32 %v9642_v54, %v5464_v5 }
 0xef7   :  { %5522 = vst [vmem:[#allocation2 + $0x78] sm:$0xff] %v5465_v59 }
 0xefc   :  { %v5467_v19 = vpop.f32.mrf.mxu1 }
 0xefd   :  { %v5468_v33 = vadd.f32 %v9642_v54, %v5467_v19 }
 0xeff   :  { %5523 = vst [vmem:[#allocation2 + $0x80] sm:$0xff] %v5468_v33 }
 0xf04   :  { %v5469_v47 = vpop.f32.mrf.mxu1 }
 0xf05   :  { %v5470_v62 = vadd.f32 %v9642_v54, %v5469_v47 }
 0xf07   :  { %5524 = vst [vmem:[#allocation2 + $0x88] sm:$0xff] %v5470_v62 }
 0xf0c   :  { %v5472_v28 = vpop.f32.mrf.mxu1 }
 0xf0d   :  { %v5473_v27 = vadd.f32 %v9642_v54, %v5472_v28 }
 0xf0f   :  { %5525 = vst [vmem:[#allocation2 + $0x90] sm:$0xff] %v5473_v27 }
 0xf14   :  { %v5474_v12 = vpop.f32.mrf.mxu1 }
 0xf15   :  { %v5475_v41 = vadd.f32 %v9642_v54, %v5474_v12 }
 0xf17   :  { %5526 = vst [vmem:[#allocation2 + $0x98] sm:$0xff] %v5475_v41 }
 0xf1c   :  { %v5477_v44 = vpop.f32.mrf.mxu1 }
 0xf1d   :  { %v5478_v40 = vadd.f32 %v9642_v54, %v5477_v44 }
 0xf1f   :  { %5527 = vst [vmem:[#allocation2 + $0xa0] sm:$0xff] %v5478_v40 }
 0xf24   :  { %v5479_v15 = vpop.f32.mrf.mxu1 }
 0xf25   :  { %v5480_v23 = vadd.f32 %v9642_v54, %v5479_v15 }
 0xf27   :  { %5528 = vst [vmem:[#allocation2 + $0xa8] sm:$0xff] %v5480_v23 }
 0xf2c   :  { %v5482_v13 = vpop.f32.mrf.mxu1 }
 0xf2d   :  { %v5483_v46 = vadd.f32 %v9642_v54, %v5482_v13 }
 0xf2f   :  { %5529 = vst [vmem:[#allocation2 + $0xb0] sm:$0xff] %v5483_v46 }
 0xf34   :  { %v5484_v6 = vpop.f32.mrf.mxu1 }
 0xf35   :  { %v5485_v51 = vadd.f32 %v9642_v54, %v5484_v6 }
 0xf37   :  { %5530 = vst [vmem:[#allocation2 + $0xb8] sm:$0xff] %v5485_v51 }
 0xf3c   :  { %v5487_v29 = vpop.f32.mrf.mxu1 }
 0xf3d   :  { %v5488_v10 = vadd.f32 %v9642_v54, %v5487_v29 }
 0xf3f   :  { %5531 = vst [vmem:[#allocation2 + $0xc0] sm:$0xff] %v5488_v10 }
 0xf44   :  { %v5489_v58 = vpop.f32.mrf.mxu1 }
 0xf45   :  { %v5490_v30 = vadd.f32 %v9642_v54, %v5489_v58 }
 0xf47   :  { %5532 = vst [vmem:[#allocation2 + $0xc8] sm:$0xff] %v5490_v30 }
 0xf4c   :  { %v5492_v21 = vpop.f32.mrf.mxu1 }
 0xf4d   :  { %v5493_v16 = vadd.f32 %v9642_v54, %v5492_v21 }
 0xf4f   :  { %5533 = vst [vmem:[#allocation2 + $0xd0] sm:$0xff] %v5493_v16 }
 0xf54   :  { %v5494_v37 = vpop.f32.mrf.mxu1 }
 0xf55   :  { %v5495_v42 = vadd.f32 %v9642_v54, %v5494_v37 }
 0xf57   :  { %5534 = vst [vmem:[#allocation2 + $0xd8] sm:$0xff] %v5495_v42 }
 0xf5c   :  { %v5497_v53 = vpop.f32.mrf.mxu1 }
 0xf5d   :  { %v5498_v38 = vadd.f32 %v9642_v54, %v5497_v53 }
 0xf5f   :  { %5535 = vst [vmem:[#allocation2 + $0xe0] sm:$0xff] %v5498_v38 }
 0xf64   :  { %v5499_v14 = vpop.f32.mrf.mxu1 }
 0xf65   :  { %v5500_v20 = vadd.f32 %v9642_v54, %v5499_v14 }
 0xf67   :  { %5536 = vst [vmem:[#allocation2 + $0xe8] sm:$0xff] %v5500_v20 }
 0xf6c   :  { %v5502_v56 = vpop.f32.mrf.mxu1 }
 0xf6d   :  { %v5503_v7 = vadd.f32 %v9642_v54, %v5502_v56 }
 0xf6f   :  { %5537 = vst [vmem:[#allocation2 + $0xf0] sm:$0xff] %v5503_v7 }
 0xf74   :  { %v5504_v9 = vpop.f32.mrf.mxu1 }
 0xf75   :  { %v5505_v49 = vadd.f32 %v9642_v54, %v5504_v9 }
 0xf77   :  { %5538 = vst [vmem:[#allocation2 + $0xf8] sm:$0xff] %v5505_v49 }
 0xf78   :  { %5551 = dma.vmem_to_hbm [thread:$0]  %s5544_s24, 4096, %s5546_s27, [#allocation3], %s6383_s28, %s6383_s28, %s6384_s29  }
 0xf79   :  { %6380 = dma.done.wait [#allocation3], 4096  }
 0xf7a   :  { %6381 = vsyncadd [#allocation3], 4294963200 }
 0xf7b   :  { %5556 = vsyncpa [#allocation3], 1 }

</bundles_post_ra>
